<compile_context>
chip_gen: v7x
topology: tpu7x:2x2x1
jax: 0.10.0
libtpu: 0.0.40
codegen_flags: <defaults>
</compile_context>

<pallas_src>
import math
import functools

import jax
import jax.numpy as jnp
from jax import lax
from jax.experimental import pallas as pl
from jax.experimental.pallas import tpu as pltpu


# ---------------------------------------------------------------------------
# Fused kernel: one grid step processes every batch element.
#   x_ref       : (B, C, N)      channels-x-tokens slabs (lane-dense), f32
#   wqkv_t_ref  : (3*H*dph, C)   pre-transposed, scale-folded qkv weight, bf16
#   bqkv_ref    : (3*H*dph, 1)   scale-folded qkv bias, f32
#   wproj_t_ref : (C, H*dph)     pre-transposed proj weight, bf16
#   bproj_ref   : (C, 1)         proj bias, f32
#   o_ref       : (B, C, N)      output slabs (lane-dense store), f32
# ---------------------------------------------------------------------------
def fused_global_attention_kernel(x_ref, wqkv_t_ref, bqkv_ref, wproj_t_ref, bproj_ref,
                                  o_ref, *, batch, heads, dph):
    wqkv_t = wqkv_t_ref[...]          # (3HD, C) bf16, resident
    wproj_t = wproj_t_ref[...]        # (C, HD)  bf16, resident
    bqkv = bqkv_ref[...]              # (3HD, 1) f32
    bproj = bproj_ref[...]            # (C, 1)   f32

    for b in range(batch):            # small static B -> unrolled at trace time
        x_t = x_ref[b].astype(jnp.bfloat16)                       # (C, N)

        # qkv^T = W_qkv^T @ x : standard (M,K)@(K,N) matmul, bf16 in / f32 acc.
        qkv_t = lax.dot_general(
            wqkv_t, x_t, (((1,), (0,)), ((), ())),
            preferred_element_type=jnp.float32) + bqkv            # (3HD, N) f32

        o_heads = []
        for h in range(heads):        # heads is small; unrolled
            base = h * 3 * dph        # row layout matches torch .view/.chunk ordering
            q_t = qkv_t[base:base + dph].astype(jnp.bfloat16)             # (dph, N)
            k_t = qkv_t[base + dph:base + 2 * dph].astype(jnp.bfloat16)   # (dph, N)
            v_t = qkv_t[base + 2 * dph:base + 3 * dph].astype(jnp.bfloat16)

            # S^T[j, i] = sum_d k[j,d] * q[i,d]  (scale already folded into q rows).
            st = lax.dot_general(k_t, q_t, (((0,), (0,)), ((), ())),
                                 preferred_element_type=jnp.float32)      # (Nk, Nq) f32

            # Numerically-stable softmax over the key axis (axis 0), stats in f32.
            m = jnp.max(st, axis=0, keepdims=True)                        # (1, N)
            e = jnp.exp(st - m)                                           # (N, N) f32
            inv = pl.reciprocal(jnp.sum(e, axis=0, keepdims=True),
                                approx=True)                              # (1, N)

            # Unnormalized PV matmul, full-width MXU output: (dph, N) = (dph,N)@(N,N).
            u_t = jnp.dot(v_t, e.astype(jnp.bfloat16),
                          preferred_element_type=jnp.float32)             # (dph, N)
            # Normalize on the small (dph, N) tile instead of the (N, N) tile.
            o_heads.append(u_t * inv)

        # Sublane (axis 0) concat of 8-row tiles: cheap, stays lane-dense.
        o_t = jnp.concatenate(o_heads, axis=0).astype(jnp.bfloat16)       # (HD, N)

        # out^T = W_proj^T @ o^T : standard matmul, lane-dense (C, N) store.
        out_t = lax.dot_general(wproj_t, o_t, (((1,), (0,)), ((), ())),
                                preferred_element_type=jnp.float32) + bproj
        o_ref[b] = out_t.astype(o_ref.dtype)


# ---------------------------------------------------------------------------
# GlobalAttention forward: one pallas_call; glue is free reshapes / tiny weight prep.
# ---------------------------------------------------------------------------
def global_attention(x, params, *, dims, dph, heads):
    # x: (B, C, H, W) -- NCHW like the PyTorch module
    B, C, H, W = x.shape
    assert C == dims
    N = H * W
    hd = heads * dph
    hd3 = 3 * hd

    x_cn = x.reshape(B, C, N)                         # free reshape, no data movement

    # --- one-time weight prep (tiny tensors; constant-folded under jit) -----------
    scale = 1.0 / math.sqrt(dph)
    # Per-head column layout of to_qkv output is [q(dph), k(dph), v(dph)]; fold the
    # softmax scale into the q columns (and q bias entries).
    sv = jnp.tile(
        jnp.concatenate([jnp.full((dph,), scale, jnp.float32),
                         jnp.ones((2 * dph,), jnp.float32)]), heads)      # (3HD,)
    w_qkv_t = (params["w_qkv"] * sv[None, :]).T.astype(jnp.bfloat16)      # (3HD, C)
    b_qkv_c = (params["b_qkv"] * sv).reshape(hd3, 1).astype(jnp.float32)  # (3HD, 1)
    w_proj_t = params["w_proj"].T.astype(jnp.bfloat16)                    # (C, HD)
    b_proj_c = params["b_proj"].reshape(C, 1).astype(jnp.float32)         # (C, 1)

    kern = functools.partial(fused_global_attention_kernel,
                             batch=B, heads=heads, dph=dph)

    out = pl.pallas_call(
        kern,
        out_shape=jax.ShapeDtypeStruct((B, C, N), jnp.float32),
        grid=(1,),                                      # single step: overhead paid once
        in_specs=[
            pl.BlockSpec((B, C, N), lambda i: (0, 0, 0)),   # all batches resident
            pl.BlockSpec((hd3, C), lambda i: (0, 0)),       # W_qkv^T (bf16)
            pl.BlockSpec((hd3, 1), lambda i: (0, 0)),       # b_qkv
            pl.BlockSpec((C, hd), lambda i: (0, 0)),        # W_proj^T (bf16)
            pl.BlockSpec((C, 1), lambda i: (0, 0)),         # b_proj
        ],
        out_specs=pl.BlockSpec((B, C, N), lambda i: (0, 0, 0)),
        compiler_params=pltpu.CompilerParams(
            dimension_semantics=("arbitrary",)),
    )(x_cn, w_qkv_t, b_qkv_c, w_proj_t, b_proj_c)

    return out.reshape(B, C, H, W)                      # free reshape back to NCHW


# ---------------------------------------------------------------------------
# Pure-JAX reference (mirrors the PyTorch module forward)
# ---------------------------------------------------------------------------
def global_attention_ref(x, params, *, dims, dph, heads):
    B, C, H, W = x.shape
    N = H * W
    tokens = jnp.transpose(x, (0, 2, 3, 1)).reshape(B, N, C)
    qkv = tokens @ params["w_qkv"] + params["b_qkv"]
    qkv = qkv.reshape(B, N, heads, 3 * dph).transpose(0, 2, 1, 3)
    q, k, v = jnp.split(qkv, 3, axis=-1)
    attn = jnp.einsum("bhnd,bhmd->bhnm", q, k) / math.sqrt(dph)
    attn = jax.nn.softmax(attn, axis=-1)
    o = jnp.einsum("bhnm,bhmd->bhnd", attn, v)
    o = o.transpose(0, 2, 1, 3).reshape(B, N, heads * dph)
    out = o @ params["w_proj"] + params["b_proj"]
    return out.transpose(0, 2, 1).reshape(B, C, H, W)


if __name__ == "__main__":
    # Small deterministic config consistent with the module:
    # dims = C = 32, dph = 8, heads = 4 (heads*dph = dims), spatial 16x16 -> N = 256
    B, C, H, W = 2, 32, 16, 16
    dims, dph, heads = C, 8, 4

    key = jax.random.PRNGKey(0)
    kx, kwq, kbq, kwp, kbp = jax.random.split(key, 5)

    x = jax.random.normal(kx, (B, C, H, W), dtype=jnp.float32)

    # Parameters stored as (in, out) so y = x @ W + b
    params = {
        "w_qkv": jax.random.normal(kwq, (dims, 3 * dph * heads), jnp.float32) * 0.05,
        "b_qkv": jax.random.normal(kbq, (3 * dph * heads,), jnp.float32) * 0.05,
        "w_proj": jax.random.normal(kwp, (dph * heads, dims), jnp.float32) * 0.05,
        "b_proj": jax.random.normal(kbp, (dims,), jnp.float32) * 0.05,
    }

    out = global_attention(x, params, dims=dims, dph=dph, heads=heads)
    out = jax.block_until_ready(out)

    ref = global_attention_ref(x, params, dims=dims, dph=dph, heads=heads)
    assert out.shape == (B, C, H, W)
    # Tolerance accounts for bf16 MXU operands + EUP approximate reciprocal; the f32
    # reference path differs at the few-1e-4 level at these magnitudes.
    err = float(jnp.max(jnp.abs(out - ref)))
    assert jnp.allclose(out, ref, atol=2e-3, rtol=2e-3), err

    print("KERNEL_OK")
</pallas_src>

<mosaic_0001>
module attributes {stable_mosaic.version = 11 : i64} {
  func.func @fused_global_attention_kernel(%arg0: i32, %arg1: memref<2x32x256xf32, #tpu.memory_space<vmem>>, %arg2: memref<96x32xbf16, #tpu.memory_space<vmem>>, %arg3: memref<96x1xf32, #tpu.memory_space<vmem>>, %arg4: memref<32x32xbf16, #tpu.memory_space<vmem>>, %arg5: memref<32x1xf32, #tpu.memory_space<vmem>>, %arg6: memref<2x32x256xf32, #tpu.memory_space<vmem>>) attributes {dimension_semantics = [#tpu.dimension_semantics<arbitrary>], iteration_bounds = array<i64: 1>, scalar_prefetch = 0 : i64, scratch_operands = 0 : i64, tpu.core_type = #tpu.core_type<tc>, window_params = [{pipeline_mode = #tpu.pipeline_mode<synchronous>, transform_indices = @transform_0, window_bounds = array<i64: 2, 32, 256>}, {pipeline_mode = #tpu.pipeline_mode<synchronous>, transform_indices = @transform_1, window_bounds = array<i64: 96, 32>}, {pipeline_mode = #tpu.pipeline_mode<synchronous>, transform_indices = @transform_2, window_bounds = array<i64: 96, 1>}, {pipeline_mode = #tpu.pipeline_mode<synchronous>, transform_indices = @transform_3, window_bounds = array<i64: 32, 32>}, {pipeline_mode = #tpu.pipeline_mode<synchronous>, transform_indices = @transform_4, window_bounds = array<i64: 32, 1>}, {pipeline_mode = #tpu.pipeline_mode<synchronous>, transform_indices = @transform_5, window_bounds = array<i64: 2, 32, 256>}]} {
    %c0 = arith.constant 0 : index
    %c0_0 = arith.constant 0 : index
    %0 = vector.load %arg2[%c0, %c0_0] : memref<96x32xbf16, #tpu.memory_space<vmem>>, vector<96x32xbf16>
    %c0_1 = arith.constant 0 : index
    %c0_2 = arith.constant 0 : index
    %1 = vector.load %arg4[%c0_1, %c0_2] : memref<32x32xbf16, #tpu.memory_space<vmem>>, vector<32x32xbf16>
    %c0_3 = arith.constant 0 : index
    %c0_4 = arith.constant 0 : index
    %2 = vector.load %arg3[%c0_3, %c0_4] : memref<96x1xf32, #tpu.memory_space<vmem>>, vector<96x1xf32>
    %c0_5 = arith.constant 0 : index
    %c0_6 = arith.constant 0 : index
    %3 = vector.load %arg5[%c0_5, %c0_6] : memref<32x1xf32, #tpu.memory_space<vmem>>, vector<32x1xf32>
    %c0_7 = arith.constant 0 : index
    %c0_8 = arith.constant 0 : index
    %c0_9 = arith.constant 0 : index
    %4 = vector.load %arg1[%c0_7, %c0_8, %c0_9] : memref<2x32x256xf32, #tpu.memory_space<vmem>>, vector<1x32x256xf32>
    %5 = vector.shape_cast %4 : vector<1x32x256xf32> to vector<32x256xf32>
    %6 = arith.truncf %5 : vector<32x256xf32> to vector<32x256xbf16>
    %cst = arith.constant dense<0.000000e+00> : vector<96x256xf32>
    %7 = tpu.matmul %0, %6, %cst {dimension_numbers = #tpu.dot_dimension_numbers<[1], [0], [0], [1], [0, 0, 1, 1], [], []>} : vector<96x32xbf16>, vector<32x256xbf16>, vector<96x256xf32> -> vector<96x256xf32>
    %8 = vector.broadcast %2 : vector<96x1xf32> to vector<96x256xf32>
    %9 = arith.addf %7, %8 : vector<96x256xf32>
    %10 = vector.extract_strided_slice %9 {offsets = [0, 0], sizes = [8, 256], strides = [1, 1]} : vector<96x256xf32> to vector<8x256xf32>
    %11 = arith.truncf %10 : vector<8x256xf32> to vector<8x256xbf16>
    %12 = vector.extract_strided_slice %9 {offsets = [8, 0], sizes = [8, 256], strides = [1, 1]} : vector<96x256xf32> to vector<8x256xf32>
    %13 = arith.truncf %12 : vector<8x256xf32> to vector<8x256xbf16>
    %14 = vector.extract_strided_slice %9 {offsets = [16, 0], sizes = [8, 256], strides = [1, 1]} : vector<96x256xf32> to vector<8x256xf32>
    %15 = arith.truncf %14 : vector<8x256xf32> to vector<8x256xbf16>
    %cst_10 = arith.constant dense<0.000000e+00> : vector<256x256xf32>
    %16 = tpu.matmul %13, %11, %cst_10 {dimension_numbers = #tpu.dot_dimension_numbers<[0], [0], [1], [1], [0, 1, 1, 1], [], []>} : vector<8x256xbf16>, vector<8x256xbf16>, vector<256x256xf32> -> vector<256x256xf32>
    %cst_11 = arith.constant dense<0xFF800000> : vector<256xf32>
    %17 = vector.multi_reduction <maximumf>, %16, %cst_11 [0] : vector<256x256xf32> to vector<256xf32>
    %18 = vector.shape_cast %17 : vector<256xf32> to vector<1x256xf32>
    %19 = vector.broadcast %18 : vector<1x256xf32> to vector<256x256xf32>
    %20 = arith.subf %16, %19 : vector<256x256xf32>
    %21 = math.exp %20 : vector<256x256xf32>
    %cst_12 = arith.constant dense<0.000000e+00> : vector<256xf32>
    %22 = vector.multi_reduction <add>, %21, %cst_12 [0] : vector<256x256xf32> to vector<256xf32>
    %23 = vector.shape_cast %22 : vector<256xf32> to vector<1x256xf32>
    %24 = tpu.reciprocal %23 {approx = true} : vector<1x256xf32> -> vector<1x256xf32>
    %25 = arith.truncf %21 : vector<256x256xf32> to vector<256x256xbf16>
    %cst_13 = arith.constant dense<0.000000e+00> : vector<8x256xf32>
    %26 = tpu.matmul %15, %25, %cst_13 {dimension_numbers = #tpu.dot_dimension_numbers<[1], [0], [0], [1], [0, 0, 1, 1], [], []>} : vector<8x256xbf16>, vector<256x256xbf16>, vector<8x256xf32> -> vector<8x256xf32>
    %27 = vector.broadcast %24 : vector<1x256xf32> to vector<8x256xf32>
    %28 = arith.mulf %26, %27 : vector<8x256xf32>
    %29 = vector.extract_strided_slice %9 {offsets = [24, 0], sizes = [8, 256], strides = [1, 1]} : vector<96x256xf32> to vector<8x256xf32>
    %30 = arith.truncf %29 : vector<8x256xf32> to vector<8x256xbf16>
    %31 = vector.extract_strided_slice %9 {offsets = [32, 0], sizes = [8, 256], strides = [1, 1]} : vector<96x256xf32> to vector<8x256xf32>
    %32 = arith.truncf %31 : vector<8x256xf32> to vector<8x256xbf16>
    %33 = vector.extract_strided_slice %9 {offsets = [40, 0], sizes = [8, 256], strides = [1, 1]} : vector<96x256xf32> to vector<8x256xf32>
    %34 = arith.truncf %33 : vector<8x256xf32> to vector<8x256xbf16>
    %cst_14 = arith.constant dense<0.000000e+00> : vector<256x256xf32>
    %35 = tpu.matmul %32, %30, %cst_14 {dimension_numbers = #tpu.dot_dimension_numbers<[0], [0], [1], [1], [0, 1, 1, 1], [], []>} : vector<8x256xbf16>, vector<8x256xbf16>, vector<256x256xf32> -> vector<256x256xf32>
    %cst_15 = arith.constant dense<0xFF800000> : vector<256xf32>
    %36 = vector.multi_reduction <maximumf>, %35, %cst_15 [0] : vector<256x256xf32> to vector<256xf32>
    %37 = vector.shape_cast %36 : vector<256xf32> to vector<1x256xf32>
    %38 = vector.broadcast %37 : vector<1x256xf32> to vector<256x256xf32>
    %39 = arith.subf %35, %38 : vector<256x256xf32>
    %40 = math.exp %39 : vector<256x256xf32>
    %cst_16 = arith.constant dense<0.000000e+00> : vector<256xf32>
    %41 = vector.multi_reduction <add>, %40, %cst_16 [0] : vector<256x256xf32> to vector<256xf32>
    %42 = vector.shape_cast %41 : vector<256xf32> to vector<1x256xf32>
    %43 = tpu.reciprocal %42 {approx = true} : vector<1x256xf32> -> vector<1x256xf32>
    %44 = arith.truncf %40 : vector<256x256xf32> to vector<256x256xbf16>
    %cst_17 = arith.constant dense<0.000000e+00> : vector<8x256xf32>
    %45 = tpu.matmul %34, %44, %cst_17 {dimension_numbers = #tpu.dot_dimension_numbers<[1], [0], [0], [1], [0, 0, 1, 1], [], []>} : vector<8x256xbf16>, vector<256x256xbf16>, vector<8x256xf32> -> vector<8x256xf32>
    %46 = vector.broadcast %43 : vector<1x256xf32> to vector<8x256xf32>
    %47 = arith.mulf %45, %46 : vector<8x256xf32>
    %48 = vector.extract_strided_slice %9 {offsets = [48, 0], sizes = [8, 256], strides = [1, 1]} : vector<96x256xf32> to vector<8x256xf32>
    %49 = arith.truncf %48 : vector<8x256xf32> to vector<8x256xbf16>
    %50 = vector.extract_strided_slice %9 {offsets = [56, 0], sizes = [8, 256], strides = [1, 1]} : vector<96x256xf32> to vector<8x256xf32>
    %51 = arith.truncf %50 : vector<8x256xf32> to vector<8x256xbf16>
    %52 = vector.extract_strided_slice %9 {offsets = [64, 0], sizes = [8, 256], strides = [1, 1]} : vector<96x256xf32> to vector<8x256xf32>
    %53 = arith.truncf %52 : vector<8x256xf32> to vector<8x256xbf16>
    %cst_18 = arith.constant dense<0.000000e+00> : vector<256x256xf32>
    %54 = tpu.matmul %51, %49, %cst_18 {dimension_numbers = #tpu.dot_dimension_numbers<[0], [0], [1], [1], [0, 1, 1, 1], [], []>} : vector<8x256xbf16>, vector<8x256xbf16>, vector<256x256xf32> -> vector<256x256xf32>
    %cst_19 = arith.constant dense<0xFF800000> : vector<256xf32>
    %55 = vector.multi_reduction <maximumf>, %54, %cst_19 [0] : vector<256x256xf32> to vector<256xf32>
    %56 = vector.shape_cast %55 : vector<256xf32> to vector<1x256xf32>
    %57 = vector.broadcast %56 : vector<1x256xf32> to vector<256x256xf32>
    %58 = arith.subf %54, %57 : vector<256x256xf32>
    %59 = math.exp %58 : vector<256x256xf32>
    %cst_20 = arith.constant dense<0.000000e+00> : vector<256xf32>
    %60 = vector.multi_reduction <add>, %59, %cst_20 [0] : vector<256x256xf32> to vector<256xf32>
    %61 = vector.shape_cast %60 : vector<256xf32> to vector<1x256xf32>
    %62 = tpu.reciprocal %61 {approx = true} : vector<1x256xf32> -> vector<1x256xf32>
    %63 = arith.truncf %59 : vector<256x256xf32> to vector<256x256xbf16>
    %cst_21 = arith.constant dense<0.000000e+00> : vector<8x256xf32>
    %64 = tpu.matmul %53, %63, %cst_21 {dimension_numbers = #tpu.dot_dimension_numbers<[1], [0], [0], [1], [0, 0, 1, 1], [], []>} : vector<8x256xbf16>, vector<256x256xbf16>, vector<8x256xf32> -> vector<8x256xf32>
    %65 = vector.broadcast %62 : vector<1x256xf32> to vector<8x256xf32>
    %66 = arith.mulf %64, %65 : vector<8x256xf32>
    %67 = vector.extract_strided_slice %9 {offsets = [72, 0], sizes = [8, 256], strides = [1, 1]} : vector<96x256xf32> to vector<8x256xf32>
    %68 = arith.truncf %67 : vector<8x256xf32> to vector<8x256xbf16>
    %69 = vector.extract_strided_slice %9 {offsets = [80, 0], sizes = [8, 256], strides = [1, 1]} : vector<96x256xf32> to vector<8x256xf32>
    %70 = arith.truncf %69 : vector<8x256xf32> to vector<8x256xbf16>
    %71 = vector.extract_strided_slice %9 {offsets = [88, 0], sizes = [8, 256], strides = [1, 1]} : vector<96x256xf32> to vector<8x256xf32>
    %72 = arith.truncf %71 : vector<8x256xf32> to vector<8x256xbf16>
    %cst_22 = arith.constant dense<0.000000e+00> : vector<256x256xf32>
    %73 = tpu.matmul %70, %68, %cst_22 {dimension_numbers = #tpu.dot_dimension_numbers<[0], [0], [1], [1], [0, 1, 1, 1], [], []>} : vector<8x256xbf16>, vector<8x256xbf16>, vector<256x256xf32> -> vector<256x256xf32>
    %cst_23 = arith.constant dense<0xFF800000> : vector<256xf32>
    %74 = vector.multi_reduction <maximumf>, %73, %cst_23 [0] : vector<256x256xf32> to vector<256xf32>
    %75 = vector.shape_cast %74 : vector<256xf32> to vector<1x256xf32>
    %76 = vector.broadcast %75 : vector<1x256xf32> to vector<256x256xf32>
    %77 = arith.subf %73, %76 : vector<256x256xf32>
    %78 = math.exp %77 : vector<256x256xf32>
    %cst_24 = arith.constant dense<0.000000e+00> : vector<256xf32>
    %79 = vector.multi_reduction <add>, %78, %cst_24 [0] : vector<256x256xf32> to vector<256xf32>
    %80 = vector.shape_cast %79 : vector<256xf32> to vector<1x256xf32>
    %81 = tpu.reciprocal %80 {approx = true} : vector<1x256xf32> -> vector<1x256xf32>
    %82 = arith.truncf %78 : vector<256x256xf32> to vector<256x256xbf16>
    %cst_25 = arith.constant dense<0.000000e+00> : vector<8x256xf32>
    %83 = tpu.matmul %72, %82, %cst_25 {dimension_numbers = #tpu.dot_dimension_numbers<[1], [0], [0], [1], [0, 0, 1, 1], [], []>} : vector<8x256xbf16>, vector<256x256xbf16>, vector<8x256xf32> -> vector<8x256xf32>
    %84 = vector.broadcast %81 : vector<1x256xf32> to vector<8x256xf32>
    %85 = arith.mulf %83, %84 : vector<8x256xf32>
    %86 = tpu.concatenate %28, %47, %66, %85 in 0 : vector<8x256xf32>, vector<8x256xf32>, vector<8x256xf32>, vector<8x256xf32> -> vector<32x256xf32>
    %87 = arith.truncf %86 : vector<32x256xf32> to vector<32x256xbf16>
    %cst_26 = arith.constant dense<0.000000e+00> : vector<32x256xf32>
    %88 = tpu.matmul %1, %87, %cst_26 {dimension_numbers = #tpu.dot_dimension_numbers<[1], [0], [0], [1], [0, 0, 1, 1], [], []>} : vector<32x32xbf16>, vector<32x256xbf16>, vector<32x256xf32> -> vector<32x256xf32>
    %89 = vector.broadcast %3 : vector<32x1xf32> to vector<32x256xf32>
    %90 = arith.addf %88, %89 : vector<32x256xf32>
    %c0_27 = arith.constant 0 : index
    %c0_28 = arith.constant 0 : index
    %c0_29 = arith.constant 0 : index
    %91 = vector.load %arg6[%c0_27, %c0_28, %c0_29] : memref<2x32x256xf32, #tpu.memory_space<vmem>>, vector<1x32x256xf32>
    %92 = vector.shape_cast %91 : vector<1x32x256xf32> to vector<32x256xf32>
    %93 = vector.shape_cast %90 : vector<32x256xf32> to vector<1x32x256xf32>
    tpu.vector_store %arg6[%c0_27, %c0_28, %c0_29], %93 {strides = array<i32>} : memref<2x32x256xf32, #tpu.memory_space<vmem>>, vector<1x32x256xf32>,
    %c1 = arith.constant 1 : index
    %c0_30 = arith.constant 0 : index
    %c0_31 = arith.constant 0 : index
    %94 = vector.load %arg1[%c1, %c0_30, %c0_31] : memref<2x32x256xf32, #tpu.memory_space<vmem>>, vector<1x32x256xf32>
    %95 = vector.shape_cast %94 : vector<1x32x256xf32> to vector<32x256xf32>
    %96 = arith.truncf %95 : vector<32x256xf32> to vector<32x256xbf16>
    %cst_32 = arith.constant dense<0.000000e+00> : vector<96x256xf32>
    %97 = tpu.matmul %0, %96, %cst_32 {dimension_numbers = #tpu.dot_dimension_numbers<[1], [0], [0], [1], [0, 0, 1, 1], [], []>} : vector<96x32xbf16>, vector<32x256xbf16>, vector<96x256xf32> -> vector<96x256xf32>
    %98 = vector.broadcast %2 : vector<96x1xf32> to vector<96x256xf32>
    %99 = arith.addf %97, %98 : vector<96x256xf32>
    %100 = vector.extract_strided_slice %99 {offsets = [0, 0], sizes = [8, 256], strides = [1, 1]} : vector<96x256xf32> to vector<8x256xf32>
    %101 = arith.truncf %100 : vector<8x256xf32> to vector<8x256xbf16>
    %102 = vector.extract_strided_slice %99 {offsets = [8, 0], sizes = [8, 256], strides = [1, 1]} : vector<96x256xf32> to vector<8x256xf32>
    %103 = arith.truncf %102 : vector<8x256xf32> to vector<8x256xbf16>
    %104 = vector.extract_strided_slice %99 {offsets = [16, 0], sizes = [8, 256], strides = [1, 1]} : vector<96x256xf32> to vector<8x256xf32>
    %105 = arith.truncf %104 : vector<8x256xf32> to vector<8x256xbf16>
    %cst_33 = arith.constant dense<0.000000e+00> : vector<256x256xf32>
    %106 = tpu.matmul %103, %101, %cst_33 {dimension_numbers = #tpu.dot_dimension_numbers<[0], [0], [1], [1], [0, 1, 1, 1], [], []>} : vector<8x256xbf16>, vector<8x256xbf16>, vector<256x256xf32> -> vector<256x256xf32>
    %cst_34 = arith.constant dense<0xFF800000> : vector<256xf32>
    %107 = vector.multi_reduction <maximumf>, %106, %cst_34 [0] : vector<256x256xf32> to vector<256xf32>
    %108 = vector.shape_cast %107 : vector<256xf32> to vector<1x256xf32>
    %109 = vector.broadcast %108 : vector<1x256xf32> to vector<256x256xf32>
    %110 = arith.subf %106, %109 : vector<256x256xf32>
    %111 = math.exp %110 : vector<256x256xf32>
    %cst_35 = arith.constant dense<0.000000e+00> : vector<256xf32>
    %112 = vector.multi_reduction <add>, %111, %cst_35 [0] : vector<256x256xf32> to vector<256xf32>
    %113 = vector.shape_cast %112 : vector<256xf32> to vector<1x256xf32>
    %114 = tpu.reciprocal %113 {approx = true} : vector<1x256xf32> -> vector<1x256xf32>
    %115 = arith.truncf %111 : vector<256x256xf32> to vector<256x256xbf16>
    %cst_36 = arith.constant dense<0.000000e+00> : vector<8x256xf32>
    %116 = tpu.matmul %105, %115, %cst_36 {dimension_numbers = #tpu.dot_dimension_numbers<[1], [0], [0], [1], [0, 0, 1, 1], [], []>} : vector<8x256xbf16>, vector<256x256xbf16>, vector<8x256xf32> -> vector<8x256xf32>
    %117 = vector.broadcast %114 : vector<1x256xf32> to vector<8x256xf32>
    %118 = arith.mulf %116, %117 : vector<8x256xf32>
    %119 = vector.extract_strided_slice %99 {offsets = [24, 0], sizes = [8, 256], strides = [1, 1]} : vector<96x256xf32> to vector<8x256xf32>
    %120 = arith.truncf %119 : vector<8x256xf32> to vector<8x256xbf16>
    %121 = vector.extract_strided_slice %99 {offsets = [32, 0], sizes = [8, 256], strides = [1, 1]} : vector<96x256xf32> to vector<8x256xf32>
    %122 = arith.truncf %121 : vector<8x256xf32> to vector<8x256xbf16>
    %123 = vector.extract_strided_slice %99 {offsets = [40, 0], sizes = [8, 256], strides = [1, 1]} : vector<96x256xf32> to vector<8x256xf32>
    %124 = arith.truncf %123 : vector<8x256xf32> to vector<8x256xbf16>
    %cst_37 = arith.constant dense<0.000000e+00> : vector<256x256xf32>
    %125 = tpu.matmul %122, %120, %cst_37 {dimension_numbers = #tpu.dot_dimension_numbers<[0], [0], [1], [1], [0, 1, 1, 1], [], []>} : vector<8x256xbf16>, vector<8x256xbf16>, vector<256x256xf32> -> vector<256x256xf32>
    %cst_38 = arith.constant dense<0xFF800000> : vector<256xf32>
    %126 = vector.multi_reduction <maximumf>, %125, %cst_38 [0] : vector<256x256xf32> to vector<256xf32>
    %127 = vector.shape_cast %126 : vector<256xf32> to vector<1x256xf32>
    %128 = vector.broadcast %127 : vector<1x256xf32> to vector<256x256xf32>
    %129 = arith.subf %125, %128 : vector<256x256xf32>
    %130 = math.exp %129 : vector<256x256xf32>
    %cst_39 = arith.constant dense<0.000000e+00> : vector<256xf32>
    %131 = vector.multi_reduction <add>, %130, %cst_39 [0] : vector<256x256xf32> to vector<256xf32>
    %132 = vector.shape_cast %131 : vector<256xf32> to vector<1x256xf32>
    %133 = tpu.reciprocal %132 {approx = true} : vector<1x256xf32> -> vector<1x256xf32>
    %134 = arith.truncf %130 : vector<256x256xf32> to vector<256x256xbf16>
    %cst_40 = arith.constant dense<0.000000e+00> : vector<8x256xf32>
    %135 = tpu.matmul %124, %134, %cst_40 {dimension_numbers = #tpu.dot_dimension_numbers<[1], [0], [0], [1], [0, 0, 1, 1], [], []>} : vector<8x256xbf16>, vector<256x256xbf16>, vector<8x256xf32> -> vector<8x256xf32>
    %136 = vector.broadcast %133 : vector<1x256xf32> to vector<8x256xf32>
    %137 = arith.mulf %135, %136 : vector<8x256xf32>
    %138 = vector.extract_strided_slice %99 {offsets = [48, 0], sizes = [8, 256], strides = [1, 1]} : vector<96x256xf32> to vector<8x256xf32>
    %139 = arith.truncf %138 : vector<8x256xf32> to vector<8x256xbf16>
    %140 = vector.extract_strided_slice %99 {offsets = [56, 0], sizes = [8, 256], strides = [1, 1]} : vector<96x256xf32> to vector<8x256xf32>
    %141 = arith.truncf %140 : vector<8x256xf32> to vector<8x256xbf16>
    %142 = vector.extract_strided_slice %99 {offsets = [64, 0], sizes = [8, 256], strides = [1, 1]} : vector<96x256xf32> to vector<8x256xf32>
    %143 = arith.truncf %142 : vector<8x256xf32> to vector<8x256xbf16>
    %cst_41 = arith.constant dense<0.000000e+00> : vector<256x256xf32>
    %144 = tpu.matmul %141, %139, %cst_41 {dimension_numbers = #tpu.dot_dimension_numbers<[0], [0], [1], [1], [0, 1, 1, 1], [], []>} : vector<8x256xbf16>, vector<8x256xbf16>, vector<256x256xf32> -> vector<256x256xf32>
    %cst_42 = arith.constant dense<0xFF800000> : vector<256xf32>
    %145 = vector.multi_reduction <maximumf>, %144, %cst_42 [0] : vector<256x256xf32> to vector<256xf32>
    %146 = vector.shape_cast %145 : vector<256xf32> to vector<1x256xf32>
    %147 = vector.broadcast %146 : vector<1x256xf32> to vector<256x256xf32>
    %148 = arith.subf %144, %147 : vector<256x256xf32>
    %149 = math.exp %148 : vector<256x256xf32>
    %cst_43 = arith.constant dense<0.000000e+00> : vector<256xf32>
    %150 = vector.multi_reduction <add>, %149, %cst_43 [0] : vector<256x256xf32> to vector<256xf32>
    %151 = vector.shape_cast %150 : vector<256xf32> to vector<1x256xf32>
    %152 = tpu.reciprocal %151 {approx = true} : vector<1x256xf32> -> vector<1x256xf32>
    %153 = arith.truncf %149 : vector<256x256xf32> to vector<256x256xbf16>
    %cst_44 = arith.constant dense<0.000000e+00> : vector<8x256xf32>
    %154 = tpu.matmul %143, %153, %cst_44 {dimension_numbers = #tpu.dot_dimension_numbers<[1], [0], [0], [1], [0, 0, 1, 1], [], []>} : vector<8x256xbf16>, vector<256x256xbf16>, vector<8x256xf32> -> vector<8x256xf32>
    %155 = vector.broadcast %152 : vector<1x256xf32> to vector<8x256xf32>
    %156 = arith.mulf %154, %155 : vector<8x256xf32>
    %157 = vector.extract_strided_slice %99 {offsets = [72, 0], sizes = [8, 256], strides = [1, 1]} : vector<96x256xf32> to vector<8x256xf32>
    %158 = arith.truncf %157 : vector<8x256xf32> to vector<8x256xbf16>
    %159 = vector.extract_strided_slice %99 {offsets = [80, 0], sizes = [8, 256], strides = [1, 1]} : vector<96x256xf32> to vector<8x256xf32>
    %160 = arith.truncf %159 : vector<8x256xf32> to vector<8x256xbf16>
    %161 = vector.extract_strided_slice %99 {offsets = [88, 0], sizes = [8, 256], strides = [1, 1]} : vector<96x256xf32> to vector<8x256xf32>
    %162 = arith.truncf %161 : vector<8x256xf32> to vector<8x256xbf16>
    %cst_45 = arith.constant dense<0.000000e+00> : vector<256x256xf32>
    %163 = tpu.matmul %160, %158, %cst_45 {dimension_numbers = #tpu.dot_dimension_numbers<[0], [0], [1], [1], [0, 1, 1, 1], [], []>} : vector<8x256xbf16>, vector<8x256xbf16>, vector<256x256xf32> -> vector<256x256xf32>
    %cst_46 = arith.constant dense<0xFF800000> : vector<256xf32>
    %164 = vector.multi_reduction <maximumf>, %163, %cst_46 [0] : vector<256x256xf32> to vector<256xf32>
    %165 = vector.shape_cast %164 : vector<256xf32> to vector<1x256xf32>
    %166 = vector.broadcast %165 : vector<1x256xf32> to vector<256x256xf32>
    %167 = arith.subf %163, %166 : vector<256x256xf32>
    %168 = math.exp %167 : vector<256x256xf32>
    %cst_47 = arith.constant dense<0.000000e+00> : vector<256xf32>
    %169 = vector.multi_reduction <add>, %168, %cst_47 [0] : vector<256x256xf32> to vector<256xf32>
    %170 = vector.shape_cast %169 : vector<256xf32> to vector<1x256xf32>
    %171 = tpu.reciprocal %170 {approx = true} : vector<1x256xf32> -> vector<1x256xf32>
    %172 = arith.truncf %168 : vector<256x256xf32> to vector<256x256xbf16>
    %cst_48 = arith.constant dense<0.000000e+00> : vector<8x256xf32>
    %173 = tpu.matmul %162, %172, %cst_48 {dimension_numbers = #tpu.dot_dimension_numbers<[1], [0], [0], [1], [0, 0, 1, 1], [], []>} : vector<8x256xbf16>, vector<256x256xbf16>, vector<8x256xf32> -> vector<8x256xf32>
    %174 = vector.broadcast %171 : vector<1x256xf32> to vector<8x256xf32>
    %175 = arith.mulf %173, %174 : vector<8x256xf32>
    %176 = tpu.concatenate %118, %137, %156, %175 in 0 : vector<8x256xf32>, vector<8x256xf32>, vector<8x256xf32>, vector<8x256xf32> -> vector<32x256xf32>
    %177 = arith.truncf %176 : vector<32x256xf32> to vector<32x256xbf16>
    %cst_49 = arith.constant dense<0.000000e+00> : vector<32x256xf32>
    %178 = tpu.matmul %1, %177, %cst_49 {dimension_numbers = #tpu.dot_dimension_numbers<[1], [0], [0], [1], [0, 0, 1, 1], [], []>} : vector<32x32xbf16>, vector<32x256xbf16>, vector<32x256xf32> -> vector<32x256xf32>
    %179 = vector.broadcast %3 : vector<32x1xf32> to vector<32x256xf32>
    %180 = arith.addf %178, %179 : vector<32x256xf32>
    %c1_50 = arith.constant 1 : index
    %c0_51 = arith.constant 0 : index
    %c0_52 = arith.constant 0 : index
    %181 = vector.load %arg6[%c1_50, %c0_51, %c0_52] : memref<2x32x256xf32, #tpu.memory_space<vmem>>, vector<1x32x256xf32>
    %182 = vector.shape_cast %181 : vector<1x32x256xf32> to vector<32x256xf32>
    %183 = vector.shape_cast %180 : vector<32x256xf32> to vector<1x32x256xf32>
    tpu.vector_store %arg6[%c1_50, %c0_51, %c0_52], %183 {strides = array<i32>} : memref<2x32x256xf32, #tpu.memory_space<vmem>>, vector<1x32x256xf32>,
    return
  }
  func.func @transform_0(%arg0: i32) -> (i32, i32, i32) {
    %c0_i32 = arith.constant 0 : i32
    %c0_i32_0 = arith.constant 0 : i32
    %c0_i32_1 = arith.constant 0 : i32
    %c0_i32_2 = arith.constant 0 : i32
    return %c0_i32, %c0_i32_0, %c0_i32_1 : i32, i32, i32
  }
  func.func @transform_1(%arg0: i32) -> (i32, i32) {
    %c0_i32 = arith.constant 0 : i32
    %c0_i32_0 = arith.constant 0 : i32
    %c0_i32_1 = arith.constant 0 : i32
    return %c0_i32, %c0_i32_0 : i32, i32
  }
  func.func @transform_2(%arg0: i32) -> (i32, i32) {
    %c0_i32 = arith.constant 0 : i32
    %c0_i32_0 = arith.constant 0 : i32
    %c0_i32_1 = arith.constant 0 : i32
    return %c0_i32, %c0_i32_0 : i32, i32
  }
  func.func @transform_3(%arg0: i32) -> (i32, i32) {
    %c0_i32 = arith.constant 0 : i32
    %c0_i32_0 = arith.constant 0 : i32
    %c0_i32_1 = arith.constant 0 : i32
    return %c0_i32, %c0_i32_0 : i32, i32
  }
  func.func @transform_4(%arg0: i32) -> (i32, i32) {
    %c0_i32 = arith.constant 0 : i32
    %c0_i32_0 = arith.constant 0 : i32
    %c0_i32_1 = arith.constant 0 : i32
    return %c0_i32, %c0_i32_0 : i32, i32
  }
  func.func @transform_5(%arg0: i32) -> (i32, i32, i32) {
    %c0_i32 = arith.constant 0 : i32
    %c0_i32_0 = arith.constant 0 : i32
    %c0_i32_1 = arith.constant 0 : i32
    %c0_i32_2 = arith.constant 0 : i32
    return %c0_i32, %c0_i32_0, %c0_i32_1 : i32, i32, i32
  }
}

</mosaic_0001>

<bundles_post_ra>
// kernel: tpu_custom_call.1
= control target key start
LH: loop header
LB: loop body
LE: loop exit
PB: predicated region body
PF: predicated region fallthrough
CT: control target
= control target key end

     0   :  { %v13501_v7 = vmov 0   ;;  %vm156_vm0 = vcmask 261120   ;;  %s13495_s0 = inlined_call_operand.vmem [shape: f32[2,32,256], index: 0, kind: input, shape index: {}]   ;;  %s13496_s1 = inlined_call_operand.vmem [shape: bf16[96,32], index: 1, kind: input, shape index: {}]   ;;  %s13497_s2 = inlined_call_operand.vmem [shape: f32[96,1], index: 2, kind: input, shape index: {}]   ;;  %s13498_s3 = inlined_call_operand.vmem [shape: bf16[32,32], index: 3, kind: input, shape index: {}]   ;;  %s13499_s4 = inlined_call_operand.vmem [shape: f32[32,1], index: 4, kind: input, shape index: {}]   ;;  %s13500_s5 = inlined_call_operand.hbm [shape: f32[2,32,256], index: 5, kind: output, shape index: {}]  }
   0x1   :  { %v55_v0 = vld [vmem:[%s13495_s0 + $0x8] sm:$0xff]  ;;  %v57_v1 = vld [vmem:[%s13495_s0 + $0x18] sm:$0xff]  ;;  %v54_v2 = vld [vmem:[%s13495_s0] sm:$0xff]  ;;  %207 = vmatprep.mubr.bf16.mxu0 %v13501_v7  ;;  %6347 = vset.pattern.permute.xlu0 %v13501_v7 }
   0x2   :  { %v63_v3 = vpack.c.bf16 %v57_v1, %v55_v0  ;;  %v56_v4 = vld [vmem:[%s13495_s0 + $0x10] sm:$0xff]  ;;  %v59_v5 = vld [vmem:[%s13495_s0 + $0x28] sm:$0xff]  ;;  %v61_v6 = vld [vmem:[%s13495_s0 + $0x38] sm:$0xff]  ;;  %394 = vmatprep.mubr.bf16.mxu1 %v13501_v7 }
   0x3   :  { %v62_v8 = vpack.c.bf16 %v56_v4, %v54_v2  ;;  %v65_v9 = vpack.c.bf16 %v61_v6, %v59_v5  ;;  %v58_v10 = vld [vmem:[%s13495_s0 + $0x20] sm:$0xff]  ;;  %v60_v11 = vld [vmem:[%s13495_s0 + $0x30] sm:$0xff]  ;;  %v39_v13 = vld [vmem:[%s13497_s2 + $0x8] sm:$0xff] }
   0x4   :  { %175 = vmatprep.subr.bf16.mxu0 %v63_v3  ;;  %v64_v12 = vpack.c.bf16 %v60_v11, %v58_v10  ;;  %v6349_v14 = vld [vmem:[%s13496_s1] sm:$0xff]   ;;  %73 = vperm.xlu0 %6347, %v39_v13  }
   0x5   :  { %176 = vmatpush1.bf16.msra.mxu0 %v62_v8  ;;  %v38_v15 = vld [vmem:[%s13497_s2] sm:$0xff] }
   0x6   :  { %177 = vmatprep.subr.bf16.mxu0 %v65_v9  ;;  %v42_v16 = vld [vmem:[%s13497_s2 + $0x20] sm:$0xff] }
   0x8   :  { %68 = vperm.xlu0 %6347, %v38_v15  }
   0x9   :  { %178 = vmatpush1.bf16.msra.mxu0 %v64_v12 }
   0xc   :  { %6181 = vmatmul.mubr.msk.bf16.vlgmr.msra.gmra.mrb[0].mxu0 %vm156_vm0, %v6349_v14 }
   0xd   :  { %10 = vsyncpa [#allocation3], 0  ;;  %217 = vmatprep.mubr.bf16.mxu0 %v13501_v7  ;;  %88 = vperm.xlu0 %6347, %v42_v16   ;;  %v6350_v17 = vld [vmem:[%s13496_s1 + $0x8] sm:$0xff]   ;;  %v40_v18 = vld [vmem:[%s13497_s2 + $0x10] sm:$0xff]  ;;  %vm355_vm1 = vcmask 1043456   ;;  %vm306_vm2 = vcmask 64512  }
   0xe   :  { %v41_v19 = vld [vmem:[%s13497_s2 + $0x18] sm:$0xff]  ;;  %v6351_v20 = vld [vmem:[%s13496_s1 + $0x10] sm:$0xff]   ;;  %v6353_v22 = vld [vmem:[%s13496_s1 + $0x20] sm:$0xff]  }
   0xf   :  { %v6352_v21 = vld [vmem:[%s13496_s1 + $0x18] sm:$0xff]   ;;  %v6354_v23 = vld [vmem:[%s13496_s1 + $0x28] sm:$0xff]   ;;  %v44_v58 = vld [vmem:[%s13497_s2 + $0x30] sm:$0xff] }
  0x10   :  { %v45_v55 = vld [vmem:[%s13497_s2 + $0x38] sm:$0xff]  ;;  %v43_v61 = vld [vmem:[%s13497_s2 + $0x28] sm:$0xff] }
  0x11   :  { %78 = vperm.xlu0 %6347, %v40_v18  }
  0x14   :  { %6182 = vmatmul.mubr.msk.bf16.gmra.mrb[4].mxu0 %vm156_vm0, %v6350_v17 }
  0x15   :  { %227 = vmatprep.mubr.bf16.mxu0 %v13501_v7  ;;  %83 = vperm.xlu0 %6347, %v41_v19  }
  0x1c   :  { %6183 = vmatmul.mubr.msk.bf16.gmra.mrb[8].mxu0 %vm156_vm0, %v6351_v20 }
  0x1d   :  { %237 = vmatprep.mubr.bf16.mxu0 %v13501_v7 }
  0x24   :  { %6184 = vmatmul.mubr.msk.bf16.gmra.mrb[12].mxu0 %vm156_vm0, %v6352_v21 }
  0x25   :  { %247 = vmatprep.mubr.bf16.mxu0 %v13501_v7 }
  0x2c   :  { %6185 = vmatmul.mubr.msk.bf16.gmra.mrb[16].mxu0 %vm156_vm0, %v6353_v22 }
  0x2d   :  { %257 = vmatprep.mubr.bf16.mxu0 %v13501_v7 }
  0x34   :  { %6186 = vmatmul.mubr.msk.bf16.gmra.mrb[20].mxu0 %vm156_vm0, %v6354_v23 }
  0x83   :  { %v7550_v24 = vpop.permute.xlu0 %73 }
  0x84   :  { %13884 = vst [vmem:[#allocation5_spill] sm:$0xff] %v7550_v24 }
  0x87   :  { %v7552_v25 = vpop.permute.xlu0 %68 }
  0x88   :  { %13885 = vst [vmem:[#allocation6_spill] sm:$0xff] %v7552_v25 }
  0x8c   :  { %v7556_v31 = vpop.permute.xlu0 %88 }
  0x8d   :  { %13886 = vst [vmem:[#allocation7_spill] sm:$0xff] %v7556_v31 }
  0x90   :  { %v7563_v39 = vpop.permute.xlu0 %78 }
  0x91   :  { %13888 = vst [vmem:[#allocation9_spill] sm:$0xff] %v7563_v39 }
  0x94   :  { %v7597_v2 = vpop.permute.xlu0 %83 }
  0x95   :  { %13894 = vst [vmem:[#allocation15_spill] sm:$0xff] %v7597_v2 }
  0xdf   :  { %v209_v26 = vpop.f32.mrb[0].mxu0 }
  0xe0   :  { %v211_v27 = vpop.f32.mrb[1].mxu0  ;;  %v210_v28 = vadd.f32 %v209_v26, %v7552_v25 }
  0xe1   :  { %v213_v29 = vpop.f32.mrb[2].mxu0  ;;  %v212_v30 = vadd.f32 %v211_v27, %v7552_v25 }
  0xe2   :  { %v215_v32 = vpop.f32.mrb[3].mxu0  ;;  %v214_v33 = vadd.f32 %v213_v29, %v7550_v24  ;;  %v268_v34 = vpack.c.bf16 %v210_v28, %v210_v28  ;;  %v46_v29 = vld [vmem:[%s13497_s2 + $0x40] sm:$0xff] }
  0xe3   :  { %v269_v35 = vpack.c.bf16 %v212_v30, %v212_v30  ;;  %v216_v49 = vadd.f32 %v215_v32, %v7550_v24 }
  0xe4   :  { %v270_v36 = vpack.c.bf16 %v214_v33, %v214_v33  ;;  %v357_v37 = vsel %vm355_vm1, %v268_v34, 0 }
  0xe5   :  { %6187 = vmatprep.subr.msk.bf16.mxu1 %vm355_vm1, %v269_v35  ;;  %v271_v50 = vpack.c.bf16 %v216_v49, %v216_v49  ;;  %v48_v35 = vld [vmem:[%s13497_s2 + $0x50] sm:$0xff] }
  0xe6   :  { %274 = vxpose.xlu1.c.b16.start.end [1/1] (short) %v270_v36, 128  ;;  %363 = vmatpush1.bf16.msra.mxu1 %v357_v37 }
  0xe7   :  { %v7561_v38 = vpop.f32.mrb[4].mxu0 }
  0xe8   :  { %13887 = vst [vmem:[#allocation8_spill] sm:$0xff] %v7561_v38  ;;  %v221_v40 = vpop.f32.mrb[5].mxu0 }
  0xe9   :  { %v222_v41 = vadd.f32 %v221_v40, %v7563_v39  ;;  %v7566_v42 = vpop.f32.mrb[6].mxu0 }
  0xea   :  { %13889 = vst [vmem:[#allocation10_spill] sm:$0xff] %v7566_v42  ;;  %v7568_v43 = vpop.f32.mrb[7].mxu0 }
  0xeb   :  { %13890 = vst [vmem:[#allocation11_spill] sm:$0xff] %v7568_v43  ;;  %v273_v44 = vpack.c.bf16 %v222_v41, %v222_v41 }
  0xed   :  { %961 = vmatprep.mubr.bf16.mxu0 %v273_v44  ;;  %v47_v44 = vld [vmem:[%s13497_s2 + $0x48] sm:$0xff] }
  0xef   :  { %v229_v45 = vpop.f32.mrb[8].mxu0 }
  0xf0   :  { %v230_v46 = vadd.f32 %v229_v45, %v7556_v31  ;;  %v231_v47 = vpop.f32.mrb[9].mxu0 }
  0xf1   :  { %v7572_v51 = vpop.f32.mrb[10].mxu0  ;;  %v232_v59 = vadd.f32 %v231_v47, %v7556_v31 }
  0xf2   :  { %v974_v48 = vpack.c.bf16 %v230_v46, %v230_v46  ;;  %13891 = vst [vmem:[#allocation12_spill] sm:$0xff] %v7572_v51  ;;  %v7574_v52 = vpop.f32.mrb[11].mxu0 }
  0xf3   :  { %v975_v60 = vpack.c.bf16 %v232_v59, %v232_v59 }
  0xf4   :  { %978 = vxpose.xlu0.c.b16.start.end [1/1] (short) %v974_v48, 128 }
  0xf7   :  { %v7576_v53 = vpop.f32.mrb[12].mxu0 }
  0xf8   :  { %13892 = vst [vmem:[#allocation13_spill] sm:$0xff] %v7576_v53  ;;  %v7578_v54 = vpop.f32.mrb[13].mxu0 }
  0xf9   :  { %13893 = vst [vmem:[#allocation14_spill] sm:$0xff] %v7578_v54  ;;  %v243_v56 = vpop.f32.mrb[14].mxu0 }
  0xfa   :  { %v245_v57 = vpop.f32.mrb[15].mxu0 }
  0xff   :  { %v7644_v32 = vpop.f32.mrb[16].mxu0 }
 0x100   :  { %13904 = vst [vmem:[#allocation25_spill] sm:$0xff] %v7644_v32  ;;  %v7646_v33 = vpop.f32.mrb[17].mxu0 }
 0x101   :  { %13905 = vst [vmem:[#allocation26_spill] sm:$0xff] %v7646_v33  ;;  %v7649_v34 = vpop.f32.mrb[18].mxu0 }
 0x102   :  { %13906 = vst [vmem:[#allocation27_spill] sm:$0xff] %v7649_v34  ;;  %v7655_v36 = vpop.f32.mrb[19].mxu0 }
 0x103   :  { %290 = vxpose.xlu1.c.b16.start.end [1/1] (short) %v271_v50, 128  ;;  %13907 = vst [vmem:[#allocation28_spill] sm:$0xff] %v7655_v36 }
 0x107   :  { %v259_v37 = vpop.f32.mrb[20].mxu0 }
 0x108   :  { %v261_v40 = vpop.f32.mrb[21].mxu0 }
 0x119   :  { %103 = vperm.xlu0 %6347, %v45_v55  }
 0x11d   :  { %98 = vperm.xlu0 %6347, %v44_v58  }
 0x120   :  { %994 = vxpose.xlu1.c.b16.start.end [1/1] (short) %v975_v60, 128 }
 0x124   :  { %6348 = vset.pattern.permute.xlu1 %v13501_v7 }
 0x140   :  { %93 = vperm.xlu1 %6348, %v43_v61  }
 0x14c   :  { %v282_v62 = vpop.trf.xlu1 }
 0x14d   :  { %6188 = vmatmul.mubr.msk.bf16.vlgmr.msra.gmra.mrb[0].mxu1 %vm306_vm2, %v282_v62 }
 0x14e   :  { %404 = vmatprep.mubr.bf16.mxu1 %v13501_v7 }
 0x150   :  { %v283_v63 = vpop.trf.xlu1 }
 0x154   :  { %v284_v0 = vpop.trf.xlu1 }
 0x155   :  { %6189 = vmatmul.mubr.msk.bf16.gmra.mrb[4].mxu1 %vm306_vm2, %v283_v63 }
 0x156   :  { %414 = vmatprep.mubr.bf16.mxu1 %v13501_v7 }
 0x158   :  { %v285_v1 = vpop.trf.xlu1 }
 0x15a   :  { %v7601_v3 = vpop.trf.xlu0 }
 0x15b   :  { %13895 = vst [vmem:[#allocation16_spill] sm:$0xff] %v7601_v3 }
 0x15c   :  { %v286_v4 = vpop.trf.xlu1 }
 0x15d   :  { %6190 = vmatmul.mubr.msk.bf16.gmra.mrb[8].mxu1 %vm306_vm2, %v284_v0 }
 0x15e   :  { %424 = vmatprep.mubr.bf16.mxu1 %v13501_v7  ;;  %v7605_v5 = vpop.trf.xlu0 }
 0x15f   :  { %13896 = vst [vmem:[#allocation17_spill] sm:$0xff] %v7605_v5 }
 0x160   :  { %v287_v6 = vpop.trf.xlu1 }
 0x162   :  { %v7607_v8 = vpop.trf.xlu0 }
 0x163   :  { %13897 = vst [vmem:[#allocation18_spill] sm:$0xff] %v7607_v8 }
 0x164   :  { %v288_v9 = vpop.trf.xlu1 }
 0x165   :  { %6191 = vmatmul.mubr.msk.bf16.gmra.mrb[12].mxu1 %vm306_vm2, %v285_v1 }
 0x166   :  { %434 = vmatprep.mubr.bf16.mxu1 %v13501_v7  ;;  %v7611_v10 = vpop.trf.xlu0 }
 0x167   :  { %13898 = vst [vmem:[#allocation19_spill] sm:$0xff] %v7611_v10 }
 0x168   :  { %v289_v12 = vpop.trf.xlu1 }
 0x16a   :  { %v7615_v11 = vpop.trf.xlu0 }
 0x16b   :  { %13899 = vst [vmem:[#allocation20_spill] sm:$0xff] %v7615_v11 }
 0x16c   :  { %v298_v14 = vpop.trf.xlu1 }
 0x16d   :  { %6192 = vmatmul.mubr.msk.bf16.gmra.mrb[16].mxu1 %vm306_vm2, %v286_v4 }
 0x16e   :  { %444 = vmatprep.mubr.bf16.mxu1 %v13501_v7  ;;  %v7618_v13 = vpop.trf.xlu0 }
 0x16f   :  { %13900 = vst [vmem:[#allocation21_spill] sm:$0xff] %v7618_v13 }
 0x170   :  { %v299_v17 = vpop.trf.xlu1 }
 0x172   :  { %v7621_v15 = vpop.trf.xlu0 }
 0x173   :  { %13901 = vst [vmem:[#allocation22_spill] sm:$0xff] %v7621_v15 }
 0x174   :  { %v300_v23 = vpop.trf.xlu1 }
 0x175   :  { %6193 = vmatmul.mubr.msk.bf16.gmra.mrb[20].mxu1 %vm306_vm2, %v287_v6 }
 0x176   :  { %454 = vmatprep.mubr.bf16.mxu1 %v13501_v7  ;;  %v7625_v16 = vpop.trf.xlu0 }
 0x177   :  { %13902 = vst [vmem:[#allocation23_spill] sm:$0xff] %v7625_v16 }
 0x178   :  { %v301_v26 = vpop.trf.xlu1 }
 0x17c   :  { %v302_v27 = vpop.trf.xlu1 }
 0x17d   :  { %6194 = vmatmul.mubr.msk.bf16.gmra.mrb[24].mxu1 %vm306_vm2, %v288_v9 }
 0x17e   :  { %464 = vmatprep.mubr.bf16.mxu1 %v13501_v7 }
 0x180   :  { %v303_v28 = vpop.trf.xlu1 }
 0x184   :  { %v304_v30 = vpop.trf.xlu1 }
 0x185   :  { %6195 = vmatmul.mubr.msk.bf16.gmra.mrb[28].mxu1 %vm306_vm2, %v289_v12 }
 0x186   :  { %474 = vmatprep.mubr.bf16.mxu1 %v13501_v7 }
 0x188   :  { %v305_v41 = vpop.trf.xlu1 }
 0x18c   :  { %v7697_v6 = vpop.trf.xlu1 }
 0x18d   :  { %6196 = vmatmul.mubr.msk.bf16.gmra.mrb[32].mxu1 %vm306_vm2, %v298_v14  ;;  %13914 = vst [vmem:[#allocation35_spill] sm:$0xff] %v7697_v6 }
 0x18e   :  { %484 = vmatprep.mubr.bf16.mxu1 %v13501_v7 }
 0x195   :  { %6197 = vmatmul.mubr.msk.bf16.gmra.mrb[36].mxu1 %vm306_vm2, %v299_v17 }
 0x196   :  { %494 = vmatprep.mubr.bf16.mxu1 %v13501_v7 }
 0x198   :  { %v7629_v18 = vpop.permute.xlu0 %103 }
 0x199   :  { %13903 = vst [vmem:[#allocation24_spill] sm:$0xff] %v7629_v18  ;;  %v244_v19 = vadd.f32 %v243_v56, %v7629_v18  ;;  %v246_v20 = vadd.f32 %v245_v57, %v7629_v18 }
 0x19b   :  { %v1676_v21 = vpack.c.bf16 %v244_v19, %v244_v19  ;;  %v1677_v22 = vpack.c.bf16 %v246_v20, %v246_v20 }
 0x19c   :  { %v7661_v45 = vpop.permute.xlu0 %98 }
 0x19d   :  { %1680 = vxpose.xlu0.c.b16.start.end [1/1] (short) %v1676_v21, 128  ;;  %1696 = vxpose.xlu1.c.b16.start.end [1/1] (short) %v1677_v22, 128  ;;  %13908 = vst [vmem:[#allocation29_spill] sm:$0xff] %v7661_v45  ;;  %v7709_v21 = vpop.trf.xlu1 }
 0x19e   :  { %6198 = vmatmul.mubr.msk.bf16.gmra.mrb[40].mxu1 %vm306_vm2, %v300_v23  ;;  %13916 = vst [vmem:[#allocation37_spill] sm:$0xff] %v7709_v21 }
 0x19f   :  { %504 = vmatprep.mubr.bf16.mxu1 %v13501_v7 }
 0x1a6   :  { %6199 = vmatmul.mubr.msk.bf16.gmra.mrb[44].mxu1 %vm306_vm2, %v301_v26 }
 0x1a7   :  { %514 = vmatprep.mubr.bf16.mxu1 %v13501_v7 }
 0x1ae   :  { %6200 = vmatmul.mubr.msk.bf16.gmra.mrb[48].mxu1 %vm306_vm2, %v302_v27 }
 0x1af   :  { %524 = vmatprep.mubr.bf16.mxu1 %v13501_v7 }
 0x1b6   :  { %6201 = vmatmul.mubr.msk.bf16.gmra.mrb[52].mxu1 %vm306_vm2, %v303_v28 }
 0x1b7   :  { %534 = vmatprep.mubr.bf16.mxu1 %v13501_v7 }
 0x1bd   :  { %108 = vperm.xlu1 %6348, %v46_v29   ;;  %v7719_v29 = vpop.trf.xlu1 }
 0x1be   :  { %6202 = vmatmul.mubr.msk.bf16.gmra.mrb[56].mxu1 %vm306_vm2, %v304_v30  ;;  %13918 = vst [vmem:[#allocation39_spill] sm:$0xff] %v7719_v29 }
 0x1bf   :  { %544 = vmatprep.mubr.bf16.mxu1 %v13501_v7 }
 0x1c1   :  { %v7733_v7 = vpop.trf.xlu1 }
 0x1c2   :  { %118 = vperm.xlu0 %6347, %v48_v35   ;;  %13920 = vst [vmem:[#allocation41_spill] sm:$0xff] %v7733_v7 }
 0x1c6   :  { %6203 = vmatmul.mubr.msk.bf16.gmra.mrb[60].mxu1 %vm306_vm2, %v305_v41  ;;  %113 = vperm.xlu0 %6347, %v47_v44  }
 0x203   :  { %v7663_v46 = vpop.trf.xlu0 }
 0x204   :  { %13909 = vst [vmem:[#allocation30_spill] sm:$0xff] %v7663_v46 }
 0x207   :  { %v7665_v47 = vpop.trf.xlu0 }
 0x208   :  { %13910 = vst [vmem:[#allocation31_spill] sm:$0xff] %v7665_v47 }
 0x20b   :  { %v7667_v48 = vpop.trf.xlu0 }
 0x20c   :  { %13911 = vst [vmem:[#allocation32_spill] sm:$0xff] %v7667_v48 }
 0x20f   :  { %v7677_v57 = vpop.trf.xlu0 }
 0x210   :  { %13912 = vst [vmem:[#allocation33_spill] sm:$0xff] %v7677_v57 }
 0x213   :  { %v7685_v61 = vpop.trf.xlu0 }
 0x214   :  { %13913 = vst [vmem:[#allocation34_spill] sm:$0xff] %v7685_v61 }
 0x217   :  { %v7699_v9 = vpop.trf.xlu0 }
 0x218   :  { %13915 = vst [vmem:[#allocation36_spill] sm:$0xff] %v7699_v9 }
 0x21b   :  { %v7715_v27 = vpop.trf.xlu0 }
 0x21c   :  { %13917 = vst [vmem:[#allocation38_spill] sm:$0xff] %v7715_v27  ;;  %v7751_v27 = vpop.trf.xlu1 }
 0x21d   :  { %13922 = vst [vmem:[#allocation43_spill] sm:$0xff] %v7751_v27 }
 0x220   :  { %v7669_v49 = vpop.f32.mrb[0].mxu1 }
 0x221   :  { %v7671_v50 = vpop.f32.mrb[1].mxu1 }
 0x222   :  { %v7673_v55 = vpop.f32.mrb[2].mxu1 }
 0x223   :  { %v7675_v56 = vpop.f32.mrb[3].mxu1 }
 0x228   :  { %v7679_v58 = vpop.f32.mrb[4].mxu1 }
 0x229   :  { %v555_v59 = vmax.f32 %v7669_v49, %v7679_v58  ;;  %v7683_v60 = vpop.f32.mrb[5].mxu1 }
 0x22a   :  { %v592_v62 = vmax.f32 %v7671_v50, %v7683_v60  ;;  %v7689_v63 = vpop.f32.mrb[6].mxu1 }
 0x22b   :  { %v556_v0 = vmax.f32 %v7673_v55, %v7689_v63  ;;  %v7693_v1 = vpop.f32.mrb[7].mxu1 }
 0x22c   :  { %v593_v4 = vmax.f32 %v7675_v56, %v7693_v1 }
 0x230   :  { %v7701_v12 = vpop.f32.mrb[8].mxu1 }
 0x231   :  { %v557_v14 = vmax.f32 %v555_v59, %v7701_v12  ;;  %v7704_v17 = vpop.f32.mrb[9].mxu1 }
 0x232   :  { %v594_v19 = vmax.f32 %v592_v62, %v7704_v17  ;;  %v7707_v20 = vpop.f32.mrb[10].mxu1 }
 0x233   :  { %v558_v22 = vmax.f32 %v556_v0, %v7707_v20  ;;  %v7712_v23 = vpop.f32.mrb[11].mxu1  ;;  %v7730_v0 = vpop.trf.xlu0 }
 0x234   :  { %v595_v26 = vmax.f32 %v593_v4, %v7712_v23  ;;  %13919 = vst [vmem:[#allocation40_spill] sm:$0xff] %v7730_v0 }
 0x238   :  { %v7717_v28 = vpop.f32.mrb[12].mxu1 }
 0x239   :  { %v559_v30 = vmax.f32 %v557_v14, %v7717_v28  ;;  %v7722_v35 = vpop.f32.mrb[13].mxu1 }
 0x23a   :  { %v596_v41 = vmax.f32 %v594_v19, %v7722_v35  ;;  %v7725_v44 = vpop.f32.mrb[14].mxu1 }
 0x23b   :  { %v560_v59 = vmax.f32 %v558_v22, %v7725_v44  ;;  %v7728_v62 = vpop.f32.mrb[15].mxu1 }
 0x23c   :  { %v597_v4 = vmax.f32 %v595_v26, %v7728_v62 }
 0x240   :  { %v7735_v18 = vpop.f32.mrb[16].mxu1 }
 0x241   :  { %v561_v14 = vmax.f32 %v559_v30, %v7735_v18  ;;  %v7738_v31 = vpop.permute.xlu0 %118  ;;  %v7740_v24 = vpop.f32.mrb[17].mxu1 }
 0x242   :  { %13921 = vst [vmem:[#allocation42_spill] sm:$0xff] %v7738_v31  ;;  %v260_v19 = vadd.f32 %v259_v37, %v7738_v31  ;;  %v262_v22 = vadd.f32 %v261_v40, %v7738_v31  ;;  %v598_v25 = vmax.f32 %v596_v41, %v7740_v24  ;;  %v7745_v32 = vpop.f32.mrb[18].mxu1 }
 0x243   :  { %v562_v26 = vmax.f32 %v560_v59, %v7745_v32  ;;  %v7748_v36 = vpop.f32.mrb[19].mxu1  ;;  %v7761_v59 = vpop.trf.xlu1 }
 0x244   :  { %v2378_v34 = vpack.c.bf16 %v260_v19, %v260_v19  ;;  %v2379_v0 = vpack.c.bf16 %v262_v22, %v262_v22  ;;  %v599_v30 = vmax.f32 %v597_v4, %v7748_v36  ;;  %13924 = vst [vmem:[#allocation45_spill] sm:$0xff] %v7761_v59 }
 0x246   :  { %2398 = vxpose.xlu0.c.b16.start.end [1/1] (short) %v2379_v0, 128  ;;  %2382 = vxpose.xlu1.c.b16.start.end [1/1] (short) %v2378_v34, 128 }
 0x247   :  { %v7769_v34 = vpop.trf.xlu1 }
 0x248   :  { %v7753_v9 = vpop.f32.mrb[20].mxu1  ;;  %13926 = vst [vmem:[#allocation47_spill] sm:$0xff] %v7769_v34 }
 0x249   :  { %v563_v37 = vmax.f32 %v561_v14, %v7753_v9  ;;  %v7756_v40 = vpop.f32.mrb[21].mxu1 }
 0x24a   :  { %13923 = vst [vmem:[#allocation44_spill] sm:$0xff] %v7756_v40  ;;  %v600_v41 = vmax.f32 %v598_v25, %v7756_v40  ;;  %v7759_v31 = vpop.f32.mrb[22].mxu1 }
 0x24b   :  { %v564_v19 = vmax.f32 %v562_v26, %v7759_v31  ;;  %v7764_v22 = vpop.f32.mrb[23].mxu1  ;;  %v7781_v46 = vpop.trf.xlu1 }
 0x24c   :  { %13925 = vst [vmem:[#allocation46_spill] sm:$0xff] %v7764_v22  ;;  %v601_v4 = vmax.f32 %v599_v30, %v7764_v22  ;;  %13929 = vst [vmem:[#allocation50_spill] sm:$0xff] %v7781_v46 }
 0x24f   :  { %v7795_v33 = vpop.permute.xlu1 %93 }
 0x250   :  { %v7767_v0 = vpop.f32.mrb[24].mxu1  ;;  %13932 = vst [vmem:[#allocation53_spill] sm:$0xff] %v7795_v33 }
 0x251   :  { %v565_v14 = vmax.f32 %v563_v37, %v7767_v0  ;;  %v7772_v61 = vpop.f32.mrb[25].mxu1 }
 0x252   :  { %13927 = vst [vmem:[#allocation48_spill] sm:$0xff] %v7772_v61  ;;  %v602_v25 = vmax.f32 %v600_v41, %v7772_v61  ;;  %v7775_v57 = vpop.f32.mrb[26].mxu1 }
 0x253   :  { %v566_v48 = vmax.f32 %v564_v19, %v7775_v57  ;;  %v7778_v47 = vpop.f32.mrb[27].mxu1 }
 0x254   :  { %13928 = vst [vmem:[#allocation49_spill] sm:$0xff] %v7778_v47  ;;  %v603_v26 = vmax.f32 %v601_v4, %v7778_v47  ;;  %v236_v4 = vadd.f32 %v7574_v52, %v7795_v33 }
 0x258   :  { %v7783_v30 = vpop.f32.mrb[28].mxu1 }
 0x259   :  { %v567_v51 = vmax.f32 %v565_v14, %v7783_v30  ;;  %v7786_v54 = vpop.f32.mrb[29].mxu1 }
 0x25a   :  { %13930 = vst [vmem:[#allocation51_spill] sm:$0xff] %v7786_v54  ;;  %v604_v37 = vmax.f32 %v602_v25, %v7786_v54  ;;  %v7789_v53 = vpop.f32.mrb[30].mxu1  ;;  %v977_v25 = vpack.c.bf16 %v236_v4, %v236_v4 }
 0x25b   :  { %v568_v41 = vmax.f32 %v566_v48, %v7789_v53  ;;  %v7792_v45 = vpop.f32.mrb[31].mxu1 }
 0x25c   :  { %13931 = vst [vmem:[#allocation52_spill] sm:$0xff] %v7792_v45  ;;  %v605_v19 = vmax.f32 %v603_v26, %v7792_v45  ;;  %1663 = vmatprep.mubr.bf16.mxu1 %v977_v25 }
 0x260   :  { %v7799_v46 = vpop.f32.mrb[32].mxu1 }
 0x261   :  { %v569_v14 = vmax.f32 %v567_v51, %v7799_v46  ;;  %v7802_v34 = vpop.f32.mrb[33].mxu1  ;;  %v49_v51 = vld [vmem:[%s13497_s2 + $0x58] sm:$0xff] }
 0x262   :  { %13933 = vst [vmem:[#allocation54_spill] sm:$0xff] %v7802_v34  ;;  %v606_v59 = vmax.f32 %v604_v37, %v7802_v34  ;;  %v7805_v27 = vpop.f32.mrb[34].mxu1 }
 0x263   :  { %v570_v48 = vmax.f32 %v568_v41, %v7805_v27  ;;  %v7808_v7 = vpop.f32.mrb[35].mxu1 }
 0x264   :  { %13934 = vst [vmem:[#allocation55_spill] sm:$0xff] %v7808_v7  ;;  %v607_v26 = vmax.f32 %v605_v19, %v7808_v7 }
 0x268   :  { %v7811_v29 = vpop.f32.mrb[36].mxu1 }
 0x269   :  { %v571_v52 = vmax.f32 %v569_v14, %v7811_v29  ;;  %v7817_v4 = vpop.f32.mrb[37].mxu1 }
 0x26a   :  { %13935 = vst [vmem:[#allocation56_spill] sm:$0xff] %v7817_v4  ;;  %v608_v37 = vmax.f32 %v606_v59, %v7817_v4  ;;  %v7820_v33 = vpop.f32.mrb[38].mxu1 }
 0x26b   :  { %v572_v41 = vmax.f32 %v570_v48, %v7820_v33  ;;  %123 = vperm.xlu0 %6347, %v49_v51   ;;  %v7823_v25 = vpop.f32.mrb[39].mxu1 }
 0x26c   :  { %13936 = vst [vmem:[#allocation57_spill] sm:$0xff] %v7823_v25  ;;  %v609_v19 = vmax.f32 %v607_v26, %v7823_v25 }
 0x271   :  { %v7826_v21 = vpop.f32.mrb[40].mxu1 }
 0x272   :  { %v573_v6 = vmax.f32 %v571_v52, %v7826_v21  ;;  %v7829_v16 = vpop.f32.mrb[41].mxu1 }
 0x273   :  { %13937 = vst [vmem:[#allocation58_spill] sm:$0xff] %v7829_v16  ;;  %v610_v14 = vmax.f32 %v608_v37, %v7829_v16  ;;  %v7832_v15 = vpop.f32.mrb[42].mxu1 }
 0x274   :  { %v574_v59 = vmax.f32 %v572_v41, %v7832_v15  ;;  %v7835_v13 = vpop.f32.mrb[43].mxu1 }
 0x275   :  { %13938 = vst [vmem:[#allocation59_spill] sm:$0xff] %v7835_v13  ;;  %v611_v48 = vmax.f32 %v609_v19, %v7835_v13 }
 0x279   :  { %v7838_v51 = vpop.f32.mrb[44].mxu1 }
 0x27a   :  { %v7840_v11 = vpop.f32.mrb[45].mxu1  ;;  %v575_v26 = vmax.f32 %v573_v6, %v7838_v51 }
 0x27b   :  { %13939 = vst [vmem:[#allocation60_spill] sm:$0xff] %v7840_v11  ;;  %v7843_v10 = vpop.f32.mrb[46].mxu1  ;;  %v612_v52 = vmax.f32 %v610_v14, %v7840_v11 }
 0x27c   :  { %v7846_v8 = vpop.f32.mrb[47].mxu1  ;;  %v576_v37 = vmax.f32 %v574_v59, %v7843_v10 }
 0x27d   :  { %13940 = vst [vmem:[#allocation61_spill] sm:$0xff] %v7846_v8  ;;  %v613_v41 = vmax.f32 %v611_v48, %v7846_v8 }
 0x281   :  { %v7850_v5 = vpop.f32.mrb[48].mxu1 }
 0x282   :  { %v7852_v3 = vpop.f32.mrb[49].mxu1  ;;  %v577_v19 = vmax.f32 %v575_v26, %v7850_v5 }
 0x283   :  { %13941 = vst [vmem:[#allocation62_spill] sm:$0xff] %v7852_v3  ;;  %v7855_v38 = vpop.f32.mrb[50].mxu1  ;;  %v614_v6 = vmax.f32 %v612_v52, %v7852_v3 }
 0x284   :  { %v7858_v39 = vpop.f32.mrb[51].mxu1  ;;  %v578_v14 = vmax.f32 %v576_v37, %v7855_v38 }
 0x285   :  { %13942 = vst [vmem:[#allocation63_spill] sm:$0xff] %v7858_v39  ;;  %v615_v43 = vmax.f32 %v613_v41, %v7858_v39 }
 0x289   :  { %v7862_v42 = vpop.f32.mrb[52].mxu1 }
 0x28a   :  { %v579_v59 = vmax.f32 %v577_v19, %v7862_v42  ;;  %v7865_v48 = vpop.f32.mrb[53].mxu1 }
 0x28b   :  { %13943 = vst [vmem:[#allocation64_spill] sm:$0xff] %v7865_v48  ;;  %v616_v2 = vmax.f32 %v614_v6, %v7865_v48  ;;  %v7868_v8 = vpop.f32.mrb[54].mxu1 }
 0x28c   :  { %v580_v26 = vmax.f32 %v578_v14, %v7868_v8  ;;  %v7871_v11 = vpop.f32.mrb[55].mxu1 }
 0x28d   :  { %13944 = vst [vmem:[#allocation65_spill] sm:$0xff] %v7871_v11  ;;  %v617_v52 = vmax.f32 %v615_v43, %v7871_v11 }
 0x291   :  { %v7874_v3 = vpop.f32.mrb[56].mxu1 }
 0x292   :  { %v581_v37 = vmax.f32 %v579_v59, %v7874_v3  ;;  %v7877_v41 = vpop.f32.mrb[57].mxu1 }
 0x293   :  { %13945 = vst [vmem:[#allocation66_spill] sm:$0xff] %v7877_v41  ;;  %v618_v19 = vmax.f32 %v616_v2, %v7877_v41  ;;  %v7880_v39 = vpop.f32.mrb[58].mxu1 }
 0x294   :  { %v582_v6 = vmax.f32 %v580_v26, %v7880_v39  ;;  %v7883_v48 = vpop.f32.mrb[59].mxu1 }
 0x295   :  { %13946 = vst [vmem:[#allocation67_spill] sm:$0xff] %v7883_v48  ;;  %v619_v14 = vmax.f32 %v617_v52, %v7883_v48 }
 0x299   :  { %v7886_v13 = vpop.f32.mrb[60].mxu1 }
 0x29a   :  { %v583_v43 = vmax.f32 %v581_v37, %v7886_v13  ;;  %v7889_v11 = vpop.f32.mrb[61].mxu1  ;;  %v7898_v37 = vpop.f32.mrb[22].mxu0 }
 0x29b   :  { %13947 = vst [vmem:[#allocation68_spill] sm:$0xff] %v7889_v11  ;;  %v620_v59 = vmax.f32 %v618_v19, %v7889_v11  ;;  %v7892_v16 = vpop.f32.mrb[62].mxu1  ;;  %13949 = vst [vmem:[#allocation70_spill] sm:$0xff] %v7898_v37  ;;  %v7900_v47 = vpop.f32.mrb[23].mxu0 }
 0x29c   :  { %v584_v2 = vmax.f32 %v582_v6, %v7892_v16  ;;  %v7895_v41 = vpop.f32.mrb[63].mxu1  ;;  %13950 = vst [vmem:[#allocation71_spill] sm:$0xff] %v7900_v47 }
 0x29d   :  { %13948 = vst [vmem:[#allocation69_spill] sm:$0xff] %v7895_v41  ;;  %v621_v26 = vmax.f32 %v619_v14, %v7895_v41 }
 0x29e   :  { %v585_v25 = vmax.f32 %v583_v43, %v584_v2 }
 0x29f   :  { %v622_v4 = vmax.f32 %v620_v59, %v621_v26 }
 0x2a0   :  { %v586_v7 = vrot.slane %v585_v25, 4 }
 0x2a1   :  { %v623_v52 = vrot.slane %v622_v4, 4 }
 0x2a2   :  { %v587_v48 = vmax.f32 %v585_v25, %v586_v7  ;;  %v13971_v47 = vld [vmem:[#allocation68_spill] sm:$0xff] }
 0x2a3   :  { %v624_v34 = vmax.f32 %v622_v4, %v623_v52 }
 0x2a4   :  { %v588_v45 = vrot.slane %v587_v48, 2 }
 0x2a5   :  { %v625_v54 = vrot.slane %v624_v34, 2 }
 0x2a6   :  { %v589_v19 = vmax.f32 %v587_v48, %v588_v45 }
 0x2a7   :  { %v626_v11 = vmax.f32 %v624_v34, %v625_v54 }
 0x2a8   :  { %v590_v61 = vrot.slane %v589_v19, 1 }
 0x2a9   :  { %v627_v6 = vrot.slane %v626_v11, 1 }
 0x2aa   :  { %v7902_v22 = vmax.f32 %v589_v19, %v590_v61 }
 0x2ab   :  { %v7904_v40 = vmax.f32 %v626_v11, %v627_v6 }
 0x2ac   :  { %v629_v14 = vsub.f32 %v7669_v49, %v7902_v22  ;;  %v631_v7 = vsub.f32 %v7673_v55, %v7902_v22  ;;  %v633_v4 = vsub.f32 %v7679_v58, %v7902_v22  ;;  %v635_v25 = vsub.f32 %v7689_v63, %v7902_v22 }
 0x2ad   :  { %v637_v54 = vsub.f32 %v7701_v12, %v7902_v22  ;;  %v639_v45 = vsub.f32 %v7707_v20, %v7902_v22  ;;  %v641_v11 = vsub.f32 %v7717_v28, %v7902_v22  ;;  %v643_v49 = vsub.f32 %v7725_v44, %v7902_v22 }
 0x2ae   :  { %v645_v55 = vsub.f32 %v7735_v18, %v7902_v22  ;;  %v647_v58 = vsub.f32 %v7745_v32, %v7902_v22  ;;  %v649_v61 = vsub.f32 %v7753_v9, %v7902_v22  ;;  %v651_v63 = vsub.f32 %v7759_v31, %v7902_v22 }
 0x2af   :  { %v653_v12 = vsub.f32 %v7767_v0, %v7902_v22  ;;  %v655_v20 = vsub.f32 %v7775_v57, %v7902_v22  ;;  %v657_v28 = vsub.f32 %v7783_v30, %v7902_v22  ;;  %v659_v18 = vsub.f32 %v7789_v53, %v7902_v22 }
 0x2b0   :  { %v661_v32 = vsub.f32 %v7799_v46, %v7902_v22  ;;  %v663_v9 = vsub.f32 %v7805_v27, %v7902_v22  ;;  %v665_v31 = vsub.f32 %v7811_v29, %v7902_v22  ;;  %v667_v44 = vsub.f32 %v7820_v33, %v7902_v22 }
 0x2b1   :  { %v669_v57 = vsub.f32 %v7826_v21, %v7902_v22  ;;  %v671_v0 = vsub.f32 %v7832_v15, %v7902_v22  ;;  %v673_v53 = vsub.f32 %v7838_v51, %v7902_v22  ;;  %v675_v46 = vsub.f32 %v7843_v10, %v7902_v22  ;;  %v13966_v21 = vld [vmem:[#allocation63_spill] sm:$0xff] }
 0x2b2   :  { %v693_v51 = vmul.f32 1.442695, %v629_v14  ;;  %v697_v48 = vmul.f32 1.442695, %v631_v7  ;;  %v701_v43 = vmul.f32 1.442695, %v633_v4 }
 0x2b3   :  { %v705_v2 = vmul.f32 1.442695, %v635_v25  ;;  %v709_v52 = vmul.f32 1.442695, %v637_v54  ;;  %v713_v19 = vmul.f32 1.442695, %v639_v45 }
 0x2b4   :  { %6357 = vpow2.f32 %v693_v51  ;;  %v717_v6 = vmul.f32 1.442695, %v641_v11  ;;  %v721_v10 = vmul.f32 1.442695, %v643_v49  ;;  %v725_v34 = vmul.f32 1.442695, %v645_v55 }
 0x2b5   :  { %6359 = vpow2.f32 %v697_v48  ;;  %v729_v30 = vmul.f32 1.442695, %v647_v58  ;;  %v733_v14 = vmul.f32 1.442695, %v649_v61  ;;  %v737_v7 = vmul.f32 1.442695, %v651_v63 }
 0x2b6   :  { %6361 = vpow2.f32 %v701_v43  ;;  %v741_v4 = vmul.f32 1.442695, %v653_v12  ;;  %v745_v59 = vmul.f32 1.442695, %v655_v20  ;;  %v749_v25 = vmul.f32 1.442695, %v657_v28 }
 0x2b7   :  { %6363 = vpow2.f32 %v705_v2  ;;  %v753_v15 = vmul.f32 1.442695, %v659_v18  ;;  %v757_v26 = vmul.f32 1.442695, %v661_v32  ;;  %v761_v51 = vmul.f32 1.442695, %v663_v9 }
 0x2b8   :  { %6365 = vpow2.f32 %v709_v52  ;;  %v765_v54 = vmul.f32 1.442695, %v665_v31  ;;  %v769_v45 = vmul.f32 1.442695, %v667_v44  ;;  %v773_v48 = vmul.f32 1.442695, %v669_v57 }
 0x2b9   :  { %6367 = vpow2.f32 %v713_v19  ;;  %v7974_v11 = vmul.f32 1.442695, %v671_v0  ;;  %v7976_v49 = vmul.f32 1.442695, %v673_v53  ;;  %v7978_v55 = vmul.f32 1.442695, %v675_v46 }
 0x2ba   :  { %6369 = vpow2.f32 %v717_v6  ;;  %v13951_v44 = vld [vmem:[#allocation44_spill] sm:$0xff]  ;;  %v13952_v0 = vld [vmem:[#allocation46_spill] sm:$0xff]  ;;  %v13954_v43 = vld [vmem:[#allocation49_spill] sm:$0xff] }
 0x2bb   :  { %6371 = vpow2.f32 %v721_v10  ;;  %v13953_v10 = vld [vmem:[#allocation48_spill] sm:$0xff]  ;;  %v13955_v19 = vld [vmem:[#allocation51_spill] sm:$0xff]  ;;  %v13960_v6 = vld [vmem:[#allocation57_spill] sm:$0xff] }
 0x2bc   :  { %6373 = vpow2.f32 %v725_v34  ;;  %v13958_v31 = vld [vmem:[#allocation55_spill] sm:$0xff]  ;;  %v13959_v32 = vld [vmem:[#allocation56_spill] sm:$0xff]  ;;  %v13961_v28 = vld [vmem:[#allocation58_spill] sm:$0xff] }
 0x2bd   :  { %6375 = vpow2.f32 %v729_v30  ;;  %v13962_v12 = vld [vmem:[#allocation59_spill] sm:$0xff]  ;;  %v13963_v2 = vld [vmem:[#allocation60_spill] sm:$0xff]  ;;  %v13964_v61 = vld [vmem:[#allocation61_spill] sm:$0xff] }
 0x2be   :  { %v7988_v20 = vpop.eup %6357  ;;  %6377 = vpow2.f32 %v733_v14  ;;  %v13956_v14 = vld [vmem:[#allocation52_spill] sm:$0xff]  ;;  %v13970_v53 = vld [vmem:[#allocation67_spill] sm:$0xff] }
 0x2bf   :  { %v7996_v9 = vpop.eup %6359  ;;  %6379 = vpow2.f32 %v737_v7  ;;  %v13965_v7 = vld [vmem:[#allocation62_spill] sm:$0xff] }
 0x2c0   :  { %v8004_v46 = vpop.eup %6361  ;;  %6381 = vpow2.f32 %v741_v4  ;;  %v821_v34 = vadd.f32 %v7996_v9, %v7988_v20  ;;  %v13957_v4 = vld [vmem:[#allocation54_spill] sm:$0xff] }
 0x2c1   :  { %v8012_v52 = vpop.eup %6363  ;;  %6383 = vpow2.f32 %v745_v59  ;;  %v13968_v59 = vld [vmem:[#allocation65_spill] sm:$0xff] }
 0x2c2   :  { %v8020_v57 = vpop.eup %6365  ;;  %6385 = vpow2.f32 %v749_v25  ;;  %v822_v30 = vadd.f32 %v8004_v46, %v821_v34 }
 0x2c3   :  { %v8027_v18 = vpop.eup %6367  ;;  %6387 = vpow2.f32 %v753_v15 }
 0x2c4   :  { %v8035_v63 = vpop.eup %6369  ;;  %6389 = vpow2.f32 %v757_v26  ;;  %v823_v34 = vadd.f32 %v8012_v52, %v822_v30 }
 0x2c5   :  { %v8042_v58 = vpop.eup %6371  ;;  %6391 = vpow2.f32 %v761_v51 }
 0x2c6   :  { %v8050_v29 = vpop.eup %6373  ;;  %6393 = vpow2.f32 %v765_v54  ;;  %v824_v30 = vadd.f32 %v8020_v57, %v823_v34  ;;  %v13972_v34 = vsub.f32 %v7850_v5, %v7902_v22 }
 0x2c7   :  { %v8057_v37 = vpop.eup %6375  ;;  %6395 = vpow2.f32 %v769_v45  ;;  %v13973_v45 = vsub.f32 %v7855_v38, %v7902_v22 }
 0x2c8   :  { %v8065_v33 = vpop.eup %6377  ;;  %6397 = vpow2.f32 %v773_v48  ;;  %v789_v15 = vmul.f32 1.442695, %v13972_v34  ;;  %v825_v51 = vadd.f32 %v8027_v18, %v824_v30  ;;  %v13974_v48 = vsub.f32 %v7862_v42, %v7902_v22 }
 0x2c9   :  { %v8071_v27 = vpop.eup %6379  ;;  %6399 = vpow2.f32 %v7974_v11  ;;  %v793_v26 = vmul.f32 1.442695, %v13973_v45  ;;  %v13975_v11 = vsub.f32 %v7868_v8, %v7902_v22  ;;  %v13979_v8 = vsub.f32 %v7886_v13, %v7902_v22 }
 0x2ca   :  { %v8077_v25 = vpop.eup %6381  ;;  %6401 = vpow2.f32 %v7976_v49  ;;  %v797_v54 = vmul.f32 1.442695, %v13974_v48  ;;  %v826_v5 = vadd.f32 %v8035_v63, %v825_v51  ;;  %v13976_v49 = vsub.f32 %v7874_v3, %v7902_v22 }
 0x2cb   :  { %v8084_v34 = vpop.eup %6383  ;;  %6403 = vpow2.f32 %v7978_v55  ;;  %v801_v30 = vmul.f32 1.442695, %v13975_v11  ;;  %v13977_v51 = vsub.f32 %v7880_v39, %v7902_v22 }
 0x2cc   :  { %v8090_v38 = vpop.eup %6385  ;;  %6405 = vpow2.f32 %v789_v15  ;;  %v805_v45 = vmul.f32 1.442695, %v13976_v49  ;;  %v827_v42 = vadd.f32 %v8042_v58, %v826_v5  ;;  %v813_v15 = vmul.f32 1.442695, %v13979_v8 }
 0x2cd   :  { %v8096_v48 = vpop.eup %6387  ;;  %6407 = vpow2.f32 %v793_v26  ;;  %v809_v55 = vmul.f32 1.442695, %v13977_v51  ;;  %v13980_v5 = vsub.f32 %v7892_v16, %v7902_v22  ;;  %v13983_v16 = vsub.f32 %v7683_v60, %v7904_v40 }
 0x2ce   :  { %v8101_v41 = vpop.eup %6389  ;;  %6409 = vpow2.f32 %v797_v54  ;;  %v828_v11 = vadd.f32 %v8050_v29, %v827_v42  ;;  %v13981_v54 = vsub.f32 %v7671_v50, %v7904_v40  ;;  %v13982_v42 = vsub.f32 %v7675_v56, %v7904_v40 }
 0x2cf   :  { %13978 = vst [vmem:[#allocation44_spill] sm:$0xff] %v8101_v41  ;;  %v8107_v3 = vpop.eup %6391  ;;  %6411 = vpow2.f32 %v801_v30  ;;  %v817_v26 = vmul.f32 1.442695, %v13980_v5  ;;  %v703_v22 = vmul.f32 1.442695, %v13983_v16  ;;  %v13984_v50 = vsub.f32 %v7693_v1, %v7904_v40 }
 0x2d0   :  { %v8112_v49 = vpop.eup %6393  ;;  %6413 = vpow2.f32 %v805_v45  ;;  %v829_v39 = vadd.f32 %v8057_v37, %v828_v11  ;;  %v695_v51 = vmul.f32 1.442695, %v13981_v54  ;;  %v699_v30 = vmul.f32 1.442695, %v13982_v42 }
 0x2d1   :  { %v8118_v13 = vpop.eup %6395  ;;  %6415 = vpow2.f32 %v809_v55  ;;  %v707_v11 = vmul.f32 1.442695, %v13984_v50  ;;  %v13985_v55 = vsub.f32 %v7704_v17, %v7904_v40  ;;  %v13986_v56 = vsub.f32 %v7712_v23, %v7904_v40 }
 0x2d2   :  { %v8126_v8 = vpop.eup %6397  ;;  %6417 = vpow2.f32 %v813_v15  ;;  %v830_v45 = vadd.f32 %v8065_v33, %v829_v39  ;;  %v13987_v15 = vsub.f32 %v7722_v35, %v7904_v40  ;;  %v13988_v39 = vsub.f32 %v7728_v62, %v7904_v40 }
 0x2d3   :  { %v711_v5 = vmul.f32 1.442695, %v13985_v55  ;;  %v8135_v54 = vpop.eup %6399  ;;  %6419 = vpow2.f32 %v817_v26  ;;  %v715_v60 = vmul.f32 1.442695, %v13986_v56  ;;  %v13989_v26 = vsub.f32 %v7740_v24, %v7904_v40 }
 0x2d4   :  { %v719_v42 = vmul.f32 1.442695, %v13987_v15  ;;  %v723_v1 = vmul.f32 1.442695, %v13988_v39  ;;  %v8146_v16 = vpop.eup %6401  ;;  %v831_v17 = vadd.f32 %v8071_v27, %v830_v45  ;;  %6421 = vpow2.f32 %v695_v51 }
 0x2d5   :  { %v727_v50 = vmul.f32 1.442695, %v13989_v26  ;;  %v13990_v23 = vsub.f32 %v7748_v36, %v7904_v40  ;;  %v8155_v56 = vpop.eup %6403  ;;  %6423 = vpow2.f32 %v699_v30 }
 0x2d6   :  { %v8163_v45 = vpop.eup %6405  ;;  %v832_v24 = vadd.f32 %v8077_v25, %v831_v17  ;;  %6425 = vpow2.f32 %v703_v22 }
 0x2d7   :  { %v731_v55 = vmul.f32 1.442695, %v13990_v23  ;;  %v8170_v15 = vpop.eup %6407  ;;  %6427 = vpow2.f32 %v707_v11  ;;  %v13991_v11 = vsub.f32 %v13951_v44, %v7904_v40  ;;  %v13992_v23 = vsub.f32 %v13952_v0, %v7904_v40 }
 0x2d8   :  { %v8178_v17 = vpop.eup %6409  ;;  %v833_v22 = vadd.f32 %v8084_v34, %v832_v24  ;;  %6429 = vpow2.f32 %v711_v5 }
 0x2d9   :  { %v8185_v36 = vpop.eup %6411  ;;  %6431 = vpow2.f32 %v715_v60  ;;  %v735_v30 = vmul.f32 1.442695, %v13991_v11  ;;  %v739_v26 = vmul.f32 1.442695, %v13992_v23 }
 0x2da   :  { %v8193_v24 = vpop.eup %6413  ;;  %v834_v5 = vadd.f32 %v8090_v38, %v833_v22  ;;  %6433 = vpow2.f32 %v719_v42  ;;  %v13993_v42 = vsub.f32 %v13953_v10, %v7904_v40  ;;  %v13998_v10 = vsub.f32 %v13958_v31, %v7904_v40 }
 0x2db   :  { %v8201_v51 = vpop.eup %6415  ;;  %6435 = vpow2.f32 %v723_v1  ;;  %v13994_v1 = vsub.f32 %v13954_v43, %v7904_v40  ;;  %v13997_v43 = vsub.f32 %v13957_v4, %v7904_v40  ;;  %v14001_v31 = vsub.f32 %v13961_v28, %v7904_v40 }
 0x2dc   :  { %v8206_v39 = vpop.eup %6417  ;;  %v835_v62 = vadd.f32 %v8096_v48, %v834_v5  ;;  %6437 = vpow2.f32 %v727_v50  ;;  %v743_v44 = vmul.f32 1.442695, %v13993_v42  ;;  %v13995_v50 = vsub.f32 %v13955_v19, %v7904_v40 }
 0x2dd   :  { %v8214_v11 = vpop.eup %6419  ;;  %6439 = vpow2.f32 %v731_v55  ;;  %v747_v0 = vmul.f32 1.442695, %v13994_v1  ;;  %v13996_v55 = vsub.f32 %v13956_v14, %v7904_v40  ;;  %v759_v1 = vmul.f32 1.442695, %v13997_v43 }
 0x2de   :  { %v6422_v23 = vpop.eup %6421  ;;  %v836_v60 = vadd.f32 %v8101_v41, %v835_v62  ;;  %6441 = vpow2.f32 %v735_v30  ;;  %v751_v5 = vmul.f32 1.442695, %v13995_v50  ;;  %v13999_v14 = vsub.f32 %v13959_v32, %v7904_v40 }
 0x2df   :  { %v6424_v42 = vpop.eup %6423  ;;  %6443 = vpow2.f32 %v739_v26  ;;  %v755_v22 = vmul.f32 1.442695, %v13996_v55  ;;  %v763_v26 = vmul.f32 1.442695, %v13998_v10  ;;  %v775_v10 = vmul.f32 1.442695, %v14001_v31 }
 0x2e0   :  { %v6426_v35 = vpop.eup %6425  ;;  %v837_v62 = vadd.f32 %v8107_v3, %v836_v60  ;;  %6445 = vpow2.f32 %v743_v44  ;;  %v858_v30 = vadd.f32 %v6424_v42, %v6422_v23  ;;  %v898_v19 = vpack.c.bf16 %v6424_v42, %v6422_v23 }
 0x2e1   :  { %v6428_v50 = vpop.eup %6427  ;;  %6447 = vpow2.f32 %v747_v0  ;;  %v767_v55 = vmul.f32 1.442695, %v13999_v14  ;;  %v14000_v0 = vsub.f32 %v13960_v6, %v7904_v40  ;;  %v14002_v32 = vpack.c.bf16 %v7996_v9, %v7988_v20 }
 0x2e2   :  { %v6430_v41 = vpop.eup %6429  ;;  %v838_v4 = vadd.f32 %v8112_v49, %v837_v62  ;;  %6449 = vpow2.f32 %v751_v5  ;;  %v859_v43 = vadd.f32 %v6426_v35, %v858_v30  ;;  %929 = vmatprep.subr.bf16.mxu0 %v898_v19  ;;  %v900_v60 = vpack.c.bf16 %v6428_v50, %v6426_v35 }
 0x2e3   :  { %v6432_v44 = vpop.eup %6431  ;;  %6451 = vpow2.f32 %v755_v22  ;;  %v771_v23 = vmul.f32 1.442695, %v14000_v0  ;;  %930 = vmatpush1.bf16.msra.mxu0 %v14002_v32  ;;  %v14003_v6 = vsub.f32 %v13962_v12, %v7904_v40  ;;  %v14004_v28 = vsub.f32 %v13963_v2, %v7904_v40  ;;  %v14009_v32 = vld [vmem:[#allocation64_spill] sm:$0xff] }
 0x2e4   :  { %v6434_v42 = vpop.eup %6433  ;;  %v839_v5 = vadd.f32 %v8118_v13, %v838_v4  ;;  %6453 = vpow2.f32 %v759_v1  ;;  %v860_v62 = vadd.f32 %v6428_v50, %v859_v43  ;;  %931 = vmatprep.subr.bf16.mxu0 %v900_v60  ;;  %v902_v35 = vpack.c.bf16 %v6432_v44, %v6430_v41 }
 0x2e5   :  { %v6436_v22 = vpop.eup %6435  ;;  %6455 = vpow2.f32 %v763_v26  ;;  %v779_v30 = vmul.f32 1.442695, %v14003_v6  ;;  %v783_v19 = vmul.f32 1.442695, %v14004_v28  ;;  %v14005_v50 = vsub.f32 %v13964_v61, %v7904_v40 }
 0x2e6   :  { %v6438_v14 = vpop.eup %6437  ;;  %v840_v20 = vadd.f32 %v8126_v8, %v839_v5  ;;  %6457 = vpow2.f32 %v767_v55  ;;  %v861_v9 = vadd.f32 %v6430_v41, %v860_v62  ;;  %v904_v4 = vpack.c.bf16 %v6436_v22, %v6434_v42 }
 0x2e7   :  { %v6440_v1 = vpop.eup %6439  ;;  %6459 = vpow2.f32 %v771_v23  ;;  %v787_v26 = vmul.f32 1.442695, %v14005_v50  ;;  %v14006_v12 = vsub.f32 %v13965_v7, %v7904_v40  ;;  %v14007_v2 = vpack.c.bf16 %v8012_v52, %v8004_v46 }
 0x2e8   :  { %v6442_v60 = vpop.eup %6441  ;;  %v841_v0 = vadd.f32 %v8135_v54, %v840_v20  ;;  %6461 = vpow2.f32 %v775_v10  ;;  %v862_v41 = vadd.f32 %v6432_v44, %v861_v9  ;;  %v906_v55 = vpack.c.bf16 %v6440_v1, %v6438_v14 }
 0x2e9   :  { %v791_v43 = vmul.f32 1.442695, %v14006_v12  ;;  %932 = vmatpush1.bf16.msra.mxu0 %v14007_v2  ;;  %v6444_v23 = vpop.eup %6443  ;;  %6463 = vpow2.f32 %v779_v30  ;;  %v14008_v61 = vsub.f32 %v13966_v21, %v7904_v40  ;;  %v14010_v7 = vsub.f32 %v14009_v32, %v7904_v40  ;;  %v14012_v30 = vld [vmem:[#allocation66_spill] sm:$0xff] }
 0x2ea   :  { %933 = vmatprep.subr.bf16.mxu0 %v902_v35  ;;  %v6446_v62 = vpop.eup %6445  ;;  %v842_v46 = vadd.f32 %v8146_v16, %v841_v0  ;;  %6465 = vpow2.f32 %v783_v19  ;;  %v863_v52 = vadd.f32 %v6434_v42, %v862_v41  ;;  %v908_v6 = vpack.c.bf16 %v6444_v23, %v6442_v60 }
 0x2eb   :  { %v795_v31 = vmul.f32 1.442695, %v14008_v61  ;;  %v799_v5 = vmul.f32 1.442695, %v14010_v7  ;;  %v6448_v10 = vpop.eup %6447  ;;  %6467 = vpow2.f32 %v787_v26  ;;  %v14011_v44 = vsub.f32 %v13968_v59, %v7904_v40 }
 0x2ec   :  { %v14013_v21 = vsub.f32 %v14012_v30, %v7904_v40  ;;  %v14014_v20 = vpack.c.bf16 %v8027_v18, %v8020_v57  ;;  %v6450_v9 = vpop.eup %6449  ;;  %v843_v50 = vadd.f32 %v8155_v56, %v842_v46  ;;  %6469 = vpow2.f32 %v791_v43 }
 0x2ed   :  { %v803_v35 = vmul.f32 1.442695, %v14011_v44  ;;  %v864_v42 = vadd.f32 %v6436_v22, %v863_v52  ;;  %v910_v19 = vpack.c.bf16 %v6448_v10, %v6446_v62  ;;  %v6452_v26 = vpop.eup %6451  ;;  %6471 = vpow2.f32 %v795_v31  ;;  %v14017_v22 = vld [vmem:[#allocation69_spill] sm:$0xff] }
 0x2ee   :  { %v807_v28 = vmul.f32 1.442695, %v14013_v21  ;;  %934 = vmatpush1.bf16.msra.mxu0 %v14014_v20  ;;  %v14015_v59 = vsub.f32 %v13970_v53, %v7904_v40  ;;  %v14016_v2 = vsub.f32 %v13971_v47, %v7904_v40  ;;  %v6454_v41 = vpop.eup %6453  ;;  %v844_v18 = vadd.f32 %v8163_v45, %v843_v50 }
 0x2ef   :  { %935 = vmatprep.subr.bf16.mxu0 %v904_v4  ;;  %6473 = vpow2.f32 %v799_v5  ;;  %v865_v57 = vadd.f32 %v6438_v14, %v864_v42  ;;  %v912_v61 = vpack.c.bf16 %v6452_v26, %v6450_v9  ;;  %v6456_v43 = vpop.eup %6455  ;;  %v14018_v4 = vsub.f32 %v14017_v22, %v7904_v40 }
 0x2f0   :  { %v811_v12 = vmul.f32 1.442695, %v14015_v59  ;;  %v815_v0 = vmul.f32 1.442695, %v14016_v2  ;;  %6475 = vpow2.f32 %v803_v35  ;;  %v14019_v53 = vpack.c.bf16 %v8042_v58, %v8035_v63  ;;  %v6458_v32 = vpop.eup %6457 }
 0x2f1   :  { %v819_v31 = vmul.f32 1.442695, %v14018_v4  ;;  %v845_v47 = vadd.f32 %v8170_v15, %v844_v18  ;;  %6477 = vpow2.f32 %v807_v28  ;;  %v866_v7 = vadd.f32 %v6440_v1, %v865_v57  ;;  %v6460_v5 = vpop.eup %6459 }
 0x2f2   :  { %936 = vmatpush1.bf16.msra.mxu0 %v14019_v53  ;;  %v914_v46 = vpack.c.bf16 %v6456_v43, %v6454_v41  ;;  %6479 = vpow2.f32 %v811_v12  ;;  %v6462_v14 = vpop.eup %6461  ;;  %v916_v40 = vpack.c.bf16 %v6460_v5, %v6458_v32  ;;  %v14020_v58 = vpack.c.bf16 %v8057_v37, %v8050_v29 }
 0x2f3   :  { %937 = vmatprep.subr.bf16.mxu0 %v906_v55  ;;  %v846_v52 = vadd.f32 %v8178_v17, %v845_v47  ;;  %6481 = vpow2.f32 %v815_v0  ;;  %v867_v44 = vadd.f32 %v6442_v60, %v866_v7  ;;  %v6464_v35 = vpop.eup %6463  ;;  %v14021_v59 = vpack.c.bf16 %v8071_v27, %v8065_v33 }
 0x2f4   :  { %6483 = vpow2.f32 %v819_v31  ;;  %v6466_v63 = vpop.eup %6465  ;;  %v918_v55 = vpack.c.bf16 %v6464_v35, %v6462_v14  ;;  %v14023_v47 = vpack.c.bf16 %v8096_v48, %v8090_v38  ;;  %v14027_v38 = vpack.c.bf16 %v8135_v54, %v8126_v8 }
 0x2f5   :  { %v847_v30 = vadd.f32 %v8185_v36, %v846_v52  ;;  %v868_v1 = vadd.f32 %v6444_v23, %v867_v44  ;;  %v6468_v21 = vpop.eup %6467  ;;  %v14030_v8 = vpack.c.bf16 %v8185_v36, %v8178_v17 }
 0x2f6   :  { %938 = vmatpush1.bf16.msra.mxu0 %v14020_v58  ;;  %v6470_v28 = vpop.eup %6469  ;;  %v920_v42 = vpack.c.bf16 %v6468_v21, %v6466_v63 }
 0x2f7   :  { %939 = vmatprep.subr.bf16.mxu0 %v908_v6  ;;  %v848_v20 = vadd.f32 %v8193_v24, %v847_v30  ;;  %v869_v50 = vadd.f32 %v6446_v62, %v868_v1  ;;  %v6472_v60 = vpop.eup %6471  ;;  %v14022_v62 = vpack.c.bf16 %v8084_v34, %v8077_v25  ;;  %v14024_v25 = vld [vmem:[#allocation44_spill] sm:$0xff] }
 0x2f8   :  { %v922_v2 = vpack.c.bf16 %v6472_v60, %v6470_v28  ;;  %v14025_v34 = vpack.c.bf16 %v8107_v3, %v14024_v25  ;;  %v14028_v3 = vpack.c.bf16 %v8155_v56, %v8146_v16  ;;  %v14033_v56 = vld [vmem:[#allocation11_spill] sm:$0xff] }
 0x2f9   :  { %v6474_v12 = vpop.eup %6473  ;;  %v849_v37 = vadd.f32 %v8201_v51, %v848_v20  ;;  %v870_v29 = vadd.f32 %v6448_v10, %v869_v50  ;;  %v14040_v20 = vld [vmem:[#allocation17_spill] sm:$0xff]  ;;  %v14043_v50 = vld [vmem:[#allocation20_spill] sm:$0xff] }
 0x2fa   :  { %940 = vmatpush1.bf16.msra.mxu0 %v14021_v59  ;;  %v6476_v23 = vpop.eup %6475  ;;  %v14046_v59 = vld [vmem:[#allocation23_spill] sm:$0xff] }
 0x2fb   :  { %941 = vmatprep.subr.bf16.mxu0 %v910_v19  ;;  %v6478_v6 = vpop.eup %6477  ;;  %v850_v0 = vadd.f32 %v8206_v39, %v849_v37  ;;  %v871_v18 = vadd.f32 %v6450_v9, %v870_v29  ;;  %v924_v57 = vpack.c.bf16 %v6476_v23, %v6474_v12  ;;  %v14048_v37 = vld [vmem:[#allocation35_spill] sm:$0xff] }
 0x2fc   :  { %v6480_v22 = vpop.eup %6479 }
 0x2fd   :  { %v6482_v4 = vpop.eup %6481  ;;  %v8312_v27 = vadd.f32 %v8214_v11, %v850_v0  ;;  %v872_v33 = vadd.f32 %v6452_v26, %v871_v18  ;;  %v926_v10 = vpack.c.bf16 %v6480_v22, %v6478_v6  ;;  %v14026_v26 = vpack.c.bf16 %v8118_v13, %v8112_v49 }
 0x2fe   :  { %942 = vmatpush1.bf16.msra.mxu0 %v14022_v62  ;;  %v6484_v19 = vpop.eup %6483  ;;  %v14029_v49 = vpack.c.bf16 %v8170_v15, %v8163_v45  ;;  %v14034_v45 = vpack.c.bf16 %v8201_v51, %v8193_v24  ;;  %v14035_v15 = vld [vmem:[#allocation9_spill] sm:$0xff]  ;;  %v14038_v51 = vmov 0   ;;  %v14039_v24 = vld [vmem:[#allocation16_spill] sm:$0xff]  ;;  %v14057_v62 = vld [vmem:[#allocation43_spill] sm:$0xff] }
 0x2ff   :  { %943 = vmatprep.subr.bf16.mxu0 %v912_v61  ;;  %v873_v31 = vadd.f32 %v6454_v41, %v872_v33  ;;  %v928_v53 = vpack.c.bf16 %v6484_v19, %v6482_v4  ;;  %v14059_v33 = vld [vmem:[#allocation45_spill] sm:$0xff]  ;;  %v852_v25 = vrot.slane %v8312_v27, 4 }
 0x301   :  { %v874_v9 = vadd.f32 %v6456_v43, %v873_v31  ;;  %v14062_v31 = vld [vmem:[#allocation47_spill] sm:$0xff] }
 0x302   :  { %944 = vmatpush1.bf16.msra.mxu0 %v14023_v47 }
 0x303   :  { %945 = vmatprep.subr.bf16.mxu0 %v914_v46  ;;  %v875_v7 = vadd.f32 %v6458_v32, %v874_v9 }
 0x305   :  { %v876_v52 = vadd.f32 %v6460_v5, %v875_v7  ;;  %v14064_v7 = vld [vmem:[#allocation50_spill] sm:$0xff] }
 0x306   :  { %946 = vmatpush1.bf16.msra.mxu0 %v14025_v34 }
 0x307   :  { %947 = vmatprep.subr.bf16.mxu0 %v916_v40  ;;  %v877_v44 = vadd.f32 %v6462_v14, %v876_v52  ;;  %v14031_v14 = vld [vmem:[#allocation15_spill] sm:$0xff]  ;;  %v14032_v40 = vld [vmem:[#allocation10_spill] sm:$0xff]  ;;  %v853_v52 = vadd.f32 %v852_v25, %v8312_v27 }
 0x308   :  { %v224_v16 = vadd.f32 %v14032_v40, %v14031_v14 }
 0x309   :  { %v878_v41 = vadd.f32 %v6464_v35, %v877_v44  ;;  %v226_v35 = vadd.f32 %v14033_v56, %v14031_v14 }
 0x30a   :  { %948 = vmatpush1.bf16.msra.mxu0 %v14026_v26  ;;  %v972_v36 = vpack.c.bf16 %v224_v16, %v224_v16  ;;  %v854_v26 = vrot.slane %v853_v52, 2 }
 0x30b   :  { %949 = vmatprep.subr.bf16.mxu0 %v918_v55  ;;  %v879_v61 = vadd.f32 %v6466_v63, %v878_v41  ;;  %v14036_v63 = vld [vmem:[#allocation8_spill] sm:$0xff]  ;;  %v973_v17 = vpack.c.bf16 %v226_v35, %v226_v35  ;;  %v14037_v55 = vpack.c.bf16 %v8214_v11, %v8206_v39  ;;  %v14041_v39 = vld [vmem:[#allocation18_spill] sm:$0xff]  ;;  %v14042_v11 = vld [vmem:[#allocation19_spill] sm:$0xff] }
 0x30c   :  { %v220_v30 = vadd.f32 %v14036_v63, %v14035_v15 }
 0x30d   :  { %v880_v48 = vadd.f32 %v6468_v21, %v879_v61  ;;  %v855_v61 = vadd.f32 %v854_v26, %v853_v52 }
 0x30e   :  { %950 = vmatpush1.bf16.msra.mxu0 %v14027_v38  ;;  %v272_v21 = vpack.c.bf16 %v220_v30, %v220_v30 }
 0x30f   :  { %951 = vmatprep.subr.bf16.mxu0 %v920_v42  ;;  %v881_v43 = vadd.f32 %v6470_v28, %v880_v48  ;;  %v1059_v28 = vsel %vm355_vm1, %v972_v36, 0  ;;  %v14044_v42 = vld [vmem:[#allocation21_spill] sm:$0xff]  ;;  %v856_v48 = vrot.slane %v855_v61, 1 }
 0x311   :  { %v882_v32 = vadd.f32 %v6472_v60, %v881_v43  ;;  %v14045_v60 = vld [vmem:[#allocation22_spill] sm:$0xff] }
 0x312   :  { %952 = vmatpush1.bf16.msra.mxu0 %v14028_v3  ;;  %v857_v3 = vadd.f32 %v856_v48, %v855_v61 }
 0x313   :  { %953 = vmatprep.subr.bf16.mxu0 %v922_v2  ;;  %v883_v46 = vadd.f32 %v6474_v12, %v882_v32  ;;  %v8374_v12 = vpop.trf.xlu1  ;;  %v14050_v2 = vld [vmem:[#allocation37_spill] sm:$0xff] }
 0x314   :  { %14047 = vst [vmem:[#allocation46_spill] sm:$0xff] %v8374_v12  ;;  %6485 = vrcp.f32 %v857_v3 }
 0x315   :  { %v884_v13 = vadd.f32 %v6476_v23, %v883_v46 }
 0x316   :  { %954 = vmatpush1.bf16.msra.mxu0 %v14029_v49 }
 0x317   :  { %955 = vmatprep.subr.bf16.mxu0 %v924_v57  ;;  %v885_v5 = vadd.f32 %v6478_v6, %v884_v13  ;;  %v8379_v29 = vpop.trf.xlu1  ;;  %v14052_v6 = vld [vmem:[#allocation39_spill] sm:$0xff]  ;;  %v14055_v57 = vld [vmem:[#allocation41_spill] sm:$0xff] }
 0x318   :  { %14049 = vst [vmem:[#allocation48_spill] sm:$0xff] %v8379_v29 }
 0x319   :  { %v886_v54 = vadd.f32 %v6480_v22, %v885_v5 }
 0x31a   :  { %956 = vmatpush1.bf16.msra.mxu0 %v14030_v8 }
 0x31b   :  { %957 = vmatprep.subr.bf16.mxu0 %v926_v10  ;;  %v887_v58 = vadd.f32 %v6482_v4, %v886_v54  ;;  %v8384_v23 = vpop.trf.xlu1 }
 0x31c   :  { %14051 = vst [vmem:[#allocation49_spill] sm:$0xff] %v8384_v23 }
 0x31d   :  { %v888_v1 = vadd.f32 %v6484_v19, %v887_v58 }
 0x31e   :  { %958 = vmatpush1.bf16.msra.mxu0 %v14034_v45  ;;  %v6486_v46 = vpop.eup %6485 }
 0x31f   :  { %959 = vmatprep.subr.bf16.mxu0 %v928_v53  ;;  %v8388_v0 = vpop.trf.xlu1  ;;  %v14063_v53 = vld [vmem:[#allocation26_spill] sm:$0xff]  ;;  %v889_v34 = vrot.slane %v888_v1, 4 }
 0x320   :  { %14053 = vst [vmem:[#allocation51_spill] sm:$0xff] %v8388_v0 }
 0x321   :  { %v890_v44 = vadd.f32 %v889_v34, %v888_v1 }
 0x322   :  { %960 = vmatpush1.bf16.msra.mxu0 %v14037_v55 }
 0x323   :  { %6204 = vmatprep.subr.msk.bf16.mxu0 %vm355_vm1, %v973_v17  ;;  %v8391_v18 = vpop.trf.xlu1  ;;  %v891_v41 = vrot.slane %v890_v44, 2 }
 0x324   :  { %14054 = vst [vmem:[#allocation52_spill] sm:$0xff] %v8391_v18 }
 0x325   :  { %962 = vmatmul.mubr.bf16.vlgmr.msra.gmra.mrb[24].mxu0 %v272_v21  ;;  %v892_v38 = vadd.f32 %v891_v41, %v890_v44 }
 0x326   :  { %1065 = vmatpush1.bf16.msra.mxu0 %v1059_v28  ;;  %1096 = vmatprep.mubr.bf16.mxu0 %v14038_v51 }
 0x327   :  { %v8396_v22 = vpop.trf.xlu1  ;;  %v893_v43 = vrot.slane %v892_v38, 1 }
 0x328   :  { %14056 = vst [vmem:[#allocation54_spill] sm:$0xff] %v8396_v22 }
 0x329   :  { %v894_v32 = vadd.f32 %v893_v43, %v892_v38 }
 0x32b   :  { %v8401_v4 = vpop.trf.xlu1  ;;  %6487 = vrcp.f32 %v894_v32 }
 0x32c   :  { %14058 = vst [vmem:[#allocation55_spill] sm:$0xff] %v8401_v4 }
 0x32d   :  { %6205 = vmatmul.mubr.msk.bf16.vlgmr.msra.gmra.mrb[28].mxu0 %vm306_vm2, %v14039_v24 }
 0x32e   :  { %1106 = vmatprep.mubr.bf16.mxu0 %v14038_v51 }
 0x32f   :  { %v8405_v10 = vpop.trf.xlu1 }
 0x330   :  { %14060 = vst [vmem:[#allocation56_spill] sm:$0xff] %v8405_v10 }
 0x333   :  { %v8408_v19 = vpop.permute.xlu1 %108 }
 0x334   :  { %14061 = vst [vmem:[#allocation57_spill] sm:$0xff] %v8408_v19  ;;  %v252_v47 = vadd.f32 %v14063_v53, %v8408_v19 }
 0x335   :  { %6206 = vmatmul.mubr.msk.bf16.gmra.mrb[32].mxu0 %vm306_vm2, %v14040_v20  ;;  %v6488_v13 = vpop.eup %6487 }
 0x336   :  { %1116 = vmatprep.mubr.bf16.mxu0 %v14038_v51  ;;  %v1679_v9 = vpack.c.bf16 %v252_v47, %v252_v47 }
 0x33d   :  { %6207 = vmatmul.mubr.msk.bf16.gmra.mrb[36].mxu0 %vm306_vm2, %v14041_v39 }
 0x33e   :  { %1126 = vmatprep.mubr.bf16.mxu0 %v14038_v51 }
 0x345   :  { %6208 = vmatmul.mubr.msk.bf16.gmra.mrb[40].mxu0 %vm306_vm2, %v14042_v11 }
 0x346   :  { %1136 = vmatprep.mubr.bf16.mxu0 %v14038_v51 }
 0x34d   :  { %6209 = vmatmul.mubr.msk.bf16.gmra.mrb[44].mxu0 %vm306_vm2, %v14043_v50 }
 0x34e   :  { %1146 = vmatprep.mubr.bf16.mxu0 %v14038_v51 }
 0x355   :  { %6210 = vmatmul.mubr.msk.bf16.gmra.mrb[48].mxu0 %vm306_vm2, %v14044_v42 }
 0x356   :  { %1156 = vmatprep.mubr.bf16.mxu0 %v14038_v51 }
 0x35d   :  { %6211 = vmatmul.mubr.msk.bf16.gmra.mrb[52].mxu0 %vm306_vm2, %v14045_v60 }
 0x35e   :  { %1166 = vmatprep.mubr.bf16.mxu0 %v14038_v51 }
 0x365   :  { %6212 = vmatmul.mubr.msk.bf16.gmra.mrb[56].mxu0 %vm306_vm2, %v14046_v59 }
 0x366   :  { %1176 = vmatprep.mubr.bf16.mxu0 %v14038_v51 }
 0x36d   :  { %6213 = vmatmul.mubr.msk.bf16.gmra.mrb[60].mxu0 %vm306_vm2, %v14048_v37 }
 0x36e   :  { %1186 = vmatprep.mubr.bf16.mxu0 %v14038_v51 }
 0x375   :  { %6214 = vmatmul.mubr.msk.bf16.gmra.mrb[64].mxu0 %vm306_vm2, %v14050_v2 }
 0x376   :  { %1196 = vmatprep.mubr.bf16.mxu0 %v14038_v51 }
 0x37d   :  { %6215 = vmatmul.mubr.msk.bf16.gmra.mrb[68].mxu0 %vm306_vm2, %v14052_v6 }
 0x37e   :  { %1206 = vmatprep.mubr.bf16.mxu0 %v14038_v51 }
 0x385   :  { %6216 = vmatmul.mubr.msk.bf16.gmra.mrb[72].mxu0 %vm306_vm2, %v14055_v57 }
 0x386   :  { %1216 = vmatprep.mubr.bf16.mxu0 %v14038_v51 }
 0x38d   :  { %6217 = vmatmul.mubr.msk.bf16.gmra.mrb[76].mxu0 %vm306_vm2, %v14057_v62 }
 0x38e   :  { %1226 = vmatprep.mubr.bf16.mxu0 %v14038_v51 }
 0x395   :  { %6218 = vmatmul.mubr.msk.bf16.gmra.mrb[80].mxu0 %vm306_vm2, %v14059_v33 }
 0x396   :  { %1236 = vmatprep.mubr.bf16.mxu0 %v14038_v51 }
 0x39d   :  { %6219 = vmatmul.mubr.msk.bf16.gmra.mrb[84].mxu0 %vm306_vm2, %v14062_v31 }
 0x39e   :  { %1246 = vmatprep.mubr.bf16.mxu0 %v14038_v51 }
 0x3a5   :  { %6220 = vmatmul.mubr.msk.bf16.gmra.mrb[88].mxu0 %vm306_vm2, %v14064_v7 }
 0x3a6   :  { %2365 = vmatprep.mubr.bf16.mxu0 %v1679_v9 }
 0x3f8   :  { %v963_v49 = vpop.f32.mrb[24].mxu0 }
 0x3f9   :  { %v8419_v5 = vmul.f32 %v6486_v46, %v963_v49  ;;  %v965_v8 = vpop.f32.mrb[25].mxu0 }
 0x3fa   :  { %v8421_v54 = vmul.f32 %v6488_v13, %v965_v8  ;;  %v967_v27 = vpop.f32.mrb[26].mxu0 }
 0x3fb   :  { %14065 = vst [vmem:[#allocation58_spill] sm:$0xff] %v8419_v5  ;;  %v968_v40 = vpop.f32.mrb[27].mxu0 }
 0x3fc   :  { %14066 = vst [vmem:[#allocation59_spill] sm:$0xff] %v8421_v54 }
 0x400   :  { %v8423_v16 = vpop.f32.mrb[28].mxu0 }
 0x401   :  { %v8425_v56 = vpop.f32.mrb[29].mxu0 }
 0x402   :  { %v8427_v35 = vpop.f32.mrb[30].mxu0 }
 0x403   :  { %v8429_v58 = vpop.f32.mrb[31].mxu0 }
 0x408   :  { %v8431_v45 = vpop.f32.mrb[32].mxu0 }
 0x409   :  { %v1257_v63 = vmax.f32 %v8423_v16, %v8431_v45  ;;  %v8435_v30 = vpop.f32.mrb[33].mxu0 }
 0x40a   :  { %v1294_v1 = vmax.f32 %v8425_v56, %v8435_v30  ;;  %v8439_v36 = vpop.f32.mrb[34].mxu0 }
 0x40b   :  { %v1258_v17 = vmax.f32 %v8427_v35, %v8439_v36  ;;  %v8443_v55 = vpop.f32.mrb[35].mxu0 }
 0x40c   :  { %v1295_v21 = vmax.f32 %v8429_v58, %v8443_v55 }
 0x410   :  { %v8447_v28 = vpop.f32.mrb[36].mxu0 }
 0x411   :  { %v8449_v24 = vpop.f32.mrb[37].mxu0  ;;  %v1259_v20 = vmax.f32 %v1257_v63, %v8447_v28 }
 0x412   :  { %v8452_v39 = vpop.f32.mrb[38].mxu0  ;;  %v1296_v11 = vmax.f32 %v1294_v1, %v8449_v24 }
 0x413   :  { %v8455_v50 = vpop.f32.mrb[39].mxu0  ;;  %v1260_v42 = vmax.f32 %v1258_v17, %v8452_v39 }
 0x414   :  { %v1297_v60 = vmax.f32 %v1295_v21, %v8455_v50 }
 0x418   :  { %v8459_v59 = vpop.f32.mrb[40].mxu0 }
 0x419   :  { %v8461_v37 = vpop.f32.mrb[41].mxu0  ;;  %v1261_v2 = vmax.f32 %v1259_v20, %v8459_v59 }
 0x41a   :  { %v8464_v6 = vpop.f32.mrb[42].mxu0  ;;  %v1298_v57 = vmax.f32 %v1296_v11, %v8461_v37 }
 0x41b   :  { %v8467_v62 = vpop.f32.mrb[43].mxu0  ;;  %v1262_v33 = vmax.f32 %v1260_v42, %v8464_v6 }
 0x41c   :  { %v1299_v31 = vmax.f32 %v1297_v60, %v8467_v62 }
 0x420   :  { %v8471_v53 = vpop.f32.mrb[44].mxu0 }
 0x421   :  { %v1263_v47 = vmax.f32 %v1261_v2, %v8471_v53  ;;  %v8474_v9 = vpop.f32.mrb[45].mxu0 }
 0x422   :  { %v1300_v7 = vmax.f32 %v1298_v57, %v8474_v9  ;;  %v8477_v25 = vpop.f32.mrb[46].mxu0 }
 0x423   :  { %v1264_v34 = vmax.f32 %v1262_v33, %v8477_v25  ;;  %v8480_v52 = vpop.f32.mrb[47].mxu0 }
 0x424   :  { %v1301_v44 = vmax.f32 %v1299_v31, %v8480_v52 }
 0x428   :  { %v8483_v26 = vpop.f32.mrb[48].mxu0 }
 0x429   :  { %v1265_v41 = vmax.f32 %v1263_v47, %v8483_v26  ;;  %v8486_v61 = vpop.f32.mrb[49].mxu0 }
 0x42a   :  { %v1302_v38 = vmax.f32 %v1300_v7, %v8486_v61  ;;  %v8489_v48 = vpop.f32.mrb[50].mxu0 }
 0x42b   :  { %v1266_v43 = vmax.f32 %v1264_v34, %v8489_v48  ;;  %v8492_v3 = vpop.f32.mrb[51].mxu0 }
 0x42c   :  { %14067 = vst [vmem:[#allocation60_spill] sm:$0xff] %v8492_v3  ;;  %v1303_v32 = vmax.f32 %v1301_v44, %v8492_v3 }
 0x430   :  { %v8495_v46 = vpop.f32.mrb[52].mxu0 }
 0x431   :  { %v1267_v49 = vmax.f32 %v1265_v41, %v8495_v46  ;;  %v8498_v13 = vpop.f32.mrb[53].mxu0 }
 0x432   :  { %14068 = vst [vmem:[#allocation61_spill] sm:$0xff] %v8498_v13  ;;  %v1304_v8 = vmax.f32 %v1302_v38, %v8498_v13  ;;  %v8501_v27 = vpop.f32.mrb[54].mxu0 }
 0x433   :  { %v1268_v40 = vmax.f32 %v1266_v43, %v8501_v27  ;;  %v8504_v63 = vpop.f32.mrb[55].mxu0 }
 0x434   :  { %14069 = vst [vmem:[#allocation62_spill] sm:$0xff] %v8504_v63  ;;  %v1305_v1 = vmax.f32 %v1303_v32, %v8504_v63 }
 0x438   :  { %v8507_v17 = vpop.f32.mrb[56].mxu0 }
 0x439   :  { %v1269_v21 = vmax.f32 %v1267_v49, %v8507_v17  ;;  %v8510_v20 = vpop.f32.mrb[57].mxu0 }
 0x43a   :  { %14070 = vst [vmem:[#allocation63_spill] sm:$0xff] %v8510_v20  ;;  %v1306_v11 = vmax.f32 %v1304_v8, %v8510_v20  ;;  %v8513_v42 = vpop.f32.mrb[58].mxu0 }
 0x43b   :  { %v1270_v60 = vmax.f32 %v1268_v40, %v8513_v42  ;;  %v8516_v2 = vpop.f32.mrb[59].mxu0 }
 0x43c   :  { %14071 = vst [vmem:[#allocation65_spill] sm:$0xff] %v8516_v2  ;;  %v1307_v57 = vmax.f32 %v1305_v1, %v8516_v2 }
 0x440   :  { %v8519_v33 = vpop.f32.mrb[60].mxu0 }
 0x441   :  { %v1271_v31 = vmax.f32 %v1269_v21, %v8519_v33  ;;  %v8522_v47 = vpop.f32.mrb[61].mxu0 }
 0x442   :  { %14072 = vst [vmem:[#allocation67_spill] sm:$0xff] %v8522_v47  ;;  %v1308_v7 = vmax.f32 %v1306_v11, %v8522_v47  ;;  %v8525_v34 = vpop.f32.mrb[62].mxu0 }
 0x443   :  { %v1272_v44 = vmax.f32 %v1270_v60, %v8525_v34  ;;  %v8528_v41 = vpop.f32.mrb[63].mxu0 }
 0x444   :  { %14073 = vst [vmem:[#allocation68_spill] sm:$0xff] %v8528_v41  ;;  %v1309_v38 = vmax.f32 %v1307_v57, %v8528_v41 }
 0x448   :  { %v8531_v43 = vpop.f32.mrb[64].mxu0 }
 0x449   :  { %v1273_v32 = vmax.f32 %v1271_v31, %v8531_v43  ;;  %v8534_v49 = vpop.f32.mrb[65].mxu0 }
 0x44a   :  { %14074 = vst [vmem:[#allocation64_spill] sm:$0xff] %v8534_v49  ;;  %v1310_v8 = vmax.f32 %v1308_v7, %v8534_v49  ;;  %v8537_v40 = vpop.f32.mrb[66].mxu0 }
 0x44b   :  { %v1274_v1 = vmax.f32 %v1272_v44, %v8537_v40  ;;  %v8540_v21 = vpop.f32.mrb[67].mxu0 }
 0x44c   :  { %14075 = vst [vmem:[#allocation66_spill] sm:$0xff] %v8540_v21  ;;  %v1311_v11 = vmax.f32 %v1309_v38, %v8540_v21 }
 0x450   :  { %v8543_v60 = vpop.f32.mrb[68].mxu0 }
 0x451   :  { %v1275_v57 = vmax.f32 %v1273_v32, %v8543_v60  ;;  %v8546_v14 = vpop.f32.mrb[69].mxu0 }
 0x452   :  { %14076 = vst [vmem:[#allocation69_spill] sm:$0xff] %v8546_v14  ;;  %v1312_v31 = vmax.f32 %v1310_v8, %v8546_v14  ;;  %v8549_v15 = vpop.f32.mrb[70].mxu0 }
 0x453   :  { %v1276_v7 = vmax.f32 %v1274_v1, %v8549_v15  ;;  %v8552_v19 = vpop.f32.mrb[71].mxu0 }
 0x454   :  { %14077 = vst [vmem:[#allocation44_spill] sm:$0xff] %v8552_v19  ;;  %v1313_v44 = vmax.f32 %v1311_v11, %v8552_v19 }
 0x458   :  { %v8555_v54 = vpop.f32.mrb[72].mxu0 }
 0x459   :  { %v1277_v38 = vmax.f32 %v1275_v57, %v8555_v54  ;;  %v8558_v5 = vpop.f32.mrb[73].mxu0 }
 0x45a   :  { %14078 = vst [vmem:[#allocation10_spill] sm:$0xff] %v8558_v5  ;;  %v1314_v32 = vmax.f32 %v1312_v31, %v8558_v5  ;;  %v8561_v10 = vpop.f32.mrb[74].mxu0 }
 0x45b   :  { %v1278_v8 = vmax.f32 %v1276_v7, %v8561_v10  ;;  %v8564_v4 = vpop.f32.mrb[75].mxu0 }
 0x45c   :  { %14079 = vst [vmem:[#allocation11_spill] sm:$0xff] %v8564_v4  ;;  %v1315_v1 = vmax.f32 %v1313_v44, %v8564_v4 }
 0x460   :  { %v8567_v22 = vpop.f32.mrb[76].mxu0 }
 0x461   :  { %v1279_v11 = vmax.f32 %v1277_v38, %v8567_v22  ;;  %v8570_v18 = vpop.f32.mrb[77].mxu0 }
 0x462   :  { %14080 = vst [vmem:[#allocation8_spill] sm:$0xff] %v8570_v18  ;;  %v1316_v57 = vmax.f32 %v1314_v32, %v8570_v18  ;;  %v8573_v0 = vpop.f32.mrb[78].mxu0 }
 0x463   :  { %v1280_v31 = vmax.f32 %v1278_v8, %v8573_v0  ;;  %v8576_v23 = vpop.f32.mrb[79].mxu0 }
 0x464   :  { %14081 = vst [vmem:[#allocation16_spill] sm:$0xff] %v8576_v23  ;;  %v1317_v7 = vmax.f32 %v1315_v1, %v8576_v23 }
 0x468   :  { %v8579_v29 = vpop.f32.mrb[80].mxu0 }
 0x469   :  { %v1281_v44 = vmax.f32 %v1279_v11, %v8579_v29  ;;  %v8582_v12 = vpop.f32.mrb[81].mxu0 }
 0x46a   :  { %14082 = vst [vmem:[#allocation17_spill] sm:$0xff] %v8582_v12  ;;  %v1318_v38 = vmax.f32 %v1316_v57, %v8582_v12  ;;  %v8585_v51 = vpop.f32.mrb[82].mxu0 }
 0x46b   :  { %v1282_v32 = vmax.f32 %v1280_v31, %v8585_v51  ;;  %v8588_v18 = vpop.f32.mrb[83].mxu0 }
 0x46c   :  { %14083 = vst [vmem:[#allocation18_spill] sm:$0xff] %v8588_v18  ;;  %v1319_v8 = vmax.f32 %v1317_v7, %v8588_v18 }
 0x470   :  { %v8591_v4 = vpop.f32.mrb[84].mxu0 }
 0x471   :  { %v1283_v1 = vmax.f32 %v1281_v44, %v8591_v4  ;;  %v8594_v23 = vpop.f32.mrb[85].mxu0 }
 0x472   :  { %14084 = vst [vmem:[#allocation19_spill] sm:$0xff] %v8594_v23  ;;  %v1320_v11 = vmax.f32 %v1318_v38, %v8594_v23  ;;  %v8597_v5 = vpop.f32.mrb[86].mxu0 }
 0x473   :  { %v1284_v57 = vmax.f32 %v1282_v32, %v8597_v5  ;;  %v8600_v12 = vpop.f32.mrb[87].mxu0 }
 0x474   :  { %14085 = vst [vmem:[#allocation20_spill] sm:$0xff] %v8600_v12  ;;  %v1321_v31 = vmax.f32 %v1319_v8, %v8600_v12 }
 0x478   :  { %v8603_v19 = vpop.f32.mrb[88].mxu0 }
 0x479   :  { %v1285_v7 = vmax.f32 %v1283_v1, %v8603_v19  ;;  %v8606_v18 = vpop.f32.mrb[89].mxu0 }
 0x47a   :  { %14086 = vst [vmem:[#allocation21_spill] sm:$0xff] %v8606_v18  ;;  %v1322_v44 = vmax.f32 %v1320_v11, %v8606_v18  ;;  %v8609_v14 = vpop.f32.mrb[90].mxu0 }
 0x47b   :  { %v1286_v38 = vmax.f32 %v1284_v57, %v8609_v14  ;;  %v8612_v23 = vpop.f32.mrb[91].mxu0 }
 0x47c   :  { %14087 = vst [vmem:[#allocation22_spill] sm:$0xff] %v8612_v23  ;;  %v1323_v32 = vmax.f32 %v1321_v31, %v8612_v23 }
 0x47d   :  { %v1287_v21 = vmax.f32 %v1285_v7, %v1286_v38 }
 0x47e   :  { %v1324_v49 = vmax.f32 %v1322_v44, %v1323_v32 }
 0x47f   :  { %v1288_v41 = vrot.slane %v1287_v21, 4 }
 0x480   :  { %v1325_v8 = vrot.slane %v1324_v49, 4 }
 0x481   :  { %v1289_v12 = vmax.f32 %v1287_v21, %v1288_v41 }
 0x482   :  { %v1326_v47 = vmax.f32 %v1324_v49, %v1325_v8 }
 0x483   :  { %v1290_v2 = vrot.slane %v1289_v12, 2 }
 0x484   :  { %v1327_v1 = vrot.slane %v1326_v47, 2 }
 0x485   :  { %v1291_v20 = vmax.f32 %v1289_v12, %v1290_v2  ;;  %v14107_v2 = vld [vmem:[#allocation21_spill] sm:$0xff] }
 0x486   :  { %v1328_v63 = vmax.f32 %v1326_v47, %v1327_v1 }
 0x487   :  { %v1292_v13 = vrot.slane %v1291_v20, 1 }
 0x488   :  { %v1329_v11 = vrot.slane %v1328_v63, 1 }
 0x489   :  { %v8615_v18 = vmax.f32 %v1291_v20, %v1292_v13 }
 0x48a   :  { %v8617_v3 = vmax.f32 %v1328_v63, %v1329_v11 }
 0x48b   :  { %v1331_v57 = vsub.f32 %v8423_v16, %v8615_v18  ;;  %v1333_v31 = vsub.f32 %v8427_v35, %v8615_v18  ;;  %v1335_v41 = vsub.f32 %v8431_v45, %v8615_v18  ;;  %v1337_v49 = vsub.f32 %v8439_v36, %v8615_v18 }
 0x48c   :  { %v1339_v12 = vsub.f32 %v8447_v28, %v8615_v18  ;;  %v1341_v13 = vsub.f32 %v8452_v39, %v8615_v18  ;;  %v1343_v63 = vsub.f32 %v8459_v59, %v8615_v18  ;;  %v1345_v16 = vsub.f32 %v8464_v6, %v8615_v18 }
 0x48d   :  { %v1347_v35 = vsub.f32 %v8471_v53, %v8615_v18  ;;  %v1349_v45 = vsub.f32 %v8477_v25, %v8615_v18  ;;  %v1351_v36 = vsub.f32 %v8483_v26, %v8615_v18  ;;  %v1353_v28 = vsub.f32 %v8489_v48, %v8615_v18 }
 0x48e   :  { %v1355_v39 = vsub.f32 %v8495_v46, %v8615_v18  ;;  %v1357_v59 = vsub.f32 %v8501_v27, %v8615_v18  ;;  %v1359_v6 = vsub.f32 %v8507_v17, %v8615_v18  ;;  %v1361_v53 = vsub.f32 %v8513_v42, %v8615_v18 }
 0x48f   :  { %v1363_v25 = vsub.f32 %v8519_v33, %v8615_v18  ;;  %v1365_v26 = vsub.f32 %v8525_v34, %v8615_v18  ;;  %v1367_v48 = vsub.f32 %v8531_v43, %v8615_v18  ;;  %v1369_v46 = vsub.f32 %v8537_v40, %v8615_v18 }
 0x490   :  { %v1371_v27 = vsub.f32 %v8543_v60, %v8615_v18  ;;  %v1373_v17 = vsub.f32 %v8549_v15, %v8615_v18  ;;  %v1375_v20 = vsub.f32 %v8555_v54, %v8615_v18  ;;  %v1377_v42 = vsub.f32 %v8561_v10, %v8615_v18 }
 0x491   :  { %v1395_v40 = vmul.f32 1.442695, %v1331_v57  ;;  %v1399_v21 = vmul.f32 1.442695, %v1333_v31  ;;  %v1403_v60 = vmul.f32 1.442695, %v1335_v41 }
 0x492   :  { %v1407_v44 = vmul.f32 1.442695, %v1337_v49  ;;  %v1411_v32 = vmul.f32 1.442695, %v1339_v12  ;;  %v1415_v8 = vmul.f32 1.442695, %v1341_v13 }
 0x493   :  { %6489 = vpow2.f32 %v1395_v40  ;;  %v1419_v1 = vmul.f32 1.442695, %v1343_v63  ;;  %v1423_v11 = vmul.f32 1.442695, %v1345_v16  ;;  %v1427_v10 = vmul.f32 1.442695, %v1347_v35 }
 0x494   :  { %6491 = vpow2.f32 %v1399_v21  ;;  %v1431_v43 = vmul.f32 1.442695, %v1349_v45  ;;  %v1435_v57 = vmul.f32 1.442695, %v1351_v36  ;;  %v1439_v31 = vmul.f32 1.442695, %v1353_v28 }
 0x495   :  { %6493 = vpow2.f32 %v1403_v60  ;;  %v1443_v41 = vmul.f32 1.442695, %v1355_v39  ;;  %v1447_v7 = vmul.f32 1.442695, %v1357_v59  ;;  %v1451_v49 = vmul.f32 1.442695, %v1359_v6 }
 0x496   :  { %6495 = vpow2.f32 %v1407_v44  ;;  %v1455_v54 = vmul.f32 1.442695, %v1361_v53  ;;  %v1459_v38 = vmul.f32 1.442695, %v1363_v25  ;;  %v1463_v40 = vmul.f32 1.442695, %v1365_v26 }
 0x497   :  { %6497 = vpow2.f32 %v1411_v32  ;;  %v1467_v12 = vmul.f32 1.442695, %v1367_v48  ;;  %v1471_v13 = vmul.f32 1.442695, %v1369_v46  ;;  %v1475_v21 = vmul.f32 1.442695, %v1371_v27 }
 0x498   :  { %6499 = vpow2.f32 %v1415_v8  ;;  %v8687_v63 = vmul.f32 1.442695, %v1373_v17  ;;  %v8689_v16 = vmul.f32 1.442695, %v1375_v20  ;;  %v8691_v35 = vmul.f32 1.442695, %v1377_v42 }
 0x499   :  { %6501 = vpow2.f32 %v1419_v1  ;;  %v14088_v27 = vld [vmem:[#allocation60_spill] sm:$0xff]  ;;  %v14090_v60 = vld [vmem:[#allocation62_spill] sm:$0xff]  ;;  %v14091_v8 = vld [vmem:[#allocation63_spill] sm:$0xff] }
 0x49a   :  { %6503 = vpow2.f32 %v1423_v11  ;;  %v14092_v11 = vld [vmem:[#allocation65_spill] sm:$0xff]  ;;  %v14094_v46 = vld [vmem:[#allocation68_spill] sm:$0xff]  ;;  %v14096_v1 = vld [vmem:[#allocation66_spill] sm:$0xff] }
 0x49b   :  { %6505 = vpow2.f32 %v1427_v10  ;;  %v14089_v10 = vld [vmem:[#allocation61_spill] sm:$0xff]  ;;  %v14095_v48 = vld [vmem:[#allocation64_spill] sm:$0xff]  ;;  %v14099_v44 = vld [vmem:[#allocation10_spill] sm:$0xff] }
 0x49c   :  { %6507 = vpow2.f32 %v1431_v43  ;;  %v14097_v53 = vld [vmem:[#allocation69_spill] sm:$0xff]  ;;  %v14098_v6 = vld [vmem:[#allocation44_spill] sm:$0xff]  ;;  %v14100_v28 = vld [vmem:[#allocation11_spill] sm:$0xff] }
 0x49d   :  { %v8701_v59 = vpop.eup %6489  ;;  %6509 = vpow2.f32 %v1435_v57  ;;  %v14101_v57 = vld [vmem:[#allocation8_spill] sm:$0xff] }
 0x49e   :  { %v8709_v26 = vpop.eup %6491  ;;  %6511 = vpow2.f32 %v1439_v31  ;;  %v14093_v31 = vld [vmem:[#allocation67_spill] sm:$0xff]  ;;  %v14102_v45 = vld [vmem:[#allocation16_spill] sm:$0xff] }
 0x49f   :  { %v8717_v20 = vpop.eup %6493  ;;  %6513 = vpow2.f32 %v1443_v41  ;;  %v1523_v42 = vadd.f32 %v8709_v26, %v8701_v59  ;;  %v14106_v41 = vld [vmem:[#allocation20_spill] sm:$0xff] }
 0x4a0   :  { %v8725_v32 = vpop.eup %6495  ;;  %6515 = vpow2.f32 %v1447_v7  ;;  %v14104_v7 = vld [vmem:[#allocation18_spill] sm:$0xff] }
 0x4a1   :  { %v8733_v17 = vpop.eup %6497  ;;  %6517 = vpow2.f32 %v1451_v49  ;;  %v1524_v43 = vadd.f32 %v8717_v20, %v1523_v42 }
 0x4a2   :  { %v8740_v25 = vpop.eup %6499  ;;  %6519 = vpow2.f32 %v1455_v54 }
 0x4a3   :  { %v8748_v39 = vpop.eup %6501  ;;  %6521 = vpow2.f32 %v1459_v38  ;;  %v1525_v42 = vadd.f32 %v8725_v32, %v1524_v43 }
 0x4a4   :  { %v8755_v36 = vpop.eup %6503  ;;  %6523 = vpow2.f32 %v1463_v40 }
 0x4a5   :  { %v8763_v34 = vpop.eup %6505  ;;  %6525 = vpow2.f32 %v1467_v12  ;;  %v1526_v43 = vadd.f32 %v8733_v17, %v1525_v42  ;;  %v14108_v42 = vsub.f32 %v8567_v22, %v8615_v18 }
 0x4a6   :  { %v8770_v33 = vpop.eup %6507  ;;  %6527 = vpow2.f32 %v1471_v13  ;;  %v14109_v13 = vsub.f32 %v8573_v0, %v8615_v18 }
 0x4a7   :  { %v8778_v15 = vpop.eup %6509  ;;  %6529 = vpow2.f32 %v1475_v21  ;;  %v1491_v54 = vmul.f32 1.442695, %v14108_v42  ;;  %v1527_v40 = vadd.f32 %v8740_v25, %v1526_v43  ;;  %v14110_v21 = vsub.f32 %v8579_v29, %v8615_v18 }
 0x4a8   :  { %v8784_v47 = vpop.eup %6511  ;;  %6531 = vpow2.f32 %v8687_v63  ;;  %v1495_v38 = vmul.f32 1.442695, %v14109_v13  ;;  %v14111_v63 = vsub.f32 %v8585_v51, %v8615_v18  ;;  %v14115_v51 = vsub.f32 %v8603_v19, %v8615_v18 }
 0x4a9   :  { %v8790_v49 = vpop.eup %6513  ;;  %6533 = vpow2.f32 %v8689_v16  ;;  %v1499_v12 = vmul.f32 1.442695, %v14110_v21  ;;  %v1528_v22 = vadd.f32 %v8748_v39, %v1527_v40  ;;  %v14112_v16 = vsub.f32 %v8591_v4, %v8615_v18 }
 0x4aa   :  { %v8797_v42 = vpop.eup %6515  ;;  %6535 = vpow2.f32 %v8691_v35  ;;  %v1503_v43 = vmul.f32 1.442695, %v14111_v63  ;;  %v14113_v40 = vsub.f32 %v8597_v5, %v8615_v18 }
 0x4ab   :  { %v8803_v0 = vpop.eup %6517  ;;  %6537 = vpow2.f32 %v1491_v54  ;;  %v1507_v13 = vmul.f32 1.442695, %v14112_v16  ;;  %v1529_v29 = vadd.f32 %v8755_v36, %v1528_v22  ;;  %v1515_v54 = vmul.f32 1.442695, %v14115_v51 }
 0x4ac   :  { %v8809_v21 = vpop.eup %6519  ;;  %6539 = vpow2.f32 %v1495_v38  ;;  %v1511_v35 = vmul.f32 1.442695, %v14113_v40  ;;  %v14116_v22 = vsub.f32 %v8609_v14, %v8615_v18  ;;  %v14119_v14 = vsub.f32 %v8435_v30, %v8617_v3 }
 0x4ad   :  { %v8814_v23 = vpop.eup %6521  ;;  %6541 = vpow2.f32 %v1499_v12  ;;  %v1530_v63 = vadd.f32 %v8763_v34, %v1529_v29  ;;  %v14117_v12 = vsub.f32 %v8425_v56, %v8617_v3  ;;  %v14118_v29 = vsub.f32 %v8429_v58, %v8617_v3 }
 0x4ae   :  { %14114 = vst [vmem:[#allocation23_spill] sm:$0xff] %v8814_v23  ;;  %v8820_v4 = vpop.eup %6523  ;;  %6543 = vpow2.f32 %v1503_v43  ;;  %v1519_v38 = vmul.f32 1.442695, %v14116_v22  ;;  %v1405_v18 = vmul.f32 1.442695, %v14119_v14  ;;  %v14120_v56 = vsub.f32 %v8443_v55, %v8617_v3 }
 0x4af   :  { %v8825_v16 = vpop.eup %6525  ;;  %6545 = vpow2.f32 %v1507_v13  ;;  %v1531_v5 = vadd.f32 %v8770_v33, %v1530_v63  ;;  %v1397_v40 = vmul.f32 1.442695, %v14117_v12  ;;  %v1401_v43 = vmul.f32 1.442695, %v14118_v29 }
 0x4b0   :  { %v8831_v19 = vpop.eup %6527  ;;  %6547 = vpow2.f32 %v1511_v35  ;;  %v1409_v63 = vmul.f32 1.442695, %v14120_v56  ;;  %v14121_v35 = vsub.f32 %v8449_v24, %v8617_v3  ;;  %v14122_v58 = vsub.f32 %v8455_v50, %v8617_v3 }
 0x4b1   :  { %v8839_v51 = vpop.eup %6529  ;;  %6549 = vpow2.f32 %v1515_v54  ;;  %v1532_v13 = vadd.f32 %v8778_v15, %v1531_v5  ;;  %v14123_v54 = vsub.f32 %v8461_v37, %v8617_v3  ;;  %v14124_v5 = vsub.f32 %v8467_v62, %v8617_v3 }
 0x4b2   :  { %v1413_v22 = vmul.f32 1.442695, %v14121_v35  ;;  %v8848_v12 = vpop.eup %6531  ;;  %6551 = vpow2.f32 %v1519_v38  ;;  %v1417_v30 = vmul.f32 1.442695, %v14122_v58  ;;  %v14125_v38 = vsub.f32 %v8474_v9, %v8617_v3 }
 0x4b3   :  { %v1421_v29 = vmul.f32 1.442695, %v14123_v54  ;;  %v1425_v55 = vmul.f32 1.442695, %v14124_v5  ;;  %v8859_v14 = vpop.eup %6533  ;;  %v1533_v24 = vadd.f32 %v8784_v47, %v1532_v13  ;;  %6553 = vpow2.f32 %v1397_v40 }
 0x4b4   :  { %v1429_v56 = vmul.f32 1.442695, %v14125_v38  ;;  %v14126_v50 = vsub.f32 %v8480_v52, %v8617_v3  ;;  %v8868_v58 = vpop.eup %6535  ;;  %6555 = vpow2.f32 %v1401_v43 }
 0x4b5   :  { %v8876_v13 = vpop.eup %6537  ;;  %v1534_v9 = vadd.f32 %v8790_v49, %v1533_v24  ;;  %6557 = vpow2.f32 %v1405_v18 }
 0x4b6   :  { %v1433_v35 = vmul.f32 1.442695, %v14126_v50  ;;  %v8883_v54 = vpop.eup %6539  ;;  %6559 = vpow2.f32 %v1409_v63  ;;  %v14127_v63 = vsub.f32 %v8486_v61, %v8617_v3  ;;  %v14128_v50 = vsub.f32 %v14088_v27, %v8617_v3 }
 0x4b7   :  { %v8891_v24 = vpop.eup %6541  ;;  %v1535_v18 = vadd.f32 %v8797_v42, %v1534_v9  ;;  %6561 = vpow2.f32 %v1413_v22 }
 0x4b8   :  { %v8898_v52 = vpop.eup %6543  ;;  %6563 = vpow2.f32 %v1417_v30  ;;  %v1437_v43 = vmul.f32 1.442695, %v14127_v63  ;;  %v1441_v38 = vmul.f32 1.442695, %v14128_v50 }
 0x4b9   :  { %v8906_v9 = vpop.eup %6545  ;;  %v1536_v22 = vadd.f32 %v8803_v0, %v1535_v18  ;;  %6565 = vpow2.f32 %v1421_v29  ;;  %v14129_v29 = vsub.f32 %v14089_v10, %v8617_v3  ;;  %v14134_v10 = vsub.f32 %v14094_v46, %v8617_v3 }
 0x4ba   :  { %v8914_v40 = vpop.eup %6547  ;;  %6567 = vpow2.f32 %v1425_v55  ;;  %v14130_v55 = vsub.f32 %v14090_v60, %v8617_v3  ;;  %v14133_v60 = vsub.f32 %v14093_v31, %v8617_v3  ;;  %v14137_v46 = vsub.f32 %v14097_v53, %v8617_v3 }
 0x4bb   :  { %v8919_v5 = vpop.eup %6549  ;;  %v1537_v62 = vadd.f32 %v8809_v21, %v1536_v22  ;;  %6569 = vpow2.f32 %v1429_v56  ;;  %v1445_v61 = vmul.f32 1.442695, %v14129_v29  ;;  %v14131_v56 = vsub.f32 %v14091_v8, %v8617_v3 }
 0x4bc   :  { %v8927_v63 = vpop.eup %6551  ;;  %6571 = vpow2.f32 %v1433_v35  ;;  %v1449_v27 = vmul.f32 1.442695, %v14130_v55  ;;  %v14132_v35 = vsub.f32 %v14092_v11, %v8617_v3  ;;  %v1461_v55 = vmul.f32 1.442695, %v14133_v60 }
 0x4bd   :  { %v6554_v50 = vpop.eup %6553  ;;  %v1538_v30 = vadd.f32 %v8814_v23, %v1537_v62  ;;  %6573 = vpow2.f32 %v1437_v43  ;;  %v1453_v22 = vmul.f32 1.442695, %v14131_v56  ;;  %v14135_v11 = vsub.f32 %v14095_v48, %v8617_v3 }
 0x4be   :  { %v6556_v29 = vpop.eup %6555  ;;  %6575 = vpow2.f32 %v1441_v38  ;;  %v1457_v18 = vmul.f32 1.442695, %v14132_v35  ;;  %v1465_v38 = vmul.f32 1.442695, %v14134_v10  ;;  %v1477_v10 = vmul.f32 1.442695, %v14137_v46 }
 0x4bf   :  { %v6558_v37 = vpop.eup %6557  ;;  %v1539_v62 = vadd.f32 %v8820_v4, %v1538_v30  ;;  %6577 = vpow2.f32 %v1445_v61  ;;  %v1560_v43 = vadd.f32 %v6556_v29, %v6554_v50  ;;  %v1600_v8 = vpack.c.bf16 %v6556_v29, %v6554_v50 }
 0x4c0   :  { %v6560_v56 = vpop.eup %6559  ;;  %6579 = vpow2.f32 %v1449_v27  ;;  %v1469_v35 = vmul.f32 1.442695, %v14135_v11  ;;  %v14136_v27 = vsub.f32 %v14096_v1, %v8617_v3  ;;  %v14138_v48 = vpack.c.bf16 %v8709_v26, %v8701_v59 }
 0x4c1   :  { %v6562_v23 = vpop.eup %6561  ;;  %v1540_v31 = vadd.f32 %v8825_v16, %v1539_v62  ;;  %6581 = vpow2.f32 %v1453_v22  ;;  %v1561_v60 = vadd.f32 %v6558_v37, %v1560_v43  ;;  %1631 = vmatprep.subr.bf16.mxu1 %v1600_v8  ;;  %v1602_v30 = vpack.c.bf16 %v6560_v56, %v6558_v37 }
 0x4c2   :  { %v6564_v61 = vpop.eup %6563  ;;  %6583 = vpow2.f32 %v1457_v18  ;;  %v1473_v50 = vmul.f32 1.442695, %v14136_v27  ;;  %1632 = vmatpush1.bf16.msra.mxu1 %v14138_v48  ;;  %v14139_v1 = vsub.f32 %v14098_v6, %v8617_v3  ;;  %v14140_v53 = vsub.f32 %v14099_v44, %v8617_v3  ;;  %v14145_v48 = vld [vmem:[#allocation17_spill] sm:$0xff] }
 0x4c3   :  { %v6566_v29 = vpop.eup %6565  ;;  %v1541_v22 = vadd.f32 %v8831_v19, %v1540_v31  ;;  %6585 = vpow2.f32 %v1461_v55  ;;  %v1562_v62 = vadd.f32 %v6560_v56, %v1561_v60  ;;  %1633 = vmatprep.subr.bf16.mxu1 %v1602_v30  ;;  %v1604_v37 = vpack.c.bf16 %v6564_v61, %v6562_v23 }
 0x4c4   :  { %v6568_v18 = vpop.eup %6567  ;;  %6587 = vpow2.f32 %v1465_v38  ;;  %v1481_v43 = vmul.f32 1.442695, %v14139_v1  ;;  %v1485_v8 = vmul.f32 1.442695, %v14140_v53  ;;  %v14141_v56 = vsub.f32 %v14100_v28, %v8617_v3 }
 0x4c5   :  { %v6570_v11 = vpop.eup %6569  ;;  %v1542_v59 = vadd.f32 %v8839_v51, %v1541_v22  ;;  %6589 = vpow2.f32 %v1469_v35  ;;  %v1563_v26 = vadd.f32 %v6562_v23, %v1562_v62  ;;  %v1606_v31 = vpack.c.bf16 %v6568_v18, %v6566_v29 }
 0x4c6   :  { %v6572_v55 = vpop.eup %6571  ;;  %6591 = vpow2.f32 %v1473_v50  ;;  %v1489_v38 = vmul.f32 1.442695, %v14141_v56  ;;  %v14142_v6 = vsub.f32 %v14101_v57, %v8617_v3  ;;  %v14143_v44 = vpack.c.bf16 %v8725_v32, %v8717_v20 }
 0x4c7   :  { %v6574_v30 = vpop.eup %6573  ;;  %v1543_v27 = vadd.f32 %v8848_v12, %v1542_v59  ;;  %6593 = vpow2.f32 %v1477_v10  ;;  %v1564_v23 = vadd.f32 %v6564_v61, %v1563_v26  ;;  %v1608_v35 = vpack.c.bf16 %v6572_v55, %v6570_v11 }
 0x4c8   :  { %v1493_v60 = vmul.f32 1.442695, %v14142_v6  ;;  %1634 = vmatpush1.bf16.msra.mxu1 %v14143_v44  ;;  %v6576_v50 = vpop.eup %6575  ;;  %6595 = vpow2.f32 %v1481_v43  ;;  %v14144_v28 = vsub.f32 %v14102_v45, %v8617_v3  ;;  %v14146_v57 = vsub.f32 %v14145_v48, %v8617_v3  ;;  %v14148_v43 = vld [vmem:[#allocation19_spill] sm:$0xff] }
 0x4c9   :  { %1635 = vmatprep.subr.bf16.mxu1 %v1604_v37  ;;  %v6578_v62 = vpop.eup %6577  ;;  %v1544_v20 = vadd.f32 %v8859_v14, %v1543_v27  ;;  %6597 = vpow2.f32 %v1485_v8  ;;  %v1565_v32 = vadd.f32 %v6566_v29, %v1564_v23  ;;  %v1610_v1 = vpack.c.bf16 %v6576_v50, %v6574_v30 }
 0x4ca   :  { %v1497_v46 = vmul.f32 1.442695, %v14144_v28  ;;  %v1501_v22 = vmul.f32 1.442695, %v14146_v57  ;;  %v6580_v10 = vpop.eup %6579  ;;  %6599 = vpow2.f32 %v1489_v38  ;;  %v14147_v61 = vsub.f32 %v14104_v7, %v8617_v3 }
 0x4cb   :  { %v14149_v45 = vsub.f32 %v14148_v43, %v8617_v3  ;;  %v14150_v59 = vpack.c.bf16 %v8740_v25, %v8733_v17  ;;  %v6582_v26 = vpop.eup %6581  ;;  %v1545_v56 = vadd.f32 %v8868_v58, %v1544_v20  ;;  %6601 = vpow2.f32 %v1493_v60 }
 0x4cc   :  { %v1505_v37 = vmul.f32 1.442695, %v14147_v61  ;;  %v1566_v29 = vadd.f32 %v6568_v18, %v1565_v32  ;;  %v1612_v8 = vpack.c.bf16 %v6580_v10, %v6578_v62  ;;  %v6584_v38 = vpop.eup %6583  ;;  %6603 = vpow2.f32 %v1497_v46  ;;  %v14153_v18 = vld [vmem:[#allocation22_spill] sm:$0xff] }
 0x4cd   :  { %v1509_v53 = vmul.f32 1.442695, %v14149_v45  ;;  %1636 = vmatpush1.bf16.msra.mxu1 %v14150_v59  ;;  %v14151_v7 = vsub.f32 %v14106_v41, %v8617_v3  ;;  %v14152_v44 = vsub.f32 %v14107_v2, %v8617_v3  ;;  %v6586_v23 = vpop.eup %6585  ;;  %v1546_v25 = vadd.f32 %v8876_v13, %v1545_v56 }
 0x4ce   :  { %1637 = vmatprep.subr.bf16.mxu1 %v1606_v31  ;;  %6605 = vpow2.f32 %v1501_v22  ;;  %v1567_v17 = vadd.f32 %v6570_v11, %v1566_v29  ;;  %v1614_v28 = vpack.c.bf16 %v6584_v38, %v6582_v26  ;;  %v6588_v60 = vpop.eup %6587  ;;  %v14154_v31 = vsub.f32 %v14153_v18, %v8617_v3 }
 0x4cf   :  { %v1513_v6 = vmul.f32 1.442695, %v14151_v7  ;;  %v1517_v27 = vmul.f32 1.442695, %v14152_v44  ;;  %6607 = vpow2.f32 %v1505_v37  ;;  %v14155_v41 = vpack.c.bf16 %v8755_v36, %v8748_v39  ;;  %v6590_v48 = vpop.eup %6589 }
 0x4d0   :  { %v1521_v46 = vmul.f32 1.442695, %v14154_v31  ;;  %v1547_v2 = vadd.f32 %v8883_v54, %v1546_v25  ;;  %6609 = vpow2.f32 %v1509_v53  ;;  %v1568_v57 = vadd.f32 %v6572_v55, %v1567_v17  ;;  %v6592_v22 = vpop.eup %6591 }
 0x4d1   :  { %1638 = vmatpush1.bf16.msra.mxu1 %v14155_v41  ;;  %v1616_v20 = vpack.c.bf16 %v6588_v60, %v6586_v23  ;;  %6611 = vpow2.f32 %v1513_v6  ;;  %v6594_v11 = vpop.eup %6593  ;;  %v1618_v3 = vpack.c.bf16 %v6592_v22, %v6590_v48  ;;  %v14156_v36 = vpack.c.bf16 %v8770_v33, %v8763_v34 }
 0x4d2   :  { %1639 = vmatprep.subr.bf16.mxu1 %v1608_v35  ;;  %v1548_v32 = vadd.f32 %v8891_v24, %v1547_v2  ;;  %6613 = vpow2.f32 %v1517_v27  ;;  %v1569_v61 = vadd.f32 %v6574_v30, %v1568_v57  ;;  %v6596_v37 = vpop.eup %6595  ;;  %v14157_v7 = vpack.c.bf16 %v8784_v47, %v8778_v15 }
 0x4d3   :  { %6615 = vpow2.f32 %v1521_v46  ;;  %v6598_v39 = vpop.eup %6597  ;;  %v1620_v35 = vpack.c.bf16 %v6596_v37, %v6594_v11  ;;  %v14159_v2 = vpack.c.bf16 %v8809_v21, %v8803_v0  ;;  %v14163_v0 = vpack.c.bf16 %v8848_v12, %v8839_v51 }
 0x4d4   :  { %v1549_v43 = vadd.f32 %v8898_v52, %v1548_v32  ;;  %v1570_v55 = vadd.f32 %v6576_v50, %v1569_v61  ;;  %v6600_v45 = vpop.eup %6599  ;;  %v14166_v51 = vpack.c.bf16 %v8898_v52, %v8891_v24 }
 0x4d5   :  { %1640 = vmatpush1.bf16.msra.mxu1 %v14156_v36  ;;  %v6602_v53 = vpop.eup %6601  ;;  %v1622_v29 = vpack.c.bf16 %v6600_v45, %v6598_v39 }
 0x4d6   :  { %1641 = vmatprep.subr.bf16.mxu1 %v1610_v1  ;;  %v1550_v59 = vadd.f32 %v8906_v9, %v1549_v43  ;;  %v1571_v56 = vadd.f32 %v6578_v62, %v1570_v55  ;;  %v6604_v30 = vpop.eup %6603  ;;  %v14158_v62 = vpack.c.bf16 %v8797_v42, %v8790_v49  ;;  %v14160_v49 = vld [vmem:[#allocation23_spill] sm:$0xff] }
 0x4d7   :  { %v1624_v44 = vpack.c.bf16 %v6604_v30, %v6602_v53  ;;  %v14161_v42 = vpack.c.bf16 %v8820_v4, %v14160_v49  ;;  %v14164_v4 = vpack.c.bf16 %v8868_v58, %v8859_v14  ;;  %v14169_v58 = vld [vmem:[#allocation14_spill] sm:$0xff]  ;;  %v14201_v49 = vld [vmem:[#allocation56_spill] sm:$0xff] }
 0x4d8   :  { %v6606_v6 = vpop.eup %6605  ;;  %v1551_v33 = vadd.f32 %v8914_v40, %v1550_v59  ;;  %v1572_v34 = vadd.f32 %v6580_v10, %v1571_v56  ;;  %v14176_v59 = vld [vmem:[#allocation31_spill] sm:$0xff]  ;;  %v14179_v56 = vld [vmem:[#allocation34_spill] sm:$0xff] }
 0x4d9   :  { %1642 = vmatpush1.bf16.msra.mxu1 %v14157_v7  ;;  %v6608_v50 = vpop.eup %6607  ;;  %v14182_v7 = vld [vmem:[#allocation40_spill] sm:$0xff] }
 0x4da   :  { %1643 = vmatprep.subr.bf16.mxu1 %v1612_v8  ;;  %v6610_v1 = vpop.eup %6609  ;;  %v1552_v27 = vadd.f32 %v8919_v5, %v1551_v33  ;;  %v1573_v25 = vadd.f32 %v6582_v26, %v1572_v34  ;;  %v1626_v17 = vpack.c.bf16 %v6608_v50, %v6606_v6  ;;  %v14185_v34 = vld [vmem:[#allocation46_spill] sm:$0xff] }
 0x4db   :  { %v6612_v18 = vpop.eup %6611 }
 0x4dc   :  { %v6614_v31 = vpop.eup %6613  ;;  %v9025_v47 = vadd.f32 %v8927_v63, %v1552_v27  ;;  %v1574_v15 = vadd.f32 %v6584_v38, %v1573_v25  ;;  %v1628_v10 = vpack.c.bf16 %v6612_v18, %v6610_v1  ;;  %v14162_v38 = vpack.c.bf16 %v8831_v19, %v8825_v16  ;;  %v14189_v27 = vld [vmem:[#allocation49_spill] sm:$0xff] }
 0x4dd   :  { %1644 = vmatpush1.bf16.msra.mxu1 %v14158_v62  ;;  %v6616_v8 = vpop.eup %6615  ;;  %v14165_v16 = vpack.c.bf16 %v8883_v54, %v8876_v13  ;;  %v14170_v13 = vpack.c.bf16 %v8914_v40, %v8906_v9  ;;  %v14171_v54 = vld [vmem:[#allocation53_spill] sm:$0xff]  ;;  %v14174_v40 = vmov 0   ;;  %v14175_v9 = vld [vmem:[#allocation30_spill] sm:$0xff] }
 0x4de   :  { %1645 = vmatprep.subr.bf16.mxu1 %v1614_v28  ;;  %v1575_v46 = vadd.f32 %v6586_v23, %v1574_v15  ;;  %v1630_v41 = vpack.c.bf16 %v6616_v8, %v6614_v31 }
 0x4e0   :  { %v1576_v26 = vadd.f32 %v6588_v60, %v1575_v46 }
 0x4e1   :  { %1646 = vmatpush1.bf16.msra.mxu1 %v14159_v2  ;;  %v14200_v2 = vld [vmem:[#allocation71_spill] sm:$0xff] }
 0x4e2   :  { %1647 = vmatprep.subr.bf16.mxu1 %v1616_v20  ;;  %v1577_v57 = vadd.f32 %v6590_v48, %v1576_v26 }
 0x4e4   :  { %v1578_v32 = vadd.f32 %v6592_v22, %v1577_v57 }
 0x4e5   :  { %1648 = vmatpush1.bf16.msra.mxu1 %v14161_v42  ;;  %v1554_v42 = vrot.slane %v9025_v47, 4 }
 0x4e6   :  { %1649 = vmatprep.subr.bf16.mxu1 %v1618_v3  ;;  %v1579_v61 = vadd.f32 %v6594_v11, %v1578_v32  ;;  %v14167_v11 = vld [vmem:[#allocation29_spill] sm:$0xff] }
 0x4e7   :  { %v14168_v3 = vld [vmem:[#allocation13_spill] sm:$0xff] }
 0x4e8   :  { %v1580_v23 = vadd.f32 %v6596_v37, %v1579_v61  ;;  %v240_v14 = vadd.f32 %v14168_v3, %v14167_v11  ;;  %v242_v37 = vadd.f32 %v14169_v58, %v14167_v11  ;;  %v1555_v61 = vadd.f32 %v1554_v42, %v9025_v47 }
 0x4e9   :  { %1650 = vmatpush1.bf16.msra.mxu1 %v14162_v38 }
 0x4ea   :  { %1651 = vmatprep.subr.bf16.mxu1 %v1620_v35  ;;  %v1581_v28 = vadd.f32 %v6598_v39, %v1580_v23  ;;  %v14172_v39 = vld [vmem:[#allocation12_spill] sm:$0xff]  ;;  %v1675_v52 = vpack.c.bf16 %v242_v37, %v242_v37  ;;  %v1674_v24 = vpack.c.bf16 %v240_v14, %v240_v14  ;;  %v14173_v35 = vpack.c.bf16 %v8927_v63, %v8919_v5  ;;  %v14178_v63 = vld [vmem:[#allocation33_spill] sm:$0xff] }
 0x4eb   :  { %v234_v43 = vadd.f32 %v14172_v39, %v14171_v54  ;;  %v14177_v5 = vld [vmem:[#allocation32_spill] sm:$0xff]  ;;  %v1556_v23 = vrot.slane %v1555_v61, 2 }
 0x4ec   :  { %v1582_v21 = vadd.f32 %v6600_v45, %v1581_v28 }
 0x4ed   :  { %1652 = vmatpush1.bf16.msra.mxu1 %v14163_v0  ;;  %v976_v45 = vpack.c.bf16 %v234_v43, %v234_v43  ;;  %v1557_v0 = vadd.f32 %v1556_v23, %v1555_v61 }
 0x4ee   :  { %1653 = vmatprep.subr.bf16.mxu1 %v1622_v29  ;;  %v1583_v60 = vadd.f32 %v6602_v53, %v1582_v21  ;;  %v1761_v53 = vsel %vm355_vm1, %v1674_v24, 0  ;;  %v14180_v29 = vld [vmem:[#allocation36_spill] sm:$0xff] }
 0x4f0   :  { %v1584_v48 = vadd.f32 %v6604_v30, %v1583_v60  ;;  %v14181_v30 = vld [vmem:[#allocation38_spill] sm:$0xff]  ;;  %v1558_v60 = vrot.slane %v1557_v0, 1 }
 0x4f1   :  { %1654 = vmatpush1.bf16.msra.mxu1 %v14164_v4 }
 0x4f2   :  { %1655 = vmatprep.subr.bf16.mxu1 %v1624_v44  ;;  %v1585_v20 = vadd.f32 %v6606_v6, %v1584_v48  ;;  %v9087_v6 = vpop.permute.xlu0 %113  ;;  %v1559_v48 = vadd.f32 %v1558_v60, %v1557_v0 }
 0x4f3   :  { %14183 = vst [vmem:[#allocation35_spill] sm:$0xff] %v9087_v6 }
 0x4f4   :  { %v1586_v19 = vadd.f32 %v6608_v50, %v1585_v20  ;;  %v14187_v50 = vld [vmem:[#allocation48_spill] sm:$0xff]  ;;  %6617 = vrcp.f32 %v1559_v48 }
 0x4f5   :  { %1656 = vmatpush1.bf16.msra.mxu1 %v14165_v16 }
 0x4f6   :  { %1657 = vmatprep.subr.bf16.mxu1 %v1626_v17  ;;  %v1587_v22 = vadd.f32 %v6610_v1, %v1586_v19  ;;  %v9089_v33 = vpop.trf.xlu0 }
 0x4f7   :  { %14184 = vst [vmem:[#allocation37_spill] sm:$0xff] %v9089_v33 }
 0x4f8   :  { %v1588_v12 = vadd.f32 %v6612_v18, %v1587_v22  ;;  %v14192_v18 = vld [vmem:[#allocation51_spill] sm:$0xff] }
 0x4f9   :  { %1658 = vmatpush1.bf16.msra.mxu1 %v14166_v51 }
 0x4fa   :  { %1659 = vmatprep.subr.bf16.mxu1 %v1628_v10  ;;  %v1589_v36 = vadd.f32 %v6614_v31, %v1588_v12  ;;  %v9094_v44 = vpop.trf.xlu0  ;;  %v14194_v31 = vld [vmem:[#allocation52_spill] sm:$0xff]  ;;  %v14196_v10 = vld [vmem:[#allocation54_spill] sm:$0xff] }
 0x4fb   :  { %14186 = vst [vmem:[#allocation39_spill] sm:$0xff] %v9094_v44 }
 0x4fc   :  { %v1590_v55 = vadd.f32 %v6616_v8, %v1589_v36 }
 0x4fd   :  { %1660 = vmatpush1.bf16.msra.mxu1 %v14170_v13 }
 0x4fe   :  { %1661 = vmatprep.subr.bf16.mxu1 %v1630_v41  ;;  %v9099_v1 = vpop.trf.xlu0  ;;  %v14199_v41 = vld [vmem:[#allocation55_spill] sm:$0xff]  ;;  %v1591_v32 = vrot.slane %v1590_v55, 4  ;;  %v6618_v16 = vpop.eup %6617 }
 0x4ff   :  { %14188 = vst [vmem:[#allocation41_spill] sm:$0xff] %v9099_v1 }
 0x500   :  { %v1592_v38 = vadd.f32 %v1591_v32, %v1590_v55 }
 0x501   :  { %1662 = vmatpush1.bf16.msra.mxu1 %v14173_v35 }
 0x502   :  { %6221 = vmatprep.subr.msk.bf16.mxu1 %vm355_vm1, %v1675_v52  ;;  %v9104_v25 = vpop.trf.xlu0  ;;  %v1593_v28 = vrot.slane %v1592_v38, 2 }
 0x503   :  { %14190 = vst [vmem:[#allocation43_spill] sm:$0xff] %v9104_v25 }
 0x504   :  { %1664 = vmatmul.mubr.bf16.vlgmr.msra.gmra.mrb[64].mxu1 %v976_v45  ;;  %v1594_v21 = vadd.f32 %v1593_v28, %v1592_v38 }
 0x505   :  { %1767 = vmatpush1.bf16.msra.mxu1 %v1761_v53  ;;  %1798 = vmatprep.mubr.bf16.mxu1 %v14174_v40 }
 0x506   :  { %v9106_v17 = vpop.trf.xlu0  ;;  %v1595_v4 = vrot.slane %v1594_v21, 1 }
 0x507   :  { %14191 = vst [vmem:[#allocation45_spill] sm:$0xff] %v9106_v17 }
 0x508   :  { %v1596_v20 = vadd.f32 %v1595_v4, %v1594_v21 }
 0x50a   :  { %v9111_v62 = vpop.trf.xlu0  ;;  %6619 = vrcp.f32 %v1596_v20 }
 0x50b   :  { %14193 = vst [vmem:[#allocation47_spill] sm:$0xff] %v9111_v62 }
 0x50c   :  { %6222 = vmatmul.mubr.msk.bf16.vlgmr.msra.gmra.mrb[68].mxu1 %vm306_vm2, %v14175_v9 }
 0x50d   :  { %1808 = vmatprep.mubr.bf16.mxu1 %v14174_v40 }
 0x50e   :  { %v9116_v15 = vpop.trf.xlu0 }
 0x50f   :  { %14195 = vst [vmem:[#allocation26_spill] sm:$0xff] %v9116_v15 }
 0x512   :  { %v9121_v8 = vpop.trf.xlu0 }
 0x513   :  { %14197 = vst [vmem:[#allocation50_spill] sm:$0xff] %v9121_v8 }
 0x514   :  { %6223 = vmatmul.mubr.msk.bf16.gmra.mrb[72].mxu1 %vm306_vm2, %v14176_v59  ;;  %v6620_v22 = vpop.eup %6619 }
 0x515   :  { %1818 = vmatprep.mubr.bf16.mxu1 %v14174_v40 }
 0x516   :  { %v9123_v46 = vpop.permute.xlu0 %123 }
 0x517   :  { %14198 = vst [vmem:[#allocation60_spill] sm:$0xff] %v9123_v46  ;;  %v266_v26 = vadd.f32 %v14200_v2, %v9123_v46 }
 0x519   :  { %v2381_v57 = vpack.c.bf16 %v266_v26, %v266_v26 }
 0x51c   :  { %6224 = vmatmul.mubr.msk.bf16.gmra.mrb[76].mxu1 %vm306_vm2, %v14177_v5 }
 0x51d   :  { %1828 = vmatprep.mubr.bf16.mxu1 %v14174_v40 }
 0x524   :  { %6225 = vmatmul.mubr.msk.bf16.gmra.mrb[80].mxu1 %vm306_vm2, %v14178_v63 }
 0x525   :  { %1838 = vmatprep.mubr.bf16.mxu1 %v14174_v40 }
 0x52c   :  { %6226 = vmatmul.mubr.msk.bf16.gmra.mrb[84].mxu1 %vm306_vm2, %v14179_v56 }
 0x52d   :  { %1848 = vmatprep.mubr.bf16.mxu1 %v14174_v40 }
 0x534   :  { %6227 = vmatmul.mubr.msk.bf16.gmra.mrb[88].mxu1 %vm306_vm2, %v14180_v29 }
 0x535   :  { %1858 = vmatprep.mubr.bf16.mxu1 %v14174_v40 }
 0x53c   :  { %6228 = vmatmul.mubr.msk.bf16.gmra.mrb[92].mxu1 %vm306_vm2, %v14181_v30 }
 0x53d   :  { %1868 = vmatprep.mubr.bf16.mxu1 %v14174_v40 }
 0x544   :  { %6229 = vmatmul.mubr.msk.bf16.gmra.mrb[96].mxu1 %vm306_vm2, %v14182_v7 }
 0x545   :  { %1878 = vmatprep.mubr.bf16.mxu1 %v14174_v40 }
 0x54c   :  { %6230 = vmatmul.mubr.msk.bf16.gmra.mrb[100].mxu1 %vm306_vm2, %v14185_v34 }
 0x54d   :  { %1888 = vmatprep.mubr.bf16.mxu1 %v14174_v40 }
 0x554   :  { %6231 = vmatmul.mubr.msk.bf16.gmra.mrb[104].mxu1 %vm306_vm2, %v14187_v50 }
 0x555   :  { %1898 = vmatprep.mubr.bf16.mxu1 %v14174_v40 }
 0x55c   :  { %6232 = vmatmul.mubr.msk.bf16.gmra.mrb[108].mxu1 %vm306_vm2, %v14189_v27 }
 0x55d   :  { %1908 = vmatprep.mubr.bf16.mxu1 %v14174_v40 }
 0x564   :  { %6233 = vmatmul.mubr.msk.bf16.gmra.mrb[112].mxu1 %vm306_vm2, %v14192_v18 }
 0x565   :  { %1918 = vmatprep.mubr.bf16.mxu1 %v14174_v40 }
 0x56c   :  { %6234 = vmatmul.mubr.msk.bf16.gmra.mrb[116].mxu1 %vm306_vm2, %v14194_v31 }
 0x56d   :  { %1928 = vmatprep.mubr.bf16.mxu1 %v14174_v40 }
 0x574   :  { %6235 = vmatmul.mubr.msk.bf16.gmra.mrb[120].mxu1 %vm306_vm2, %v14196_v10 }
 0x575   :  { %1938 = vmatprep.mubr.bf16.mxu1 %v14174_v40 }
 0x57c   :  { %6236 = vmatmul.mubr.msk.bf16.gmra.mrb[124].mxu1 %vm306_vm2, %v14199_v41 }
 0x57d   :  { %1948 = vmatprep.mubr.bf16.mxu1 %v14174_v40 }
 0x584   :  { %6237 = vmatmul.mubr.msk.bf16.gmra.mrb[128].mxu1 %vm306_vm2, %v14201_v49 }
 0x585   :  { %3067 = vmatprep.mubr.bf16.mxu1 %v2381_v57 }
 0x5d7   :  { %v1665_v19 = vpop.f32.mrb[64].mxu1 }
 0x5d8   :  { %v9134_v51 = vmul.f32 %v6618_v16, %v1665_v19  ;;  %v1667_v12 = vpop.f32.mrb[65].mxu1 }
 0x5d9   :  { %v9136_v3 = vmul.f32 %v6620_v22, %v1667_v12  ;;  %v1669_v47 = vpop.f32.mrb[66].mxu1 }
 0x5da   :  { %14202 = vst [vmem:[#allocation61_spill] sm:$0xff] %v9134_v51  ;;  %v1670_v37 = vpop.f32.mrb[67].mxu1 }
 0x5db   :  { %14203 = vst [vmem:[#allocation62_spill] sm:$0xff] %v9136_v3 }
 0x5df   :  { %v9142_v39 = vpop.f32.mrb[68].mxu1 }
 0x5e0   :  { %v9144_v43 = vpop.f32.mrb[69].mxu1 }
 0x5e1   :  { %v9146_v55 = vpop.f32.mrb[70].mxu1 }
 0x5e2   :  { %v9148_v52 = vpop.f32.mrb[71].mxu1 }
 0x5e7   :  { %v9150_v24 = vpop.f32.mrb[72].mxu1 }
 0x5e8   :  { %v1959_v35 = vmax.f32 %v9142_v39, %v9150_v24  ;;  %v9154_v45 = vpop.f32.mrb[73].mxu1 }
 0x5e9   :  { %v1996_v53 = vmax.f32 %v9144_v43, %v9154_v45  ;;  %v9158_v9 = vpop.f32.mrb[74].mxu1 }
 0x5ea   :  { %v1960_v59 = vmax.f32 %v9146_v55, %v9158_v9  ;;  %v9162_v5 = vpop.f32.mrb[75].mxu1 }
 0x5eb   :  { %v1997_v63 = vmax.f32 %v9148_v52, %v9162_v5 }
 0x5ef   :  { %v9166_v56 = vpop.f32.mrb[76].mxu1 }
 0x5f0   :  { %v1961_v29 = vmax.f32 %v1959_v35, %v9166_v56  ;;  %v9169_v30 = vpop.f32.mrb[77].mxu1 }
 0x5f1   :  { %v1998_v7 = vmax.f32 %v1996_v53, %v9169_v30  ;;  %v9172_v34 = vpop.f32.mrb[78].mxu1 }
 0x5f2   :  { %v1962_v50 = vmax.f32 %v1960_v59, %v9172_v34  ;;  %v9175_v27 = vpop.f32.mrb[79].mxu1 }
 0x5f3   :  { %v1999_v18 = vmax.f32 %v1997_v63, %v9175_v27 }
 0x5f7   :  { %v9178_v31 = vpop.f32.mrb[80].mxu1 }
 0x5f8   :  { %v1963_v10 = vmax.f32 %v1961_v29, %v9178_v31  ;;  %v9181_v41 = vpop.f32.mrb[81].mxu1 }
 0x5f9   :  { %v2000_v2 = vmax.f32 %v1998_v7, %v9181_v41  ;;  %v9184_v26 = vpop.f32.mrb[82].mxu1 }
 0x5fa   :  { %v1964_v57 = vmax.f32 %v1962_v50, %v9184_v26  ;;  %v9187_v49 = vpop.f32.mrb[83].mxu1 }
 0x5fb   :  { %v2001_v42 = vmax.f32 %v1999_v18, %v9187_v49 }
 0x5ff   :  { %v9190_v32 = vpop.f32.mrb[84].mxu1 }
 0x600   :  { %v1965_v61 = vmax.f32 %v1963_v10, %v9190_v32  ;;  %v9193_v38 = vpop.f32.mrb[85].mxu1 }
 0x601   :  { %v2002_v23 = vmax.f32 %v2000_v2, %v9193_v38  ;;  %v9196_v28 = vpop.f32.mrb[86].mxu1 }
 0x602   :  { %v1966_v0 = vmax.f32 %v1964_v57, %v9196_v28  ;;  %v9199_v21 = vpop.f32.mrb[87].mxu1 }
 0x603   :  { %v2003_v60 = vmax.f32 %v2001_v42, %v9199_v21 }
 0x607   :  { %v9202_v4 = vpop.f32.mrb[88].mxu1 }
 0x608   :  { %v1967_v48 = vmax.f32 %v1965_v61, %v9202_v4  ;;  %v9205_v20 = vpop.f32.mrb[89].mxu1 }
 0x609   :  { %v2004_v16 = vmax.f32 %v2002_v23, %v9205_v20  ;;  %v9208_v19 = vpop.f32.mrb[90].mxu1 }
 0x60a   :  { %v1968_v22 = vmax.f32 %v1966_v0, %v9208_v19  ;;  %v9211_v12 = vpop.f32.mrb[91].mxu1 }
 0x60b   :  { %14206 = vst [vmem:[#allocation63_spill] sm:$0xff] %v9211_v12  ;;  %v2005_v47 = vmax.f32 %v2003_v60, %v9211_v12 }
 0x60f   :  { %v9214_v37 = vpop.f32.mrb[92].mxu1 }
 0x610   :  { %v1969_v35 = vmax.f32 %v1967_v48, %v9214_v37  ;;  %v9217_v53 = vpop.f32.mrb[93].mxu1 }
 0x611   :  { %14207 = vst [vmem:[#allocation65_spill] sm:$0xff] %v9217_v53  ;;  %v2006_v59 = vmax.f32 %v2004_v16, %v9217_v53  ;;  %v9220_v63 = vpop.f32.mrb[94].mxu1 }
 0x612   :  { %v1970_v29 = vmax.f32 %v1968_v22, %v9220_v63  ;;  %v9223_v7 = vpop.f32.mrb[95].mxu1 }
 0x613   :  { %14208 = vst [vmem:[#allocation67_spill] sm:$0xff] %v9223_v7  ;;  %v2007_v50 = vmax.f32 %v2005_v47, %v9223_v7 }
 0x617   :  { %v9226_v18 = vpop.f32.mrb[96].mxu1 }
 0x618   :  { %v1971_v10 = vmax.f32 %v1969_v35, %v9226_v18  ;;  %v9229_v2 = vpop.f32.mrb[97].mxu1 }
 0x619   :  { %14209 = vst [vmem:[#allocation68_spill] sm:$0xff] %v9229_v2  ;;  %v2008_v57 = vmax.f32 %v2006_v59, %v9229_v2  ;;  %v9232_v42 = vpop.f32.mrb[98].mxu1 }
 0x61a   :  { %v1972_v61 = vmax.f32 %v1970_v29, %v9232_v42  ;;  %v9235_v23 = vpop.f32.mrb[99].mxu1 }
 0x61b   :  { %14210 = vst [vmem:[#allocation64_spill] sm:$0xff] %v9235_v23  ;;  %v2009_v0 = vmax.f32 %v2007_v50, %v9235_v23 }
 0x61f   :  { %v9238_v60 = vpop.f32.mrb[100].mxu1 }
 0x620   :  { %v1973_v48 = vmax.f32 %v1971_v10, %v9238_v60  ;;  %v9241_v16 = vpop.f32.mrb[101].mxu1 }
 0x621   :  { %14211 = vst [vmem:[#allocation66_spill] sm:$0xff] %v9241_v16  ;;  %v2010_v22 = vmax.f32 %v2008_v57, %v9241_v16  ;;  %v9244_v47 = vpop.f32.mrb[102].mxu1 }
 0x622   :  { %v1974_v35 = vmax.f32 %v1972_v61, %v9244_v47  ;;  %v9247_v59 = vpop.f32.mrb[103].mxu1 }
 0x623   :  { %14212 = vst [vmem:[#allocation69_spill] sm:$0xff] %v9247_v59  ;;  %v2011_v29 = vmax.f32 %v2009_v0, %v9247_v59 }
 0x627   :  { %v9250_v58 = vpop.f32.mrb[104].mxu1 }
 0x628   :  { %v1975_v50 = vmax.f32 %v1973_v48, %v9250_v58  ;;  %v9253_v13 = vpop.f32.mrb[105].mxu1 }
 0x629   :  { %14213 = vst [vmem:[#allocation44_spill] sm:$0xff] %v9253_v13  ;;  %v2012_v10 = vmax.f32 %v2010_v22, %v9253_v13  ;;  %v9256_v11 = vpop.f32.mrb[106].mxu1 }
 0x62a   :  { %v1976_v57 = vmax.f32 %v1974_v35, %v9256_v11  ;;  %v9259_v54 = vpop.f32.mrb[107].mxu1 }
 0x62b   :  { %14214 = vst [vmem:[#allocation10_spill] sm:$0xff] %v9259_v54  ;;  %v2013_v61 = vmax.f32 %v2011_v29, %v9259_v54 }
 0x62f   :  { %v9262_v14 = vpop.f32.mrb[108].mxu1 }
 0x630   :  { %v1977_v0 = vmax.f32 %v1975_v50, %v9262_v14  ;;  %v9265_v51 = vpop.f32.mrb[109].mxu1 }
 0x631   :  { %14215 = vst [vmem:[#allocation11_spill] sm:$0xff] %v9265_v51  ;;  %v2014_v48 = vmax.f32 %v2012_v10, %v9265_v51  ;;  %v9268_v36 = vpop.f32.mrb[110].mxu1 }
 0x632   :  { %v1978_v22 = vmax.f32 %v1976_v57, %v9268_v36  ;;  %v9271_v3 = vpop.f32.mrb[111].mxu1 }
 0x633   :  { %14216 = vst [vmem:[#allocation8_spill] sm:$0xff] %v9271_v3  ;;  %v2015_v35 = vmax.f32 %v2013_v61, %v9271_v3 }
 0x637   :  { %v9274_v46 = vpop.f32.mrb[112].mxu1 }
 0x638   :  { %v1979_v29 = vmax.f32 %v1977_v0, %v9274_v46  ;;  %v9277_v8 = vpop.f32.mrb[113].mxu1 }
 0x639   :  { %14217 = vst [vmem:[#allocation16_spill] sm:$0xff] %v9277_v8  ;;  %v2016_v50 = vmax.f32 %v2014_v48, %v9277_v8  ;;  %v9280_v15 = vpop.f32.mrb[114].mxu1 }
 0x63a   :  { %v1980_v10 = vmax.f32 %v1978_v22, %v9280_v15  ;;  %v9283_v62 = vpop.f32.mrb[115].mxu1 }
 0x63b   :  { %14218 = vst [vmem:[#allocation18_spill] sm:$0xff] %v9283_v62  ;;  %v2017_v57 = vmax.f32 %v2015_v35, %v9283_v62 }
 0x63f   :  { %v9286_v17 = vpop.f32.mrb[116].mxu1 }
 0x640   :  { %v1981_v61 = vmax.f32 %v1979_v29, %v9286_v17  ;;  %v9289_v25 = vpop.f32.mrb[117].mxu1 }
 0x641   :  { %14219 = vst [vmem:[#allocation20_spill] sm:$0xff] %v9289_v25  ;;  %v2018_v0 = vmax.f32 %v2016_v50, %v9289_v25  ;;  %v9292_v1 = vpop.f32.mrb[118].mxu1 }
 0x642   :  { %v1982_v48 = vmax.f32 %v1980_v10, %v9292_v1  ;;  %v9295_v44 = vpop.f32.mrb[119].mxu1 }
 0x643   :  { %14220 = vst [vmem:[#allocation21_spill] sm:$0xff] %v9295_v44  ;;  %v2019_v22 = vmax.f32 %v2017_v57, %v9295_v44 }
 0x647   :  { %v9298_v33 = vpop.f32.mrb[120].mxu1 }
 0x648   :  { %v1983_v35 = vmax.f32 %v1981_v61, %v9298_v33  ;;  %v9301_v40 = vpop.f32.mrb[121].mxu1 }
 0x649   :  { %14221 = vst [vmem:[#allocation17_spill] sm:$0xff] %v9301_v40  ;;  %v2020_v29 = vmax.f32 %v2018_v0, %v9301_v40  ;;  %v9304_v6 = vpop.f32.mrb[122].mxu1 }
 0x64a   :  { %v1984_v50 = vmax.f32 %v1982_v48, %v9304_v6  ;;  %v9307_v25 = vpop.f32.mrb[123].mxu1 }
 0x64b   :  { %14222 = vst [vmem:[#allocation19_spill] sm:$0xff] %v9307_v25  ;;  %v2021_v10 = vmax.f32 %v2019_v22, %v9307_v25 }
 0x64f   :  { %v9310_v62 = vpop.f32.mrb[124].mxu1 }
 0x650   :  { %v1985_v57 = vmax.f32 %v1983_v35, %v9310_v62  ;;  %v9313_v44 = vpop.f32.mrb[125].mxu1 }
 0x651   :  { %14223 = vst [vmem:[#allocation22_spill] sm:$0xff] %v9313_v44  ;;  %v2022_v61 = vmax.f32 %v2020_v29, %v9313_v44  ;;  %v9316_v8 = vpop.f32.mrb[126].mxu1 }
 0x652   :  { %v1986_v0 = vmax.f32 %v1984_v50, %v9316_v8  ;;  %v9319_v40 = vpop.f32.mrb[127].mxu1 }
 0x653   :  { %14224 = vst [vmem:[#allocation23_spill] sm:$0xff] %v9319_v40  ;;  %v2023_v48 = vmax.f32 %v2021_v10, %v9319_v40 }
 0x657   :  { %v9322_v3 = vpop.f32.mrb[128].mxu1 }
 0x658   :  { %v1987_v22 = vmax.f32 %v1985_v57, %v9322_v3  ;;  %v9325_v25 = vpop.f32.mrb[129].mxu1 }
 0x659   :  { %14225 = vst [vmem:[#allocation13_spill] sm:$0xff] %v9325_v25  ;;  %v2024_v35 = vmax.f32 %v2022_v61, %v9325_v25  ;;  %v9328_v51 = vpop.f32.mrb[130].mxu1 }
 0x65a   :  { %v1988_v29 = vmax.f32 %v1986_v0, %v9328_v51  ;;  %v9331_v44 = vpop.f32.mrb[131].mxu1 }
 0x65b   :  { %14226 = vst [vmem:[#allocation14_spill] sm:$0xff] %v9331_v44  ;;  %v2025_v50 = vmax.f32 %v2023_v48, %v9331_v44 }
 0x65c   :  { %v1989_v54 = vmax.f32 %v1987_v22, %v1988_v29 }
 0x65d   :  { %v2026_v13 = vmax.f32 %v2024_v35, %v2025_v50 }
 0x65e   :  { %v1990_v59 = vrot.slane %v1989_v54, 4 }
 0x65f   :  { %v2027_v10 = vrot.slane %v2026_v13, 4 }
 0x660   :  { %v1991_v40 = vmax.f32 %v1989_v54, %v1990_v59 }
 0x661   :  { %v2028_v16 = vmax.f32 %v2026_v13, %v2027_v10 }
 0x662   :  { %v1992_v23 = vrot.slane %v1991_v40, 2 }
 0x663   :  { %v2029_v57 = vrot.slane %v2028_v16, 2 }
 0x664   :  { %v1993_v2 = vmax.f32 %v1991_v40, %v1992_v23  ;;  %v14246_v23 = vld [vmem:[#allocation13_spill] sm:$0xff] }
 0x665   :  { %v2030_v7 = vmax.f32 %v2028_v16, %v2029_v57 }
 0x666   :  { %v1994_v53 = vrot.slane %v1993_v2, 1 }
 0x667   :  { %v2031_v61 = vrot.slane %v2030_v7, 1 }
 0x668   :  { %v9334_v25 = vmax.f32 %v1993_v2, %v1994_v53 }
 0x669   :  { %v9336_v12 = vmax.f32 %v2030_v7, %v2031_v61 }
 0x66a   :  { %v2033_v0 = vsub.f32 %v9142_v39, %v9334_v25  ;;  %v2035_v48 = vsub.f32 %v9146_v55, %v9334_v25  ;;  %v2037_v54 = vsub.f32 %v9150_v24, %v9334_v25  ;;  %v2039_v13 = vsub.f32 %v9158_v9, %v9334_v25 }
 0x66b   :  { %v2041_v40 = vsub.f32 %v9166_v56, %v9334_v25  ;;  %v2043_v53 = vsub.f32 %v9172_v34, %v9334_v25  ;;  %v2045_v7 = vsub.f32 %v9178_v31, %v9334_v25  ;;  %v2047_v39 = vsub.f32 %v9184_v26, %v9334_v25 }
 0x66c   :  { %v2049_v55 = vsub.f32 %v9190_v32, %v9334_v25  ;;  %v2051_v24 = vsub.f32 %v9196_v28, %v9334_v25  ;;  %v2053_v9 = vsub.f32 %v9202_v4, %v9334_v25  ;;  %v2055_v56 = vsub.f32 %v9208_v19, %v9334_v25 }
 0x66d   :  { %v2057_v34 = vsub.f32 %v9214_v37, %v9334_v25  ;;  %v2059_v31 = vsub.f32 %v9220_v63, %v9334_v25  ;;  %v2061_v26 = vsub.f32 %v9226_v18, %v9334_v25  ;;  %v2063_v32 = vsub.f32 %v9232_v42, %v9334_v25 }
 0x66e   :  { %v2065_v28 = vsub.f32 %v9238_v60, %v9334_v25  ;;  %v2067_v4 = vsub.f32 %v9244_v47, %v9334_v25  ;;  %v2069_v19 = vsub.f32 %v9250_v58, %v9334_v25  ;;  %v2071_v37 = vsub.f32 %v9256_v11, %v9334_v25 }
 0x66f   :  { %v2073_v63 = vsub.f32 %v9262_v14, %v9334_v25  ;;  %v2075_v18 = vsub.f32 %v9268_v36, %v9334_v25  ;;  %v2077_v2 = vsub.f32 %v9274_v46, %v9334_v25  ;;  %v2079_v42 = vsub.f32 %v9280_v15, %v9334_v25 }
 0x670   :  { %v2097_v16 = vmul.f32 1.442695, %v2033_v0  ;;  %v2101_v47 = vmul.f32 1.442695, %v2035_v48  ;;  %v2105_v59 = vmul.f32 1.442695, %v2037_v54 }
 0x671   :  { %v2109_v35 = vmul.f32 1.442695, %v2039_v13  ;;  %v2113_v50 = vmul.f32 1.442695, %v2041_v40  ;;  %v2117_v10 = vmul.f32 1.442695, %v2043_v53 }
 0x672   :  { %6621 = vpow2.f32 %v2097_v16  ;;  %v2121_v57 = vmul.f32 1.442695, %v2045_v7  ;;  %v2125_v61 = vmul.f32 1.442695, %v2047_v39  ;;  %v2129_v15 = vmul.f32 1.442695, %v2049_v55 }
 0x673   :  { %6623 = vpow2.f32 %v2101_v47  ;;  %v2133_v60 = vmul.f32 1.442695, %v2051_v24  ;;  %v2137_v0 = vmul.f32 1.442695, %v2053_v9  ;;  %v2141_v48 = vmul.f32 1.442695, %v2055_v56 }
 0x674   :  { %6625 = vpow2.f32 %v2105_v59  ;;  %v2145_v54 = vmul.f32 1.442695, %v2057_v34  ;;  %v2149_v22 = vmul.f32 1.442695, %v2059_v31  ;;  %v2153_v13 = vmul.f32 1.442695, %v2061_v26 }
 0x675   :  { %6627 = vpow2.f32 %v2109_v35  ;;  %v2157_v46 = vmul.f32 1.442695, %v2063_v32  ;;  %v2161_v29 = vmul.f32 1.442695, %v2065_v28  ;;  %v2165_v16 = vmul.f32 1.442695, %v2067_v4 }
 0x676   :  { %6629 = vpow2.f32 %v2113_v50  ;;  %v2169_v40 = vmul.f32 1.442695, %v2069_v19  ;;  %v2173_v53 = vmul.f32 1.442695, %v2071_v37  ;;  %v2177_v47 = vmul.f32 1.442695, %v2073_v63 }
 0x677   :  { %6631 = vpow2.f32 %v2117_v10  ;;  %v9406_v7 = vmul.f32 1.442695, %v2075_v18  ;;  %v9408_v39 = vmul.f32 1.442695, %v2077_v2  ;;  %v9410_v55 = vmul.f32 1.442695, %v2079_v42 }
 0x678   :  { %6633 = vpow2.f32 %v2121_v57  ;;  %v14227_v63 = vld [vmem:[#allocation63_spill] sm:$0xff]  ;;  %v14230_v10 = vld [vmem:[#allocation68_spill] sm:$0xff]  ;;  %v14233_v37 = vld [vmem:[#allocation69_spill] sm:$0xff] }
 0x679   :  { %6635 = vpow2.f32 %v2125_v61  ;;  %v14229_v59 = vld [vmem:[#allocation67_spill] sm:$0xff]  ;;  %v14231_v61 = vld [vmem:[#allocation64_spill] sm:$0xff]  ;;  %v14235_v57 = vld [vmem:[#allocation10_spill] sm:$0xff] }
 0x67a   :  { %6637 = vpow2.f32 %v2129_v15  ;;  %v14228_v15 = vld [vmem:[#allocation65_spill] sm:$0xff]  ;;  %v14234_v19 = vld [vmem:[#allocation44_spill] sm:$0xff]  ;;  %v14236_v32 = vld [vmem:[#allocation11_spill] sm:$0xff] }
 0x67b   :  { %6639 = vpow2.f32 %v2133_v60  ;;  %v14237_v26 = vld [vmem:[#allocation8_spill] sm:$0xff]  ;;  %v14239_v56 = vld [vmem:[#allocation18_spill] sm:$0xff]  ;;  %v14241_v24 = vld [vmem:[#allocation21_spill] sm:$0xff] }
 0x67c   :  { %v9420_v31 = vpop.eup %6621  ;;  %6641 = vpow2.f32 %v2137_v0  ;;  %v14238_v35 = vld [vmem:[#allocation16_spill] sm:$0xff] }
 0x67d   :  { %v9428_v4 = vpop.eup %6623  ;;  %6643 = vpow2.f32 %v2141_v48  ;;  %v14232_v48 = vld [vmem:[#allocation66_spill] sm:$0xff]  ;;  %v14240_v0 = vld [vmem:[#allocation20_spill] sm:$0xff] }
 0x67e   :  { %v9436_v2 = vpop.eup %6625  ;;  %6645 = vpow2.f32 %v2145_v54  ;;  %v2225_v42 = vadd.f32 %v9428_v4, %v9420_v31  ;;  %v14245_v54 = vld [vmem:[#allocation23_spill] sm:$0xff] }
 0x67f   :  { %v9444_v50 = vpop.eup %6627  ;;  %6647 = vpow2.f32 %v2149_v22  ;;  %v14243_v22 = vld [vmem:[#allocation19_spill] sm:$0xff] }
 0x680   :  { %v9452_v18 = vpop.eup %6629  ;;  %6649 = vpow2.f32 %v2153_v13  ;;  %v2226_v60 = vadd.f32 %v9436_v2, %v2225_v42 }
 0x681   :  { %v9459_v28 = vpop.eup %6631  ;;  %6651 = vpow2.f32 %v2157_v46 }
 0x682   :  { %v9467_v34 = vpop.eup %6633  ;;  %6653 = vpow2.f32 %v2161_v29  ;;  %v2227_v42 = vadd.f32 %v9444_v50, %v2226_v60 }
 0x683   :  { %v9474_v9 = vpop.eup %6635  ;;  %6655 = vpow2.f32 %v2165_v16 }
 0x684   :  { %v9482_v14 = vpop.eup %6637  ;;  %6657 = vpow2.f32 %v2169_v40  ;;  %v2228_v60 = vadd.f32 %v9452_v18, %v2227_v42  ;;  %v14247_v42 = vsub.f32 %v9286_v17, %v9334_v25 }
 0x685   :  { %v9489_v58 = vpop.eup %6639  ;;  %6659 = vpow2.f32 %v2173_v53  ;;  %v14248_v53 = vsub.f32 %v9292_v1, %v9334_v25 }
 0x686   :  { %v9497_v36 = vpop.eup %6641  ;;  %6661 = vpow2.f32 %v2177_v47  ;;  %v2193_v46 = vmul.f32 1.442695, %v14247_v42  ;;  %v2229_v16 = vadd.f32 %v9459_v28, %v2228_v60  ;;  %v14249_v47 = vsub.f32 %v9298_v33, %v9334_v25 }
 0x687   :  { %v9503_v11 = vpop.eup %6643  ;;  %6663 = vpow2.f32 %v9406_v7  ;;  %v2197_v29 = vmul.f32 1.442695, %v14248_v53  ;;  %v14250_v7 = vsub.f32 %v9304_v6, %v9334_v25  ;;  %v14254_v6 = vsub.f32 %v9322_v3, %v9334_v25 }
 0x688   :  { %v9509_v13 = vpop.eup %6645  ;;  %6665 = vpow2.f32 %v9408_v39  ;;  %v2201_v40 = vmul.f32 1.442695, %v14249_v47  ;;  %v2230_v17 = vadd.f32 %v9467_v34, %v2229_v16  ;;  %v14251_v39 = vsub.f32 %v9310_v62, %v9334_v25 }
 0x689   :  { %v9516_v42 = vpop.eup %6647  ;;  %6667 = vpow2.f32 %v9410_v55  ;;  %v2205_v60 = vmul.f32 1.442695, %v14250_v7  ;;  %v14252_v16 = vsub.f32 %v9316_v8, %v9334_v25 }
 0x68a   :  { %v9522_v1 = vpop.eup %6649  ;;  %6669 = vpow2.f32 %v2193_v46  ;;  %v2209_v53 = vmul.f32 1.442695, %v14251_v39  ;;  %v2231_v33 = vadd.f32 %v9474_v9, %v2230_v17  ;;  %v2217_v46 = vmul.f32 1.442695, %v14254_v6 }
 0x68b   :  { %v9528_v47 = vpop.eup %6651  ;;  %6671 = vpow2.f32 %v2197_v29  ;;  %v2213_v55 = vmul.f32 1.442695, %v14252_v16  ;;  %v14255_v17 = vsub.f32 %v9328_v51, %v9334_v25  ;;  %v14258_v25 = vsub.f32 %v9154_v45, %v9336_v12 }
 0x68c   :  { %v9533_v44 = vpop.eup %6653  ;;  %6673 = vpow2.f32 %v2201_v40  ;;  %v2232_v7 = vadd.f32 %v9482_v14, %v2231_v33  ;;  %v14256_v40 = vsub.f32 %v9144_v43, %v9336_v12  ;;  %v14257_v33 = vsub.f32 %v9148_v52, %v9336_v12 }
 0x68d   :  { %14253 = vst [vmem:[#allocation12_spill] sm:$0xff] %v9533_v44  ;;  %v9539_v62 = vpop.eup %6655  ;;  %6675 = vpow2.f32 %v2205_v60  ;;  %v2221_v29 = vmul.f32 1.442695, %v14255_v17  ;;  %v2107_v51 = vmul.f32 1.442695, %v14258_v25  ;;  %v14259_v43 = vsub.f32 %v9162_v5, %v9336_v12 }
 0x68e   :  { %v9544_v39 = vpop.eup %6657  ;;  %6677 = vpow2.f32 %v2209_v53  ;;  %v2233_v8 = vadd.f32 %v9489_v58, %v2232_v7  ;;  %v2099_v16 = vmul.f32 1.442695, %v14256_v40  ;;  %v2103_v60 = vmul.f32 1.442695, %v14257_v33 }
 0x68f   :  { %v9550_v3 = vpop.eup %6659  ;;  %6679 = vpow2.f32 %v2213_v55  ;;  %v2111_v7 = vmul.f32 1.442695, %v14259_v43  ;;  %v14260_v55 = vsub.f32 %v9169_v30, %v9336_v12  ;;  %v14261_v52 = vsub.f32 %v9175_v27, %v9336_v12 }
 0x690   :  { %v9558_v6 = vpop.eup %6661  ;;  %6681 = vpow2.f32 %v2217_v46  ;;  %v2234_v53 = vadd.f32 %v9497_v36, %v2233_v8  ;;  %v14262_v46 = vsub.f32 %v9181_v41, %v9336_v12  ;;  %v14263_v8 = vsub.f32 %v9187_v49, %v9336_v12 }
 0x691   :  { %v2115_v17 = vmul.f32 1.442695, %v14260_v55  ;;  %v9567_v40 = vpop.eup %6663  ;;  %6683 = vpow2.f32 %v2221_v29  ;;  %v2119_v45 = vmul.f32 1.442695, %v14261_v52  ;;  %v14264_v29 = vsub.f32 %v9193_v38, %v9336_v12 }
 0x692   :  { %v2123_v33 = vmul.f32 1.442695, %v14262_v46  ;;  %v2127_v5 = vmul.f32 1.442695, %v14263_v8  ;;  %v9578_v25 = vpop.eup %6665  ;;  %v2235_v30 = vadd.f32 %v9503_v11, %v2234_v53  ;;  %6685 = vpow2.f32 %v2099_v16 }
 0x693   :  { %v2131_v43 = vmul.f32 1.442695, %v14264_v29  ;;  %v14265_v27 = vsub.f32 %v9199_v21, %v9336_v12  ;;  %v9587_v52 = vpop.eup %6667  ;;  %6687 = vpow2.f32 %v2103_v60 }
 0x694   :  { %v9595_v53 = vpop.eup %6669  ;;  %v2236_v38 = vadd.f32 %v9509_v13, %v2235_v30  ;;  %6689 = vpow2.f32 %v2107_v51 }
 0x695   :  { %v2135_v55 = vmul.f32 1.442695, %v14265_v27  ;;  %v9602_v46 = vpop.eup %6671  ;;  %6691 = vpow2.f32 %v2111_v7  ;;  %v14266_v7 = vsub.f32 %v9205_v20, %v9336_v12  ;;  %v14267_v27 = vsub.f32 %v14227_v63, %v9336_v12 }
 0x696   :  { %v9610_v30 = vpop.eup %6673  ;;  %v2237_v51 = vadd.f32 %v9516_v42, %v2236_v38  ;;  %6693 = vpow2.f32 %v2115_v17 }
 0x697   :  { %v9617_v21 = vpop.eup %6675  ;;  %6695 = vpow2.f32 %v2119_v45  ;;  %v2139_v60 = vmul.f32 1.442695, %v14266_v7  ;;  %v2143_v29 = vmul.f32 1.442695, %v14267_v27 }
 0x698   :  { %v9625_v38 = vpop.eup %6677  ;;  %v2238_v17 = vadd.f32 %v9522_v1, %v2237_v51  ;;  %6697 = vpow2.f32 %v2123_v33  ;;  %v14268_v33 = vsub.f32 %v14228_v15, %v9336_v12  ;;  %v14273_v15 = vsub.f32 %v14233_v37, %v9336_v12 }
 0x699   :  { %v9633_v16 = vpop.eup %6679  ;;  %6699 = vpow2.f32 %v2127_v5  ;;  %v14269_v5 = vsub.f32 %v14229_v59, %v9336_v12  ;;  %v14272_v59 = vsub.f32 %v14232_v48, %v9336_v12  ;;  %v14276_v37 = vsub.f32 %v14236_v32, %v9336_v12 }
 0x69a   :  { %v9638_v8 = vpop.eup %6681  ;;  %v2239_v49 = vadd.f32 %v9528_v47, %v2238_v17  ;;  %6701 = vpow2.f32 %v2131_v43  ;;  %v2147_v20 = vmul.f32 1.442695, %v14268_v33  ;;  %v14270_v43 = vsub.f32 %v14230_v10, %v9336_v12 }
 0x69b   :  { %v9646_v7 = vpop.eup %6683  ;;  %6703 = vpow2.f32 %v2135_v55  ;;  %v2151_v63 = vmul.f32 1.442695, %v14269_v5  ;;  %v14271_v55 = vsub.f32 %v14231_v61, %v9336_v12  ;;  %v2163_v5 = vmul.f32 1.442695, %v14272_v59 }
 0x69c   :  { %v6686_v27 = vpop.eup %6685  ;;  %v2240_v45 = vadd.f32 %v9533_v44, %v2239_v49  ;;  %6705 = vpow2.f32 %v2139_v60  ;;  %v2155_v17 = vmul.f32 1.442695, %v14270_v43  ;;  %v14274_v61 = vsub.f32 %v14234_v19, %v9336_v12 }
 0x69d   :  { %v6688_v33 = vpop.eup %6687  ;;  %6707 = vpow2.f32 %v2143_v29  ;;  %v2159_v51 = vmul.f32 1.442695, %v14271_v55  ;;  %v2167_v29 = vmul.f32 1.442695, %v14273_v15  ;;  %v2179_v15 = vmul.f32 1.442695, %v14276_v37 }
 0x69e   :  { %v6690_v41 = vpop.eup %6689  ;;  %v2241_v49 = vadd.f32 %v9539_v62, %v2240_v45  ;;  %6709 = vpow2.f32 %v2147_v20  ;;  %v2262_v60 = vadd.f32 %v6688_v33, %v6686_v27  ;;  %v2302_v10 = vpack.c.bf16 %v6688_v33, %v6686_v27 }
 0x69f   :  { %v6692_v43 = vpop.eup %6691  ;;  %6711 = vpow2.f32 %v2151_v63  ;;  %v2171_v55 = vmul.f32 1.442695, %v14274_v61  ;;  %v14275_v63 = vsub.f32 %v14235_v57, %v9336_v12  ;;  %v14277_v19 = vpack.c.bf16 %v9428_v4, %v9420_v31 }
 0x6a0   :  { %v6694_v44 = vpop.eup %6693  ;;  %v2242_v48 = vadd.f32 %v9544_v39, %v2241_v49  ;;  %6713 = vpow2.f32 %v2155_v17  ;;  %v2263_v59 = vadd.f32 %v6690_v41, %v2262_v60  ;;  %2333 = vmatprep.subr.bf16.mxu0 %v2302_v10  ;;  %v2304_v45 = vpack.c.bf16 %v6692_v43, %v6690_v41 }
 0x6a1   :  { %v6696_v20 = vpop.eup %6695  ;;  %6715 = vpow2.f32 %v2159_v51  ;;  %v2175_v27 = vmul.f32 1.442695, %v14275_v63  ;;  %2334 = vmatpush1.bf16.msra.mxu0 %v14277_v19  ;;  %v14278_v57 = vsub.f32 %v14237_v26, %v9336_v12  ;;  %v14279_v32 = vsub.f32 %v14238_v35, %v9336_v12  ;;  %v14284_v19 = vld [vmem:[#allocation17_spill] sm:$0xff] }
 0x6a2   :  { %v6698_v33 = vpop.eup %6697  ;;  %v2243_v17 = vadd.f32 %v9550_v3, %v2242_v48  ;;  %6717 = vpow2.f32 %v2163_v5  ;;  %v2264_v49 = vadd.f32 %v6692_v43, %v2263_v59  ;;  %2335 = vmatprep.subr.bf16.mxu0 %v2304_v45  ;;  %v2306_v41 = vpack.c.bf16 %v6696_v20, %v6694_v44 }
 0x6a3   :  { %v6700_v51 = vpop.eup %6699  ;;  %6719 = vpow2.f32 %v2167_v29  ;;  %v2183_v60 = vmul.f32 1.442695, %v14278_v57  ;;  %v2187_v10 = vmul.f32 1.442695, %v14279_v32  ;;  %v14280_v43 = vsub.f32 %v14239_v56, %v9336_v12 }
 0x6a4   :  { %v6702_v61 = vpop.eup %6701  ;;  %v2244_v31 = vadd.f32 %v9558_v6, %v2243_v17  ;;  %6721 = vpow2.f32 %v2171_v55  ;;  %v2265_v4 = vadd.f32 %v6694_v44, %v2264_v49  ;;  %v2308_v48 = vpack.c.bf16 %v6700_v51, %v6698_v33 }
 0x6a5   :  { %v6704_v5 = vpop.eup %6703  ;;  %6723 = vpow2.f32 %v2175_v27  ;;  %v2191_v29 = vmul.f32 1.442695, %v14280_v43  ;;  %v14281_v26 = vsub.f32 %v14240_v0, %v9336_v12  ;;  %v14282_v35 = vpack.c.bf16 %v9444_v50, %v9436_v2 }
 0x6a6   :  { %v6706_v45 = vpop.eup %6705  ;;  %v2245_v63 = vadd.f32 %v9567_v40, %v2244_v31  ;;  %6725 = vpow2.f32 %v2179_v15  ;;  %v2266_v44 = vadd.f32 %v6696_v20, %v2265_v4  ;;  %v2310_v55 = vpack.c.bf16 %v6704_v5, %v6702_v61 }
 0x6a7   :  { %v2195_v59 = vmul.f32 1.442695, %v14281_v26  ;;  %2336 = vmatpush1.bf16.msra.mxu0 %v14282_v35  ;;  %v6708_v27 = vpop.eup %6707  ;;  %6727 = vpow2.f32 %v2183_v60  ;;  %v14283_v56 = vsub.f32 %v14241_v24, %v9336_v12  ;;  %v14285_v0 = vsub.f32 %v14284_v19, %v9336_v12  ;;  %v14287_v60 = vld [vmem:[#allocation22_spill] sm:$0xff] }
 0x6a8   :  { %2337 = vmatprep.subr.bf16.mxu0 %v2306_v41  ;;  %v6710_v49 = vpop.eup %6709  ;;  %v2246_v2 = vadd.f32 %v9578_v25, %v2245_v63  ;;  %6729 = vpow2.f32 %v2187_v10  ;;  %v2267_v50 = vadd.f32 %v6698_v33, %v2266_v44  ;;  %v2312_v57 = vpack.c.bf16 %v6708_v27, %v6706_v45 }
 0x6a9   :  { %v2199_v37 = vmul.f32 1.442695, %v14283_v56  ;;  %v2203_v17 = vmul.f32 1.442695, %v14285_v0  ;;  %v6712_v15 = vpop.eup %6711  ;;  %6731 = vpow2.f32 %v2191_v29  ;;  %v14286_v20 = vsub.f32 %v14243_v22, %v9336_v12 }
 0x6aa   :  { %v14288_v24 = vsub.f32 %v14287_v60, %v9336_v12  ;;  %v14289_v31 = vpack.c.bf16 %v9459_v28, %v9452_v18  ;;  %v6714_v4 = vpop.eup %6713  ;;  %v2247_v43 = vadd.f32 %v9587_v52, %v2246_v2  ;;  %6733 = vpow2.f32 %v2195_v59 }
 0x6ab   :  { %v2207_v41 = vmul.f32 1.442695, %v14286_v20  ;;  %v2268_v33 = vadd.f32 %v6700_v51, %v2267_v50  ;;  %v2314_v10 = vpack.c.bf16 %v6712_v15, %v6710_v49  ;;  %v6716_v29 = vpop.eup %6715  ;;  %6735 = vpow2.f32 %v2199_v37  ;;  %v14292_v51 = vld [vmem:[#allocation14_spill] sm:$0xff] }
 0x6ac   :  { %v2211_v32 = vmul.f32 1.442695, %v14288_v24  ;;  %2338 = vmatpush1.bf16.msra.mxu0 %v14289_v31  ;;  %v14290_v22 = vsub.f32 %v14245_v54, %v9336_v12  ;;  %v14291_v35 = vsub.f32 %v14246_v23, %v9336_v12  ;;  %v6718_v44 = vpop.eup %6717  ;;  %v2248_v28 = vadd.f32 %v9595_v53, %v2247_v43 }
 0x6ad   :  { %2339 = vmatprep.subr.bf16.mxu0 %v2308_v48  ;;  %6737 = vpow2.f32 %v2203_v17  ;;  %v2269_v18 = vadd.f32 %v6702_v61, %v2268_v33  ;;  %v2316_v56 = vpack.c.bf16 %v6716_v29, %v6714_v4  ;;  %v6720_v59 = vpop.eup %6719  ;;  %v14293_v48 = vsub.f32 %v14292_v51, %v9336_v12 }
 0x6ae   :  { %v2215_v26 = vmul.f32 1.442695, %v14290_v22  ;;  %v2219_v63 = vmul.f32 1.442695, %v14291_v35  ;;  %6739 = vpow2.f32 %v2207_v41  ;;  %v14294_v54 = vpack.c.bf16 %v9474_v9, %v9467_v34  ;;  %v6722_v19 = vpop.eup %6721 }
 0x6af   :  { %v2223_v37 = vmul.f32 1.442695, %v14293_v48  ;;  %v2249_v23 = vadd.f32 %v9602_v46, %v2248_v28  ;;  %6741 = vpow2.f32 %v2211_v32  ;;  %v2270_v0 = vadd.f32 %v6704_v5, %v2269_v18  ;;  %v6724_v17 = vpop.eup %6723 }
 0x6b0   :  { %2340 = vmatpush1.bf16.msra.mxu0 %v14294_v54  ;;  %v2318_v2 = vpack.c.bf16 %v6720_v59, %v6718_v44  ;;  %6743 = vpow2.f32 %v2215_v26  ;;  %v6726_v61 = vpop.eup %6725  ;;  %v2320_v12 = vpack.c.bf16 %v6724_v17, %v6722_v19  ;;  %v14295_v9 = vpack.c.bf16 %v9489_v58, %v9482_v14 }
 0x6b1   :  { %2341 = vmatprep.subr.bf16.mxu0 %v2310_v55  ;;  %v2250_v50 = vadd.f32 %v9610_v30, %v2249_v23  ;;  %6745 = vpow2.f32 %v2219_v63  ;;  %v2271_v20 = vadd.f32 %v6706_v45, %v2270_v0  ;;  %v6728_v41 = vpop.eup %6727  ;;  %v14296_v22 = vpack.c.bf16 %v9503_v11, %v9497_v36 }
 0x6b2   :  { %6747 = vpow2.f32 %v2223_v37  ;;  %v6730_v34 = vpop.eup %6729  ;;  %v2322_v55 = vpack.c.bf16 %v6728_v41, %v6726_v61  ;;  %v14298_v23 = vpack.c.bf16 %v9528_v47, %v9522_v1  ;;  %v14302_v1 = vpack.c.bf16 %v9567_v40, %v9558_v6 }
 0x6b3   :  { %v2251_v60 = vadd.f32 %v9617_v21, %v2250_v50  ;;  %v2272_v5 = vadd.f32 %v6708_v27, %v2271_v20  ;;  %v6732_v24 = vpop.eup %6731  ;;  %v14305_v6 = vpack.c.bf16 %v9617_v21, %v9610_v30 }
 0x6b4   :  { %2342 = vmatpush1.bf16.msra.mxu0 %v14295_v9  ;;  %v6734_v32 = vpop.eup %6733  ;;  %v2324_v33 = vpack.c.bf16 %v6732_v24, %v6730_v34 }
 0x6b5   :  { %2343 = vmatprep.subr.bf16.mxu0 %v2312_v57  ;;  %v2252_v31 = vadd.f32 %v9625_v38, %v2251_v60  ;;  %v2273_v43 = vadd.f32 %v6710_v49, %v2272_v5  ;;  %v6736_v45 = vpop.eup %6735  ;;  %v14297_v49 = vpack.c.bf16 %v9516_v42, %v9509_v13  ;;  %v14299_v13 = vld [vmem:[#allocation12_spill] sm:$0xff] }
 0x6b6   :  { %v2326_v35 = vpack.c.bf16 %v6736_v45, %v6734_v32  ;;  %v14300_v42 = vpack.c.bf16 %v9539_v62, %v14299_v13  ;;  %v14303_v62 = vpack.c.bf16 %v9587_v52, %v9578_v25  ;;  %v14308_v52 = vld [vmem:[#allocation28_spill] sm:$0xff] }
 0x6b7   :  { %v6738_v26 = vpop.eup %6737  ;;  %v2253_v58 = vadd.f32 %v9633_v16, %v2252_v31  ;;  %v2274_v14 = vadd.f32 %v6712_v15, %v2273_v43 }
 0x6b8   :  { %2344 = vmatpush1.bf16.msra.mxu0 %v14296_v22  ;;  %v6740_v27 = vpop.eup %6739 }
 0x6b9   :  { %2345 = vmatprep.subr.bf16.mxu0 %v2314_v10  ;;  %v6742_v57 = vpop.eup %6741  ;;  %v2254_v63 = vadd.f32 %v9638_v8, %v2253_v58  ;;  %v2275_v28 = vadd.f32 %v6714_v4, %v2274_v14  ;;  %v2328_v18 = vpack.c.bf16 %v6740_v27, %v6738_v26  ;;  %v14315_v58 = vld [vmem:[#allocation39_spill] sm:$0xff]  ;;  %v14316_v14 = vld [vmem:[#allocation41_spill] sm:$0xff] }
 0x6ba   :  { %v6744_v51 = vpop.eup %6743 }
 0x6bb   :  { %v6746_v48 = vpop.eup %6745  ;;  %v9744_v11 = vadd.f32 %v9646_v7, %v2254_v63  ;;  %v2276_v36 = vadd.f32 %v6716_v29, %v2275_v28  ;;  %v2330_v15 = vpack.c.bf16 %v6744_v51, %v6742_v57  ;;  %v14301_v29 = vpack.c.bf16 %v9550_v3, %v9544_v39  ;;  %v14320_v63 = vld [vmem:[#allocation26_spill] sm:$0xff] }
 0x6bc   :  { %2346 = vmatpush1.bf16.msra.mxu0 %v14297_v49  ;;  %v6748_v10 = vpop.eup %6747  ;;  %v14304_v39 = vpack.c.bf16 %v9602_v46, %v9595_v53  ;;  %v14309_v53 = vpack.c.bf16 %v9633_v16, %v9625_v38  ;;  %v14310_v46 = vld [vmem:[#allocation57_spill] sm:$0xff]  ;;  %v14313_v16 = vmov 0   ;;  %v2390_v38 = vpop.trf.xlu1  ;;  %v14321_v28 = vld [vmem:[#allocation50_spill] sm:$0xff] }
 0x6bd   :  { %2347 = vmatprep.subr.bf16.mxu0 %v2316_v56  ;;  %v2277_v37 = vadd.f32 %v6718_v44, %v2276_v36  ;;  %v2332_v54 = vpack.c.bf16 %v6748_v10, %v6746_v48 }
 0x6bf   :  { %v2278_v4 = vadd.f32 %v6720_v59, %v2277_v37 }
 0x6c0   :  { %2348 = vmatpush1.bf16.msra.mxu0 %v14298_v23  ;;  %v2391_v31 = vpop.trf.xlu1 }
 0x6c1   :  { %2349 = vmatprep.subr.bf16.mxu0 %v2318_v2  ;;  %v2279_v0 = vadd.f32 %v6722_v19, %v2278_v4 }
 0x6c3   :  { %v2280_v50 = vadd.f32 %v6724_v17, %v2279_v0 }
 0x6c4   :  { %2350 = vmatpush1.bf16.msra.mxu0 %v14300_v42 }
 0x6c5   :  { %2351 = vmatprep.subr.bf16.mxu0 %v2320_v12  ;;  %v2281_v20 = vadd.f32 %v6726_v61, %v2280_v50  ;;  %v14306_v61 = vld [vmem:[#allocation35_spill] sm:$0xff] }
 0x6c6   :  { %v14307_v12 = vld [vmem:[#allocation27_spill] sm:$0xff] }
 0x6c7   :  { %v2282_v44 = vadd.f32 %v6728_v41, %v2281_v20  ;;  %v254_v25 = vadd.f32 %v14307_v12, %v14306_v61  ;;  %v256_v41 = vadd.f32 %v14308_v52, %v14306_v61 }
 0x6c8   :  { %2352 = vmatpush1.bf16.msra.mxu0 %v14301_v29 }
 0x6c9   :  { %2353 = vmatprep.subr.bf16.mxu0 %v2322_v55  ;;  %v2283_v56 = vadd.f32 %v6730_v34, %v2282_v44  ;;  %v14311_v34 = vld [vmem:[#allocation25_spill] sm:$0xff]  ;;  %v2377_v21 = vpack.c.bf16 %v256_v41, %v256_v41  ;;  %v2376_v30 = vpack.c.bf16 %v254_v25, %v254_v25  ;;  %v14312_v55 = vpack.c.bf16 %v9646_v7, %v9638_v8  ;;  %v2392_v8 = vpop.trf.xlu1 }
 0x6ca   :  { %v250_v60 = vadd.f32 %v14311_v34, %v14310_v46 }
 0x6cb   :  { %v2284_v47 = vadd.f32 %v6732_v24, %v2283_v56 }
 0x6cc   :  { %2354 = vmatpush1.bf16.msra.mxu0 %v14302_v1  ;;  %v1678_v24 = vpack.c.bf16 %v250_v60, %v250_v60 }
 0x6cd   :  { %2355 = vmatprep.subr.bf16.mxu0 %v2324_v33  ;;  %v2285_v59 = vadd.f32 %v6734_v32, %v2284_v47  ;;  %v2463_v32 = vsel %vm355_vm1, %v2376_v30, 0  ;;  %v2393_v7 = vpop.trf.xlu1 }
 0x6cf   :  { %v2286_v19 = vadd.f32 %v6736_v45, %v2285_v59 }
 0x6d0   :  { %2356 = vmatpush1.bf16.msra.mxu0 %v14303_v62 }
 0x6d1   :  { %2357 = vmatprep.subr.bf16.mxu0 %v2326_v35  ;;  %v2287_v2 = vadd.f32 %v6738_v26, %v2286_v19  ;;  %v2394_v43 = vpop.trf.xlu1  ;;  %v14314_v26 = vld [vmem:[#allocation37_spill] sm:$0xff]  ;;  %v14317_v35 = vld [vmem:[#allocation43_spill] sm:$0xff] }
 0x6d3   :  { %v2288_v3 = vadd.f32 %v6740_v27, %v2287_v2  ;;  %v14318_v27 = vld [vmem:[#allocation45_spill] sm:$0xff] }
 0x6d4   :  { %2358 = vmatpush1.bf16.msra.mxu0 %v14304_v39 }
 0x6d5   :  { %2359 = vmatprep.subr.bf16.mxu0 %v2328_v18  ;;  %v2289_v17 = vadd.f32 %v6742_v57, %v2288_v3  ;;  %v2395_v33 = vpop.trf.xlu1  ;;  %v14319_v57 = vld [vmem:[#allocation47_spill] sm:$0xff]  ;;  %v2256_v18 = vrot.slane %v9744_v11, 4 }
 0x6d7   :  { %v2290_v40 = vadd.f32 %v6744_v51, %v2289_v17  ;;  %v2257_v49 = vadd.f32 %v2256_v18, %v9744_v11 }
 0x6d8   :  { %2360 = vmatpush1.bf16.msra.mxu0 %v14305_v6 }
 0x6d9   :  { %2361 = vmatprep.subr.bf16.mxu0 %v2330_v15  ;;  %v2291_v9 = vadd.f32 %v6746_v48, %v2290_v40  ;;  %v2396_v45 = vpop.trf.xlu1  ;;  %v2258_v36 = vrot.slane %v2257_v49, 2 }
 0x6db   :  { %v2292_v5 = vadd.f32 %v6748_v10, %v2291_v9  ;;  %v2259_v10 = vadd.f32 %v2258_v36, %v2257_v49 }
 0x6dc   :  { %2362 = vmatpush1.bf16.msra.mxu0 %v14309_v53 }
 0x6dd   :  { %2363 = vmatprep.subr.bf16.mxu0 %v2332_v54  ;;  %v2397_v22 = vpop.trf.xlu1  ;;  %v2293_v51 = vrot.slane %v2292_v5, 4  ;;  %v2260_v54 = vrot.slane %v2259_v10, 1 }
 0x6df   :  { %v2294_v48 = vadd.f32 %v2293_v51, %v2292_v5  ;;  %v2261_v4 = vadd.f32 %v2260_v54, %v2259_v10 }
 0x6e0   :  { %2364 = vmatpush1.bf16.msra.mxu0 %v14312_v55 }
 0x6e1   :  { %6238 = vmatprep.subr.msk.bf16.mxu0 %vm355_vm1, %v2377_v21  ;;  %v2295_v15 = vrot.slane %v2294_v48, 2  ;;  %6749 = vrcp.f32 %v2261_v4 }
 0x6e3   :  { %2366 = vmatmul.mubr.bf16.vlgmr.msra.gmra.mrb[92].mxu0 %v1678_v24  ;;  %v2296_v37 = vadd.f32 %v2295_v15, %v2294_v48 }
 0x6e4   :  { %2469 = vmatpush1.bf16.msra.mxu0 %v2463_v32  ;;  %2500 = vmatprep.mubr.bf16.mxu0 %v14313_v16 }
 0x6e5   :  { %v2297_v23 = vrot.slane %v2296_v37, 1 }
 0x6e7   :  { %v2298_v0 = vadd.f32 %v2297_v23, %v2296_v37 }
 0x6e9   :  { %6751 = vrcp.f32 %v2298_v0 }
 0x6eb   :  { %6239 = vmatmul.mubr.msk.bf16.vlgmr.msra.gmra.mrb[96].mxu0 %vm306_vm2, %v2390_v38  ;;  %v6750_v13 = vpop.eup %6749 }
 0x6ec   :  { %2510 = vmatprep.mubr.bf16.mxu0 %v14313_v16 }
 0x6f3   :  { %6240 = vmatmul.mubr.msk.bf16.gmra.mrb[100].mxu0 %vm306_vm2, %v2391_v31  ;;  %v6752_v50 = vpop.eup %6751 }
 0x6f4   :  { %2520 = vmatprep.mubr.bf16.mxu0 %v14313_v16 }
 0x6fb   :  { %6241 = vmatmul.mubr.msk.bf16.gmra.mrb[104].mxu0 %vm306_vm2, %v2392_v8 }
 0x6fc   :  { %2530 = vmatprep.mubr.bf16.mxu0 %v14313_v16 }
 0x703   :  { %6242 = vmatmul.mubr.msk.bf16.gmra.mrb[108].mxu0 %vm306_vm2, %v2393_v7 }
 0x704   :  { %2540 = vmatprep.mubr.bf16.mxu0 %v14313_v16 }
 0x70b   :  { %6243 = vmatmul.mubr.msk.bf16.gmra.mrb[112].mxu0 %vm306_vm2, %v2394_v43 }
 0x70c   :  { %2550 = vmatprep.mubr.bf16.mxu0 %v14313_v16 }
 0x713   :  { %6244 = vmatmul.mubr.msk.bf16.gmra.mrb[116].mxu0 %vm306_vm2, %v2395_v33 }
 0x714   :  { %2560 = vmatprep.mubr.bf16.mxu0 %v14313_v16 }
 0x71b   :  { %6245 = vmatmul.mubr.msk.bf16.gmra.mrb[120].mxu0 %vm306_vm2, %v2396_v45 }
 0x71c   :  { %2570 = vmatprep.mubr.bf16.mxu0 %v14313_v16 }
 0x723   :  { %6246 = vmatmul.mubr.msk.bf16.gmra.mrb[124].mxu0 %vm306_vm2, %v2397_v22 }
 0x724   :  { %2580 = vmatprep.mubr.bf16.mxu0 %v14313_v16 }
 0x72b   :  { %6247 = vmatmul.mubr.msk.bf16.gmra.mrb[128].mxu0 %vm306_vm2, %v14314_v26 }
 0x72c   :  { %2590 = vmatprep.mubr.bf16.mxu0 %v14313_v16 }
 0x733   :  { %6248 = vmatmul.mubr.msk.bf16.gmra.mrb[132].mxu0 %vm306_vm2, %v14315_v58 }
 0x734   :  { %2600 = vmatprep.mubr.bf16.mxu0 %v14313_v16 }
 0x73b   :  { %6249 = vmatmul.mubr.msk.bf16.gmra.mrb[136].mxu0 %vm306_vm2, %v14316_v14 }
 0x73c   :  { %2610 = vmatprep.mubr.bf16.mxu0 %v14313_v16 }
 0x743   :  { %6250 = vmatmul.mubr.msk.bf16.gmra.mrb[140].mxu0 %vm306_vm2, %v14317_v35 }
 0x744   :  { %2620 = vmatprep.mubr.bf16.mxu0 %v14313_v16 }
 0x74b   :  { %6251 = vmatmul.mubr.msk.bf16.gmra.mrb[144].mxu0 %vm306_vm2, %v14318_v27 }
 0x74c   :  { %2630 = vmatprep.mubr.bf16.mxu0 %v14313_v16 }
 0x753   :  { %6252 = vmatmul.mubr.msk.bf16.gmra.mrb[148].mxu0 %vm306_vm2, %v14319_v57 }
 0x754   :  { %2640 = vmatprep.mubr.bf16.mxu0 %v14313_v16 }
 0x75b   :  { %6253 = vmatmul.mubr.msk.bf16.gmra.mrb[152].mxu0 %vm306_vm2, %v14320_v63 }
 0x75c   :  { %2650 = vmatprep.mubr.bf16.mxu0 %v14313_v16 }
 0x763   :  { %6254 = vmatmul.mubr.msk.bf16.gmra.mrb[156].mxu0 %vm306_vm2, %v14321_v28 }
 0x7b6   :  { %v2367_v42 = vpop.f32.mrb[92].mxu0 }
 0x7b7   :  { %v9823_v20 = vmul.f32 %v6750_v13, %v2367_v42  ;;  %v2369_v29 = vpop.f32.mrb[93].mxu0 }
 0x7b8   :  { %v9825_v44 = vmul.f32 %v6752_v50, %v2369_v29  ;;  %v2371_v11 = vpop.f32.mrb[94].mxu0 }
 0x7b9   :  { %14322 = vst [vmem:[#allocation30_spill] sm:$0xff] %v9823_v20  ;;  %v2372_v56 = vpop.f32.mrb[95].mxu0 }
 0x7ba   :  { %14323 = vst [vmem:[#allocation31_spill] sm:$0xff] %v9825_v44 }
 0x7be   :  { %v9827_v1 = vpop.f32.mrb[96].mxu0 }
 0x7bf   :  { %v9829_v47 = vpop.f32.mrb[97].mxu0 }
 0x7c0   :  { %v9831_v59 = vpop.f32.mrb[98].mxu0 }
 0x7c1   :  { %v9833_v62 = vpop.f32.mrb[99].mxu0 }
 0x7c6   :  { %v9835_v19 = vpop.f32.mrb[100].mxu0 }
 0x7c7   :  { %v2661_v2 = vmax.f32 %v9827_v1, %v9835_v19  ;;  %v9839_v39 = vpop.f32.mrb[101].mxu0 }
 0x7c8   :  { %v2698_v3 = vmax.f32 %v9829_v47, %v9839_v39  ;;  %v9843_v17 = vpop.f32.mrb[102].mxu0 }
 0x7c9   :  { %v2662_v6 = vmax.f32 %v9831_v59, %v9843_v17  ;;  %v9847_v40 = vpop.f32.mrb[103].mxu0 }
 0x7ca   :  { %v2699_v12 = vmax.f32 %v9833_v62, %v9847_v40 }
 0x7ce   :  { %v9851_v25 = vpop.f32.mrb[104].mxu0 }
 0x7cf   :  { %v2663_v52 = vmax.f32 %v2661_v2, %v9851_v25  ;;  %v9854_v41 = vpop.f32.mrb[105].mxu0 }
 0x7d0   :  { %v2700_v9 = vmax.f32 %v2698_v3, %v9854_v41  ;;  %v9857_v53 = vpop.f32.mrb[106].mxu0 }
 0x7d1   :  { %v2664_v34 = vmax.f32 %v2662_v6, %v9857_v53  ;;  %v9860_v60 = vpop.f32.mrb[107].mxu0 }
 0x7d2   :  { %v2701_v5 = vmax.f32 %v2699_v12, %v9860_v60 }
 0x7d6   :  { %v9863_v21 = vpop.f32.mrb[108].mxu0 }
 0x7d7   :  { %v2665_v30 = vmax.f32 %v2663_v52, %v9863_v21  ;;  %v9866_v55 = vpop.f32.mrb[109].mxu0 }
 0x7d8   :  { %v2702_v24 = vmax.f32 %v2700_v9, %v9866_v55  ;;  %v9869_v32 = vpop.f32.mrb[110].mxu0 }
 0x7d9   :  { %v2666_v38 = vmax.f32 %v2664_v34, %v9869_v32  ;;  %v9872_v31 = vpop.f32.mrb[111].mxu0 }
 0x7da   :  { %v2703_v8 = vmax.f32 %v2701_v5, %v9872_v31 }
 0x7de   :  { %v9875_v7 = vpop.f32.mrb[112].mxu0 }
 0x7df   :  { %v2667_v43 = vmax.f32 %v2665_v30, %v9875_v7  ;;  %v9878_v33 = vpop.f32.mrb[113].mxu0 }
 0x7e0   :  { %v2704_v45 = vmax.f32 %v2702_v24, %v9878_v33  ;;  %v9881_v22 = vpop.f32.mrb[114].mxu0 }
 0x7e1   :  { %v2668_v26 = vmax.f32 %v2666_v38, %v9881_v22  ;;  %v9884_v58 = vpop.f32.mrb[115].mxu0 }
 0x7e2   :  { %v2705_v14 = vmax.f32 %v2703_v8, %v9884_v58 }
 0x7e6   :  { %v9887_v35 = vpop.f32.mrb[116].mxu0 }
 0x7e7   :  { %v2669_v27 = vmax.f32 %v2667_v43, %v9887_v35  ;;  %v9890_v57 = vpop.f32.mrb[117].mxu0 }
 0x7e8   :  { %v2706_v63 = vmax.f32 %v2704_v45, %v9890_v57  ;;  %v9893_v28 = vpop.f32.mrb[118].mxu0 }
 0x7e9   :  { %v2670_v18 = vmax.f32 %v2668_v26, %v9893_v28  ;;  %v9896_v51 = vpop.f32.mrb[119].mxu0 }
 0x7ea   :  { %14324 = vst [vmem:[#allocation32_spill] sm:$0xff] %v9896_v51  ;;  %v2707_v49 = vmax.f32 %v2705_v14, %v9896_v51 }
 0x7ee   :  { %v9899_v48 = vpop.f32.mrb[120].mxu0 }
 0x7ef   :  { %v2671_v36 = vmax.f32 %v2669_v27, %v9899_v48  ;;  %v9902_v15 = vpop.f32.mrb[121].mxu0 }
 0x7f0   :  { %14325 = vst [vmem:[#allocation33_spill] sm:$0xff] %v9902_v15  ;;  %v2708_v10 = vmax.f32 %v2706_v63, %v9902_v15  ;;  %v9905_v37 = vpop.f32.mrb[122].mxu0 }
 0x7f1   :  { %v2672_v54 = vmax.f32 %v2670_v18, %v9905_v37  ;;  %v9908_v23 = vpop.f32.mrb[123].mxu0 }
 0x7f2   :  { %14326 = vst [vmem:[#allocation34_spill] sm:$0xff] %v9908_v23  ;;  %v2709_v4 = vmax.f32 %v2707_v49, %v9908_v23 }
 0x7f6   :  { %v9911_v0 = vpop.f32.mrb[124].mxu0 }
 0x7f7   :  { %v2673_v13 = vmax.f32 %v2671_v36, %v9911_v0  ;;  %v9914_v42 = vpop.f32.mrb[125].mxu0 }
 0x7f8   :  { %14327 = vst [vmem:[#allocation36_spill] sm:$0xff] %v9914_v42  ;;  %v2710_v50 = vmax.f32 %v2708_v10, %v9914_v42  ;;  %v9917_v29 = vpop.f32.mrb[126].mxu0 }
 0x7f9   :  { %v2674_v11 = vmax.f32 %v2672_v54, %v9917_v29  ;;  %v9920_v56 = vpop.f32.mrb[127].mxu0 }
 0x7fa   :  { %14328 = vst [vmem:[#allocation38_spill] sm:$0xff] %v9920_v56  ;;  %v2711_v2 = vmax.f32 %v2709_v4, %v9920_v56 }
 0x7fe   :  { %v9923_v3 = vpop.f32.mrb[128].mxu0 }
 0x7ff   :  { %v2675_v6 = vmax.f32 %v2673_v13, %v9923_v3  ;;  %v9926_v12 = vpop.f32.mrb[129].mxu0 }
 0x800   :  { %14329 = vst [vmem:[#allocation40_spill] sm:$0xff] %v9926_v12  ;;  %v2712_v52 = vmax.f32 %v2710_v50, %v9926_v12  ;;  %v9929_v9 = vpop.f32.mrb[130].mxu0 }
 0x801   :  { %v2676_v34 = vmax.f32 %v2674_v11, %v9929_v9  ;;  %v9932_v5 = vpop.f32.mrb[131].mxu0 }
 0x802   :  { %14330 = vst [vmem:[#allocation46_spill] sm:$0xff] %v9932_v5  ;;  %v2713_v30 = vmax.f32 %v2711_v2, %v9932_v5 }
 0x806   :  { %v9935_v24 = vpop.f32.mrb[132].mxu0 }
 0x807   :  { %v2677_v38 = vmax.f32 %v2675_v6, %v9935_v24  ;;  %v9938_v8 = vpop.f32.mrb[133].mxu0 }
 0x808   :  { %14331 = vst [vmem:[#allocation48_spill] sm:$0xff] %v9938_v8  ;;  %v2714_v43 = vmax.f32 %v2712_v52, %v9938_v8  ;;  %v9941_v45 = vpop.f32.mrb[134].mxu0 }
 0x809   :  { %v2678_v26 = vmax.f32 %v2676_v34, %v9941_v45  ;;  %v9944_v14 = vpop.f32.mrb[135].mxu0 }
 0x80a   :  { %14332 = vst [vmem:[#allocation49_spill] sm:$0xff] %v9944_v14  ;;  %v2715_v27 = vmax.f32 %v2713_v30, %v9944_v14 }
 0x80e   :  { %v9947_v63 = vpop.f32.mrb[136].mxu0 }
 0x80f   :  { %v2679_v18 = vmax.f32 %v2677_v38, %v9947_v63  ;;  %v9950_v49 = vpop.f32.mrb[137].mxu0 }
 0x810   :  { %14333 = vst [vmem:[#allocation51_spill] sm:$0xff] %v9950_v49  ;;  %v2716_v36 = vmax.f32 %v2714_v43, %v9950_v49  ;;  %v9953_v10 = vpop.f32.mrb[138].mxu0 }
 0x811   :  { %v2680_v54 = vmax.f32 %v2678_v26, %v9953_v10  ;;  %v9956_v4 = vpop.f32.mrb[139].mxu0 }
 0x812   :  { %14334 = vst [vmem:[#allocation52_spill] sm:$0xff] %v9956_v4  ;;  %v2717_v13 = vmax.f32 %v2715_v27, %v9956_v4 }
 0x816   :  { %v9959_v50 = vpop.f32.mrb[140].mxu0 }
 0x817   :  { %v2681_v11 = vmax.f32 %v2679_v18, %v9959_v50  ;;  %v9962_v2 = vpop.f32.mrb[141].mxu0 }
 0x818   :  { %14335 = vst [vmem:[#allocation54_spill] sm:$0xff] %v9962_v2  ;;  %v2718_v6 = vmax.f32 %v2716_v36, %v9962_v2  ;;  %v9965_v52 = vpop.f32.mrb[142].mxu0 }
 0x819   :  { %v2682_v34 = vmax.f32 %v2680_v54, %v9965_v52  ;;  %v9968_v30 = vpop.f32.mrb[143].mxu0 }
 0x81a   :  { %14336 = vst [vmem:[#allocation55_spill] sm:$0xff] %v9968_v30  ;;  %v2719_v38 = vmax.f32 %v2717_v13, %v9968_v30 }
 0x81e   :  { %v9971_v43 = vpop.f32.mrb[144].mxu0 }
 0x81f   :  { %v2683_v26 = vmax.f32 %v2681_v11, %v9971_v43  ;;  %v9974_v27 = vpop.f32.mrb[145].mxu0 }
 0x820   :  { %14337 = vst [vmem:[#allocation71_spill] sm:$0xff] %v9974_v27  ;;  %v2720_v18 = vmax.f32 %v2718_v6, %v9974_v27  ;;  %v9977_v61 = vpop.f32.mrb[146].mxu0 }
 0x821   :  { %v2684_v36 = vmax.f32 %v2682_v34, %v9977_v61  ;;  %v9980_v46 = vpop.f32.mrb[147].mxu0 }
 0x822   :  { %14338 = vst [vmem:[#allocation56_spill] sm:$0xff] %v9980_v46  ;;  %v2721_v54 = vmax.f32 %v2719_v38, %v9980_v46 }
 0x826   :  { %v9983_v44 = vpop.f32.mrb[148].mxu0 }
 0x827   :  { %v2685_v13 = vmax.f32 %v2683_v26, %v9983_v44  ;;  %v9986_v20 = vpop.f32.mrb[149].mxu0 }
 0x828   :  { %14339 = vst [vmem:[#allocation63_spill] sm:$0xff] %v9986_v20  ;;  %v2722_v11 = vmax.f32 %v2720_v18, %v9986_v20  ;;  %v9989_v16 = vpop.f32.mrb[150].mxu0 }
 0x829   :  { %v2686_v6 = vmax.f32 %v2684_v36, %v9989_v16  ;;  %v9992_v27 = vpop.f32.mrb[151].mxu0 }
 0x82a   :  { %14340 = vst [vmem:[#allocation65_spill] sm:$0xff] %v9992_v27  ;;  %v2723_v34 = vmax.f32 %v2721_v54, %v9992_v27 }
 0x82e   :  { %v9995_v30 = vpop.f32.mrb[152].mxu0 }
 0x82f   :  { %v2687_v38 = vmax.f32 %v2685_v13, %v9995_v30  ;;  %v9998_v46 = vpop.f32.mrb[153].mxu0 }
 0x830   :  { %14341 = vst [vmem:[#allocation67_spill] sm:$0xff] %v9998_v46  ;;  %v2724_v26 = vmax.f32 %v2722_v11, %v9998_v46  ;;  %v10001_v2 = vpop.f32.mrb[154].mxu0 }
 0x831   :  { %v2688_v18 = vmax.f32 %v2686_v6, %v10001_v2  ;;  %v10004_v20 = vpop.f32.mrb[155].mxu0 }
 0x832   :  { %14342 = vst [vmem:[#allocation68_spill] sm:$0xff] %v10004_v20  ;;  %v2725_v36 = vmax.f32 %v2723_v34, %v10004_v20 }
 0x836   :  { %v10007_v4 = vpop.f32.mrb[156].mxu0 }
 0x837   :  { %v2689_v54 = vmax.f32 %v2687_v38, %v10007_v4  ;;  %v10010_v27 = vpop.f32.mrb[157].mxu0 }
 0x838   :  { %14343 = vst [vmem:[#allocation64_spill] sm:$0xff] %v10010_v27  ;;  %v2726_v13 = vmax.f32 %v2724_v26, %v10010_v27  ;;  %v10013_v49 = vpop.f32.mrb[158].mxu0 }
 0x839   :  { %v2690_v11 = vmax.f32 %v2688_v18, %v10013_v49  ;;  %v10016_v46 = vpop.f32.mrb[159].mxu0 }
 0x83a   :  { %14344 = vst [vmem:[#allocation66_spill] sm:$0xff] %v10016_v46  ;;  %v2727_v6 = vmax.f32 %v2725_v36, %v10016_v46 }
 0x83b   :  { %v2691_v14 = vmax.f32 %v2689_v54, %v2690_v11 }
 0x83c   :  { %v2728_v8 = vmax.f32 %v2726_v13, %v2727_v6 }
 0x83d   :  { %v2692_v5 = vrot.slane %v2691_v14, 4 }
 0x83e   :  { %v2729_v34 = vrot.slane %v2728_v8, 4 }
 0x83f   :  { %v2693_v20 = vmax.f32 %v2691_v14, %v2692_v5 }
 0x840   :  { %v2730_v12 = vmax.f32 %v2728_v8, %v2729_v34 }
 0x841   :  { %v2694_v56 = vrot.slane %v2693_v20, 2 }
 0x842   :  { %v2731_v38 = vrot.slane %v2730_v12, 2 }
 0x843   :  { %v2695_v42 = vmax.f32 %v2693_v20, %v2694_v56  ;;  %v14364_v56 = vld [vmem:[#allocation64_spill] sm:$0xff] }
 0x844   :  { %v2732_v23 = vmax.f32 %v2730_v12, %v2731_v38 }
 0x845   :  { %v2696_v15 = vrot.slane %v2695_v42, 1 }
 0x846   :  { %v2733_v26 = vrot.slane %v2732_v23, 1 }
 0x847   :  { %v10019_v27 = vmax.f32 %v2695_v42, %v2696_v15 }
 0x848   :  { %v10021_v51 = vmax.f32 %v2732_v23, %v2733_v26 }
 0x849   :  { %v2735_v18 = vsub.f32 %v9827_v1, %v10019_v27  ;;  %v2737_v36 = vsub.f32 %v9831_v59, %v10019_v27  ;;  %v2739_v5 = vsub.f32 %v9835_v19, %v10019_v27  ;;  %v2741_v8 = vsub.f32 %v9843_v17, %v10019_v27 }
 0x84a   :  { %v2743_v20 = vsub.f32 %v9851_v25, %v10019_v27  ;;  %v2745_v15 = vsub.f32 %v9857_v53, %v10019_v27  ;;  %v2747_v23 = vsub.f32 %v9863_v21, %v10019_v27  ;;  %v2749_v1 = vsub.f32 %v9869_v32, %v10019_v27 }
 0x84b   :  { %v2751_v59 = vsub.f32 %v9875_v7, %v10019_v27  ;;  %v2753_v19 = vsub.f32 %v9881_v22, %v10019_v27  ;;  %v2755_v17 = vsub.f32 %v9887_v35, %v10019_v27  ;;  %v2757_v25 = vsub.f32 %v9893_v28, %v10019_v27 }
 0x84c   :  { %v2759_v53 = vsub.f32 %v9899_v48, %v10019_v27  ;;  %v2761_v21 = vsub.f32 %v9905_v37, %v10019_v27  ;;  %v2763_v32 = vsub.f32 %v9911_v0, %v10019_v27  ;;  %v2765_v7 = vsub.f32 %v9917_v29, %v10019_v27 }
 0x84d   :  { %v2767_v22 = vsub.f32 %v9923_v3, %v10019_v27  ;;  %v2769_v35 = vsub.f32 %v9929_v9, %v10019_v27  ;;  %v2771_v28 = vsub.f32 %v9935_v24, %v10019_v27  ;;  %v2773_v48 = vsub.f32 %v9941_v45, %v10019_v27 }
 0x84e   :  { %v2775_v37 = vsub.f32 %v9947_v63, %v10019_v27  ;;  %v2777_v0 = vsub.f32 %v9953_v10, %v10019_v27  ;;  %v2779_v42 = vsub.f32 %v9959_v50, %v10019_v27  ;;  %v2781_v29 = vsub.f32 %v9965_v52, %v10019_v27 }
 0x84f   :  { %v2799_v10 = vmul.f32 1.442695, %v2735_v18  ;;  %v2803_v50 = vmul.f32 1.442695, %v2737_v36  ;;  %v2807_v52 = vmul.f32 1.442695, %v2739_v5 }
 0x850   :  { %v2811_v13 = vmul.f32 1.442695, %v2741_v8  ;;  %v2815_v6 = vmul.f32 1.442695, %v2743_v20  ;;  %v2819_v34 = vmul.f32 1.442695, %v2745_v15 }
 0x851   :  { %6753 = vpow2.f32 %v2799_v10  ;;  %v2823_v38 = vmul.f32 1.442695, %v2747_v23  ;;  %v2827_v26 = vmul.f32 1.442695, %v2749_v1  ;;  %v2831_v14 = vmul.f32 1.442695, %v2751_v59 }
 0x852   :  { %6755 = vpow2.f32 %v2803_v50  ;;  %v2835_v63 = vmul.f32 1.442695, %v2753_v19  ;;  %v2839_v18 = vmul.f32 1.442695, %v2755_v17  ;;  %v2843_v36 = vmul.f32 1.442695, %v2757_v25 }
 0x853   :  { %6757 = vpow2.f32 %v2807_v52  ;;  %v2847_v5 = vmul.f32 1.442695, %v2759_v53  ;;  %v2851_v54 = vmul.f32 1.442695, %v2761_v21  ;;  %v2855_v8 = vmul.f32 1.442695, %v2763_v32 }
 0x854   :  { %6759 = vpow2.f32 %v2811_v13  ;;  %v2859_v45 = vmul.f32 1.442695, %v2765_v7  ;;  %v2863_v11 = vmul.f32 1.442695, %v2767_v22  ;;  %v2867_v10 = vmul.f32 1.442695, %v2769_v35 }
 0x855   :  { %6761 = vpow2.f32 %v2815_v6  ;;  %v2871_v20 = vmul.f32 1.442695, %v2771_v28  ;;  %v2875_v15 = vmul.f32 1.442695, %v2773_v48  ;;  %v2879_v50 = vmul.f32 1.442695, %v2775_v37 }
 0x856   :  { %6763 = vpow2.f32 %v2819_v34  ;;  %v10091_v23 = vmul.f32 1.442695, %v2777_v0  ;;  %v10093_v1 = vmul.f32 1.442695, %v2779_v42  ;;  %v10095_v59 = vmul.f32 1.442695, %v2781_v29 }
 0x857   :  { %6765 = vpow2.f32 %v2823_v38  ;;  %v14345_v37 = vld [vmem:[#allocation32_spill] sm:$0xff]  ;;  %v14347_v52 = vld [vmem:[#allocation34_spill] sm:$0xff]  ;;  %v14353_v38 = vld [vmem:[#allocation49_spill] sm:$0xff] }
 0x858   :  { %6767 = vpow2.f32 %v2827_v26  ;;  %v14348_v34 = vld [vmem:[#allocation36_spill] sm:$0xff]  ;;  %v14349_v26 = vld [vmem:[#allocation38_spill] sm:$0xff]  ;;  %v14354_v7 = vld [vmem:[#allocation51_spill] sm:$0xff] }
 0x859   :  { %6769 = vpow2.f32 %v2831_v14  ;;  %v14346_v14 = vld [vmem:[#allocation33_spill] sm:$0xff]  ;;  %v14351_v48 = vld [vmem:[#allocation46_spill] sm:$0xff]  ;;  %v14352_v28 = vld [vmem:[#allocation48_spill] sm:$0xff] }
 0x85a   :  { %6771 = vpow2.f32 %v2835_v63  ;;  %v14355_v32 = vld [vmem:[#allocation52_spill] sm:$0xff]  ;;  %v14356_v13 = vld [vmem:[#allocation54_spill] sm:$0xff]  ;;  %v14357_v25 = vld [vmem:[#allocation55_spill] sm:$0xff] }
 0x85b   :  { %v10105_v21 = vpop.eup %6753  ;;  %6773 = vpow2.f32 %v2839_v18  ;;  %v14358_v18 = vld [vmem:[#allocation71_spill] sm:$0xff]  ;;  %v14359_v19 = vld [vmem:[#allocation56_spill] sm:$0xff] }
 0x85c   :  { %v10113_v35 = vpop.eup %6755  ;;  %6775 = vpow2.f32 %v2843_v36  ;;  %v14350_v36 = vld [vmem:[#allocation40_spill] sm:$0xff] }
 0x85d   :  { %v10121_v42 = vpop.eup %6757  ;;  %6777 = vpow2.f32 %v2847_v5  ;;  %v2927_v29 = vadd.f32 %v10113_v35, %v10105_v21  ;;  %v14363_v5 = vld [vmem:[#allocation68_spill] sm:$0xff] }
 0x85e   :  { %v10129_v6 = vpop.eup %6759  ;;  %6779 = vpow2.f32 %v2851_v54  ;;  %v14361_v54 = vld [vmem:[#allocation65_spill] sm:$0xff] }
 0x85f   :  { %v10137_v0 = vpop.eup %6761  ;;  %6781 = vpow2.f32 %v2855_v8  ;;  %v2928_v63 = vadd.f32 %v10121_v42, %v2927_v29 }
 0x860   :  { %v10144_v22 = vpop.eup %6763  ;;  %6783 = vpow2.f32 %v2859_v45 }
 0x861   :  { %v10152_v53 = vpop.eup %6765  ;;  %6785 = vpow2.f32 %v2863_v11  ;;  %v2929_v29 = vadd.f32 %v10129_v6, %v2928_v63 }
 0x862   :  { %v10159_v17 = vpop.eup %6767  ;;  %6787 = vpow2.f32 %v2867_v10 }
 0x863   :  { %v10167_v9 = vpop.eup %6769  ;;  %6789 = vpow2.f32 %v2871_v20  ;;  %v2930_v63 = vadd.f32 %v10137_v0, %v2929_v29  ;;  %v14365_v29 = vsub.f32 %v9971_v43, %v10019_v27 }
 0x864   :  { %v10174_v3 = vpop.eup %6771  ;;  %6791 = vpow2.f32 %v2875_v15  ;;  %v14366_v15 = vsub.f32 %v9977_v61, %v10019_v27 }
 0x865   :  { %v10182_v24 = vpop.eup %6773  ;;  %6793 = vpow2.f32 %v2879_v50  ;;  %v2895_v45 = vmul.f32 1.442695, %v14365_v29  ;;  %v2931_v10 = vadd.f32 %v10144_v22, %v2930_v63  ;;  %v14367_v50 = vsub.f32 %v9983_v44, %v10019_v27 }
 0x866   :  { %v10188_v12 = vpop.eup %6775  ;;  %6795 = vpow2.f32 %v10091_v23  ;;  %v2899_v11 = vmul.f32 1.442695, %v14366_v15  ;;  %v14368_v23 = vsub.f32 %v9989_v16, %v10019_v27  ;;  %v14372_v16 = vsub.f32 %v10007_v4, %v10019_v27 }
 0x867   :  { %v10194_v8 = vpop.eup %6777  ;;  %6797 = vpow2.f32 %v10093_v1  ;;  %v2903_v20 = vmul.f32 1.442695, %v14367_v50  ;;  %v2932_v43 = vadd.f32 %v10152_v53, %v2931_v10  ;;  %v14369_v1 = vsub.f32 %v9995_v30, %v10019_v27 }
 0x868   :  { %v10201_v29 = vpop.eup %6779  ;;  %6799 = vpow2.f32 %v10095_v59  ;;  %v2907_v63 = vmul.f32 1.442695, %v14368_v23  ;;  %v14370_v10 = vsub.f32 %v10001_v2, %v10019_v27 }
 0x869   :  { %v10207_v61 = vpop.eup %6781  ;;  %6801 = vpow2.f32 %v2895_v45  ;;  %v2911_v15 = vmul.f32 1.442695, %v14369_v1  ;;  %v2933_v44 = vadd.f32 %v10159_v17, %v2932_v43  ;;  %v2919_v45 = vmul.f32 1.442695, %v14372_v16 }
 0x86a   :  { %v10213_v50 = vpop.eup %6783  ;;  %6803 = vpow2.f32 %v2899_v11  ;;  %v2915_v59 = vmul.f32 1.442695, %v14370_v10  ;;  %v14373_v43 = vsub.f32 %v10013_v49, %v10019_v27  ;;  %v14376_v49 = vsub.f32 %v9839_v39, %v10021_v51 }
 0x86b   :  { %v10218_v46 = vpop.eup %6785  ;;  %6805 = vpow2.f32 %v2903_v20  ;;  %v2934_v23 = vadd.f32 %v10167_v9, %v2933_v44  ;;  %v14374_v20 = vsub.f32 %v9829_v47, %v10021_v51  ;;  %v14375_v44 = vsub.f32 %v9833_v62, %v10021_v51 }
 0x86c   :  { %14371 = vst [vmem:[#allocation69_spill] sm:$0xff] %v10218_v46  ;;  %v10224_v30 = vpop.eup %6787  ;;  %6807 = vpow2.f32 %v2907_v63  ;;  %v2923_v11 = vmul.f32 1.442695, %v14373_v43  ;;  %v2809_v27 = vmul.f32 1.442695, %v14376_v49  ;;  %v14377_v47 = vsub.f32 %v9847_v40, %v10021_v51 }
 0x86d   :  { %v10229_v1 = vpop.eup %6789  ;;  %6809 = vpow2.f32 %v2911_v15  ;;  %v2935_v2 = vadd.f32 %v10174_v3, %v2934_v23  ;;  %v2801_v10 = vmul.f32 1.442695, %v14374_v20  ;;  %v2805_v63 = vmul.f32 1.442695, %v14375_v44 }
 0x86e   :  { %v10235_v4 = vpop.eup %6791  ;;  %6811 = vpow2.f32 %v2915_v59  ;;  %v2813_v23 = vmul.f32 1.442695, %v14377_v47  ;;  %v14378_v59 = vsub.f32 %v9854_v41, %v10021_v51  ;;  %v14379_v62 = vsub.f32 %v9860_v60, %v10021_v51 }
 0x86f   :  { %v10243_v16 = vpop.eup %6793  ;;  %6813 = vpow2.f32 %v2919_v45  ;;  %v2936_v15 = vadd.f32 %v10182_v24, %v2935_v2  ;;  %v14380_v45 = vsub.f32 %v9866_v55, %v10021_v51  ;;  %v14381_v2 = vsub.f32 %v9872_v31, %v10021_v51 }
 0x870   :  { %v2817_v43 = vmul.f32 1.442695, %v14378_v59  ;;  %v10252_v20 = vpop.eup %6795  ;;  %6815 = vpow2.f32 %v2923_v11  ;;  %v2821_v39 = vmul.f32 1.442695, %v14379_v62  ;;  %v14382_v11 = vsub.f32 %v9878_v33, %v10021_v51 }
 0x871   :  { %v2825_v44 = vmul.f32 1.442695, %v14380_v45  ;;  %v2829_v40 = vmul.f32 1.442695, %v14381_v2  ;;  %v10263_v49 = vpop.eup %6797  ;;  %v2937_v41 = vadd.f32 %v10188_v12, %v2936_v15  ;;  %6817 = vpow2.f32 %v2801_v10 }
 0x872   :  { %v2833_v47 = vmul.f32 1.442695, %v14382_v11  ;;  %v14383_v60 = vsub.f32 %v9884_v58, %v10021_v51  ;;  %v10272_v62 = vpop.eup %6799  ;;  %6819 = vpow2.f32 %v2805_v63 }
 0x873   :  { %v10280_v15 = vpop.eup %6801  ;;  %v2938_v33 = vadd.f32 %v10194_v8, %v2937_v41  ;;  %6821 = vpow2.f32 %v2809_v27 }
 0x874   :  { %v2837_v59 = vmul.f32 1.442695, %v14383_v60  ;;  %v10287_v45 = vpop.eup %6803  ;;  %6823 = vpow2.f32 %v2813_v23  ;;  %v14384_v23 = vsub.f32 %v9890_v57, %v10021_v51  ;;  %v14385_v60 = vsub.f32 %v14345_v37, %v10021_v51 }
 0x875   :  { %v10295_v41 = vpop.eup %6805  ;;  %v2939_v27 = vadd.f32 %v10201_v29, %v2938_v33  ;;  %6825 = vpow2.f32 %v2817_v43 }
 0x876   :  { %v10302_v58 = vpop.eup %6807  ;;  %6827 = vpow2.f32 %v2821_v39  ;;  %v2841_v63 = vmul.f32 1.442695, %v14384_v23  ;;  %v2845_v11 = vmul.f32 1.442695, %v14385_v60 }
 0x877   :  { %v10310_v33 = vpop.eup %6809  ;;  %v2940_v43 = vadd.f32 %v10207_v61, %v2939_v27  ;;  %6829 = vpow2.f32 %v2825_v44  ;;  %v14386_v44 = vsub.f32 %v14346_v14, %v10021_v51  ;;  %v14391_v14 = vsub.f32 %v14351_v48, %v10021_v51 }
 0x878   :  { %v10318_v10 = vpop.eup %6811  ;;  %6831 = vpow2.f32 %v2829_v40  ;;  %v14387_v40 = vsub.f32 %v14347_v52, %v10021_v51  ;;  %v14390_v52 = vsub.f32 %v14350_v36, %v10021_v51  ;;  %v14394_v48 = vsub.f32 %v14354_v7, %v10021_v51 }
 0x879   :  { %v10323_v2 = vpop.eup %6813  ;;  %v2941_v31 = vadd.f32 %v10213_v50, %v2940_v43  ;;  %6833 = vpow2.f32 %v2833_v47  ;;  %v2849_v57 = vmul.f32 1.442695, %v14386_v44  ;;  %v14388_v47 = vsub.f32 %v14348_v34, %v10021_v51 }
 0x87a   :  { %v10331_v23 = vpop.eup %6815  ;;  %6835 = vpow2.f32 %v2837_v59  ;;  %v2853_v37 = vmul.f32 1.442695, %v14387_v40  ;;  %v14389_v59 = vsub.f32 %v14349_v26, %v10021_v51  ;;  %v2865_v40 = vmul.f32 1.442695, %v14390_v52 }
 0x87b   :  { %v6818_v60 = vpop.eup %6817  ;;  %v2942_v39 = vadd.f32 %v10218_v46, %v2941_v31  ;;  %6837 = vpow2.f32 %v2841_v63  ;;  %v2857_v43 = vmul.f32 1.442695, %v14388_v47  ;;  %v14392_v26 = vsub.f32 %v14352_v28, %v10021_v51 }
 0x87c   :  { %v6820_v44 = vpop.eup %6819  ;;  %6839 = vpow2.f32 %v2845_v11  ;;  %v2861_v27 = vmul.f32 1.442695, %v14389_v59  ;;  %v2869_v11 = vmul.f32 1.442695, %v14391_v14  ;;  %v2881_v14 = vmul.f32 1.442695, %v14394_v48 }
 0x87d   :  { %v6822_v55 = vpop.eup %6821  ;;  %v2943_v31 = vadd.f32 %v10224_v30, %v2942_v39  ;;  %6841 = vpow2.f32 %v2849_v57  ;;  %v2964_v63 = vadd.f32 %v6820_v44, %v6818_v60  ;;  %v3004_v34 = vpack.c.bf16 %v6820_v44, %v6818_v60 }
 0x87e   :  { %v6824_v47 = vpop.eup %6823  ;;  %6843 = vpow2.f32 %v2853_v37  ;;  %v2873_v59 = vmul.f32 1.442695, %v14392_v26  ;;  %v14393_v37 = vsub.f32 %v14353_v38, %v10021_v51  ;;  %v14395_v28 = vpack.c.bf16 %v10113_v35, %v10105_v21 }
 0x87f   :  { %v6826_v46 = vpop.eup %6825  ;;  %v2944_v36 = vadd.f32 %v10229_v1, %v2943_v31  ;;  %6845 = vpow2.f32 %v2857_v43  ;;  %v2965_v52 = vadd.f32 %v6822_v55, %v2964_v63  ;;  %3035 = vmatprep.subr.bf16.mxu1 %v3004_v34  ;;  %v3006_v39 = vpack.c.bf16 %v6824_v47, %v6822_v55 }
 0x880   :  { %v6828_v57 = vpop.eup %6827  ;;  %6847 = vpow2.f32 %v2861_v27  ;;  %v2877_v60 = vmul.f32 1.442695, %v14393_v37  ;;  %3036 = vmatpush1.bf16.msra.mxu1 %v14395_v28  ;;  %v14396_v38 = vsub.f32 %v14355_v32, %v10021_v51  ;;  %v14397_v7 = vsub.f32 %v14356_v13, %v10021_v51  ;;  %v14402_v28 = vld [vmem:[#allocation63_spill] sm:$0xff] }
 0x881   :  { %v6830_v44 = vpop.eup %6829  ;;  %v2945_v43 = vadd.f32 %v10235_v4, %v2944_v36  ;;  %6849 = vpow2.f32 %v2865_v40  ;;  %v2966_v31 = vadd.f32 %v6824_v47, %v2965_v52  ;;  %3037 = vmatprep.subr.bf16.mxu1 %v3006_v39  ;;  %v3008_v55 = vpack.c.bf16 %v6828_v57, %v6826_v46 }
 0x882   :  { %v6832_v27 = vpop.eup %6831  ;;  %6851 = vpow2.f32 %v2869_v11  ;;  %v2885_v63 = vmul.f32 1.442695, %v14396_v38  ;;  %v2889_v34 = vmul.f32 1.442695, %v14397_v7  ;;  %v14398_v47 = vsub.f32 %v14357_v25, %v10021_v51 }
 0x883   :  { %v6834_v26 = vpop.eup %6833  ;;  %v2946_v21 = vadd.f32 %v10243_v16, %v2945_v43  ;;  %6853 = vpow2.f32 %v2873_v59  ;;  %v2967_v35 = vadd.f32 %v6826_v46, %v2966_v31  ;;  %v3010_v36 = vpack.c.bf16 %v6832_v27, %v6830_v44 }
 0x884   :  { %v6836_v40 = vpop.eup %6835  ;;  %6855 = vpow2.f32 %v2877_v60  ;;  %v2893_v11 = vmul.f32 1.442695, %v14398_v47  ;;  %v14399_v32 = vsub.f32 %v14358_v18, %v10021_v51  ;;  %v14400_v13 = vpack.c.bf16 %v10129_v6, %v10121_v42 }
 0x885   :  { %v6838_v39 = vpop.eup %6837  ;;  %v2947_v37 = vadd.f32 %v10252_v20, %v2946_v21  ;;  %6857 = vpow2.f32 %v2881_v14  ;;  %v2968_v46 = vadd.f32 %v6828_v57, %v2967_v35  ;;  %v3012_v59 = vpack.c.bf16 %v6836_v40, %v6834_v26 }
 0x886   :  { %v2897_v52 = vmul.f32 1.442695, %v14399_v32  ;;  %3038 = vmatpush1.bf16.msra.mxu1 %v14400_v13  ;;  %v6840_v60 = vpop.eup %6839  ;;  %6859 = vpow2.f32 %v2885_v63  ;;  %v14401_v25 = vsub.f32 %v14359_v19, %v10021_v51  ;;  %v14403_v18 = vsub.f32 %v14402_v28, %v10021_v51  ;;  %v14405_v63 = vld [vmem:[#allocation67_spill] sm:$0xff] }
 0x887   :  { %3039 = vmatprep.subr.bf16.mxu1 %v3008_v55  ;;  %v6842_v31 = vpop.eup %6841  ;;  %v2948_v42 = vadd.f32 %v10263_v49, %v2947_v37  ;;  %6861 = vpow2.f32 %v2889_v34  ;;  %v2969_v6 = vadd.f32 %v6830_v44, %v2968_v46  ;;  %v3014_v38 = vpack.c.bf16 %v6840_v60, %v6838_v39 }
 0x888   :  { %v2901_v48 = vmul.f32 1.442695, %v14401_v25  ;;  %v2905_v43 = vmul.f32 1.442695, %v14403_v18  ;;  %v6844_v14 = vpop.eup %6843  ;;  %6863 = vpow2.f32 %v2893_v11  ;;  %v14404_v57 = vsub.f32 %v14361_v54, %v10021_v51 }
 0x889   :  { %v14406_v19 = vsub.f32 %v14405_v63, %v10021_v51  ;;  %v14407_v21 = vpack.c.bf16 %v10144_v22, %v10137_v0  ;;  %v6846_v35 = vpop.eup %6845  ;;  %v2949_v47 = vadd.f32 %v10272_v62, %v2948_v42  ;;  %6865 = vpow2.f32 %v2897_v52 }
 0x88a   :  { %v2909_v55 = vmul.f32 1.442695, %v14404_v57  ;;  %v2970_v44 = vadd.f32 %v6832_v27, %v2969_v6  ;;  %v3016_v34 = vpack.c.bf16 %v6844_v14, %v6842_v31  ;;  %v6848_v11 = vpop.eup %6847  ;;  %6867 = vpow2.f32 %v2901_v48  ;;  %v14410_v27 = vld [vmem:[#allocation66_spill] sm:$0xff] }
 0x88b   :  { %v2913_v7 = vmul.f32 1.442695, %v14406_v19  ;;  %3040 = vmatpush1.bf16.msra.mxu1 %v14407_v21  ;;  %v14408_v54 = vsub.f32 %v14363_v5, %v10021_v51  ;;  %v14409_v13 = vsub.f32 %v14364_v56, %v10021_v51  ;;  %v6850_v46 = vpop.eup %6849  ;;  %v2950_v22 = vadd.f32 %v10280_v15, %v2949_v47 }
 0x88c   :  { %3041 = vmatprep.subr.bf16.mxu1 %v3010_v36  ;;  %6869 = vpow2.f32 %v2905_v43  ;;  %v2971_v0 = vadd.f32 %v6834_v26, %v2970_v44  ;;  %v3018_v25 = vpack.c.bf16 %v6848_v11, %v6846_v35  ;;  %v6852_v52 = vpop.eup %6851  ;;  %v14411_v36 = vsub.f32 %v14410_v27, %v10021_v51 }
 0x88d   :  { %v2917_v32 = vmul.f32 1.442695, %v14408_v54  ;;  %v2921_v37 = vmul.f32 1.442695, %v14409_v13  ;;  %6871 = vpow2.f32 %v2909_v55  ;;  %v14412_v5 = vpack.c.bf16 %v10159_v17, %v10152_v53  ;;  %v6854_v28 = vpop.eup %6853 }
 0x88e   :  { %v2925_v48 = vmul.f32 1.442695, %v14411_v36  ;;  %v2951_v56 = vadd.f32 %v10287_v45, %v2950_v22  ;;  %6873 = vpow2.f32 %v2913_v7  ;;  %v2972_v18 = vadd.f32 %v6836_v40, %v2971_v0  ;;  %v6856_v43 = vpop.eup %6855 }
 0x88f   :  { %3042 = vmatpush1.bf16.msra.mxu1 %v14412_v5  ;;  %v3020_v42 = vpack.c.bf16 %v6852_v52, %v6850_v46  ;;  %6875 = vpow2.f32 %v2917_v32  ;;  %v6858_v26 = vpop.eup %6857  ;;  %v3022_v51 = vpack.c.bf16 %v6856_v43, %v6854_v28  ;;  %v14413_v17 = vpack.c.bf16 %v10174_v3, %v10167_v9 }
 0x890   :  { %3043 = vmatprep.subr.bf16.mxu1 %v3012_v59  ;;  %v2952_v6 = vadd.f32 %v10295_v41, %v2951_v56  ;;  %6877 = vpow2.f32 %v2921_v37  ;;  %v2973_v57 = vadd.f32 %v6838_v39, %v2972_v18  ;;  %v6860_v55 = vpop.eup %6859  ;;  %v14414_v54 = vpack.c.bf16 %v10188_v12, %v10182_v24 }
 0x891   :  { %6879 = vpow2.f32 %v2925_v48  ;;  %v6862_v53 = vpop.eup %6861  ;;  %v3024_v59 = vpack.c.bf16 %v6860_v55, %v6858_v26  ;;  %v14416_v56 = vpack.c.bf16 %v10213_v50, %v10207_v61  ;;  %v14420_v61 = vpack.c.bf16 %v10252_v20, %v10243_v16 }
 0x892   :  { %v2953_v63 = vadd.f32 %v10302_v58, %v2952_v6  ;;  %v2974_v40 = vadd.f32 %v6840_v60, %v2973_v57  ;;  %v6864_v19 = vpop.eup %6863  ;;  %v14417_v6 = vld [vmem:[#allocation69_spill] sm:$0xff]  ;;  %v14423_v16 = vpack.c.bf16 %v10302_v58, %v10295_v41  ;;  %v14429_v58 = vld [vmem:[#allocation59_spill] sm:$0xff] }
 0x893   :  { %3044 = vmatpush1.bf16.msra.mxu1 %v14413_v17  ;;  %v6866_v7 = vpop.eup %6865  ;;  %v3026_v44 = vpack.c.bf16 %v6864_v19, %v6862_v53 }
 0x894   :  { %3045 = vmatprep.subr.bf16.mxu1 %v3014_v38  ;;  %v2954_v21 = vadd.f32 %v10310_v33, %v2953_v63  ;;  %v2975_v47 = vadd.f32 %v6842_v31, %v2974_v40  ;;  %v6868_v39 = vpop.eup %6867  ;;  %v14415_v31 = vpack.c.bf16 %v10201_v29, %v10194_v8  ;;  %v14418_v8 = vpack.c.bf16 %v10224_v30, %v14417_v6  ;;  %v14431_v63 = vld [vmem:[#allocation61_spill] sm:$0xff]  ;;  %v14432_v40 = vld [vmem:[#allocation58_spill] sm:$0xff] }
 0x895   :  { %v3028_v13 = vpack.c.bf16 %v6868_v39, %v6866_v7  ;;  %v14421_v30 = vpack.c.bf16 %v10272_v62, %v10263_v49  ;;  %v14424_v49 = vpack.c.bf16 %v10318_v10, %v10310_v33  ;;  %v14425_v62 = vld [vmem:[#allocation60_spill] sm:$0xff]  ;;  %v6355_v6 = vld [vmem:[%s13498_s3] sm:$0xff]  }
 0x896   :  { %v6870_v32 = vpop.eup %6869  ;;  %v2955_v3 = vadd.f32 %v10318_v10, %v2954_v21  ;;  %v2976_v9 = vadd.f32 %v6844_v14, %v2975_v47  ;;  %v14434_v10 = vmov 0  }
 0x897   :  { %3046 = vmatpush1.bf16.msra.mxu1 %v14414_v54  ;;  %v6872_v60 = vpop.eup %6871 }
 0x898   :  { %3047 = vmatprep.subr.bf16.mxu1 %v3016_v34  ;;  %v6874_v38 = vpop.eup %6873  ;;  %v2956_v37 = vadd.f32 %v10323_v2, %v2955_v3  ;;  %v2977_v22 = vadd.f32 %v6846_v35, %v2976_v9  ;;  %v3030_v0 = vpack.c.bf16 %v6872_v60, %v6870_v32 }
 0x899   :  { %v6876_v27 = vpop.eup %6875 }
 0x89a   :  { %v6878_v36 = vpop.eup %6877  ;;  %v2957_v12 = vadd.f32 %v10331_v23, %v2956_v37  ;;  %v2978_v24 = vadd.f32 %v6848_v11, %v2977_v22  ;;  %v3032_v48 = vpack.c.bf16 %v6876_v27, %v6874_v38  ;;  %v14419_v11 = vpack.c.bf16 %v10235_v4, %v10229_v1  ;;  %v6260_v22 = vld [vmem:[%s13495_s0 + $0x48] sm:$0xff] }
 0x89b   :  { %3048 = vmatpush1.bf16.msra.mxu1 %v14415_v31  ;;  %v6880_v14 = vpop.eup %6879  ;;  %v14422_v1 = vpack.c.bf16 %v10287_v45, %v10280_v15  ;;  %v14427_v15 = vpack.c.bf16 %v10331_v23, %v10323_v2 }
 0x89c   :  { %3049 = vmatprep.subr.bf16.mxu1 %v3018_v25  ;;  %v2979_v34 = vadd.f32 %v6850_v46, %v2978_v24  ;;  %v3034_v5 = vpack.c.bf16 %v6880_v14, %v6878_v36  ;;  %v2958_v33 = vrot.slane %v2957_v12, 4 }
 0x89e   :  { %v2980_v35 = vadd.f32 %v6852_v52, %v2979_v34 }
 0x89f   :  { %3050 = vmatpush1.bf16.msra.mxu1 %v14416_v56  ;;  %v6261_v56 = vld [vmem:[%s13495_s0 + $0x50] sm:$0xff] }
 0x8a0   :  { %3051 = vmatprep.subr.bf16.mxu1 %v3020_v42  ;;  %v2981_v18 = vadd.f32 %v6854_v28, %v2980_v35  ;;  %v6264_v35 = vld [vmem:[%s13495_s0 + $0x68] sm:$0xff] }
 0x8a2   :  { %v2982_v29 = vadd.f32 %v6856_v43, %v2981_v18  ;;  %v6266_v18 = vld [vmem:[%s13495_s0 + $0x78] sm:$0xff] }
 0x8a3   :  { %3052 = vmatpush1.bf16.msra.mxu1 %v14418_v8 }
 0x8a4   :  { %3053 = vmatprep.subr.bf16.mxu1 %v3022_v51  ;;  %v2983_v57 = vadd.f32 %v6858_v26, %v2982_v29  ;;  %v14426_v51 = vld [vmem:[#allocation70_spill] sm:$0xff]  ;;  %v3191_v29 = vpack.c.bf16 %v6266_v18, %v6264_v35 }
 0x8a6   :  { %v2984_v46 = vadd.f32 %v6860_v55, %v2983_v57  ;;  %v264_v55 = vadd.f32 %v14426_v51, %v14425_v62  ;;  %v6263_v57 = vld [vmem:[%s13495_s0 + $0x60] sm:$0xff] }
 0x8a7   :  { %3054 = vmatpush1.bf16.msra.mxu1 %v14419_v11  ;;  %v6265_v11 = vld [vmem:[%s13495_s0 + $0x70] sm:$0xff] }
 0x8a8   :  { %3055 = vmatprep.subr.bf16.mxu1 %v3024_v59  ;;  %v2985_v25 = vadd.f32 %v6862_v53, %v2984_v46  ;;  %v2380_v45 = vpack.c.bf16 %v264_v55, %v264_v55  ;;  %v14428_v53 = vld [vmem:[#allocation62_spill] sm:$0xff]  ;;  %v14433_v59 = vpack.c.bf16 %v14431_v63, %v14432_v40  ;;  %v3190_v46 = vpack.c.bf16 %v6265_v11, %v6263_v57  ;;  %v14438_v63 = vld [vmem:[#allocation5_spill] sm:$0xff] }
 0x8a9   :  { %v14430_v41 = vpack.c.bf16 %v14428_v53, %v14429_v58 }
 0x8aa   :  { %v2986_v50 = vadd.f32 %v6864_v19, %v2985_v25  ;;  %v6356_v25 = vld [vmem:[%s13498_s3 + $0x8] sm:$0xff]  }
 0x8ab   :  { %3056 = vmatpush1.bf16.msra.mxu1 %v14420_v61  ;;  %v7413_v61 = vld [vmem:[%s13496_s1] sm:$0xff]  }
 0x8ac   :  { %3057 = vmatprep.subr.bf16.mxu1 %v3026_v44  ;;  %v2987_v52 = vadd.f32 %v6866_v7, %v2986_v50  ;;  %v2959_v7 = vadd.f32 %v2958_v33, %v2957_v12  ;;  %v7414_v50 = vld [vmem:[%s13496_s1 + $0x8] sm:$0xff]  }
 0x8ae   :  { %v2988_v28 = vadd.f32 %v6868_v39, %v2987_v52  ;;  %v2960_v47 = vrot.slane %v2959_v7, 2  ;;  %v7415_v52 = vld [vmem:[%s13496_s1 + $0x10] sm:$0xff]  }
 0x8af   :  { %3058 = vmatpush1.bf16.msra.mxu1 %v14421_v30  ;;  %v7416_v30 = vld [vmem:[%s13496_s1 + $0x18] sm:$0xff]  }
 0x8b0   :  { %3059 = vmatprep.subr.bf16.mxu1 %v3028_v13  ;;  %v2989_v42 = vadd.f32 %v6870_v32, %v2988_v28  ;;  %v2961_v2 = vadd.f32 %v2960_v47, %v2959_v7  ;;  %v7417_v28 = vld [vmem:[%s13496_s1 + $0x20] sm:$0xff]  }
 0x8b2   :  { %v2990_v4 = vadd.f32 %v6872_v60, %v2989_v42  ;;  %v2962_v39 = vrot.slane %v2961_v2, 1  ;;  %v7418_v42 = vld [vmem:[%s13496_s1 + $0x28] sm:$0xff]  }
 0x8b3   :  { %3060 = vmatpush1.bf16.msra.mxu1 %v14422_v1 }
 0x8b4   :  { %3061 = vmatprep.subr.bf16.mxu1 %v3030_v0  ;;  %v2991_v43 = vadd.f32 %v6874_v38, %v2990_v4  ;;  %v2963_v32 = vadd.f32 %v2962_v39, %v2961_v2  ;;  %v6262_v0 = vld [vmem:[%s13495_s0 + $0x58] sm:$0xff] }
 0x8b5   :  { %v3189_v34 = vpack.c.bf16 %v6262_v0, %v6260_v22 }
 0x8b6   :  { %v2992_v20 = vadd.f32 %v6876_v27, %v2991_v43  ;;  %6881 = vrcp.f32 %v2963_v32 }
 0x8b7   :  { %3062 = vmatpush1.bf16.msra.mxu1 %v14423_v16 }
 0x8b8   :  { %3063 = vmatprep.subr.bf16.mxu1 %v3032_v48  ;;  %v2993_v26 = vadd.f32 %v6878_v36, %v2992_v20  ;;  %v14435_v36 = vld [vmem:[#allocation30_spill] sm:$0xff]  ;;  %v14436_v48 = vld [vmem:[#allocation31_spill] sm:$0xff] }
 0x8ba   :  { %v2994_v17 = vadd.f32 %v6880_v14, %v2993_v26 }
 0x8bb   :  { %3064 = vmatpush1.bf16.msra.mxu1 %v14424_v49 }
 0x8bc   :  { %3065 = vmatprep.subr.bf16.mxu1 %v3034_v5  ;;  %v2995_v19 = vrot.slane %v2994_v17, 4  ;;  %v6259_v5 = vld [vmem:[%s13495_s0 + $0x40] sm:$0xff] }
 0x8bd   :  { %v3188_v8 = vpack.c.bf16 %v6261_v56, %v6259_v5 }
 0x8be   :  { %v2996_v21 = vadd.f32 %v2995_v19, %v2994_v17  ;;  %v14437_v17 = vld [vmem:[#allocation6_spill] sm:$0xff] }
 0x8bf   :  { %3066 = vmatpush1.bf16.msra.mxu1 %v14427_v15 }
 0x8c0   :  { %3118 = vmatprep.subr.bf16.mxu1 %v14430_v41  ;;  %v2997_v44 = vrot.slane %v2996_v21, 2  ;;  %v6882_v9 = vpop.eup %6881 }
 0x8c2   :  { %3068 = vmatmul.mubr.bf16.vlgmr.msra.gmra.mrb[132].mxu1 %v2380_v45  ;;  %v2998_v23 = vadd.f32 %v2997_v44, %v2996_v21  ;;  %v14440_v44 = vld [vmem:[#allocation9_spill] sm:$0xff] }
 0x8c3   :  { %3119 = vmatpush1.bf16.msra.mxu1 %v14433_v59  ;;  %3150 = vmatprep.mubr.bf16.mxu1 %v14434_v10 }
 0x8c4   :  { %v2999_v54 = vrot.slane %v2998_v23, 1 }
 0x8c6   :  { %v3000_v3 = vadd.f32 %v2999_v54, %v2998_v23 }
 0x8c8   :  { %6883 = vrcp.f32 %v3000_v3  ;;  %v14443_v3 = vld [vmem:[#allocation7_spill] sm:$0xff] }
 0x8d2   :  { %v6884_v60 = vpop.eup %6883 }
 0x995   :  { %v3069_v13 = vpop.f32.mrb[132].mxu1 }
 0x996   :  { %v3076_v38 = vmul.f32 %v6882_v9, %v3069_v13  ;;  %v3071_v37 = vpop.f32.mrb[133].mxu1 }
 0x997   :  { %v3077_v27 = vmul.f32 %v6884_v60, %v3071_v37  ;;  %v3073_v31 = vpop.f32.mrb[134].mxu1 }
 0x998   :  { %v3080_v12 = vpack.c.bf16 %v3076_v38, %v14435_v36  ;;  %v3074_v24 = vpop.f32.mrb[135].mxu1 }
 0x999   :  { %v3081_v14 = vpack.c.bf16 %v3077_v27, %v14436_v48 }
 0x99b   :  { %3120 = vmatprep.subr.bf16.mxu1 %v3081_v14 }
 0x99c   :  { %3121 = vmatpush1.bf16.msra.mxu1 %v3080_v12 }
 0x99d   :  { %3192 = vmatprep.subr.bf16.mxu1 %v3189_v34 }
 0x99f   :  { %6257 = vmatmul.mubr.msk.bf16.vlgmr.msra.gmra.mrb[136].mxu1 %vm156_vm0, %v6355_v6  ;;  %v14453_v6 = vld [vmem:[#allocation24_spill] sm:$0xff] }
 0x9a0   :  { %3160 = vmatprep.mubr.bf16.mxu1 %v14434_v10  ;;  %3193 = vmatpush1.bf16.msra.mxu1 %v3188_v8 }
 0x9a1   :  { %3194 = vmatprep.subr.bf16.mxu1 %v3191_v29 }
 0x9a4   :  { %3195 = vmatpush1.bf16.msra.mxu1 %v3190_v46  ;;  %v14454_v46 = vld [vmem:[#allocation42_spill] sm:$0xff] }
 0x9a7   :  { %6258 = vmatmul.mubr.msk.bf16.gmra.mrb[140].mxu1 %vm156_vm0, %v6356_v25 }
 0x9a8   :  { %3224 = vmatprep.mubr.bf16.mxu1 %v14434_v10 }
 0x9af   :  { %6267 = vmatmul.mubr.msk.bf16.vlgmr.msra.gmra.mrb[144].mxu1 %vm156_vm0, %v7413_v61 }
 0x9b0   :  { %3234 = vmatprep.mubr.bf16.mxu1 %v14434_v10 }
 0x9b7   :  { %6268 = vmatmul.mubr.msk.bf16.gmra.mrb[148].mxu1 %vm156_vm0, %v7414_v50 }
 0x9b8   :  { %3244 = vmatprep.mubr.bf16.mxu1 %v14434_v10 }
 0x9bf   :  { %6269 = vmatmul.mubr.msk.bf16.gmra.mrb[152].mxu1 %vm156_vm0, %v7415_v52 }
 0x9c0   :  { %3254 = vmatprep.mubr.bf16.mxu1 %v14434_v10 }
 0x9c7   :  { %6270 = vmatmul.mubr.msk.bf16.gmra.mrb[156].mxu1 %vm156_vm0, %v7416_v30 }
 0x9c8   :  { %3264 = vmatprep.mubr.bf16.mxu1 %v14434_v10 }
 0x9cf   :  { %6271 = vmatmul.mubr.msk.bf16.gmra.mrb[160].mxu1 %vm156_vm0, %v7417_v28  ;;  %v50_v28 = vld [vmem:[%s13499_s4] sm:$0xff] }
 0x9d0   :  { %3274 = vmatprep.mubr.bf16.mxu1 %v14434_v10 }
 0x9d7   :  { %6272 = vmatmul.mubr.msk.bf16.gmra.mrb[164].mxu1 %vm156_vm0, %v7418_v42 }
 0x9d8   :  { %3409 = vmatprep.mubr.bf16.mxu1 %v14434_v10 }
 0xa72   :  { %v10531_v1 = vpop.f32.mrb[136].mxu1 }
 0xa73   :  { %v10533_v4 = vpop.f32.mrb[137].mxu1 }
 0xa74   :  { %v10535_v43 = vpop.f32.mrb[138].mxu1 }
 0xa75   :  { %v10537_v16 = vpop.f32.mrb[139].mxu1 }
 0xa7a   :  { %v10539_v20 = vpop.f32.mrb[140].mxu1 }
 0xa7b   :  { %v10541_v26 = vpop.f32.mrb[141].mxu1 }
 0xa7c   :  { %v10543_v49 = vpop.f32.mrb[142].mxu1 }
 0xa7d   :  { %v10545_v51 = vpop.f32.mrb[143].mxu1 }
 0xa82   :  { %v3226_v55 = vpop.f32.mrb[144].mxu1 }
 0xa83   :  { %v3227_v15 = vadd.f32 %v3226_v55, %v14437_v17  ;;  %v3228_v45 = vpop.f32.mrb[145].mxu1 }
 0xa84   :  { %v3229_v53 = vadd.f32 %v3228_v45, %v14437_v17  ;;  %v3230_v58 = vpop.f32.mrb[146].mxu1  ;;  %v52_v17 = vld [vmem:[%s13499_s4 + $0x10] sm:$0xff] }
 0xa85   :  { %v3285_v41 = vpack.c.bf16 %v3227_v15, %v3227_v15  ;;  %v3231_v40 = vadd.f32 %v3230_v58, %v14438_v63  ;;  %v3232_v59 = vpop.f32.mrb[147].mxu1 }
 0xa86   :  { %v3286_v33 = vpack.c.bf16 %v3229_v53, %v3229_v53  ;;  %v3233_v36 = vadd.f32 %v3232_v59, %v14438_v63  ;;  %v53_v53 = vld [vmem:[%s13499_s4 + $0x18] sm:$0xff] }
 0xa87   :  { %v3372_v19 = vsel %vm355_vm1, %v3285_v41, 0  ;;  %v3287_v7 = vpack.c.bf16 %v3231_v40, %v3231_v40 }
 0xa88   :  { %6273 = vmatprep.subr.msk.bf16.mxu1 %vm355_vm1, %v3286_v33  ;;  %v3288_v48 = vpack.c.bf16 %v3233_v36, %v3233_v36 }
 0xa89   :  { %3291 = vxpose.xlu1.c.b16.start.end [1/1] (short) %v3287_v7, 128  ;;  %3378 = vmatpush1.bf16.msra.mxu1 %v3372_v19 }
 0xa8a   :  { %v10552_v21 = vpop.f32.mrb[148].mxu1 }
 0xa8b   :  { %14439 = vst [vmem:[#allocation44_spill] sm:$0xff] %v10552_v21  ;;  %v3238_v47 = vpop.f32.mrb[149].mxu1 }
 0xa8c   :  { %v3239_v2 = vadd.f32 %v3238_v47, %v14440_v44  ;;  %v10555_v23 = vpop.f32.mrb[150].mxu1 }
 0xa8d   :  { %14441 = vst [vmem:[#allocation10_spill] sm:$0xff] %v10555_v23  ;;  %v10557_v39 = vpop.f32.mrb[151].mxu1 }
 0xa8e   :  { %14442 = vst [vmem:[#allocation11_spill] sm:$0xff] %v10557_v39  ;;  %v3290_v54 = vpack.c.bf16 %v3239_v2, %v3239_v2 }
 0xa90   :  { %3976 = vmatprep.mubr.bf16.mxu0 %v3290_v54 }
 0xa92   :  { %v3246_v32 = vpop.f32.mrb[152].mxu1 }
 0xa93   :  { %v3247_v9 = vadd.f32 %v3246_v32, %v14443_v3  ;;  %v3248_v13 = vpop.f32.mrb[153].mxu1 }
 0xa94   :  { %v10560_v60 = vpop.f32.mrb[154].mxu1  ;;  %v3249_v57 = vadd.f32 %v3248_v13, %v14443_v3 }
 0xa95   :  { %14444 = vst [vmem:[#allocation8_spill] sm:$0xff] %v10560_v60  ;;  %v3989_v38 = vpack.c.bf16 %v3247_v9, %v3247_v9  ;;  %v10562_v37 = vpop.f32.mrb[155].mxu1 }
 0xa96   :  { %v3990_v11 = vpack.c.bf16 %v3249_v57, %v3249_v57 }
 0xa97   :  { %3993 = vxpose.xlu0.c.b16.start.end [1/1] (short) %v3989_v38, 128 }
 0xa9a   :  { %v10564_v22 = vpop.f32.mrb[156].mxu1 }
 0xa9b   :  { %14445 = vst [vmem:[#allocation16_spill] sm:$0xff] %v10564_v22  ;;  %v10566_v0 = vpop.f32.mrb[157].mxu1 }
 0xa9c   :  { %14446 = vst [vmem:[#allocation18_spill] sm:$0xff] %v10566_v0  ;;  %v3260_v27 = vpop.f32.mrb[158].mxu1 }
 0xa9d   :  { %v3262_v31 = vpop.f32.mrb[159].mxu1  ;;  %v3261_v8 = vadd.f32 %v3260_v27, %v14453_v6  ;;  %v51_v27 = vld [vmem:[%s13499_s4 + $0x8] sm:$0xff] }
 0xa9e   :  { %v3263_v50 = vadd.f32 %v3262_v31, %v14453_v6 }
 0xa9f   :  { %v4691_v29 = vpack.c.bf16 %v3261_v8, %v3261_v8 }
 0xaa0   :  { %v4692_v52 = vpack.c.bf16 %v3263_v50, %v3263_v50 }
 0xaa2   :  { %v10569_v12 = vpop.f32.mrb[160].mxu1 }
 0xaa3   :  { %14447 = vst [vmem:[#allocation20_spill] sm:$0xff] %v10569_v12  ;;  %v10571_v24 = vpop.f32.mrb[161].mxu1 }
 0xaa4   :  { %14448 = vst [vmem:[#allocation21_spill] sm:$0xff] %v10571_v24  ;;  %v10573_v14 = vpop.f32.mrb[162].mxu1 }
 0xaa5   :  { %14449 = vst [vmem:[#allocation19_spill] sm:$0xff] %v10573_v14  ;;  %v10575_v34 = vpop.f32.mrb[163].mxu1 }
 0xaa6   :  { %14450 = vst [vmem:[#allocation23_spill] sm:$0xff] %v10575_v34  ;;  %3307 = vxpose.xlu1.c.b16.start.end [1/1] (short) %v3288_v48, 128 }
 0xaaa   :  { %v3276_v5 = vpop.f32.mrb[164].mxu1 }
 0xaab   :  { %v3278_v56 = vpop.f32.mrb[165].mxu1  ;;  %v3277_v25 = vadd.f32 %v3276_v5, %v14454_v46 }
 0xaac   :  { %v10577_v35 = vpop.f32.mrb[166].mxu1  ;;  %v3279_v55 = vadd.f32 %v3278_v56, %v14454_v46 }
 0xaad   :  { %14451 = vst [vmem:[#allocation13_spill] sm:$0xff] %v10577_v35  ;;  %v10579_v18 = vpop.f32.mrb[167].mxu1  ;;  %v5393_v61 = vpack.c.bf16 %v3277_v25, %v3277_v25 }
 0xaae   :  { %14452 = vst [vmem:[#allocation17_spill] sm:$0xff] %v10579_v18  ;;  %v5394_v45 = vpack.c.bf16 %v3279_v55, %v3279_v55 }
 0xab4   :  { %4695 = vxpose.xlu0.c.b16.start.end [1/1] (short) %v4691_v29, 128 }
 0xac3   :  { %4009 = vxpose.xlu1.c.b16.start.end [1/1] (short) %v3990_v11, 128 }
 0xad1   :  { %5397 = vxpose.xlu0.c.b16.start.end [1/1] (short) %v5393_v61, 128 }
 0xae0   :  { %4711 = vxpose.xlu1.c.b16.start.end [1/1] (short) %v4692_v52, 128 }
 0xaef   :  { %v3299_v30 = vpop.trf.xlu1 }
 0xaf0   :  { %6274 = vmatmul.mubr.msk.bf16.vlgmr.msra.gmra.mrb[168].mxu1 %vm306_vm2, %v3299_v30 }
 0xaf1   :  { %3419 = vmatprep.mubr.bf16.mxu1 %v14434_v10 }
 0xaf3   :  { %v3300_v42 = vpop.trf.xlu1 }
 0xaf6   :  { %3084 = vperm.xlu0 %6347, %v50_v28  }
 0xaf7   :  { %v3301_v15 = vpop.trf.xlu1 }
 0xaf8   :  { %6275 = vmatmul.mubr.msk.bf16.gmra.mrb[172].mxu1 %vm306_vm2, %v3300_v42 }
 0xaf9   :  { %3429 = vmatprep.mubr.bf16.mxu1 %v14434_v10 }
 0xafa   :  { %3094 = vperm.xlu0 %6347, %v52_v17  }
 0xafb   :  { %v3302_v58 = vpop.trf.xlu1 }
 0xafd   :  { %5413 = vxpose.xlu1.c.b16.start.end [1/1] (short) %v5394_v45, 128  ;;  %v10599_v41 = vpop.trf.xlu0 }
 0xafe   :  { %14455 = vst [vmem:[#allocation22_spill] sm:$0xff] %v10599_v41  ;;  %3099 = vperm.xlu0 %6347, %v53_v53  }
 0xaff   :  { %v3303_v63 = vpop.trf.xlu1 }
 0xb00   :  { %6276 = vmatmul.mubr.msk.bf16.gmra.mrb[176].mxu1 %vm306_vm2, %v3301_v15 }
 0xb01   :  { %3439 = vmatprep.mubr.bf16.mxu1 %v14434_v10  ;;  %v10603_v40 = vpop.trf.xlu0 }
 0xb02   :  { %14456 = vst [vmem:[#allocation14_spill] sm:$0xff] %v10603_v40 }
 0xb03   :  { %v3304_v59 = vpop.trf.xlu1 }
 0xb05   :  { %v10605_v33 = vpop.trf.xlu0 }
 0xb06   :  { %14457 = vst [vmem:[#allocation12_spill] sm:$0xff] %v10605_v33 }
 0xb07   :  { %v3305_v19 = vpop.trf.xlu1 }
 0xb08   :  { %6277 = vmatmul.mubr.msk.bf16.gmra.mrb[180].mxu1 %vm306_vm2, %v3302_v58 }
 0xb09   :  { %3449 = vmatprep.mubr.bf16.mxu1 %v14434_v10  ;;  %v10609_v7 = vpop.trf.xlu0 }
 0xb0a   :  { %14458 = vst [vmem:[#allocation27_spill] sm:$0xff] %v10609_v7 }
 0xb0b   :  { %v3306_v47 = vpop.trf.xlu1 }
 0xb0d   :  { %v10611_v2 = vpop.trf.xlu0 }
 0xb0e   :  { %14459 = vst [vmem:[#allocation28_spill] sm:$0xff] %v10611_v2 }
 0xb0f   :  { %v3315_v54 = vpop.trf.xlu1 }
 0xb10   :  { %6278 = vmatmul.mubr.msk.bf16.gmra.mrb[184].mxu1 %vm306_vm2, %v3303_v63 }
 0xb11   :  { %3459 = vmatprep.mubr.bf16.mxu1 %v14434_v10  ;;  %v10615_v32 = vpop.trf.xlu0 }
 0xb12   :  { %14460 = vst [vmem:[#allocation25_spill] sm:$0xff] %v10615_v32 }
 0xb13   :  { %v3316_v3 = vpop.trf.xlu1 }
 0xb15   :  { %v10617_v9 = vpop.trf.xlu0 }
 0xb16   :  { %14461 = vst [vmem:[#allocation37_spill] sm:$0xff] %v10617_v9 }
 0xb17   :  { %v3317_v13 = vpop.trf.xlu1 }
 0xb18   :  { %6279 = vmatmul.mubr.msk.bf16.gmra.mrb[188].mxu1 %vm306_vm2, %v3304_v59 }
 0xb19   :  { %3469 = vmatprep.mubr.bf16.mxu1 %v14434_v10  ;;  %v10621_v38 = vpop.trf.xlu0 }
 0xb1a   :  { %14462 = vst [vmem:[#allocation39_spill] sm:$0xff] %v10621_v38 }
 0xb1b   :  { %v3318_v31 = vpop.trf.xlu1 }
 0xb1d   :  { %3089 = vperm.xlu1 %6348, %v51_v27   ;;  %v10626_v36 = vpop.trf.xlu0  ;;  %v14489_v27 = vld [vmem:[#allocation53_spill] sm:$0xff] }
 0xb1e   :  { %14463 = vst [vmem:[#allocation41_spill] sm:$0xff] %v10626_v36 }
 0xb1f   :  { %v3319_v48 = vpop.trf.xlu1 }
 0xb20   :  { %6280 = vmatmul.mubr.msk.bf16.gmra.mrb[192].mxu1 %vm306_vm2, %v3305_v19 }
 0xb21   :  { %3479 = vmatprep.mubr.bf16.mxu1 %v14434_v10  ;;  %v10630_v5 = vpop.trf.xlu0 }
 0xb22   :  { %14464 = vst [vmem:[#allocation43_spill] sm:$0xff] %v10630_v5 }
 0xb23   :  { %v3320_v56 = vpop.trf.xlu1 }
 0xb25   :  { %v10632_v6 = vpop.trf.xlu0 }
 0xb26   :  { %14465 = vst [vmem:[#allocation45_spill] sm:$0xff] %v10632_v6 }
 0xb27   :  { %v3321_v8 = vpop.trf.xlu1 }
 0xb28   :  { %6281 = vmatmul.mubr.msk.bf16.gmra.mrb[196].mxu1 %vm306_vm2, %v3306_v47 }
 0xb29   :  { %3489 = vmatprep.mubr.bf16.mxu1 %v14434_v10  ;;  %v10636_v29 = vpop.trf.xlu0 }
 0xb2a   :  { %14466 = vst [vmem:[#allocation47_spill] sm:$0xff] %v10636_v29 }
 0xb2b   :  { %v3322_v57 = vpop.trf.xlu1 }
 0xb2d   :  { %v10638_v11 = vpop.trf.xlu0 }
 0xb2e   :  { %14467 = vst [vmem:[#allocation26_spill] sm:$0xff] %v10638_v11 }
 0xb2f   :  { %v10640_v46 = vpop.trf.xlu1 }
 0xb30   :  { %14468 = vst [vmem:[#allocation50_spill] sm:$0xff] %v10640_v46  ;;  %6282 = vmatmul.mubr.msk.bf16.gmra.mrb[200].mxu1 %vm306_vm2, %v3315_v54 }
 0xb31   :  { %3499 = vmatprep.mubr.bf16.mxu1 %v14434_v10  ;;  %v10646_v61 = vpop.trf.xlu0 }
 0xb32   :  { %14470 = vst [vmem:[#allocation33_spill] sm:$0xff] %v10646_v61 }
 0xb33   :  { %v10644_v25 = vpop.trf.xlu1 }
 0xb34   :  { %14469 = vst [vmem:[#allocation32_spill] sm:$0xff] %v10644_v25 }
 0xb35   :  { %v10652_v52 = vpop.trf.xlu0 }
 0xb36   :  { %14472 = vst [vmem:[#allocation36_spill] sm:$0xff] %v10652_v52 }
 0xb37   :  { %v10648_v50 = vpop.trf.xlu1 }
 0xb38   :  { %14471 = vst [vmem:[#allocation34_spill] sm:$0xff] %v10648_v50  ;;  %6283 = vmatmul.mubr.msk.bf16.gmra.mrb[204].mxu1 %vm306_vm2, %v3316_v3 }
 0xb39   :  { %3509 = vmatprep.mubr.bf16.mxu1 %v14434_v10  ;;  %v10658_v42 = vpop.trf.xlu0 }
 0xb3a   :  { %14475 = vst [vmem:[#allocation46_spill] sm:$0xff] %v10658_v42 }
 0xb3b   :  { %v10654_v30 = vpop.trf.xlu1 }
 0xb3c   :  { %14473 = vst [vmem:[#allocation38_spill] sm:$0xff] %v10654_v30 }
 0xb3d   :  { %v10664_v17 = vpop.trf.xlu0 }
 0xb3e   :  { %14477 = vst [vmem:[#allocation49_spill] sm:$0xff] %v10664_v17 }
 0xb3f   :  { %v10656_v28 = vpop.trf.xlu1 }
 0xb40   :  { %14474 = vst [vmem:[#allocation40_spill] sm:$0xff] %v10656_v28  ;;  %6284 = vmatmul.mubr.msk.bf16.gmra.mrb[208].mxu1 %vm306_vm2, %v3317_v13 }
 0xb41   :  { %3519 = vmatprep.mubr.bf16.mxu1 %v14434_v10  ;;  %v10672_v53 = vpop.trf.xlu0 }
 0xb42   :  { %14480 = vst [vmem:[#allocation54_spill] sm:$0xff] %v10672_v53 }
 0xb43   :  { %v10662_v55 = vpop.trf.xlu1 }
 0xb44   :  { %14476 = vst [vmem:[#allocation48_spill] sm:$0xff] %v10662_v55 }
 0xb45   :  { %v10678_v63 = vpop.trf.xlu0 }
 0xb46   :  { %14482 = vst [vmem:[#allocation71_spill] sm:$0xff] %v10678_v63 }
 0xb47   :  { %v10666_v15 = vpop.trf.xlu1 }
 0xb48   :  { %14478 = vst [vmem:[#allocation51_spill] sm:$0xff] %v10666_v15  ;;  %6285 = vmatmul.mubr.msk.bf16.gmra.mrb[212].mxu1 %vm306_vm2, %v3318_v31  ;;  %v3253_v31 = vadd.f32 %v10562_v37, %v14489_v27 }
 0xb49   :  { %3529 = vmatprep.mubr.bf16.mxu1 %v14434_v10  ;;  %v10682_v19 = vpop.trf.xlu0 }
 0xb4a   :  { %14484 = vst [vmem:[#allocation65_spill] sm:$0xff] %v10682_v19 }
 0xb4b   :  { %v10670_v45 = vpop.trf.xlu1 }
 0xb4c   :  { %14479 = vst [vmem:[#allocation52_spill] sm:$0xff] %v10670_v45 }
 0xb4d   :  { %v10690_v3 = vpop.trf.xlu0 }
 0xb4e   :  { %14487 = vst [vmem:[#allocation63_spill] sm:$0xff] %v10690_v3 }
 0xb4f   :  { %v10674_v58 = vpop.trf.xlu1 }
 0xb50   :  { %14481 = vst [vmem:[#allocation55_spill] sm:$0xff] %v10674_v58  ;;  %6286 = vmatmul.mubr.msk.bf16.gmra.mrb[216].mxu1 %vm306_vm2, %v3319_v48 }
 0xb51   :  { %3539 = vmatprep.mubr.bf16.mxu1 %v14434_v10  ;;  %v10698_v48 = vpop.trf.xlu0 }
 0xb52   :  { %14490 = vst [vmem:[#allocation66_spill] sm:$0xff] %v10698_v48 }
 0xb53   :  { %v10680_v59 = vpop.trf.xlu1 }
 0xb54   :  { %14483 = vst [vmem:[#allocation56_spill] sm:$0xff] %v10680_v59 }
 0xb55   :  { %v10705_v62 = vpop.trf.xlu0 }
 0xb56   :  { %14493 = vst [vmem:[#allocation62_spill] sm:$0xff] %v10705_v62 }
 0xb57   :  { %v10684_v47 = vpop.trf.xlu1 }
 0xb58   :  { %14485 = vst [vmem:[#allocation68_spill] sm:$0xff] %v10684_v47  ;;  %6287 = vmatmul.mubr.msk.bf16.gmra.mrb[220].mxu1 %vm306_vm2, %v3320_v56  ;;  %v3992_v56 = vpack.c.bf16 %v3253_v31, %v3253_v31 }
 0xb59   :  { %3549 = vmatprep.mubr.bf16.mxu1 %v14434_v10 }
 0xb5b   :  { %v10688_v54 = vpop.trf.xlu1 }
 0xb5c   :  { %14486 = vst [vmem:[#allocation64_spill] sm:$0xff] %v10688_v54 }
 0xb5f   :  { %v10692_v13 = vpop.trf.xlu1 }
 0xb60   :  { %14488 = vst [vmem:[#allocation67_spill] sm:$0xff] %v10692_v13  ;;  %6288 = vmatmul.mubr.msk.bf16.gmra.mrb[224].mxu1 %vm306_vm2, %v3321_v8  ;;  %v10709_v8 = vpop.trf.xlu0 }
 0xb61   :  { %3559 = vmatprep.mubr.bf16.mxu1 %v14434_v10  ;;  %14495 = vst [vmem:[#allocation61_spill] sm:$0xff] %v10709_v8 }
 0xb63   :  { %v10700_v35 = vpop.trf.xlu1 }
 0xb64   :  { %14491 = vst [vmem:[#allocation69_spill] sm:$0xff] %v10700_v35 }
 0xb67   :  { %v10702_v18 = vpop.trf.xlu1 }
 0xb68   :  { %14492 = vst [vmem:[#allocation70_spill] sm:$0xff] %v10702_v18  ;;  %6289 = vmatmul.mubr.msk.bf16.gmra.mrb[228].mxu1 %vm306_vm2, %v3322_v57 }
 0xb69   :  { %4678 = vmatprep.mubr.bf16.mxu1 %v3992_v56 }
 0xb6b   :  { %v10707_v3 = vpop.trf.xlu1 }
 0xb6c   :  { %14494 = vst [vmem:[#allocation59_spill] sm:$0xff] %v10707_v3 }
 0xb6f   :  { %v10711_v19 = vpop.trf.xlu1 }
 0xb70   :  { %14496 = vst [vmem:[#allocation58_spill] sm:$0xff] %v10711_v19 }
 0xb73   :  { %v10713_v63 = vpop.trf.xlu1 }
 0xb74   :  { %14497 = vst [vmem:[#allocation30_spill] sm:$0xff] %v10713_v63 }
 0xb75   :  { %v10715_v37 = vpop.permute.xlu0 %3084 }
 0xb76   :  { %14498 = vst [vmem:[#allocation31_spill] sm:$0xff] %v10715_v37  ;;  %v3153_v31 = vadd.f32 %v10531_v1, %v10715_v37  ;;  %v3155_v48 = vadd.f32 %v10533_v4, %v10715_v37 }
 0xb77   :  { %v10721_v57 = vpop.trf.xlu1 }
 0xb78   :  { %3171 = vst [vmem:[#allocation2] sm:$0xff] %v3153_v31  ;;  %3172 = vst [vmem:[#allocation2 + $0x8] sm:$0xff] %v3155_v48 }
 0xb79   :  { %14499 = vst [vmem:[#allocation6_spill] sm:$0xff] %v10721_v57  ;;  %v10723_v56 = vpop.permute.xlu0 %3094 }
 0xb7a   :  { %14500 = vst [vmem:[#allocation5_spill] sm:$0xff] %v10723_v56  ;;  %v3163_v8 = vadd.f32 %v10539_v20, %v10723_v56  ;;  %v3165_v63 = vadd.f32 %v10541_v26, %v10723_v56 }
 0xb7b   :  { %v10735_v48 = vpop.trf.xlu1 }
 0xb7c   :  { %3175 = vst [vmem:[#allocation2 + $0x20] sm:$0xff] %v3163_v8  ;;  %3176 = vst [vmem:[#allocation2 + $0x28] sm:$0xff] %v3165_v63 }
 0xb7d   :  { %v10729_v19 = vpop.permute.xlu0 %3099  ;;  %14502 = vst [vmem:[#allocation24_spill] sm:$0xff] %v10735_v48 }
 0xb7e   :  { %14501 = vst [vmem:[#allocation7_spill] sm:$0xff] %v10729_v19  ;;  %v3167_v1 = vadd.f32 %v10543_v49, %v10729_v19  ;;  %v3169_v4 = vadd.f32 %v10545_v51, %v10729_v19 }
 0xb7f   :  { %v10737_v31 = vpop.trf.xlu1 }
 0xb80   :  { %3177 = vst [vmem:[#allocation2 + $0x30] sm:$0xff] %v3167_v1  ;;  %3178 = vst [vmem:[#allocation2 + $0x38] sm:$0xff] %v3169_v4 }
 0xb81   :  { %14503 = vst [vmem:[#allocation42_spill] sm:$0xff] %v10737_v31 }
 0xb83   :  { %v10739_v20 = vpop.trf.xlu1 }
 0xb84   :  { %14504 = vst [vmem:[#allocation72_spill] sm:$0xff] %v10739_v20 }
 0xb87   :  { %v10741_v37 = vpop.trf.xlu1 }
 0xb88   :  { %14505 = vst [vmem:[#allocation73_spill] sm:$0xff] %v10741_v37 }
 0xb8b   :  { %v10743_v26 = vpop.trf.xlu1 }
 0xb8c   :  { %14506 = vst [vmem:[#allocation74_spill] sm:$0xff] %v10743_v26 }
 0xb9c   :  { %v10745_v63 = vpop.permute.xlu1 %3089 }
 0xb9d   :  { %14507 = vst [vmem:[#allocation75_spill] sm:$0xff] %v10745_v63  ;;  %v3157_v49 = vadd.f32 %v10535_v43, %v10745_v63  ;;  %v3159_v51 = vadd.f32 %v10537_v16, %v10745_v63 }
 0xb9f   :  { %3173 = vst [vmem:[#allocation2 + $0x10] sm:$0xff] %v3157_v49  ;;  %3174 = vst [vmem:[#allocation2 + $0x18] sm:$0xff] %v3159_v51 }
 0xbc3   :  { %v10751_v8 = vpop.f32.mrb[168].mxu1 }
 0xbc4   :  { %v10753_v1 = vpop.f32.mrb[169].mxu1 }
 0xbc5   :  { %v10755_v4 = vpop.f32.mrb[170].mxu1 }
 0xbc6   :  { %v10757_v19 = vpop.f32.mrb[171].mxu1 }
 0xbcb   :  { %v10759_v56 = vpop.f32.mrb[172].mxu1 }
 0xbcc   :  { %v3570_v26 = vmax.f32 %v10751_v8, %v10759_v56  ;;  %v10763_v37 = vpop.f32.mrb[173].mxu1 }
 0xbcd   :  { %v3607_v43 = vmax.f32 %v10753_v1, %v10763_v37  ;;  %v10767_v16 = vpop.f32.mrb[174].mxu1 }
 0xbce   :  { %v3571_v49 = vmax.f32 %v10755_v4, %v10767_v16  ;;  %v10771_v51 = vpop.f32.mrb[175].mxu1 }
 0xbcf   :  { %v3608_v63 = vmax.f32 %v10757_v19, %v10771_v51 }
 0xbd3   :  { %v10775_v20 = vpop.f32.mrb[176].mxu1 }
 0xbd4   :  { %v3572_v31 = vmax.f32 %v3570_v26, %v10775_v20  ;;  %v10778_v48 = vpop.f32.mrb[177].mxu1 }
 0xbd5   :  { %v3609_v57 = vmax.f32 %v3607_v43, %v10778_v48  ;;  %v10781_v62 = vpop.f32.mrb[178].mxu1 }
 0xbd6   :  { %v3573_v53 = vmax.f32 %v3571_v49, %v10781_v62  ;;  %v10784_v17 = vpop.f32.mrb[179].mxu1 }
 0xbd7   :  { %v3610_v12 = vmax.f32 %v3608_v63, %v10784_v17 }
 0xbdb   :  { %v10787_v34 = vpop.f32.mrb[180].mxu1 }
 0xbdc   :  { %v3574_v14 = vmax.f32 %v3572_v31, %v10787_v34  ;;  %v10790_v3 = vpop.f32.mrb[181].mxu1 }
 0xbdd   :  { %v3611_v26 = vmax.f32 %v3609_v57, %v10790_v3  ;;  %v10793_v18 = vpop.f32.mrb[182].mxu1 }
 0xbde   :  { %v3575_v43 = vmax.f32 %v3573_v53, %v10793_v18  ;;  %v10796_v35 = vpop.f32.mrb[183].mxu1 }
 0xbdf   :  { %v3612_v49 = vmax.f32 %v3610_v12, %v10796_v35 }
 0xbe3   :  { %v10799_v13 = vpop.f32.mrb[184].mxu1 }
 0xbe4   :  { %v3576_v63 = vmax.f32 %v3574_v14, %v10799_v13  ;;  %v10802_v54 = vpop.f32.mrb[185].mxu1 }
 0xbe5   :  { %v3613_v31 = vmax.f32 %v3611_v26, %v10802_v54  ;;  %v10805_v47 = vpop.f32.mrb[186].mxu1 }
 0xbe6   :  { %v3577_v57 = vmax.f32 %v3575_v43, %v10805_v47  ;;  %v10808_v59 = vpop.f32.mrb[187].mxu1 }
 0xbe7   :  { %v3614_v53 = vmax.f32 %v3612_v49, %v10808_v59 }
 0xbeb   :  { %v10811_v58 = vpop.f32.mrb[188].mxu1 }
 0xbec   :  { %v3578_v12 = vmax.f32 %v3576_v63, %v10811_v58  ;;  %v10814_v42 = vpop.f32.mrb[189].mxu1 }
 0xbed   :  { %v3615_v14 = vmax.f32 %v3613_v31, %v10814_v42  ;;  %v10817_v52 = vpop.f32.mrb[190].mxu1 }
 0xbee   :  { %v3579_v26 = vmax.f32 %v3577_v57, %v10817_v52  ;;  %v10820_v61 = vpop.f32.mrb[191].mxu1 }
 0xbef   :  { %14508 = vst [vmem:[#allocation76_spill] sm:$0xff] %v10820_v61  ;;  %v3616_v43 = vmax.f32 %v3614_v53, %v10820_v61 }
 0xbf3   :  { %v10823_v11 = vpop.f32.mrb[192].mxu1 }
 0xbf4   :  { %v3580_v49 = vmax.f32 %v3578_v12, %v10823_v11  ;;  %v10826_v29 = vpop.f32.mrb[193].mxu1 }
 0xbf5   :  { %14509 = vst [vmem:[#allocation77_spill] sm:$0xff] %v10826_v29  ;;  %v3617_v63 = vmax.f32 %v3615_v14, %v10826_v29  ;;  %v10829_v6 = vpop.f32.mrb[194].mxu1 }
 0xbf6   :  { %v3581_v31 = vmax.f32 %v3579_v26, %v10829_v6  ;;  %v10832_v5 = vpop.f32.mrb[195].mxu1 }
 0xbf7   :  { %14510 = vst [vmem:[#allocation78_spill] sm:$0xff] %v10832_v5  ;;  %v3618_v57 = vmax.f32 %v3616_v43, %v10832_v5 }
 0xbfb   :  { %v10835_v36 = vpop.f32.mrb[196].mxu1 }
 0xbfc   :  { %v3582_v53 = vmax.f32 %v3580_v49, %v10835_v36  ;;  %v10838_v60 = vpop.f32.mrb[197].mxu1 }
 0xbfd   :  { %14511 = vst [vmem:[#allocation79_spill] sm:$0xff] %v10838_v60  ;;  %v3619_v12 = vmax.f32 %v3617_v63, %v10838_v60  ;;  %v10841_v27 = vpop.f32.mrb[198].mxu1 }
 0xbfe   :  { %v3583_v14 = vmax.f32 %v3581_v31, %v10841_v27  ;;  %v10844_v0 = vpop.f32.mrb[199].mxu1 }
 0xbff   :  { %14512 = vst [vmem:[#allocation80_spill] sm:$0xff] %v10844_v0  ;;  %v3620_v26 = vmax.f32 %v3618_v57, %v10844_v0 }
 0xc03   :  { %v10847_v22 = vpop.f32.mrb[200].mxu1 }
 0xc04   :  { %v3584_v43 = vmax.f32 %v3582_v53, %v10847_v22  ;;  %v10850_v45 = vpop.f32.mrb[201].mxu1 }
 0xc05   :  { %14513 = vst [vmem:[#allocation81_spill] sm:$0xff] %v10850_v45  ;;  %v3621_v49 = vmax.f32 %v3619_v12, %v10850_v45  ;;  %v10853_v24 = vpop.f32.mrb[202].mxu1 }
 0xc06   :  { %v3585_v63 = vmax.f32 %v3583_v14, %v10853_v24  ;;  %v10856_v15 = vpop.f32.mrb[203].mxu1 }
 0xc07   :  { %14514 = vst [vmem:[#allocation82_spill] sm:$0xff] %v10856_v15  ;;  %v3622_v31 = vmax.f32 %v3620_v26, %v10856_v15 }
 0xc0b   :  { %v10859_v55 = vpop.f32.mrb[204].mxu1 }
 0xc0c   :  { %v3586_v57 = vmax.f32 %v3584_v43, %v10859_v55  ;;  %v10862_v28 = vpop.f32.mrb[205].mxu1 }
 0xc0d   :  { %14515 = vst [vmem:[#allocation83_spill] sm:$0xff] %v10862_v28  ;;  %v3623_v53 = vmax.f32 %v3621_v49, %v10862_v28  ;;  %v10865_v30 = vpop.f32.mrb[206].mxu1 }
 0xc0e   :  { %v3587_v12 = vmax.f32 %v3585_v63, %v10865_v30  ;;  %v10868_v50 = vpop.f32.mrb[207].mxu1 }
 0xc0f   :  { %14516 = vst [vmem:[#allocation84_spill] sm:$0xff] %v10868_v50  ;;  %v3624_v14 = vmax.f32 %v3622_v31, %v10868_v50 }
 0xc13   :  { %v10871_v25 = vpop.f32.mrb[208].mxu1 }
 0xc14   :  { %v3588_v26 = vmax.f32 %v3586_v57, %v10871_v25  ;;  %v10874_v46 = vpop.f32.mrb[209].mxu1 }
 0xc15   :  { %14517 = vst [vmem:[#allocation85_spill] sm:$0xff] %v10874_v46  ;;  %v3625_v43 = vmax.f32 %v3623_v53, %v10874_v46  ;;  %v10877_v38 = vpop.f32.mrb[210].mxu1 }
 0xc16   :  { %v3589_v49 = vmax.f32 %v3587_v12, %v10877_v38  ;;  %v10880_v9 = vpop.f32.mrb[211].mxu1 }
 0xc17   :  { %14518 = vst [vmem:[#allocation86_spill] sm:$0xff] %v10880_v9  ;;  %v3626_v63 = vmax.f32 %v3624_v14, %v10880_v9 }
 0xc1b   :  { %v10883_v32 = vpop.f32.mrb[212].mxu1 }
 0xc1c   :  { %v3590_v31 = vmax.f32 %v3588_v26, %v10883_v32  ;;  %v10886_v2 = vpop.f32.mrb[213].mxu1 }
 0xc1d   :  { %14519 = vst [vmem:[#allocation87_spill] sm:$0xff] %v10886_v2  ;;  %v3627_v57 = vmax.f32 %v3625_v43, %v10886_v2  ;;  %v10889_v7 = vpop.f32.mrb[214].mxu1 }
 0xc1e   :  { %v3591_v53 = vmax.f32 %v3589_v49, %v10889_v7  ;;  %v10892_v33 = vpop.f32.mrb[215].mxu1 }
 0xc1f   :  { %14520 = vst [vmem:[#allocation88_spill] sm:$0xff] %v10892_v33  ;;  %v3628_v12 = vmax.f32 %v3626_v63, %v10892_v33 }
 0xc23   :  { %v10895_v40 = vpop.f32.mrb[216].mxu1 }
 0xc24   :  { %v3592_v14 = vmax.f32 %v3590_v31, %v10895_v40  ;;  %v10898_v41 = vpop.f32.mrb[217].mxu1 }
 0xc25   :  { %14521 = vst [vmem:[#allocation89_spill] sm:$0xff] %v10898_v41  ;;  %v3629_v26 = vmax.f32 %v3627_v57, %v10898_v41  ;;  %v10901_v10 = vpop.f32.mrb[218].mxu1 }
 0xc26   :  { %v3593_v43 = vmax.f32 %v3591_v53, %v10901_v10  ;;  %v10904_v21 = vpop.f32.mrb[219].mxu1 }
 0xc27   :  { %14522 = vst [vmem:[#allocation90_spill] sm:$0xff] %v10904_v21  ;;  %v3630_v49 = vmax.f32 %v3628_v12, %v10904_v21 }
 0xc2b   :  { %v10907_v44 = vpop.f32.mrb[220].mxu1 }
 0xc2c   :  { %v3594_v63 = vmax.f32 %v3592_v14, %v10907_v44  ;;  %v10910_v39 = vpop.f32.mrb[221].mxu1 }
 0xc2d   :  { %14523 = vst [vmem:[#allocation91_spill] sm:$0xff] %v10910_v39  ;;  %v3631_v31 = vmax.f32 %v3629_v26, %v10910_v39  ;;  %v10913_v23 = vpop.f32.mrb[222].mxu1 }
 0xc2e   :  { %v3595_v57 = vmax.f32 %v3593_v43, %v10913_v23  ;;  %v10916_v41 = vpop.f32.mrb[223].mxu1 }
 0xc2f   :  { %14524 = vst [vmem:[#allocation92_spill] sm:$0xff] %v10916_v41  ;;  %v3632_v53 = vmax.f32 %v3630_v49, %v10916_v41 }
 0xc33   :  { %v10919_v33 = vpop.f32.mrb[224].mxu1 }
 0xc34   :  { %v3596_v12 = vmax.f32 %v3594_v63, %v10919_v33  ;;  %v10922_v21 = vpop.f32.mrb[225].mxu1 }
 0xc35   :  { %14525 = vst [vmem:[#allocation93_spill] sm:$0xff] %v10922_v21  ;;  %v3633_v14 = vmax.f32 %v3631_v31, %v10922_v21  ;;  %v10925_v2 = vpop.f32.mrb[226].mxu1 }
 0xc36   :  { %v3597_v26 = vmax.f32 %v3595_v57, %v10925_v2  ;;  %v10928_v39 = vpop.f32.mrb[227].mxu1 }
 0xc37   :  { %14526 = vst [vmem:[#allocation94_spill] sm:$0xff] %v10928_v39  ;;  %v3634_v43 = vmax.f32 %v3632_v53, %v10928_v39 }
 0xc3b   :  { %v10931_v9 = vpop.f32.mrb[228].mxu1 }
 0xc3c   :  { %v3598_v49 = vmax.f32 %v3596_v12, %v10931_v9  ;;  %v10934_v41 = vpop.f32.mrb[229].mxu1 }
 0xc3d   :  { %14527 = vst [vmem:[#allocation95_spill] sm:$0xff] %v10934_v41  ;;  %v3635_v63 = vmax.f32 %v3633_v14, %v10934_v41  ;;  %v10937_v46 = vpop.f32.mrb[230].mxu1 }
 0xc3e   :  { %v3599_v31 = vmax.f32 %v3597_v26, %v10937_v46  ;;  %v10940_v21 = vpop.f32.mrb[231].mxu1 }
 0xc3f   :  { %14528 = vst [vmem:[#allocation96_spill] sm:$0xff] %v10940_v21  ;;  %v3636_v57 = vmax.f32 %v3634_v43, %v10940_v21 }
 0xc40   :  { %v3600_v50 = vmax.f32 %v3598_v49, %v3599_v31 }
 0xc41   :  { %v3637_v28 = vmax.f32 %v3635_v63, %v3636_v57 }
 0xc42   :  { %v3601_v15 = vrot.slane %v3600_v50, 4 }
 0xc43   :  { %v3638_v53 = vrot.slane %v3637_v28, 4 }
 0xc44   :  { %v3602_v39 = vmax.f32 %v3600_v50, %v3601_v15 }
 0xc45   :  { %v3639_v45 = vmax.f32 %v3637_v28, %v3638_v53 }
 0xc46   :  { %v3603_v0 = vrot.slane %v3602_v39, 2 }
 0xc47   :  { %v3640_v12 = vrot.slane %v3639_v45, 2 }
 0xc48   :  { %v3604_v60 = vmax.f32 %v3602_v39, %v3603_v0 }
 0xc49   :  { %v3641_v5 = vmax.f32 %v3639_v45, %v3640_v12 }
 0xc4a   :  { %v3605_v29 = vrot.slane %v3604_v60, 1 }
 0xc4b   :  { %v3642_v14 = vrot.slane %v3641_v5, 1 }
 0xc4c   :  { %v10943_v41 = vmax.f32 %v3604_v60, %v3605_v29 }
 0xc4d   :  { %v10945_v61 = vmax.f32 %v3641_v5, %v3642_v14 }
 0xc4e   :  { %v3644_v26 = vsub.f32 %v10751_v8, %v10943_v41  ;;  %v3646_v43 = vsub.f32 %v10755_v4, %v10943_v41  ;;  %v3648_v50 = vsub.f32 %v10759_v56, %v10943_v41  ;;  %v3650_v28 = vsub.f32 %v10767_v16, %v10943_v41 }
 0xc4f   :  { %v3652_v39 = vsub.f32 %v10775_v20, %v10943_v41  ;;  %v3654_v60 = vsub.f32 %v10781_v62, %v10943_v41  ;;  %v3656_v0 = vsub.f32 %v10787_v34, %v10943_v41  ;;  %v3658_v5 = vsub.f32 %v10793_v18, %v10943_v41 }
 0xc50   :  { %v3660_v29 = vsub.f32 %v10799_v13, %v10943_v41  ;;  %v3662_v15 = vsub.f32 %v10805_v47, %v10943_v41  ;;  %v3664_v45 = vsub.f32 %v10811_v58, %v10943_v41  ;;  %v3666_v56 = vsub.f32 %v10817_v52, %v10943_v41 }
 0xc51   :  { %v3668_v62 = vsub.f32 %v10823_v11, %v10943_v41  ;;  %v3670_v34 = vsub.f32 %v10829_v6, %v10943_v41  ;;  %v3672_v18 = vsub.f32 %v10835_v36, %v10943_v41  ;;  %v3674_v13 = vsub.f32 %v10841_v27, %v10943_v41 }
 0xc52   :  { %v3676_v47 = vsub.f32 %v10847_v22, %v10943_v41  ;;  %v3678_v58 = vsub.f32 %v10853_v24, %v10943_v41  ;;  %v3680_v52 = vsub.f32 %v10859_v55, %v10943_v41  ;;  %v3682_v11 = vsub.f32 %v10865_v30, %v10943_v41  ;;  %v14548_v24 = vld [vmem:[#allocation95_spill] sm:$0xff] }
 0xc53   :  { %v3684_v6 = vsub.f32 %v10871_v25, %v10943_v41  ;;  %v3686_v36 = vsub.f32 %v10877_v38, %v10943_v41  ;;  %v3688_v27 = vsub.f32 %v10883_v32, %v10943_v41  ;;  %v3690_v22 = vsub.f32 %v10889_v7, %v10943_v41 }
 0xc54   :  { %v3708_v8 = vmul.f32 1.442695, %v3644_v26  ;;  %v3712_v4 = vmul.f32 1.442695, %v3646_v43  ;;  %v3716_v16 = vmul.f32 1.442695, %v3648_v50 }
 0xc55   :  { %v3720_v63 = vmul.f32 1.442695, %v3650_v28  ;;  %v3724_v57 = vmul.f32 1.442695, %v3652_v39  ;;  %v3728_v53 = vmul.f32 1.442695, %v3654_v60 }
 0xc56   :  { %6885 = vpow2.f32 %v3708_v8  ;;  %v3732_v12 = vmul.f32 1.442695, %v3656_v0  ;;  %v3736_v14 = vmul.f32 1.442695, %v3658_v5  ;;  %v3740_v7 = vmul.f32 1.442695, %v3660_v29 }
 0xc57   :  { %6887 = vpow2.f32 %v3712_v4  ;;  %v3744_v20 = vmul.f32 1.442695, %v3662_v15  ;;  %v3748_v26 = vmul.f32 1.442695, %v3664_v45  ;;  %v3752_v43 = vmul.f32 1.442695, %v3666_v56 }
 0xc58   :  { %6889 = vpow2.f32 %v3716_v16  ;;  %v3756_v50 = vmul.f32 1.442695, %v3668_v62  ;;  %v3760_v49 = vmul.f32 1.442695, %v3670_v34  ;;  %v3764_v28 = vmul.f32 1.442695, %v3672_v18 }
 0xc59   :  { %6891 = vpow2.f32 %v3720_v63  ;;  %v3768_v32 = vmul.f32 1.442695, %v3674_v13  ;;  %v3772_v31 = vmul.f32 1.442695, %v3676_v47  ;;  %v3776_v8 = vmul.f32 1.442695, %v3678_v58 }
 0xc5a   :  { %6893 = vpow2.f32 %v3724_v57  ;;  %v3780_v39 = vmul.f32 1.442695, %v3680_v52  ;;  %v3784_v60 = vmul.f32 1.442695, %v3682_v11  ;;  %v3788_v4 = vmul.f32 1.442695, %v3684_v6 }
 0xc5b   :  { %6895 = vpow2.f32 %v3728_v53  ;;  %v11015_v0 = vmul.f32 1.442695, %v3686_v36  ;;  %v11017_v5 = vmul.f32 1.442695, %v3688_v27  ;;  %v11019_v29 = vmul.f32 1.442695, %v3690_v22 }
 0xc5c   :  { %6897 = vpow2.f32 %v3732_v12  ;;  %v14529_v6 = vld [vmem:[#allocation76_spill] sm:$0xff]  ;;  %v14531_v16 = vld [vmem:[#allocation78_spill] sm:$0xff]  ;;  %v14532_v53 = vld [vmem:[#allocation79_spill] sm:$0xff] }
 0xc5d   :  { %6899 = vpow2.f32 %v3736_v14  ;;  %v14533_v14 = vld [vmem:[#allocation80_spill] sm:$0xff]  ;;  %v14535_v11 = vld [vmem:[#allocation82_spill] sm:$0xff]  ;;  %v14536_v52 = vld [vmem:[#allocation83_spill] sm:$0xff] }
 0xc5e   :  { %6901 = vpow2.f32 %v3740_v7  ;;  %v14530_v7 = vld [vmem:[#allocation77_spill] sm:$0xff]  ;;  %v14537_v12 = vld [vmem:[#allocation84_spill] sm:$0xff]  ;;  %v14539_v18 = vld [vmem:[#allocation86_spill] sm:$0xff] }
 0xc5f   :  { %6903 = vpow2.f32 %v3744_v20  ;;  %v14538_v13 = vld [vmem:[#allocation85_spill] sm:$0xff]  ;;  %v14540_v63 = vld [vmem:[#allocation87_spill] sm:$0xff]  ;;  %v14541_v56 = vld [vmem:[#allocation88_spill] sm:$0xff] }
 0xc60   :  { %v11029_v34 = vpop.eup %6885  ;;  %6905 = vpow2.f32 %v3748_v26  ;;  %v14542_v26 = vld [vmem:[#allocation89_spill] sm:$0xff]  ;;  %v14543_v15 = vld [vmem:[#allocation90_spill] sm:$0xff] }
 0xc61   :  { %v11037_v58 = vpop.eup %6887  ;;  %6907 = vpow2.f32 %v3752_v43  ;;  %v14534_v43 = vld [vmem:[#allocation81_spill] sm:$0xff] }
 0xc62   :  { %v11045_v27 = vpop.eup %6889  ;;  %6909 = vpow2.f32 %v3756_v50  ;;  %v3836_v22 = vadd.f32 %v11037_v58, %v11029_v34  ;;  %v14547_v50 = vld [vmem:[#allocation94_spill] sm:$0xff] }
 0xc63   :  { %v11053_v57 = vpop.eup %6891  ;;  %6911 = vpow2.f32 %v3760_v49  ;;  %v14545_v49 = vld [vmem:[#allocation92_spill] sm:$0xff] }
 0xc64   :  { %v11061_v36 = vpop.eup %6893  ;;  %6913 = vpow2.f32 %v3764_v28  ;;  %v3837_v20 = vadd.f32 %v11045_v27, %v3836_v22 }
 0xc65   :  { %v11068_v47 = vpop.eup %6895  ;;  %6915 = vpow2.f32 %v3768_v32 }
 0xc66   :  { %v11076_v62 = vpop.eup %6897  ;;  %6917 = vpow2.f32 %v3772_v31  ;;  %v3838_v22 = vadd.f32 %v11053_v57, %v3837_v20 }
 0xc67   :  { %v11083_v45 = vpop.eup %6899  ;;  %6919 = vpow2.f32 %v3776_v8 }
 0xc68   :  { %v11091_v25 = vpop.eup %6901  ;;  %6921 = vpow2.f32 %v3780_v39  ;;  %v3839_v20 = vadd.f32 %v11061_v36, %v3838_v22  ;;  %v14549_v22 = vsub.f32 %v10895_v40, %v10943_v41 }
 0xc69   :  { %v11098_v55 = vpop.eup %6903  ;;  %6923 = vpow2.f32 %v3784_v60  ;;  %v14550_v60 = vsub.f32 %v10901_v10, %v10943_v41 }
 0xc6a   :  { %v11106_v38 = vpop.eup %6905  ;;  %6925 = vpow2.f32 %v3788_v4  ;;  %v3804_v32 = vmul.f32 1.442695, %v14549_v22  ;;  %v3840_v8 = vadd.f32 %v11068_v47, %v3839_v20  ;;  %v14551_v4 = vsub.f32 %v10907_v44, %v10943_v41 }
 0xc6b   :  { %v11112_v30 = vpop.eup %6907  ;;  %6927 = vpow2.f32 %v11015_v0  ;;  %v3808_v31 = vmul.f32 1.442695, %v14550_v60  ;;  %v14552_v0 = vsub.f32 %v10913_v23, %v10943_v41  ;;  %v14556_v23 = vsub.f32 %v10931_v9, %v10943_v41 }
 0xc6c   :  { %v11118_v28 = vpop.eup %6909  ;;  %6929 = vpow2.f32 %v11017_v5  ;;  %v3812_v39 = vmul.f32 1.442695, %v14551_v4  ;;  %v3841_v40 = vadd.f32 %v11076_v62, %v3840_v8  ;;  %v14553_v5 = vsub.f32 %v10919_v33, %v10943_v41 }
 0xc6d   :  { %v11125_v22 = vpop.eup %6911  ;;  %6931 = vpow2.f32 %v11019_v29  ;;  %v3816_v20 = vmul.f32 1.442695, %v14552_v0  ;;  %v14554_v8 = vsub.f32 %v10925_v2, %v10943_v41 }
 0xc6e   :  { %v11131_v10 = vpop.eup %6913  ;;  %6933 = vpow2.f32 %v3804_v32  ;;  %v3820_v60 = vmul.f32 1.442695, %v14553_v5  ;;  %v3842_v44 = vadd.f32 %v11083_v45, %v3841_v40  ;;  %v3828_v32 = vmul.f32 1.442695, %v14556_v23 }
 0xc6f   :  { %v11137_v4 = vpop.eup %6915  ;;  %6935 = vpow2.f32 %v3808_v31  ;;  %v3824_v29 = vmul.f32 1.442695, %v14554_v8  ;;  %v14557_v40 = vsub.f32 %v10937_v46, %v10943_v41  ;;  %v14560_v41 = vsub.f32 %v10763_v37, %v10945_v61 }
 0xc70   :  { %v11142_v21 = vpop.eup %6917  ;;  %6937 = vpow2.f32 %v3812_v39  ;;  %v3843_v0 = vadd.f32 %v11091_v25, %v3842_v44  ;;  %v14558_v39 = vsub.f32 %v10753_v1, %v10945_v61  ;;  %v14559_v44 = vsub.f32 %v10757_v19, %v10945_v61 }
 0xc71   :  { %14555 = vst [vmem:[#allocation76_spill] sm:$0xff] %v11142_v21  ;;  %v11148_v33 = vpop.eup %6919  ;;  %6939 = vpow2.f32 %v3816_v20  ;;  %v3832_v31 = vmul.f32 1.442695, %v14557_v40  ;;  %v3718_v46 = vmul.f32 1.442695, %v14560_v41  ;;  %v14561_v1 = vsub.f32 %v10771_v51, %v10945_v61 }
 0xc72   :  { %v11153_v5 = vpop.eup %6921  ;;  %6941 = vpow2.f32 %v3820_v60  ;;  %v3844_v2 = vadd.f32 %v11098_v55, %v3843_v0  ;;  %v3710_v8 = vmul.f32 1.442695, %v14558_v39  ;;  %v3714_v20 = vmul.f32 1.442695, %v14559_v44 }
 0xc73   :  { %v11159_v9 = vpop.eup %6923  ;;  %6943 = vpow2.f32 %v3824_v29  ;;  %v3722_v0 = vmul.f32 1.442695, %v14561_v1  ;;  %v14562_v29 = vsub.f32 %v10778_v48, %v10945_v61  ;;  %v14563_v19 = vsub.f32 %v10784_v17, %v10945_v61 }
 0xc74   :  { %v11167_v23 = vpop.eup %6925  ;;  %6945 = vpow2.f32 %v3828_v32  ;;  %v3845_v60 = vadd.f32 %v11106_v38, %v3844_v2  ;;  %v14564_v32 = vsub.f32 %v10790_v3, %v10945_v61  ;;  %v14565_v2 = vsub.f32 %v10796_v35, %v10945_v61 }
 0xc75   :  { %v3726_v40 = vmul.f32 1.442695, %v14562_v29  ;;  %v11176_v39 = vpop.eup %6927  ;;  %6947 = vpow2.f32 %v3832_v31  ;;  %v3730_v37 = vmul.f32 1.442695, %v14563_v19  ;;  %v14566_v31 = vsub.f32 %v10802_v54, %v10945_v61 }
 0xc76   :  { %v3734_v44 = vmul.f32 1.442695, %v14564_v32  ;;  %v3738_v51 = vmul.f32 1.442695, %v14565_v2  ;;  %v11187_v41 = vpop.eup %6929  ;;  %v3846_v48 = vadd.f32 %v11112_v30, %v3845_v60  ;;  %6949 = vpow2.f32 %v3710_v8 }
 0xc77   :  { %v3742_v1 = vmul.f32 1.442695, %v14566_v31  ;;  %v14567_v17 = vsub.f32 %v10808_v59, %v10945_v61  ;;  %v11196_v19 = vpop.eup %6931  ;;  %6951 = vpow2.f32 %v3714_v20 }
 0xc78   :  { %v11204_v60 = vpop.eup %6933  ;;  %v3847_v54 = vadd.f32 %v11118_v28, %v3846_v48  ;;  %6953 = vpow2.f32 %v3718_v46 }
 0xc79   :  { %v3746_v29 = vmul.f32 1.442695, %v14567_v17  ;;  %v11211_v32 = vpop.eup %6935  ;;  %6955 = vpow2.f32 %v3722_v0  ;;  %v14568_v0 = vsub.f32 %v10814_v42, %v10945_v61  ;;  %v14569_v17 = vsub.f32 %v14529_v6, %v10945_v61 }
 0xc7a   :  { %v11219_v48 = vpop.eup %6937  ;;  %v3848_v46 = vadd.f32 %v11125_v22, %v3847_v54  ;;  %6957 = vpow2.f32 %v3726_v40 }
 0xc7b   :  { %v11226_v59 = vpop.eup %6939  ;;  %6959 = vpow2.f32 %v3730_v37  ;;  %v3750_v20 = vmul.f32 1.442695, %v14568_v0  ;;  %v3754_v31 = vmul.f32 1.442695, %v14569_v17 }
 0xc7c   :  { %v11234_v54 = vpop.eup %6941  ;;  %v3849_v40 = vadd.f32 %v11131_v10, %v3848_v46  ;;  %6961 = vpow2.f32 %v3734_v44  ;;  %v14570_v44 = vsub.f32 %v14530_v7, %v10945_v61  ;;  %v14575_v7 = vsub.f32 %v14535_v11, %v10945_v61 }
 0xc7d   :  { %v11242_v8 = vpop.eup %6943  ;;  %6963 = vpow2.f32 %v3738_v51  ;;  %v14571_v51 = vsub.f32 %v14531_v16, %v10945_v61  ;;  %v14574_v16 = vsub.f32 %v14534_v43, %v10945_v61  ;;  %v14578_v11 = vsub.f32 %v14538_v13, %v10945_v61 }
 0xc7e   :  { %v11247_v2 = vpop.eup %6945  ;;  %v3850_v3 = vadd.f32 %v11137_v4, %v3849_v40  ;;  %6965 = vpow2.f32 %v3742_v1  ;;  %v3758_v42 = vmul.f32 1.442695, %v14570_v44  ;;  %v14572_v1 = vsub.f32 %v14532_v53, %v10945_v61 }
 0xc7f   :  { %v11255_v0 = vpop.eup %6947  ;;  %6967 = vpow2.f32 %v3746_v29  ;;  %v3762_v6 = vmul.f32 1.442695, %v14571_v51  ;;  %v14573_v29 = vsub.f32 %v14533_v14, %v10945_v61  ;;  %v3774_v51 = vmul.f32 1.442695, %v14574_v16 }
 0xc80   :  { %v6950_v17 = vpop.eup %6949  ;;  %v3851_v37 = vadd.f32 %v11142_v21, %v3850_v3  ;;  %6969 = vpow2.f32 %v3750_v20  ;;  %v3766_v40 = vmul.f32 1.442695, %v14572_v1  ;;  %v14576_v14 = vsub.f32 %v14536_v52, %v10945_v61 }
 0xc81   :  { %v6952_v44 = vpop.eup %6951  ;;  %6971 = vpow2.f32 %v3754_v31  ;;  %v3770_v46 = vmul.f32 1.442695, %v14573_v29  ;;  %v3778_v31 = vmul.f32 1.442695, %v14575_v7  ;;  %v3790_v7 = vmul.f32 1.442695, %v14578_v11 }
 0xc82   :  { %v6954_v35 = vpop.eup %6953  ;;  %v3852_v3 = vadd.f32 %v11148_v33, %v3851_v37  ;;  %6973 = vpow2.f32 %v3758_v42  ;;  %v3873_v20 = vadd.f32 %v6952_v44, %v6950_v17  ;;  %v3913_v53 = vpack.c.bf16 %v6952_v44, %v6950_v17 }
 0xc83   :  { %v6956_v1 = vpop.eup %6955  ;;  %6975 = vpow2.f32 %v3762_v6  ;;  %v3782_v29 = vmul.f32 1.442695, %v14576_v14  ;;  %v14577_v6 = vsub.f32 %v14537_v12, %v10945_v61  ;;  %v14579_v52 = vpack.c.bf16 %v11037_v58, %v11029_v34 }
 0xc84   :  { %v6958_v21 = vpop.eup %6957  ;;  %v3853_v43 = vadd.f32 %v11153_v5, %v3852_v3  ;;  %6977 = vpow2.f32 %v3766_v40  ;;  %v3874_v16 = vadd.f32 %v6954_v35, %v3873_v20  ;;  %3944 = vmatprep.subr.bf16.mxu0 %v3913_v53  ;;  %v3915_v37 = vpack.c.bf16 %v6956_v1, %v6954_v35 }
 0xc85   :  { %v6960_v42 = vpop.eup %6959  ;;  %6979 = vpow2.f32 %v3770_v46  ;;  %v3786_v17 = vmul.f32 1.442695, %v14577_v6  ;;  %3945 = vmatpush1.bf16.msra.mxu0 %v14579_v52  ;;  %v14580_v12 = vsub.f32 %v14539_v18, %v10945_v61  ;;  %v14581_v13 = vsub.f32 %v14540_v63, %v10945_v61  ;;  %v14586_v52 = vld [vmem:[#allocation91_spill] sm:$0xff] }
 0xc86   :  { %v6962_v44 = vpop.eup %6961  ;;  %v3854_v40 = vadd.f32 %v11159_v9, %v3853_v43  ;;  %6981 = vpow2.f32 %v3774_v51  ;;  %v3875_v3 = vadd.f32 %v6956_v1, %v3874_v16  ;;  %3946 = vmatprep.subr.bf16.mxu0 %v3915_v37  ;;  %v3917_v35 = vpack.c.bf16 %v6960_v42, %v6958_v21 }
 0xc87   :  { %v6964_v46 = vpop.eup %6963  ;;  %6983 = vpow2.f32 %v3778_v31  ;;  %v3794_v20 = vmul.f32 1.442695, %v14580_v12  ;;  %v3798_v53 = vmul.f32 1.442695, %v14581_v13  ;;  %v14582_v1 = vsub.f32 %v14541_v56, %v10945_v61 }
 0xc88   :  { %v6966_v14 = vpop.eup %6965  ;;  %v3855_v34 = vadd.f32 %v11167_v23, %v3854_v40  ;;  %6985 = vpow2.f32 %v3782_v29  ;;  %v3876_v58 = vadd.f32 %v6958_v21, %v3875_v3  ;;  %v3919_v43 = vpack.c.bf16 %v6964_v46, %v6962_v44 }
 0xc89   :  { %v6968_v51 = vpop.eup %6967  ;;  %6987 = vpow2.f32 %v3786_v17  ;;  %v3802_v31 = vmul.f32 1.442695, %v14582_v1  ;;  %v14583_v18 = vsub.f32 %v14542_v26, %v10945_v61  ;;  %v14584_v63 = vpack.c.bf16 %v11053_v57, %v11045_v27 }
 0xc8a   :  { %v6970_v37 = vpop.eup %6969  ;;  %v3856_v6 = vadd.f32 %v11176_v39, %v3855_v34  ;;  %6989 = vpow2.f32 %v3790_v7  ;;  %v3877_v21 = vadd.f32 %v6960_v42, %v3876_v58  ;;  %v3921_v29 = vpack.c.bf16 %v6968_v51, %v6966_v14 }
 0xc8b   :  { %v3806_v16 = vmul.f32 1.442695, %v14583_v18  ;;  %3947 = vmatpush1.bf16.msra.mxu0 %v14584_v63  ;;  %v6972_v17 = vpop.eup %6971  ;;  %6991 = vpow2.f32 %v3794_v20  ;;  %v14585_v56 = vsub.f32 %v14543_v15, %v10945_v61  ;;  %v14587_v26 = vsub.f32 %v14586_v52, %v10945_v61  ;;  %v14589_v20 = vld [vmem:[#allocation93_spill] sm:$0xff] }
 0xc8c   :  { %3948 = vmatprep.subr.bf16.mxu0 %v3917_v35  ;;  %v6974_v3 = vpop.eup %6973  ;;  %v3857_v27 = vadd.f32 %v11187_v41, %v3856_v6  ;;  %6993 = vpow2.f32 %v3798_v53  ;;  %v3878_v57 = vadd.f32 %v6962_v44, %v3877_v21  ;;  %v3923_v12 = vpack.c.bf16 %v6972_v17, %v6970_v37 }
 0xc8d   :  { %v3810_v11 = vmul.f32 1.442695, %v14585_v56  ;;  %v3814_v40 = vmul.f32 1.442695, %v14587_v26  ;;  %v6976_v7 = vpop.eup %6975  ;;  %6995 = vpow2.f32 %v3802_v31  ;;  %v14588_v42 = vsub.f32 %v14545_v49, %v10945_v61 }
 0xc8e   :  { %v14590_v15 = vsub.f32 %v14589_v20, %v10945_v61  ;;  %v14591_v34 = vpack.c.bf16 %v11068_v47, %v11061_v36  ;;  %v6978_v58 = vpop.eup %6977  ;;  %v3858_v1 = vadd.f32 %v11196_v19, %v3857_v27  ;;  %6997 = vpow2.f32 %v3806_v16 }
 0xc8f   :  { %v3818_v35 = vmul.f32 1.442695, %v14588_v42  ;;  %v3879_v44 = vadd.f32 %v6964_v46, %v3878_v57  ;;  %v3925_v53 = vpack.c.bf16 %v6976_v7, %v6974_v3  ;;  %v6980_v31 = vpop.eup %6979  ;;  %6999 = vpow2.f32 %v3810_v11  ;;  %v14594_v46 = vld [vmem:[#allocation96_spill] sm:$0xff] }
 0xc90   :  { %v3822_v13 = vmul.f32 1.442695, %v14590_v15  ;;  %3949 = vmatpush1.bf16.msra.mxu0 %v14591_v34  ;;  %v14592_v49 = vsub.f32 %v14547_v50, %v10945_v61  ;;  %v14593_v63 = vsub.f32 %v14548_v24, %v10945_v61  ;;  %v6982_v21 = vpop.eup %6981  ;;  %v3859_v47 = vadd.f32 %v11204_v60, %v3858_v1 }
 0xc91   :  { %3950 = vmatprep.subr.bf16.mxu0 %v3919_v43  ;;  %7001 = vpow2.f32 %v3814_v40  ;;  %v3880_v36 = vadd.f32 %v6966_v14, %v3879_v44  ;;  %v3927_v56 = vpack.c.bf16 %v6980_v31, %v6978_v58  ;;  %v6984_v16 = vpop.eup %6983  ;;  %v14595_v43 = vsub.f32 %v14594_v46, %v10945_v61 }
 0xc92   :  { %v3826_v18 = vmul.f32 1.442695, %v14592_v49  ;;  %v3830_v6 = vmul.f32 1.442695, %v14593_v63  ;;  %7003 = vpow2.f32 %v3818_v35  ;;  %v14596_v50 = vpack.c.bf16 %v11083_v45, %v11076_v62  ;;  %v6986_v52 = vpop.eup %6985 }
 0xc93   :  { %v3834_v11 = vmul.f32 1.442695, %v14595_v43  ;;  %v3860_v24 = vadd.f32 %v11211_v32, %v3859_v47  ;;  %7005 = vpow2.f32 %v3822_v13  ;;  %v3881_v26 = vadd.f32 %v6968_v51, %v3880_v36  ;;  %v6988_v40 = vpop.eup %6987 }
 0xc94   :  { %3951 = vmatpush1.bf16.msra.mxu0 %v14596_v50  ;;  %v3929_v27 = vpack.c.bf16 %v6984_v16, %v6982_v21  ;;  %7007 = vpow2.f32 %v3826_v18  ;;  %v6990_v14 = vpop.eup %6989  ;;  %v3931_v61 = vpack.c.bf16 %v6988_v40, %v6986_v52  ;;  %v14597_v45 = vpack.c.bf16 %v11098_v55, %v11091_v25 }
 0xc95   :  { %3952 = vmatprep.subr.bf16.mxu0 %v3921_v29  ;;  %v3861_v57 = vadd.f32 %v11219_v48, %v3860_v24  ;;  %7009 = vpow2.f32 %v3830_v6  ;;  %v3882_v42 = vadd.f32 %v6970_v37, %v3881_v26  ;;  %v6992_v35 = vpop.eup %6991  ;;  %v14598_v49 = vpack.c.bf16 %v11112_v30, %v11106_v38 }
 0xc96   :  { %7011 = vpow2.f32 %v3834_v11  ;;  %v6994_v62 = vpop.eup %6993  ;;  %v3933_v29 = vpack.c.bf16 %v6992_v35, %v6990_v14  ;;  %v14600_v24 = vpack.c.bf16 %v11137_v4, %v11131_v10  ;;  %v14604_v10 = vpack.c.bf16 %v11176_v39, %v11167_v23 }
 0xc97   :  { %v3862_v20 = vadd.f32 %v11226_v59, %v3861_v57  ;;  %v3883_v51 = vadd.f32 %v6972_v17, %v3882_v42  ;;  %v6996_v15 = vpop.eup %6995  ;;  %v14607_v23 = vpack.c.bf16 %v11226_v59, %v11219_v48 }
 0xc98   :  { %3953 = vmatpush1.bf16.msra.mxu0 %v14597_v45  ;;  %v6998_v13 = vpop.eup %6997  ;;  %v3935_v44 = vpack.c.bf16 %v6996_v15, %v6994_v62 }
 0xc99   :  { %3954 = vmatprep.subr.bf16.mxu0 %v3923_v12  ;;  %v3863_v34 = vadd.f32 %v11234_v54, %v3862_v20  ;;  %v3884_v1 = vadd.f32 %v6974_v3, %v3883_v51  ;;  %v7000_v37 = vpop.eup %6999  ;;  %v14599_v3 = vpack.c.bf16 %v11125_v22, %v11118_v28  ;;  %v14601_v28 = vld [vmem:[#allocation76_spill] sm:$0xff] }
 0xc9a   :  { %v3937_v63 = vpack.c.bf16 %v7000_v37, %v6998_v13  ;;  %v14602_v22 = vpack.c.bf16 %v11148_v33, %v14601_v28  ;;  %v14605_v33 = vpack.c.bf16 %v11196_v19, %v11187_v41  ;;  %v14610_v19 = vld [vmem:[#allocation11_spill] sm:$0xff] }
 0xc9b   :  { %v7002_v18 = vpop.eup %7001  ;;  %v3864_v55 = vadd.f32 %v11242_v8, %v3863_v34  ;;  %v3885_v25 = vadd.f32 %v6976_v7, %v3884_v1  ;;  %v14617_v34 = vld [vmem:[#allocation14_spill] sm:$0xff]  ;;  %v14620_v1 = vld [vmem:[#allocation28_spill] sm:$0xff] }
 0xc9c   :  { %3955 = vmatpush1.bf16.msra.mxu0 %v14598_v49  ;;  %v7004_v17 = vpop.eup %7003  ;;  %v14623_v49 = vld [vmem:[#allocation39_spill] sm:$0xff] }
 0xc9d   :  { %3956 = vmatprep.subr.bf16.mxu0 %v3925_v53  ;;  %v7006_v12 = vpop.eup %7005  ;;  %v3865_v6 = vadd.f32 %v11247_v2, %v3864_v55  ;;  %v3886_v47 = vadd.f32 %v6978_v58, %v3885_v25  ;;  %v3939_v36 = vpack.c.bf16 %v7004_v17, %v7002_v18  ;;  %v14625_v55 = vld [vmem:[#allocation32_spill] sm:$0xff]  ;;  %v14626_v25 = vld [vmem:[#allocation34_spill] sm:$0xff] }
 0xc9e   :  { %v7008_v46 = vpop.eup %7007 }
 0xc9f   :  { %v7010_v43 = vpop.eup %7009  ;;  %v11353_v30 = vadd.f32 %v11255_v0, %v3865_v6  ;;  %v3887_v38 = vadd.f32 %v6980_v31, %v3886_v47  ;;  %v3941_v7 = vpack.c.bf16 %v7008_v46, %v7006_v12  ;;  %v14603_v31 = vpack.c.bf16 %v11159_v9, %v11153_v5  ;;  %v14630_v6 = vld [vmem:[#allocation51_spill] sm:$0xff]  ;;  %v14631_v47 = vld [vmem:[#allocation57_spill] sm:$0xff] }
 0xca0   :  { %3957 = vmatpush1.bf16.msra.mxu0 %v14599_v3  ;;  %v7012_v53 = vpop.eup %7011  ;;  %v14606_v5 = vpack.c.bf16 %v11211_v32, %v11204_v60  ;;  %v14611_v60 = vpack.c.bf16 %v11242_v8, %v11234_v54  ;;  %v14612_v32 = vld [vmem:[#allocation9_spill] sm:$0xff]  ;;  %v14615_v8 = vmov 0   ;;  %v14616_v54 = vld [vmem:[#allocation22_spill] sm:$0xff] }
 0xca1   :  { %3958 = vmatprep.subr.bf16.mxu0 %v3927_v56  ;;  %v3888_v11 = vadd.f32 %v6982_v21, %v3887_v38  ;;  %v3943_v50 = vpack.c.bf16 %v7012_v53, %v7010_v43  ;;  %v3867_v38 = vrot.slane %v11353_v30, 4 }
 0xca3   :  { %v3889_v58 = vadd.f32 %v6984_v16, %v3888_v11 }
 0xca4   :  { %3959 = vmatpush1.bf16.msra.mxu0 %v14600_v24 }
 0xca5   :  { %3960 = vmatprep.subr.bf16.mxu0 %v3929_v27  ;;  %v3890_v26 = vadd.f32 %v6986_v52, %v3889_v58 }
 0xca7   :  { %v3891_v57 = vadd.f32 %v6988_v40, %v3890_v26 }
 0xca8   :  { %3961 = vmatpush1.bf16.msra.mxu0 %v14602_v22 }
 0xca9   :  { %3962 = vmatprep.subr.bf16.mxu0 %v3931_v61  ;;  %v3892_v42 = vadd.f32 %v6990_v14, %v3891_v57  ;;  %v14608_v14 = vld [vmem:[#allocation15_spill] sm:$0xff]  ;;  %v14609_v61 = vld [vmem:[#allocation10_spill] sm:$0xff] }
 0xcaa   :  { %v3241_v41 = vadd.f32 %v14609_v61, %v14608_v14 }
 0xcab   :  { %v3893_v21 = vadd.f32 %v6992_v35, %v3892_v42  ;;  %v3243_v35 = vadd.f32 %v14610_v19, %v14608_v14 }
 0xcac   :  { %3963 = vmatpush1.bf16.msra.mxu0 %v14603_v31  ;;  %v3987_v59 = vpack.c.bf16 %v3241_v41, %v3241_v41 }
 0xcad   :  { %3964 = vmatprep.subr.bf16.mxu0 %v3933_v29  ;;  %v3894_v56 = vadd.f32 %v6994_v62, %v3893_v21  ;;  %v14613_v62 = vld [vmem:[#allocation44_spill] sm:$0xff]  ;;  %v3988_v48 = vpack.c.bf16 %v3243_v35, %v3243_v35  ;;  %v14614_v29 = vpack.c.bf16 %v11255_v0, %v11247_v2  ;;  %v14619_v0 = vld [vmem:[#allocation27_spill] sm:$0xff] }
 0xcae   :  { %v3237_v20 = vadd.f32 %v14613_v62, %v14612_v32  ;;  %v14618_v2 = vld [vmem:[#allocation12_spill] sm:$0xff] }
 0xcaf   :  { %v3895_v4 = vadd.f32 %v6996_v15, %v3894_v56 }
 0xcb0   :  { %3965 = vmatpush1.bf16.msra.mxu0 %v14604_v10  ;;  %v3289_v15 = vpack.c.bf16 %v3237_v20, %v3237_v20 }
 0xcb1   :  { %3966 = vmatprep.subr.bf16.mxu0 %v3935_v44  ;;  %v3896_v16 = vadd.f32 %v6998_v13, %v3895_v4  ;;  %v4074_v13 = vsel %vm355_vm1, %v3987_v59, 0  ;;  %v14621_v44 = vld [vmem:[#allocation25_spill] sm:$0xff] }
 0xcb3   :  { %v3897_v52 = vadd.f32 %v7000_v37, %v3896_v16  ;;  %v14622_v37 = vld [vmem:[#allocation37_spill] sm:$0xff] }
 0xcb4   :  { %3967 = vmatpush1.bf16.msra.mxu0 %v14605_v33 }
 0xcb5   :  { %3968 = vmatprep.subr.bf16.mxu0 %v3937_v63  ;;  %v3898_v27 = vadd.f32 %v7002_v18, %v3897_v52  ;;  %v14624_v18 = vld [vmem:[#allocation50_spill] sm:$0xff] }
 0xcb6   :  { %v14627_v63 = vld [vmem:[#allocation38_spill] sm:$0xff] }
 0xcb7   :  { %v3899_v9 = vadd.f32 %v7004_v17, %v3898_v27  ;;  %v14628_v17 = vld [vmem:[#allocation40_spill] sm:$0xff] }
 0xcb8   :  { %3969 = vmatpush1.bf16.msra.mxu0 %v14606_v5 }
 0xcb9   :  { %3970 = vmatprep.subr.bf16.mxu0 %v3939_v36  ;;  %v3900_v40 = vadd.f32 %v7006_v12, %v3899_v9  ;;  %v14629_v12 = vld [vmem:[#allocation48_spill] sm:$0xff]  ;;  %v14632_v36 = vld [vmem:[#allocation21_spill] sm:$0xff] }
 0xcbb   :  { %v3901_v39 = vadd.f32 %v7008_v46, %v3900_v40  ;;  %v3269_v46 = vadd.f32 %v14632_v36, %v14631_v47 }
 0xcbc   :  { %3971 = vmatpush1.bf16.msra.mxu0 %v14607_v23 }
 0xcbd   :  { %3972 = vmatprep.subr.bf16.mxu0 %v3941_v7  ;;  %v3902_v45 = vadd.f32 %v7010_v43, %v3901_v39  ;;  %v4694_v3 = vpack.c.bf16 %v3269_v46, %v3269_v46  ;;  %v14633_v43 = vld [vmem:[#allocation52_spill] sm:$0xff] }
 0xcbf   :  { %v3903_v51 = vadd.f32 %v7012_v53, %v3902_v45  ;;  %v3868_v53 = vadd.f32 %v3867_v38, %v11353_v30 }
 0xcc0   :  { %3973 = vmatpush1.bf16.msra.mxu0 %v14611_v60 }
 0xcc1   :  { %3974 = vmatprep.subr.bf16.mxu0 %v3943_v50  ;;  %v3904_v7 = vrot.slane %v3903_v51, 4  ;;  %v3869_v50 = vrot.slane %v3868_v53, 2 }
 0xcc3   :  { %v3905_v11 = vadd.f32 %v3904_v7, %v3903_v51  ;;  %v3870_v58 = vadd.f32 %v3869_v50, %v3868_v53 }
 0xcc4   :  { %3975 = vmatpush1.bf16.msra.mxu0 %v14614_v29 }
 0xcc5   :  { %6290 = vmatprep.subr.msk.bf16.mxu0 %vm355_vm1, %v3988_v48  ;;  %v3906_v24 = vrot.slane %v3905_v11, 2  ;;  %v3871_v28 = vrot.slane %v3870_v58, 1 }
 0xcc7   :  { %3977 = vmatmul.mubr.bf16.vlgmr.msra.gmra.mrb[160].mxu0 %v3289_v15  ;;  %v3907_v26 = vadd.f32 %v3906_v24, %v3905_v11  ;;  %v3872_v57 = vadd.f32 %v3871_v28, %v3870_v58 }
 0xcc8   :  { %4080 = vmatpush1.bf16.msra.mxu0 %v4074_v13  ;;  %4111 = vmatprep.mubr.bf16.mxu0 %v14615_v8 }
 0xcc9   :  { %v3908_v22 = vrot.slane %v3907_v26, 1  ;;  %7013 = vrcp.f32 %v3872_v57 }
 0xccb   :  { %v3909_v42 = vadd.f32 %v3908_v22, %v3907_v26 }
 0xccd   :  { %7015 = vrcp.f32 %v3909_v42 }
 0xccf   :  { %6291 = vmatmul.mubr.msk.bf16.vlgmr.msra.gmra.mrb[164].mxu0 %vm306_vm2, %v14616_v54 }
 0xcd0   :  { %4121 = vmatprep.mubr.bf16.mxu0 %v14615_v8 }
 0xcd3   :  { %v7014_v31 = vpop.eup %7013 }
 0xcd7   :  { %6292 = vmatmul.mubr.msk.bf16.gmra.mrb[168].mxu0 %vm306_vm2, %v14617_v34  ;;  %v7016_v56 = vpop.eup %7015 }
 0xcd8   :  { %4131 = vmatprep.mubr.bf16.mxu0 %v14615_v8 }
 0xcdf   :  { %6293 = vmatmul.mubr.msk.bf16.gmra.mrb[172].mxu0 %vm306_vm2, %v14618_v2 }
 0xce0   :  { %4141 = vmatprep.mubr.bf16.mxu0 %v14615_v8 }
 0xce7   :  { %6294 = vmatmul.mubr.msk.bf16.gmra.mrb[176].mxu0 %vm306_vm2, %v14619_v0 }
 0xce8   :  { %4151 = vmatprep.mubr.bf16.mxu0 %v14615_v8 }
 0xcef   :  { %6295 = vmatmul.mubr.msk.bf16.gmra.mrb[180].mxu0 %vm306_vm2, %v14620_v1 }
 0xcf0   :  { %4161 = vmatprep.mubr.bf16.mxu0 %v14615_v8 }
 0xcf7   :  { %6296 = vmatmul.mubr.msk.bf16.gmra.mrb[184].mxu0 %vm306_vm2, %v14621_v44 }
 0xcf8   :  { %4171 = vmatprep.mubr.bf16.mxu0 %v14615_v8 }
 0xcff   :  { %6297 = vmatmul.mubr.msk.bf16.gmra.mrb[188].mxu0 %vm306_vm2, %v14622_v37 }
 0xd00   :  { %4181 = vmatprep.mubr.bf16.mxu0 %v14615_v8 }
 0xd07   :  { %6298 = vmatmul.mubr.msk.bf16.gmra.mrb[192].mxu0 %vm306_vm2, %v14623_v49 }
 0xd08   :  { %4191 = vmatprep.mubr.bf16.mxu0 %v14615_v8 }
 0xd0f   :  { %6299 = vmatmul.mubr.msk.bf16.gmra.mrb[196].mxu0 %vm306_vm2, %v14624_v18 }
 0xd10   :  { %4201 = vmatprep.mubr.bf16.mxu0 %v14615_v8 }
 0xd17   :  { %6300 = vmatmul.mubr.msk.bf16.gmra.mrb[200].mxu0 %vm306_vm2, %v14625_v55 }
 0xd18   :  { %4211 = vmatprep.mubr.bf16.mxu0 %v14615_v8 }
 0xd1f   :  { %6301 = vmatmul.mubr.msk.bf16.gmra.mrb[204].mxu0 %vm306_vm2, %v14626_v25 }
 0xd20   :  { %4221 = vmatprep.mubr.bf16.mxu0 %v14615_v8 }
 0xd27   :  { %6302 = vmatmul.mubr.msk.bf16.gmra.mrb[208].mxu0 %vm306_vm2, %v14627_v63 }
 0xd28   :  { %4231 = vmatprep.mubr.bf16.mxu0 %v14615_v8 }
 0xd2f   :  { %6303 = vmatmul.mubr.msk.bf16.gmra.mrb[212].mxu0 %vm306_vm2, %v14628_v17 }
 0xd30   :  { %4241 = vmatprep.mubr.bf16.mxu0 %v14615_v8 }
 0xd37   :  { %6304 = vmatmul.mubr.msk.bf16.gmra.mrb[216].mxu0 %vm306_vm2, %v14629_v12 }
 0xd38   :  { %4251 = vmatprep.mubr.bf16.mxu0 %v14615_v8 }
 0xd3f   :  { %6305 = vmatmul.mubr.msk.bf16.gmra.mrb[220].mxu0 %vm306_vm2, %v14630_v6 }
 0xd40   :  { %4261 = vmatprep.mubr.bf16.mxu0 %v14615_v8 }
 0xd47   :  { %6306 = vmatmul.mubr.msk.bf16.gmra.mrb[224].mxu0 %vm306_vm2, %v14633_v43 }
 0xd48   :  { %5380 = vmatprep.mubr.bf16.mxu0 %v4694_v3 }
 0xd9a   :  { %v3978_v21 = vpop.f32.mrb[160].mxu0 }
 0xd9b   :  { %v11442_v10 = vmul.f32 %v7014_v31, %v3978_v21  ;;  %v3980_v4 = vpop.f32.mrb[161].mxu0 }
 0xd9c   :  { %v11444_v16 = vmul.f32 %v7016_v56, %v3980_v4  ;;  %v3982_v30 = vpop.f32.mrb[162].mxu0 }
 0xd9d   :  { %14634 = vst [vmem:[#allocation77_spill] sm:$0xff] %v11442_v10  ;;  %v3983_v33 = vpop.f32.mrb[163].mxu0 }
 0xd9e   :  { %14635 = vst [vmem:[#allocation78_spill] sm:$0xff] %v11444_v16 }
 0xda2   :  { %v11446_v52 = vpop.f32.mrb[164].mxu0 }
 0xda3   :  { %v11448_v27 = vpop.f32.mrb[165].mxu0 }
 0xda4   :  { %v11450_v5 = vpop.f32.mrb[166].mxu0 }
 0xda5   :  { %v11452_v9 = vpop.f32.mrb[167].mxu0 }
 0xdaa   :  { %v11454_v40 = vpop.f32.mrb[168].mxu0 }
 0xdab   :  { %v4272_v23 = vmax.f32 %v11446_v52, %v11454_v40  ;;  %v11458_v39 = vpop.f32.mrb[169].mxu0 }
 0xdac   :  { %v4309_v14 = vmax.f32 %v11448_v27, %v11458_v39  ;;  %v11462_v61 = vpop.f32.mrb[170].mxu0 }
 0xdad   :  { %v4273_v41 = vmax.f32 %v11450_v5, %v11462_v61  ;;  %v11466_v19 = vpop.f32.mrb[171].mxu0 }
 0xdae   :  { %v4310_v35 = vmax.f32 %v11452_v9, %v11466_v19 }
 0xdb2   :  { %v11470_v45 = vpop.f32.mrb[172].mxu0 }
 0xdb3   :  { %v4274_v60 = vmax.f32 %v4272_v23, %v11470_v45  ;;  %v11473_v32 = vpop.f32.mrb[173].mxu0 }
 0xdb4   :  { %v4311_v62 = vmax.f32 %v4309_v14, %v11473_v32  ;;  %v11476_v20 = vpop.f32.mrb[174].mxu0 }
 0xdb5   :  { %v4275_v51 = vmax.f32 %v4273_v41, %v11476_v20  ;;  %v11479_v59 = vpop.f32.mrb[175].mxu0 }
 0xdb6   :  { %v4312_v48 = vmax.f32 %v4310_v35, %v11479_v59 }
 0xdba   :  { %v11482_v29 = vpop.f32.mrb[176].mxu0 }
 0xdbb   :  { %v4276_v15 = vmax.f32 %v4274_v60, %v11482_v29  ;;  %v11485_v13 = vpop.f32.mrb[177].mxu0 }
 0xdbc   :  { %v4313_v54 = vmax.f32 %v4311_v62, %v11485_v13  ;;  %v11488_v34 = vpop.f32.mrb[178].mxu0 }
 0xdbd   :  { %v4277_v2 = vmax.f32 %v4275_v51, %v11488_v34  ;;  %v11491_v0 = vpop.f32.mrb[179].mxu0 }
 0xdbe   :  { %v4314_v1 = vmax.f32 %v4312_v48, %v11491_v0 }
 0xdc2   :  { %v11494_v44 = vpop.f32.mrb[180].mxu0 }
 0xdc3   :  { %v4278_v37 = vmax.f32 %v4276_v15, %v11494_v44  ;;  %v11497_v49 = vpop.f32.mrb[181].mxu0 }
 0xdc4   :  { %v4315_v18 = vmax.f32 %v4313_v54, %v11497_v49  ;;  %v11500_v55 = vpop.f32.mrb[182].mxu0 }
 0xdc5   :  { %v4279_v25 = vmax.f32 %v4277_v2, %v11500_v55  ;;  %v11503_v63 = vpop.f32.mrb[183].mxu0 }
 0xdc6   :  { %v4316_v17 = vmax.f32 %v4314_v1, %v11503_v63 }
 0xdca   :  { %v11506_v12 = vpop.f32.mrb[184].mxu0 }
 0xdcb   :  { %v4280_v6 = vmax.f32 %v4278_v37, %v11506_v12  ;;  %v11509_v36 = vpop.f32.mrb[185].mxu0 }
 0xdcc   :  { %v4317_v46 = vmax.f32 %v4315_v18, %v11509_v36  ;;  %v11512_v3 = vpop.f32.mrb[186].mxu0 }
 0xdcd   :  { %v4281_v43 = vmax.f32 %v4279_v25, %v11512_v3  ;;  %v11515_v38 = vpop.f32.mrb[187].mxu0 }
 0xdce   :  { %14636 = vst [vmem:[#allocation79_spill] sm:$0xff] %v11515_v38  ;;  %v4318_v7 = vmax.f32 %v4316_v17, %v11515_v38 }
 0xdd2   :  { %v11518_v53 = vpop.f32.mrb[188].mxu0 }
 0xdd3   :  { %v4282_v11 = vmax.f32 %v4280_v6, %v11518_v53  ;;  %v11521_v50 = vpop.f32.mrb[189].mxu0 }
 0xdd4   :  { %14637 = vst [vmem:[#allocation80_spill] sm:$0xff] %v11521_v50  ;;  %v4319_v24 = vmax.f32 %v4317_v46, %v11521_v50  ;;  %v11524_v58 = vpop.f32.mrb[190].mxu0 }
 0xdd5   :  { %v4283_v26 = vmax.f32 %v4281_v43, %v11524_v58  ;;  %v11527_v28 = vpop.f32.mrb[191].mxu0 }
 0xdd6   :  { %14638 = vst [vmem:[#allocation81_spill] sm:$0xff] %v11527_v28  ;;  %v4320_v22 = vmax.f32 %v4318_v7, %v11527_v28 }
 0xdda   :  { %v11530_v57 = vpop.f32.mrb[192].mxu0 }
 0xddb   :  { %v4284_v42 = vmax.f32 %v4282_v11, %v11530_v57  ;;  %v11533_v31 = vpop.f32.mrb[193].mxu0 }
 0xddc   :  { %14639 = vst [vmem:[#allocation82_spill] sm:$0xff] %v11533_v31  ;;  %v4321_v21 = vmax.f32 %v4319_v24, %v11533_v31  ;;  %v11536_v56 = vpop.f32.mrb[194].mxu0 }
 0xddd   :  { %v4285_v4 = vmax.f32 %v4283_v26, %v11536_v56  ;;  %v11539_v30 = vpop.f32.mrb[195].mxu0 }
 0xdde   :  { %14640 = vst [vmem:[#allocation83_spill] sm:$0xff] %v11539_v30  ;;  %v4322_v33 = vmax.f32 %v4320_v22, %v11539_v30 }
 0xde2   :  { %v11542_v23 = vpop.f32.mrb[196].mxu0 }
 0xde3   :  { %v4286_v14 = vmax.f32 %v4284_v42, %v11542_v23  ;;  %v11545_v41 = vpop.f32.mrb[197].mxu0 }
 0xde4   :  { %14641 = vst [vmem:[#allocation84_spill] sm:$0xff] %v11545_v41  ;;  %v4323_v35 = vmax.f32 %v4321_v21, %v11545_v41  ;;  %v11548_v60 = vpop.f32.mrb[198].mxu0 }
 0xde5   :  { %v4287_v62 = vmax.f32 %v4285_v4, %v11548_v60  ;;  %v11551_v51 = vpop.f32.mrb[199].mxu0 }
 0xde6   :  { %14642 = vst [vmem:[#allocation85_spill] sm:$0xff] %v11551_v51  ;;  %v4324_v48 = vmax.f32 %v4322_v33, %v11551_v51 }
 0xdea   :  { %v11554_v15 = vpop.f32.mrb[200].mxu0 }
 0xdeb   :  { %v4288_v54 = vmax.f32 %v4286_v14, %v11554_v15  ;;  %v11557_v2 = vpop.f32.mrb[201].mxu0 }
 0xdec   :  { %14643 = vst [vmem:[#allocation86_spill] sm:$0xff] %v11557_v2  ;;  %v4325_v1 = vmax.f32 %v4323_v35, %v11557_v2  ;;  %v11560_v37 = vpop.f32.mrb[202].mxu0 }
 0xded   :  { %v4289_v18 = vmax.f32 %v4287_v62, %v11560_v37  ;;  %v11563_v25 = vpop.f32.mrb[203].mxu0 }
 0xdee   :  { %14644 = vst [vmem:[#allocation87_spill] sm:$0xff] %v11563_v25  ;;  %v4326_v17 = vmax.f32 %v4324_v48, %v11563_v25 }
 0xdf2   :  { %v11566_v6 = vpop.f32.mrb[204].mxu0 }
 0xdf3   :  { %v4290_v46 = vmax.f32 %v4288_v54, %v11566_v6  ;;  %v11569_v43 = vpop.f32.mrb[205].mxu0 }
 0xdf4   :  { %14645 = vst [vmem:[#allocation88_spill] sm:$0xff] %v11569_v43  ;;  %v4327_v7 = vmax.f32 %v4325_v1, %v11569_v43  ;;  %v11572_v11 = vpop.f32.mrb[206].mxu0 }
 0xdf5   :  { %v4291_v24 = vmax.f32 %v4289_v18, %v11572_v11  ;;  %v11575_v26 = vpop.f32.mrb[207].mxu0 }
 0xdf6   :  { %14646 = vst [vmem:[#allocation89_spill] sm:$0xff] %v11575_v26  ;;  %v4328_v22 = vmax.f32 %v4326_v17, %v11575_v26 }
 0xdfa   :  { %v11578_v42 = vpop.f32.mrb[208].mxu0 }
 0xdfb   :  { %v4292_v21 = vmax.f32 %v4290_v46, %v11578_v42  ;;  %v11581_v4 = vpop.f32.mrb[209].mxu0 }
 0xdfc   :  { %14647 = vst [vmem:[#allocation90_spill] sm:$0xff] %v11581_v4  ;;  %v4329_v33 = vmax.f32 %v4327_v7, %v11581_v4  ;;  %v11584_v14 = vpop.f32.mrb[210].mxu0 }
 0xdfd   :  { %v4293_v35 = vmax.f32 %v4291_v24, %v11584_v14  ;;  %v11587_v62 = vpop.f32.mrb[211].mxu0 }
 0xdfe   :  { %14648 = vst [vmem:[#allocation92_spill] sm:$0xff] %v11587_v62  ;;  %v4330_v48 = vmax.f32 %v4328_v22, %v11587_v62 }
 0xe02   :  { %v11590_v54 = vpop.f32.mrb[212].mxu0 }
 0xe03   :  { %v4294_v1 = vmax.f32 %v4292_v21, %v11590_v54  ;;  %v11593_v18 = vpop.f32.mrb[213].mxu0 }
 0xe04   :  { %14649 = vst [vmem:[#allocation94_spill] sm:$0xff] %v11593_v18  ;;  %v4331_v17 = vmax.f32 %v4329_v33, %v11593_v18  ;;  %v11596_v46 = vpop.f32.mrb[214].mxu0 }
 0xe05   :  { %v4295_v7 = vmax.f32 %v4293_v35, %v11596_v46  ;;  %v11599_v47 = vpop.f32.mrb[215].mxu0 }
 0xe06   :  { %14650 = vst [vmem:[#allocation95_spill] sm:$0xff] %v11599_v47  ;;  %v4332_v24 = vmax.f32 %v4330_v48, %v11599_v47 }
 0xe0a   :  { %v11602_v16 = vpop.f32.mrb[216].mxu0 }
 0xe0b   :  { %v4296_v22 = vmax.f32 %v4294_v1, %v11602_v16  ;;  %v11605_v10 = vpop.f32.mrb[217].mxu0 }
 0xe0c   :  { %14651 = vst [vmem:[#allocation91_spill] sm:$0xff] %v11605_v10  ;;  %v4333_v21 = vmax.f32 %v4331_v17, %v11605_v10  ;;  %v11608_v8 = vpop.f32.mrb[218].mxu0 }
 0xe0d   :  { %v4297_v33 = vmax.f32 %v4295_v7, %v11608_v8  ;;  %v11611_v18 = vpop.f32.mrb[219].mxu0 }
 0xe0e   :  { %14652 = vst [vmem:[#allocation93_spill] sm:$0xff] %v11611_v18  ;;  %v4334_v35 = vmax.f32 %v4332_v24, %v11611_v18 }
 0xe12   :  { %v11614_v62 = vpop.f32.mrb[220].mxu0 }
 0xe13   :  { %v4298_v48 = vmax.f32 %v4296_v22, %v11614_v62  ;;  %v11617_v47 = vpop.f32.mrb[221].mxu0 }
 0xe14   :  { %14653 = vst [vmem:[#allocation96_spill] sm:$0xff] %v11617_v47  ;;  %v4335_v1 = vmax.f32 %v4333_v21, %v11617_v47  ;;  %v11620_v4 = vpop.f32.mrb[222].mxu0 }
 0xe15   :  { %v4299_v17 = vmax.f32 %v4297_v33, %v11620_v4  ;;  %v11623_v10 = vpop.f32.mrb[223].mxu0 }
 0xe16   :  { %14654 = vst [vmem:[#allocation76_spill] sm:$0xff] %v11623_v10  ;;  %v4336_v7 = vmax.f32 %v4334_v35, %v11623_v10 }
 0xe1a   :  { %v11626_v26 = vpop.f32.mrb[224].mxu0 }
 0xe1b   :  { %v4300_v24 = vmax.f32 %v4298_v48, %v11626_v26  ;;  %v11629_v18 = vpop.f32.mrb[225].mxu0 }
 0xe1c   :  { %14655 = vst [vmem:[#allocation15_spill] sm:$0xff] %v11629_v18  ;;  %v4337_v22 = vmax.f32 %v4335_v1, %v11629_v18  ;;  %v11632_v43 = vpop.f32.mrb[226].mxu0 }
 0xe1d   :  { %v4301_v21 = vmax.f32 %v4299_v17, %v11632_v43  ;;  %v11635_v47 = vpop.f32.mrb[227].mxu0 }
 0xe1e   :  { %14656 = vst [vmem:[#allocation10_spill] sm:$0xff] %v11635_v47  ;;  %v4338_v33 = vmax.f32 %v4336_v7, %v11635_v47 }
 0xe1f   :  { %v4302_v25 = vmax.f32 %v4300_v24, %v4301_v21 }
 0xe20   :  { %v4339_v2 = vmax.f32 %v4337_v22, %v4338_v33 }
 0xe21   :  { %v4303_v51 = vrot.slane %v4302_v25, 4 }
 0xe22   :  { %v4340_v35 = vrot.slane %v4339_v2, 4 }
 0xe23   :  { %v4304_v10 = vmax.f32 %v4302_v25, %v4303_v51 }
 0xe24   :  { %v4341_v41 = vmax.f32 %v4339_v2, %v4340_v35 }
 0xe25   :  { %v4305_v30 = vrot.slane %v4304_v10, 2 }
 0xe26   :  { %v4342_v48 = vrot.slane %v4341_v41, 2 }
 0xe27   :  { %v4306_v31 = vmax.f32 %v4304_v10, %v4305_v30  ;;  %v14676_v30 = vld [vmem:[#allocation15_spill] sm:$0xff] }
 0xe28   :  { %v4343_v28 = vmax.f32 %v4341_v41, %v4342_v48 }
 0xe29   :  { %v4307_v50 = vrot.slane %v4306_v31, 1 }
 0xe2a   :  { %v4344_v1 = vrot.slane %v4343_v28, 1 }
 0xe2b   :  { %v11638_v18 = vmax.f32 %v4306_v31, %v4307_v50 }
 0xe2c   :  { %v11640_v38 = vmax.f32 %v4343_v28, %v4344_v1 }
 0xe2d   :  { %v4346_v17 = vsub.f32 %v11446_v52, %v11638_v18  ;;  %v4348_v7 = vsub.f32 %v11450_v5, %v11638_v18  ;;  %v4350_v51 = vsub.f32 %v11454_v40, %v11638_v18  ;;  %v4352_v2 = vsub.f32 %v11462_v61, %v11638_v18 }
 0xe2e   :  { %v4354_v10 = vsub.f32 %v11470_v45, %v11638_v18  ;;  %v4356_v50 = vsub.f32 %v11476_v20, %v11638_v18  ;;  %v4358_v28 = vsub.f32 %v11482_v29, %v11638_v18  ;;  %v4360_v52 = vsub.f32 %v11488_v34, %v11638_v18 }
 0xe2f   :  { %v4362_v5 = vsub.f32 %v11494_v44, %v11638_v18  ;;  %v4364_v40 = vsub.f32 %v11500_v55, %v11638_v18  ;;  %v4366_v61 = vsub.f32 %v11506_v12, %v11638_v18  ;;  %v4368_v45 = vsub.f32 %v11512_v3, %v11638_v18 }
 0xe30   :  { %v4370_v20 = vsub.f32 %v11518_v53, %v11638_v18  ;;  %v4372_v29 = vsub.f32 %v11524_v58, %v11638_v18  ;;  %v4374_v34 = vsub.f32 %v11530_v57, %v11638_v18  ;;  %v4376_v44 = vsub.f32 %v11536_v56, %v11638_v18 }
 0xe31   :  { %v4378_v55 = vsub.f32 %v11542_v23, %v11638_v18  ;;  %v4380_v12 = vsub.f32 %v11548_v60, %v11638_v18  ;;  %v4382_v3 = vsub.f32 %v11554_v15, %v11638_v18  ;;  %v4384_v53 = vsub.f32 %v11560_v37, %v11638_v18 }
 0xe32   :  { %v4386_v58 = vsub.f32 %v11566_v6, %v11638_v18  ;;  %v4388_v57 = vsub.f32 %v11572_v11, %v11638_v18  ;;  %v4390_v31 = vsub.f32 %v11578_v42, %v11638_v18  ;;  %v4392_v56 = vsub.f32 %v11584_v14, %v11638_v18 }
 0xe33   :  { %v4410_v11 = vmul.f32 1.442695, %v4346_v17  ;;  %v4414_v42 = vmul.f32 1.442695, %v4348_v7  ;;  %v4418_v14 = vmul.f32 1.442695, %v4350_v51 }
 0xe34   :  { %v4422_v22 = vmul.f32 1.442695, %v4352_v2  ;;  %v4426_v33 = vmul.f32 1.442695, %v4354_v10  ;;  %v4430_v35 = vmul.f32 1.442695, %v4356_v50 }
 0xe35   :  { %7017 = vpow2.f32 %v4410_v11  ;;  %v4434_v48 = vmul.f32 1.442695, %v4358_v28  ;;  %v4438_v1 = vmul.f32 1.442695, %v4360_v52  ;;  %v4442_v25 = vmul.f32 1.442695, %v4362_v5 }
 0xe36   :  { %7019 = vpow2.f32 %v4414_v42  ;;  %v4446_v6 = vmul.f32 1.442695, %v4364_v40  ;;  %v4450_v17 = vmul.f32 1.442695, %v4366_v61  ;;  %v4454_v7 = vmul.f32 1.442695, %v4368_v45 }
 0xe37   :  { %7021 = vpow2.f32 %v4418_v14  ;;  %v4458_v51 = vmul.f32 1.442695, %v4370_v20  ;;  %v4462_v24 = vmul.f32 1.442695, %v4372_v29  ;;  %v4466_v2 = vmul.f32 1.442695, %v4374_v34 }
 0xe38   :  { %7023 = vpow2.f32 %v4422_v22  ;;  %v4470_v37 = vmul.f32 1.442695, %v4376_v44  ;;  %v4474_v21 = vmul.f32 1.442695, %v4378_v55  ;;  %v4478_v11 = vmul.f32 1.442695, %v4380_v12 }
 0xe39   :  { %7025 = vpow2.f32 %v4426_v33  ;;  %v4482_v10 = vmul.f32 1.442695, %v4382_v3  ;;  %v4486_v50 = vmul.f32 1.442695, %v4384_v53  ;;  %v4490_v42 = vmul.f32 1.442695, %v4386_v58 }
 0xe3a   :  { %7027 = vpow2.f32 %v4430_v35  ;;  %v11710_v28 = vmul.f32 1.442695, %v4388_v57  ;;  %v11712_v52 = vmul.f32 1.442695, %v4390_v31  ;;  %v11714_v5 = vmul.f32 1.442695, %v4392_v56 }
 0xe3b   :  { %7029 = vpow2.f32 %v4434_v48  ;;  %v14657_v58 = vld [vmem:[#allocation79_spill] sm:$0xff]  ;;  %v14659_v14 = vld [vmem:[#allocation81_spill] sm:$0xff]  ;;  %v14660_v35 = vld [vmem:[#allocation82_spill] sm:$0xff] }
 0xe3c   :  { %7031 = vpow2.f32 %v4438_v1  ;;  %v14661_v1 = vld [vmem:[#allocation83_spill] sm:$0xff]  ;;  %v14663_v53 = vld [vmem:[#allocation85_spill] sm:$0xff]  ;;  %v14664_v3 = vld [vmem:[#allocation86_spill] sm:$0xff] }
 0xe3d   :  { %7033 = vpow2.f32 %v4442_v25  ;;  %v14658_v25 = vld [vmem:[#allocation80_spill] sm:$0xff]  ;;  %v14665_v48 = vld [vmem:[#allocation87_spill] sm:$0xff]  ;;  %v14667_v34 = vld [vmem:[#allocation89_spill] sm:$0xff] }
 0xe3e   :  { %7035 = vpow2.f32 %v4446_v6  ;;  %v14666_v44 = vld [vmem:[#allocation88_spill] sm:$0xff]  ;;  %v14668_v22 = vld [vmem:[#allocation90_spill] sm:$0xff]  ;;  %v14671_v40 = vld [vmem:[#allocation95_spill] sm:$0xff] }
 0xe3f   :  { %v11724_v29 = vpop.eup %7017  ;;  %7037 = vpow2.f32 %v4450_v17  ;;  %v14669_v45 = vld [vmem:[#allocation92_spill] sm:$0xff]  ;;  %v14670_v17 = vld [vmem:[#allocation94_spill] sm:$0xff] }
 0xe40   :  { %v11732_v12 = vpop.eup %7019  ;;  %7039 = vpow2.f32 %v4454_v7  ;;  %v14662_v7 = vld [vmem:[#allocation84_spill] sm:$0xff] }
 0xe41   :  { %v11740_v31 = vpop.eup %7021  ;;  %7041 = vpow2.f32 %v4458_v51  ;;  %v4538_v56 = vadd.f32 %v11732_v12, %v11724_v29  ;;  %v14675_v51 = vld [vmem:[#allocation76_spill] sm:$0xff] }
 0xe42   :  { %v11748_v33 = vpop.eup %7023  ;;  %7043 = vpow2.f32 %v4462_v24  ;;  %v14673_v24 = vld [vmem:[#allocation93_spill] sm:$0xff] }
 0xe43   :  { %v11756_v57 = vpop.eup %7025  ;;  %7045 = vpow2.f32 %v4466_v2  ;;  %v4539_v6 = vadd.f32 %v11740_v31, %v4538_v56 }
 0xe44   :  { %v11763_v55 = vpop.eup %7027  ;;  %7047 = vpow2.f32 %v4470_v37 }
 0xe45   :  { %v11771_v20 = vpop.eup %7029  ;;  %7049 = vpow2.f32 %v4474_v21  ;;  %v4540_v56 = vadd.f32 %v11748_v33, %v4539_v6 }
 0xe46   :  { %v11778_v61 = vpop.eup %7031  ;;  %7051 = vpow2.f32 %v4478_v11 }
 0xe47   :  { %v11786_v60 = vpop.eup %7033  ;;  %7053 = vpow2.f32 %v4482_v10  ;;  %v4541_v6 = vadd.f32 %v11756_v57, %v4540_v56  ;;  %v14677_v56 = vsub.f32 %v11590_v54, %v11638_v18 }
 0xe48   :  { %v11793_v23 = vpop.eup %7035  ;;  %7055 = vpow2.f32 %v4486_v50  ;;  %v14678_v50 = vsub.f32 %v11596_v46, %v11638_v18 }
 0xe49   :  { %v11801_v15 = vpop.eup %7037  ;;  %7057 = vpow2.f32 %v4490_v42  ;;  %v4506_v37 = vmul.f32 1.442695, %v14677_v56  ;;  %v4542_v11 = vadd.f32 %v11763_v55, %v4541_v6  ;;  %v14679_v42 = vsub.f32 %v11602_v16, %v11638_v18 }
 0xe4a   :  { %v11807_v41 = vpop.eup %7039  ;;  %7059 = vpow2.f32 %v11710_v28  ;;  %v4510_v21 = vmul.f32 1.442695, %v14678_v50  ;;  %v14680_v28 = vsub.f32 %v11608_v8, %v11638_v18  ;;  %v14684_v8 = vsub.f32 %v11626_v26, %v11638_v18 }
 0xe4b   :  { %v11813_v2 = vpop.eup %7041  ;;  %7061 = vpow2.f32 %v11712_v52  ;;  %v4514_v10 = vmul.f32 1.442695, %v14679_v42  ;;  %v4543_v54 = vadd.f32 %v11771_v20, %v4542_v11  ;;  %v14681_v52 = vsub.f32 %v11614_v62, %v11638_v18 }
 0xe4c   :  { %v11820_v56 = vpop.eup %7043  ;;  %7063 = vpow2.f32 %v11714_v5  ;;  %v4518_v6 = vmul.f32 1.442695, %v14680_v28  ;;  %v14682_v11 = vsub.f32 %v11620_v4, %v11638_v18 }
 0xe4d   :  { %v11826_v46 = vpop.eup %7045  ;;  %7065 = vpow2.f32 %v4506_v37  ;;  %v4522_v50 = vmul.f32 1.442695, %v14681_v52  ;;  %v4544_v16 = vadd.f32 %v11778_v61, %v4543_v54  ;;  %v4530_v37 = vmul.f32 1.442695, %v14684_v8 }
 0xe4e   :  { %v11832_v42 = vpop.eup %7047  ;;  %7067 = vpow2.f32 %v4510_v21  ;;  %v4526_v5 = vmul.f32 1.442695, %v14682_v11  ;;  %v14685_v54 = vsub.f32 %v11632_v43, %v11638_v18  ;;  %v14688_v43 = vsub.f32 %v11458_v39, %v11640_v38 }
 0xe4f   :  { %v11837_v47 = vpop.eup %7049  ;;  %7069 = vpow2.f32 %v4514_v10  ;;  %v4545_v28 = vadd.f32 %v11786_v60, %v4544_v16  ;;  %v14686_v10 = vsub.f32 %v11448_v27, %v11640_v38  ;;  %v14687_v16 = vsub.f32 %v11452_v9, %v11640_v38 }
 0xe50   :  { %14683 = vst [vmem:[#allocation11_spill] sm:$0xff] %v11837_v47  ;;  %v11843_v62 = vpop.eup %7051  ;;  %7071 = vpow2.f32 %v4518_v6  ;;  %v4534_v21 = vmul.f32 1.442695, %v14685_v54  ;;  %v4420_v18 = vmul.f32 1.442695, %v14688_v43  ;;  %v14689_v27 = vsub.f32 %v11466_v19, %v11640_v38 }
 0xe51   :  { %v11848_v52 = vpop.eup %7053  ;;  %7073 = vpow2.f32 %v4522_v50  ;;  %v4546_v4 = vadd.f32 %v11793_v23, %v4545_v28  ;;  %v4412_v11 = vmul.f32 1.442695, %v14686_v10  ;;  %v4416_v6 = vmul.f32 1.442695, %v14687_v16 }
 0xe52   :  { %v11854_v26 = vpop.eup %7055  ;;  %7075 = vpow2.f32 %v4526_v5  ;;  %v4424_v28 = vmul.f32 1.442695, %v14689_v27  ;;  %v14690_v5 = vsub.f32 %v11473_v32, %v11640_v38  ;;  %v14691_v9 = vsub.f32 %v11479_v59, %v11640_v38 }
 0xe53   :  { %v11862_v8 = vpop.eup %7057  ;;  %7077 = vpow2.f32 %v4530_v37  ;;  %v4547_v50 = vadd.f32 %v11801_v15, %v4546_v4  ;;  %v14692_v37 = vsub.f32 %v11485_v13, %v11640_v38  ;;  %v14693_v4 = vsub.f32 %v11491_v0, %v11640_v38 }
 0xe54   :  { %v4428_v54 = vmul.f32 1.442695, %v14690_v5  ;;  %v11871_v10 = vpop.eup %7059  ;;  %7079 = vpow2.f32 %v4534_v21  ;;  %v4432_v39 = vmul.f32 1.442695, %v14691_v9  ;;  %v14694_v21 = vsub.f32 %v11497_v49, %v11640_v38 }
 0xe55   :  { %v4436_v16 = vmul.f32 1.442695, %v14692_v37  ;;  %v4440_v19 = vmul.f32 1.442695, %v14693_v4  ;;  %v11882_v43 = vpop.eup %7061  ;;  %v4548_v32 = vadd.f32 %v11807_v41, %v4547_v50  ;;  %7081 = vpow2.f32 %v4412_v11 }
 0xe56   :  { %v4444_v27 = vmul.f32 1.442695, %v14694_v21  ;;  %v14695_v59 = vsub.f32 %v11503_v63, %v11640_v38  ;;  %v11891_v9 = vpop.eup %7063  ;;  %7083 = vpow2.f32 %v4416_v6 }
 0xe57   :  { %v11899_v50 = vpop.eup %7065  ;;  %v4549_v49 = vadd.f32 %v11813_v2, %v4548_v32  ;;  %7085 = vpow2.f32 %v4420_v18 }
 0xe58   :  { %v4448_v5 = vmul.f32 1.442695, %v14695_v59  ;;  %v11906_v37 = vpop.eup %7067  ;;  %7087 = vpow2.f32 %v4424_v28  ;;  %v14696_v28 = vsub.f32 %v11509_v36, %v11640_v38  ;;  %v14697_v59 = vsub.f32 %v14657_v58, %v11640_v38 }
 0xe59   :  { %v11914_v32 = vpop.eup %7069  ;;  %v4550_v18 = vadd.f32 %v11820_v56, %v4549_v49  ;;  %7089 = vpow2.f32 %v4428_v54 }
 0xe5a   :  { %v11921_v63 = vpop.eup %7071  ;;  %7091 = vpow2.f32 %v4432_v39  ;;  %v4452_v6 = vmul.f32 1.442695, %v14696_v28  ;;  %v4456_v21 = vmul.f32 1.442695, %v14697_v59 }
 0xe5b   :  { %v11929_v49 = vpop.eup %7073  ;;  %v4551_v54 = vadd.f32 %v11826_v46, %v4550_v18  ;;  %7093 = vpow2.f32 %v4436_v16  ;;  %v14698_v16 = vsub.f32 %v14658_v25, %v11640_v38  ;;  %v14703_v25 = vsub.f32 %v14663_v53, %v11640_v38 }
 0xe5c   :  { %v11937_v11 = vpop.eup %7075  ;;  %7095 = vpow2.f32 %v4440_v19  ;;  %v14699_v19 = vsub.f32 %v14659_v14, %v11640_v38  ;;  %v14702_v14 = vsub.f32 %v14662_v7, %v11640_v38  ;;  %v14706_v53 = vsub.f32 %v14666_v44, %v11640_v38 }
 0xe5d   :  { %v11942_v4 = vpop.eup %7077  ;;  %v4552_v0 = vadd.f32 %v11832_v42, %v4551_v54  ;;  %7097 = vpow2.f32 %v4444_v27  ;;  %v4460_v36 = vmul.f32 1.442695, %v14698_v16  ;;  %v14700_v27 = vsub.f32 %v14660_v35, %v11640_v38 }
 0xe5e   :  { %v11950_v28 = vpop.eup %7079  ;;  %7099 = vpow2.f32 %v4448_v5  ;;  %v4464_v58 = vmul.f32 1.442695, %v14699_v19  ;;  %v14701_v5 = vsub.f32 %v14661_v1, %v11640_v38  ;;  %v4476_v19 = vmul.f32 1.442695, %v14702_v14 }
 0xe5f   :  { %v7082_v59 = vpop.eup %7081  ;;  %v4553_v39 = vadd.f32 %v11837_v47, %v4552_v0  ;;  %7101 = vpow2.f32 %v4452_v6  ;;  %v4468_v54 = vmul.f32 1.442695, %v14700_v27  ;;  %v14704_v1 = vsub.f32 %v14664_v3, %v11640_v38 }
 0xe60   :  { %v7084_v16 = vpop.eup %7083  ;;  %7103 = vpow2.f32 %v4456_v21  ;;  %v4472_v18 = vmul.f32 1.442695, %v14701_v5  ;;  %v4480_v21 = vmul.f32 1.442695, %v14703_v25  ;;  %v4492_v25 = vmul.f32 1.442695, %v14706_v53 }
 0xe61   :  { %v7086_v13 = vpop.eup %7085  ;;  %v4554_v0 = vadd.f32 %v11843_v62, %v4553_v39  ;;  %7105 = vpow2.f32 %v4460_v36  ;;  %v4575_v6 = vadd.f32 %v7084_v16, %v7082_v59  ;;  %v4615_v35 = vpack.c.bf16 %v7084_v16, %v7082_v59 }
 0xe62   :  { %v7088_v27 = vpop.eup %7087  ;;  %7107 = vpow2.f32 %v4464_v58  ;;  %v4484_v5 = vmul.f32 1.442695, %v14704_v1  ;;  %v14705_v58 = vsub.f32 %v14665_v48, %v11640_v38  ;;  %v14707_v3 = vpack.c.bf16 %v11732_v12, %v11724_v29 }
 0xe63   :  { %v7090_v47 = vpop.eup %7089  ;;  %v4555_v7 = vadd.f32 %v11848_v52, %v4554_v0  ;;  %7109 = vpow2.f32 %v4468_v54  ;;  %v4576_v14 = vadd.f32 %v7086_v13, %v4575_v6  ;;  %4646 = vmatprep.subr.bf16.mxu1 %v4615_v35  ;;  %v4617_v39 = vpack.c.bf16 %v7088_v27, %v7086_v13 }
 0xe64   :  { %v7092_v36 = vpop.eup %7091  ;;  %7111 = vpow2.f32 %v4472_v18  ;;  %v4488_v59 = vmul.f32 1.442695, %v14705_v58  ;;  %4647 = vmatpush1.bf16.msra.mxu1 %v14707_v3  ;;  %v14708_v48 = vsub.f32 %v14667_v34, %v11640_v38  ;;  %v14709_v44 = vsub.f32 %v14668_v22, %v11640_v38  ;;  %v14714_v3 = vld [vmem:[#allocation91_spill] sm:$0xff] }
 0xe65   :  { %v7094_v16 = vpop.eup %7093  ;;  %v4556_v54 = vadd.f32 %v11854_v26, %v4555_v7  ;;  %7113 = vpow2.f32 %v4476_v19  ;;  %v4577_v0 = vadd.f32 %v7088_v27, %v4576_v14  ;;  %4648 = vmatprep.subr.bf16.mxu1 %v4617_v39  ;;  %v4619_v13 = vpack.c.bf16 %v7092_v36, %v7090_v47 }
 0xe66   :  { %v7096_v18 = vpop.eup %7095  ;;  %7115 = vpow2.f32 %v4480_v21  ;;  %v4496_v6 = vmul.f32 1.442695, %v14708_v48  ;;  %v4500_v35 = vmul.f32 1.442695, %v14709_v44  ;;  %v14710_v27 = vsub.f32 %v14669_v45, %v11640_v38 }
 0xe67   :  { %v7098_v1 = vpop.eup %7097  ;;  %v4557_v29 = vadd.f32 %v11862_v8, %v4556_v54  ;;  %7117 = vpow2.f32 %v4484_v5  ;;  %v4578_v12 = vadd.f32 %v7090_v47, %v4577_v0  ;;  %v4621_v7 = vpack.c.bf16 %v7096_v18, %v7094_v16 }
 0xe68   :  { %v7100_v19 = vpop.eup %7099  ;;  %7119 = vpow2.f32 %v4488_v59  ;;  %v4504_v21 = vmul.f32 1.442695, %v14710_v27  ;;  %v14711_v34 = vsub.f32 %v14670_v17, %v11640_v38  ;;  %v14712_v22 = vpack.c.bf16 %v11748_v33, %v11740_v31 }
 0xe69   :  { %v7102_v39 = vpop.eup %7101  ;;  %v4558_v58 = vadd.f32 %v11871_v10, %v4557_v29  ;;  %7121 = vpow2.f32 %v4492_v25  ;;  %v4579_v47 = vadd.f32 %v7092_v36, %v4578_v12  ;;  %v4623_v5 = vpack.c.bf16 %v7100_v19, %v7098_v1 }
 0xe6a   :  { %v4508_v14 = vmul.f32 1.442695, %v14711_v34  ;;  %4649 = vmatpush1.bf16.msra.mxu1 %v14712_v22  ;;  %v7104_v59 = vpop.eup %7103  ;;  %7123 = vpow2.f32 %v4496_v6  ;;  %v14713_v45 = vsub.f32 %v14671_v40, %v11640_v38  ;;  %v14715_v17 = vsub.f32 %v14714_v3, %v11640_v38  ;;  %v14717_v6 = vld [vmem:[#allocation96_spill] sm:$0xff] }
 0xe6b   :  { %4650 = vmatprep.subr.bf16.mxu1 %v4619_v13  ;;  %v7106_v0 = vpop.eup %7105  ;;  %v4559_v31 = vadd.f32 %v11882_v43, %v4558_v58  ;;  %7125 = vpow2.f32 %v4500_v35  ;;  %v4580_v33 = vadd.f32 %v7094_v16, %v4579_v47  ;;  %v4625_v48 = vpack.c.bf16 %v7104_v59, %v7102_v39 }
 0xe6c   :  { %v4512_v53 = vmul.f32 1.442695, %v14713_v45  ;;  %v4516_v54 = vmul.f32 1.442695, %v14715_v17  ;;  %v7108_v25 = vpop.eup %7107  ;;  %7127 = vpow2.f32 %v4504_v21  ;;  %v14716_v36 = vsub.f32 %v14673_v24, %v11640_v38 }
 0xe6d   :  { %v14718_v40 = vsub.f32 %v14717_v6, %v11640_v38  ;;  %v14719_v29 = vpack.c.bf16 %v11763_v55, %v11756_v57  ;;  %v7110_v12 = vpop.eup %7109  ;;  %v4560_v27 = vadd.f32 %v11891_v9, %v4559_v31  ;;  %7129 = vpow2.f32 %v4508_v14 }
 0xe6e   :  { %v4520_v13 = vmul.f32 1.442695, %v14716_v36  ;;  %v4581_v16 = vadd.f32 %v7096_v18, %v4580_v33  ;;  %v4627_v35 = vpack.c.bf16 %v7108_v25, %v7106_v0  ;;  %v7112_v21 = vpop.eup %7111  ;;  %7131 = vpow2.f32 %v4512_v53  ;;  %v14722_v18 = vld [vmem:[#allocation10_spill] sm:$0xff] }
 0xe6f   :  { %v4524_v44 = vmul.f32 1.442695, %v14718_v40  ;;  %4651 = vmatpush1.bf16.msra.mxu1 %v14719_v29  ;;  %v14720_v24 = vsub.f32 %v14675_v51, %v11640_v38  ;;  %v14721_v22 = vsub.f32 %v14676_v30, %v11640_v38  ;;  %v7114_v47 = vpop.eup %7113  ;;  %v4561_v55 = vadd.f32 %v11899_v50, %v4560_v27 }
 0xe70   :  { %4652 = vmatprep.subr.bf16.mxu1 %v4621_v7  ;;  %7133 = vpow2.f32 %v4516_v54  ;;  %v4582_v57 = vadd.f32 %v7098_v1, %v4581_v16  ;;  %v4629_v45 = vpack.c.bf16 %v7112_v21, %v7110_v12  ;;  %v7116_v14 = vpop.eup %7115  ;;  %v14723_v7 = vsub.f32 %v14722_v18, %v11640_v38 }
 0xe71   :  { %v4528_v34 = vmul.f32 1.442695, %v14720_v24  ;;  %v4532_v58 = vmul.f32 1.442695, %v14721_v22  ;;  %7135 = vpow2.f32 %v4520_v13  ;;  %v14724_v51 = vpack.c.bf16 %v11778_v61, %v11771_v20  ;;  %v7118_v3 = vpop.eup %7117 }
 0xe72   :  { %v4536_v53 = vmul.f32 1.442695, %v14723_v7  ;;  %v4562_v30 = vadd.f32 %v11906_v37, %v4561_v55  ;;  %7137 = vpow2.f32 %v4524_v44  ;;  %v4583_v17 = vadd.f32 %v7100_v19, %v4582_v57  ;;  %v7120_v54 = vpop.eup %7119 }
 0xe73   :  { %4653 = vmatpush1.bf16.msra.mxu1 %v14724_v51  ;;  %v4631_v31 = vpack.c.bf16 %v7116_v14, %v7114_v47  ;;  %7139 = vpow2.f32 %v4528_v34  ;;  %v7122_v1 = vpop.eup %7121  ;;  %v4633_v38 = vpack.c.bf16 %v7120_v54, %v7118_v3  ;;  %v14725_v61 = vpack.c.bf16 %v11793_v23, %v11786_v60 }
 0xe74   :  { %4654 = vmatprep.subr.bf16.mxu1 %v4623_v5  ;;  %v4563_v33 = vadd.f32 %v11914_v32, %v4562_v30  ;;  %7141 = vpow2.f32 %v4532_v58  ;;  %v4584_v36 = vadd.f32 %v7102_v39, %v4583_v17  ;;  %v7124_v13 = vpop.eup %7123  ;;  %v14726_v24 = vpack.c.bf16 %v11807_v41, %v11801_v15 }
 0xe75   :  { %7143 = vpow2.f32 %v4536_v53  ;;  %v7126_v20 = vpop.eup %7125  ;;  %v4635_v5 = vpack.c.bf16 %v7124_v13, %v7122_v1  ;;  %v14728_v30 = vpack.c.bf16 %v11832_v42, %v11826_v46  ;;  %v14732_v46 = vpack.c.bf16 %v11871_v10, %v11862_v8 }
 0xe76   :  { %v4564_v6 = vadd.f32 %v11921_v63, %v4563_v33  ;;  %v4585_v19 = vadd.f32 %v7104_v59, %v4584_v36  ;;  %v7128_v40 = vpop.eup %7127  ;;  %v14735_v8 = vpack.c.bf16 %v11921_v63, %v11914_v32 }
 0xe77   :  { %4655 = vmatpush1.bf16.msra.mxu1 %v14725_v61  ;;  %v7130_v44 = vpop.eup %7129  ;;  %v4637_v16 = vpack.c.bf16 %v7128_v40, %v7126_v20 }
 0xe78   :  { %4656 = vmatprep.subr.bf16.mxu1 %v4625_v48  ;;  %v4565_v29 = vadd.f32 %v11929_v49, %v4564_v6  ;;  %v4586_v27 = vadd.f32 %v7106_v0, %v4585_v19  ;;  %v7132_v39 = vpop.eup %7131  ;;  %v14727_v0 = vpack.c.bf16 %v11820_v56, %v11813_v2  ;;  %v14729_v2 = vld [vmem:[#allocation11_spill] sm:$0xff] }
 0xe79   :  { %v4639_v22 = vpack.c.bf16 %v7132_v39, %v7130_v44  ;;  %v14730_v56 = vpack.c.bf16 %v11843_v62, %v14729_v2  ;;  %v14733_v62 = vpack.c.bf16 %v11891_v9, %v11882_v43  ;;  %v14738_v9 = vld [vmem:[#allocation18_spill] sm:$0xff] }
 0xe7a   :  { %v7134_v34 = vpop.eup %7133  ;;  %v4566_v23 = vadd.f32 %v11937_v11, %v4565_v29  ;;  %v4587_v60 = vadd.f32 %v7108_v25, %v4586_v27  ;;  %v14745_v29 = vld [vmem:[#allocation43_spill] sm:$0xff]  ;;  %v14748_v27 = vld [vmem:[#allocation26_spill] sm:$0xff] }
 0xe7b   :  { %4657 = vmatpush1.bf16.msra.mxu1 %v14726_v24  ;;  %v7136_v59 = vpop.eup %7135  ;;  %v14751_v24 = vld [vmem:[#allocation46_spill] sm:$0xff] }
 0xe7c   :  { %4658 = vmatprep.subr.bf16.mxu1 %v4627_v35  ;;  %v7138_v48 = vpop.eup %7137  ;;  %v4567_v58 = vadd.f32 %v11942_v4, %v4566_v23  ;;  %v4588_v55 = vadd.f32 %v7110_v12, %v4587_v60  ;;  %v4641_v57 = vpack.c.bf16 %v7136_v59, %v7134_v34  ;;  %v14753_v23 = vld [vmem:[#allocation56_spill] sm:$0xff] }
 0xe7d   :  { %v7140_v18 = vpop.eup %7139  ;;  %v14754_v60 = vld [vmem:[#allocation68_spill] sm:$0xff] }
 0xe7e   :  { %v7142_v7 = vpop.eup %7141  ;;  %v12048_v41 = vadd.f32 %v11950_v28, %v4567_v58  ;;  %v4589_v15 = vadd.f32 %v7112_v21, %v4588_v55  ;;  %v4643_v25 = vpack.c.bf16 %v7140_v18, %v7138_v48  ;;  %v14731_v21 = vpack.c.bf16 %v11854_v26, %v11848_v52  ;;  %v14758_v58 = vld [vmem:[#allocation70_spill] sm:$0xff]  ;;  %v14759_v55 = vld [vmem:[#allocation59_spill] sm:$0xff] }
 0xe7f   :  { %4659 = vmatpush1.bf16.msra.mxu1 %v14727_v0  ;;  %v7144_v35 = vpop.eup %7143  ;;  %v14734_v52 = vpack.c.bf16 %v11906_v37, %v11899_v50  ;;  %v14739_v50 = vpack.c.bf16 %v11937_v11, %v11929_v49  ;;  %v14740_v37 = vld [vmem:[#allocation53_spill] sm:$0xff]  ;;  %v14743_v11 = vmov 0  }
 0xe80   :  { %4660 = vmatprep.subr.bf16.mxu1 %v4629_v45  ;;  %v4590_v53 = vadd.f32 %v7114_v47, %v4589_v15  ;;  %v4645_v51 = vpack.c.bf16 %v7144_v35, %v7142_v7  ;;  %v14744_v49 = vld [vmem:[#allocation41_spill] sm:$0xff] }
 0xe82   :  { %v4591_v12 = vadd.f32 %v7116_v14, %v4590_v53 }
 0xe83   :  { %4661 = vmatpush1.bf16.msra.mxu1 %v14728_v30 }
 0xe84   :  { %4662 = vmatprep.subr.bf16.mxu1 %v4631_v31  ;;  %v4592_v17 = vadd.f32 %v7118_v3, %v4591_v12 }
 0xe86   :  { %v4593_v33 = vadd.f32 %v7120_v54, %v4592_v17 }
 0xe87   :  { %4663 = vmatpush1.bf16.msra.mxu1 %v14730_v56 }
 0xe88   :  { %4664 = vmatprep.subr.bf16.mxu1 %v4633_v38  ;;  %v4594_v36 = vadd.f32 %v7122_v1, %v4593_v33  ;;  %v14736_v1 = vld [vmem:[#allocation29_spill] sm:$0xff]  ;;  %v14737_v38 = vld [vmem:[#allocation16_spill] sm:$0xff] }
 0xe89   :  { %v3257_v43 = vadd.f32 %v14737_v38, %v14736_v1 }
 0xe8a   :  { %v4595_v47 = vadd.f32 %v7124_v13, %v4594_v36  ;;  %v3259_v13 = vadd.f32 %v14738_v9, %v14736_v1 }
 0xe8b   :  { %4665 = vmatpush1.bf16.msra.mxu1 %v14731_v21  ;;  %v4689_v63 = vpack.c.bf16 %v3257_v43, %v3257_v43 }
 0xe8c   :  { %4666 = vmatprep.subr.bf16.mxu1 %v4635_v5  ;;  %v4596_v45 = vadd.f32 %v7126_v20, %v4595_v47  ;;  %v14741_v20 = vld [vmem:[#allocation8_spill] sm:$0xff]  ;;  %v4690_v32 = vpack.c.bf16 %v3259_v13, %v3259_v13  ;;  %v14742_v5 = vpack.c.bf16 %v11950_v28, %v11942_v4  ;;  %v14746_v4 = vld [vmem:[#allocation45_spill] sm:$0xff]  ;;  %v14747_v28 = vld [vmem:[#allocation47_spill] sm:$0xff] }
 0xe8d   :  { %v3251_v6 = vadd.f32 %v14741_v20, %v14740_v37 }
 0xe8e   :  { %v4597_v42 = vadd.f32 %v7128_v40, %v4596_v45 }
 0xe8f   :  { %4667 = vmatpush1.bf16.msra.mxu1 %v14732_v46  ;;  %v3991_v40 = vpack.c.bf16 %v3251_v6, %v3251_v6  ;;  %v14760_v46 = vld [vmem:[#allocation77_spill] sm:$0xff] }
 0xe90   :  { %4668 = vmatprep.subr.bf16.mxu1 %v4637_v16  ;;  %v4598_v14 = vadd.f32 %v7130_v44, %v4597_v42  ;;  %v4776_v44 = vsel %vm355_vm1, %v4689_v63, 0  ;;  %v14749_v16 = vld [vmem:[#allocation33_spill] sm:$0xff] }
 0xe92   :  { %v4599_v3 = vadd.f32 %v7132_v39, %v4598_v14  ;;  %v14750_v39 = vld [vmem:[#allocation36_spill] sm:$0xff]  ;;  %v14761_v14 = vld [vmem:[#allocation78_spill] sm:$0xff] }
 0xe93   :  { %4669 = vmatpush1.bf16.msra.mxu1 %v14733_v62 }
 0xe94   :  { %4670 = vmatprep.subr.bf16.mxu1 %v4639_v22  ;;  %v4600_v31 = vadd.f32 %v7134_v34, %v4599_v3  ;;  %v14752_v34 = vld [vmem:[#allocation55_spill] sm:$0xff]  ;;  %v14755_v22 = vld [vmem:[#allocation64_spill] sm:$0xff] }
 0xe96   :  { %v4601_v26 = vadd.f32 %v7136_v59, %v4600_v31  ;;  %v14756_v59 = vld [vmem:[#allocation67_spill] sm:$0xff] }
 0xe97   :  { %4671 = vmatpush1.bf16.msra.mxu1 %v14734_v52 }
 0xe98   :  { %4672 = vmatprep.subr.bf16.mxu1 %v4641_v57  ;;  %v4602_v54 = vadd.f32 %v7138_v48, %v4601_v26  ;;  %v14757_v48 = vld [vmem:[#allocation69_spill] sm:$0xff]  ;;  %v4569_v57 = vrot.slane %v12048_v41, 4 }
 0xe9a   :  { %v4603_v10 = vadd.f32 %v7140_v18, %v4602_v54  ;;  %v4570_v0 = vadd.f32 %v4569_v57, %v12048_v41 }
 0xe9b   :  { %4673 = vmatpush1.bf16.msra.mxu1 %v14735_v8 }
 0xe9c   :  { %4674 = vmatprep.subr.bf16.mxu1 %v4643_v25  ;;  %v4604_v61 = vadd.f32 %v7142_v7, %v4603_v10  ;;  %v4571_v15 = vrot.slane %v4570_v0, 2 }
 0xe9e   :  { %v4605_v19 = vadd.f32 %v7144_v35, %v4604_v61  ;;  %v4572_v35 = vadd.f32 %v4571_v15, %v4570_v0 }
 0xe9f   :  { %4675 = vmatpush1.bf16.msra.mxu1 %v14739_v50 }
 0xea0   :  { %4676 = vmatprep.subr.bf16.mxu1 %v4645_v51  ;;  %v4606_v18 = vrot.slane %v4605_v19, 4  ;;  %v4573_v51 = vrot.slane %v4572_v35, 1 }
 0xea2   :  { %v4607_v7 = vadd.f32 %v4606_v18, %v4605_v19  ;;  %v4574_v12 = vadd.f32 %v4573_v51, %v4572_v35 }
 0xea3   :  { %4677 = vmatpush1.bf16.msra.mxu1 %v14742_v5 }
 0xea4   :  { %6307 = vmatprep.subr.msk.bf16.mxu1 %vm355_vm1, %v4690_v32  ;;  %v4608_v25 = vrot.slane %v4607_v7, 2  ;;  %7145 = vrcp.f32 %v4574_v12 }
 0xea6   :  { %4679 = vmatmul.mubr.bf16.vlgmr.msra.gmra.mrb[232].mxu1 %v3991_v40  ;;  %v4609_v53 = vadd.f32 %v4608_v25, %v4607_v7 }
 0xea7   :  { %4782 = vmatpush1.bf16.msra.mxu1 %v4776_v44  ;;  %4813 = vmatprep.mubr.bf16.mxu1 %v14743_v11 }
 0xea8   :  { %v4610_v30 = vrot.slane %v4609_v53, 1 }
 0xeaa   :  { %v4611_v17 = vadd.f32 %v4610_v30, %v4609_v53 }
 0xeac   :  { %7147 = vrcp.f32 %v4611_v17 }
 0xeae   :  { %6308 = vmatmul.mubr.msk.bf16.vlgmr.msra.gmra.mrb[236].mxu1 %vm306_vm2, %v14744_v49  ;;  %v7146_v2 = vpop.eup %7145 }
 0xeaf   :  { %4823 = vmatprep.mubr.bf16.mxu1 %v14743_v11 }
 0xeb6   :  { %6309 = vmatmul.mubr.msk.bf16.gmra.mrb[240].mxu1 %vm306_vm2, %v14745_v29  ;;  %v7148_v33 = vpop.eup %7147 }
 0xeb7   :  { %4833 = vmatprep.mubr.bf16.mxu1 %v14743_v11 }
 0xebe   :  { %6310 = vmatmul.mubr.msk.bf16.gmra.mrb[244].mxu1 %vm306_vm2, %v14746_v4 }
 0xebf   :  { %4843 = vmatprep.mubr.bf16.mxu1 %v14743_v11 }
 0xec6   :  { %6311 = vmatmul.mubr.msk.bf16.gmra.mrb[248].mxu1 %vm306_vm2, %v14747_v28 }
 0xec7   :  { %4853 = vmatprep.mubr.bf16.mxu1 %v14743_v11 }
 0xece   :  { %6312 = vmatmul.mubr.msk.bf16.gmra.mrb[252].mxu1 %vm306_vm2, %v14748_v27 }
 0xecf   :  { %4863 = vmatprep.mubr.bf16.mxu1 %v14743_v11 }
 0xed6   :  { %6313 = vmatmul.mubr.msk.bf16.gmra.mrb[0].mxu1 %vm306_vm2, %v14749_v16 }
 0xed7   :  { %4873 = vmatprep.mubr.bf16.mxu1 %v14743_v11 }
 0xede   :  { %6314 = vmatmul.mubr.msk.bf16.gmra.mrb[4].mxu1 %vm306_vm2, %v14750_v39 }
 0xedf   :  { %4883 = vmatprep.mubr.bf16.mxu1 %v14743_v11 }
 0xee6   :  { %6315 = vmatmul.mubr.msk.bf16.gmra.mrb[8].mxu1 %vm306_vm2, %v14751_v24 }
 0xee7   :  { %4893 = vmatprep.mubr.bf16.mxu1 %v14743_v11 }
 0xeee   :  { %6316 = vmatmul.mubr.msk.bf16.gmra.mrb[12].mxu1 %vm306_vm2, %v14752_v34 }
 0xeef   :  { %4903 = vmatprep.mubr.bf16.mxu1 %v14743_v11 }
 0xef6   :  { %6317 = vmatmul.mubr.msk.bf16.gmra.mrb[16].mxu1 %vm306_vm2, %v14753_v23 }
 0xef7   :  { %4913 = vmatprep.mubr.bf16.mxu1 %v14743_v11 }
 0xefe   :  { %6318 = vmatmul.mubr.msk.bf16.gmra.mrb[20].mxu1 %vm306_vm2, %v14754_v60 }
 0xeff   :  { %4923 = vmatprep.mubr.bf16.mxu1 %v14743_v11 }
 0xf06   :  { %6319 = vmatmul.mubr.msk.bf16.gmra.mrb[24].mxu1 %vm306_vm2, %v14755_v22 }
 0xf07   :  { %4933 = vmatprep.mubr.bf16.mxu1 %v14743_v11 }
 0xf0e   :  { %6320 = vmatmul.mubr.msk.bf16.gmra.mrb[28].mxu1 %vm306_vm2, %v14756_v59 }
 0xf0f   :  { %4943 = vmatprep.mubr.bf16.mxu1 %v14743_v11 }
 0xf16   :  { %6321 = vmatmul.mubr.msk.bf16.gmra.mrb[32].mxu1 %vm306_vm2, %v14757_v48 }
 0xf17   :  { %4953 = vmatprep.mubr.bf16.mxu1 %v14743_v11 }
 0xf1e   :  { %6322 = vmatmul.mubr.msk.bf16.gmra.mrb[36].mxu1 %vm306_vm2, %v14758_v58 }
 0xf1f   :  { %4963 = vmatprep.mubr.bf16.mxu1 %v14743_v11 }
 0xf26   :  { %6323 = vmatmul.mubr.msk.bf16.gmra.mrb[40].mxu1 %vm306_vm2, %v14759_v55 }
 0xf27   :  { %6129 = vmatprep.mubr.bf16.mxu1 %v14743_v11 }
 0xf79   :  { %v4680_v56 = vpop.f32.mrb[232].mxu1 }
 0xf7a   :  { %v4687_v36 = vmul.f32 %v7146_v2, %v4680_v56  ;;  %v4682_v21 = vpop.f32.mrb[233].mxu1 }
 0xf7b   :  { %v4688_v47 = vmul.f32 %v7148_v33, %v4682_v21  ;;  %v4684_v45 = vpop.f32.mrb[234].mxu1 }
 0xf7c   :  { %v6093_v41 = vpack.c.bf16 %v4687_v36, %v14760_v46  ;;  %v4685_v42 = vpop.f32.mrb[235].mxu1 }
 0xf7d   :  { %v6094_v62 = vpack.c.bf16 %v4688_v47, %v14761_v14 }
 0xf7f   :  { %6097 = vmatprep.subr.bf16.mxu1 %v6094_v62 }
 0xf80   :  { %6098 = vmatpush1.bf16.msra.mxu1 %v6093_v41 }
 0xf81   :  { %v12138_v3 = vpop.f32.mrb[236].mxu1 }
 0xf82   :  { %v12140_v31 = vpop.f32.mrb[237].mxu1 }
 0xf83   :  { %v12142_v52 = vpop.f32.mrb[238].mxu1 }
 0xf84   :  { %v12144_v26 = vpop.f32.mrb[239].mxu1 }
 0xf89   :  { %v12146_v54 = vpop.f32.mrb[240].mxu1 }
 0xf8a   :  { %v4974_v8 = vmax.f32 %v12138_v3, %v12146_v54  ;;  %v12150_v10 = vpop.f32.mrb[241].mxu1 }
 0xf8b   :  { %v5011_v1 = vmax.f32 %v12140_v31, %v12150_v10  ;;  %v12154_v38 = vpop.f32.mrb[242].mxu1 }
 0xf8c   :  { %v4975_v43 = vmax.f32 %v12142_v52, %v12154_v38  ;;  %v12158_v9 = vpop.f32.mrb[243].mxu1 }
 0xf8d   :  { %v5012_v13 = vmax.f32 %v12144_v26, %v12158_v9 }
 0xf91   :  { %v12162_v61 = vpop.f32.mrb[244].mxu1 }
 0xf92   :  { %v4976_v50 = vmax.f32 %v4974_v8, %v12162_v61  ;;  %v12165_v37 = vpop.f32.mrb[245].mxu1 }
 0xf93   :  { %v5013_v20 = vmax.f32 %v5011_v1, %v12165_v37  ;;  %v12168_v6 = vpop.f32.mrb[246].mxu1 }
 0xf94   :  { %v4977_v19 = vmax.f32 %v4975_v43, %v12168_v6  ;;  %v12171_v63 = vpop.f32.mrb[247].mxu1 }
 0xf95   :  { %v5014_v32 = vmax.f32 %v5012_v13, %v12171_v63 }
 0xf99   :  { %v12174_v5 = vpop.f32.mrb[248].mxu1 }
 0xf9a   :  { %v4978_v40 = vmax.f32 %v4976_v50, %v12174_v5  ;;  %v12177_v44 = vpop.f32.mrb[249].mxu1 }
 0xf9b   :  { %v5015_v49 = vmax.f32 %v5013_v20, %v12177_v44  ;;  %v12180_v29 = vpop.f32.mrb[250].mxu1 }
 0xf9c   :  { %v4979_v4 = vmax.f32 %v4977_v19, %v12180_v29  ;;  %v12183_v28 = vpop.f32.mrb[251].mxu1 }
 0xf9d   :  { %v5016_v27 = vmax.f32 %v5014_v32, %v12183_v28 }
 0xfa1   :  { %v12186_v16 = vpop.f32.mrb[252].mxu1 }
 0xfa2   :  { %v4980_v39 = vmax.f32 %v4978_v40, %v12186_v16  ;;  %v12189_v24 = vpop.f32.mrb[253].mxu1 }
 0xfa3   :  { %v5017_v34 = vmax.f32 %v5015_v49, %v12189_v24  ;;  %v12192_v23 = vpop.f32.mrb[254].mxu1 }
 0xfa4   :  { %v4981_v60 = vmax.f32 %v4979_v4, %v12192_v23  ;;  %v12195_v22 = vpop.f32.mrb[255].mxu1 }
 0xfa5   :  { %v5018_v59 = vmax.f32 %v5016_v27, %v12195_v22 }
 0xfa9   :  { %v12198_v48 = vpop.f32.mrb[0].mxu1 }
 0xfaa   :  { %v4982_v58 = vmax.f32 %v4980_v39, %v12198_v48  ;;  %v12201_v55 = vpop.f32.mrb[1].mxu1 }
 0xfab   :  { %v5019_v57 = vmax.f32 %v5017_v34, %v12201_v55  ;;  %v12204_v18 = vpop.f32.mrb[2].mxu1 }
 0xfac   :  { %v4983_v0 = vmax.f32 %v4981_v60, %v12204_v18  ;;  %v12207_v7 = vpop.f32.mrb[3].mxu1 }
 0xfad   :  { %14762 = vst [vmem:[#allocation9_spill] sm:$0xff] %v12207_v7  ;;  %v5020_v15 = vmax.f32 %v5018_v59, %v12207_v7 }
 0xfb1   :  { %v12210_v25 = vpop.f32.mrb[4].mxu1 }
 0xfb2   :  { %v4984_v35 = vmax.f32 %v4982_v58, %v12210_v25  ;;  %v12213_v53 = vpop.f32.mrb[5].mxu1 }
 0xfb3   :  { %14763 = vst [vmem:[#allocation44_spill] sm:$0xff] %v12213_v53  ;;  %v5021_v51 = vmax.f32 %v5019_v57, %v12213_v53  ;;  %v12216_v30 = vpop.f32.mrb[6].mxu1 }
 0xfb4   :  { %v4985_v12 = vmax.f32 %v4983_v0, %v12216_v30  ;;  %v12219_v17 = vpop.f32.mrb[7].mxu1 }
 0xfb5   :  { %14764 = vst [vmem:[#allocation22_spill] sm:$0xff] %v12219_v17  ;;  %v5022_v2 = vmax.f32 %v5020_v15, %v12219_v17 }
 0xfb9   :  { %v12222_v56 = vpop.f32.mrb[8].mxu1 }
 0xfba   :  { %v4986_v33 = vmax.f32 %v4984_v35, %v12222_v56  ;;  %v12225_v36 = vpop.f32.mrb[9].mxu1 }
 0xfbb   :  { %14765 = vst [vmem:[#allocation14_spill] sm:$0xff] %v12225_v36  ;;  %v5023_v21 = vmax.f32 %v5021_v51, %v12225_v36  ;;  %v12228_v47 = vpop.f32.mrb[10].mxu1 }
 0xfbc   :  { %v4987_v45 = vmax.f32 %v4985_v12, %v12228_v47  ;;  %v12231_v46 = vpop.f32.mrb[11].mxu1 }
 0xfbd   :  { %14766 = vst [vmem:[#allocation12_spill] sm:$0xff] %v12231_v46  ;;  %v5024_v41 = vmax.f32 %v5022_v2, %v12231_v46 }
 0xfc1   :  { %v12234_v42 = vpop.f32.mrb[12].mxu1 }
 0xfc2   :  { %v4988_v14 = vmax.f32 %v4986_v33, %v12234_v42  ;;  %v12237_v62 = vpop.f32.mrb[13].mxu1 }
 0xfc3   :  { %14767 = vst [vmem:[#allocation27_spill] sm:$0xff] %v12237_v62  ;;  %v5025_v8 = vmax.f32 %v5023_v21, %v12237_v62  ;;  %v12240_v1 = vpop.f32.mrb[14].mxu1 }
 0xfc4   :  { %v4989_v43 = vmax.f32 %v4987_v45, %v12240_v1  ;;  %v12243_v13 = vpop.f32.mrb[15].mxu1 }
 0xfc5   :  { %14768 = vst [vmem:[#allocation28_spill] sm:$0xff] %v12243_v13  ;;  %v5026_v50 = vmax.f32 %v5024_v41, %v12243_v13 }
 0xfc9   :  { %v12246_v20 = vpop.f32.mrb[16].mxu1 }
 0xfca   :  { %v4990_v19 = vmax.f32 %v4988_v14, %v12246_v20  ;;  %v12249_v32 = vpop.f32.mrb[17].mxu1 }
 0xfcb   :  { %14769 = vst [vmem:[#allocation25_spill] sm:$0xff] %v12249_v32  ;;  %v5027_v40 = vmax.f32 %v5025_v8, %v12249_v32  ;;  %v12252_v49 = vpop.f32.mrb[18].mxu1 }
 0xfcc   :  { %v4991_v4 = vmax.f32 %v4989_v43, %v12252_v49  ;;  %v12255_v27 = vpop.f32.mrb[19].mxu1 }
 0xfcd   :  { %14770 = vst [vmem:[#allocation37_spill] sm:$0xff] %v12255_v27  ;;  %v5028_v39 = vmax.f32 %v5026_v50, %v12255_v27 }
 0xfd1   :  { %v12258_v34 = vpop.f32.mrb[20].mxu1 }
 0xfd2   :  { %v4992_v60 = vmax.f32 %v4990_v19, %v12258_v34  ;;  %v12261_v59 = vpop.f32.mrb[21].mxu1 }
 0xfd3   :  { %14771 = vst [vmem:[#allocation39_spill] sm:$0xff] %v12261_v59  ;;  %v5029_v58 = vmax.f32 %v5027_v40, %v12261_v59  ;;  %v12264_v57 = vpop.f32.mrb[22].mxu1 }
 0xfd4   :  { %v4993_v0 = vmax.f32 %v4991_v4, %v12264_v57  ;;  %v12267_v15 = vpop.f32.mrb[23].mxu1 }
 0xfd5   :  { %14772 = vst [vmem:[#allocation50_spill] sm:$0xff] %v12267_v15  ;;  %v5030_v35 = vmax.f32 %v5028_v39, %v12267_v15 }
 0xfd9   :  { %v12270_v51 = vpop.f32.mrb[24].mxu1 }
 0xfda   :  { %v4994_v12 = vmax.f32 %v4992_v60, %v12270_v51  ;;  %v12273_v2 = vpop.f32.mrb[25].mxu1 }
 0xfdb   :  { %14773 = vst [vmem:[#allocation32_spill] sm:$0xff] %v12273_v2  ;;  %v5031_v33 = vmax.f32 %v5029_v58, %v12273_v2  ;;  %v12276_v21 = vpop.f32.mrb[26].mxu1 }
 0xfdc   :  { %v4995_v45 = vmax.f32 %v4993_v0, %v12276_v21  ;;  %v12279_v41 = vpop.f32.mrb[27].mxu1 }
 0xfdd   :  { %14774 = vst [vmem:[#allocation34_spill] sm:$0xff] %v12279_v41  ;;  %v5032_v14 = vmax.f32 %v5030_v35, %v12279_v41 }
 0xfe1   :  { %v12282_v8 = vpop.f32.mrb[28].mxu1 }
 0xfe2   :  { %v4996_v43 = vmax.f32 %v4994_v12, %v12282_v8  ;;  %v12285_v50 = vpop.f32.mrb[29].mxu1 }
 0xfe3   :  { %14775 = vst [vmem:[#allocation38_spill] sm:$0xff] %v12285_v50  ;;  %v5033_v19 = vmax.f32 %v5031_v33, %v12285_v50  ;;  %v12288_v40 = vpop.f32.mrb[30].mxu1 }
 0xfe4   :  { %v4997_v4 = vmax.f32 %v4995_v45, %v12288_v40  ;;  %v12291_v39 = vpop.f32.mrb[31].mxu1 }
 0xfe5   :  { %14776 = vst [vmem:[#allocation40_spill] sm:$0xff] %v12291_v39  ;;  %v5034_v60 = vmax.f32 %v5032_v14, %v12291_v39 }
 0xfe9   :  { %v12294_v58 = vpop.f32.mrb[32].mxu1 }
 0xfea   :  { %v4998_v0 = vmax.f32 %v4996_v43, %v12294_v58  ;;  %v12297_v35 = vpop.f32.mrb[33].mxu1 }
 0xfeb   :  { %14777 = vst [vmem:[#allocation48_spill] sm:$0xff] %v12297_v35  ;;  %v5035_v12 = vmax.f32 %v5033_v19, %v12297_v35  ;;  %v12300_v11 = vpop.f32.mrb[34].mxu1 }
 0xfec   :  { %v4999_v33 = vmax.f32 %v4997_v4, %v12300_v11  ;;  %v12303_v50 = vpop.f32.mrb[35].mxu1 }
 0xfed   :  { %14778 = vst [vmem:[#allocation51_spill] sm:$0xff] %v12303_v50  ;;  %v5036_v45 = vmax.f32 %v5034_v60, %v12303_v50 }
 0xff1   :  { %v12306_v41 = vpop.f32.mrb[36].mxu1 }
 0xff2   :  { %v5000_v14 = vmax.f32 %v4998_v0, %v12306_v41  ;;  %v12309_v39 = vpop.f32.mrb[37].mxu1 }
 0xff3   :  { %14779 = vst [vmem:[#allocation21_spill] sm:$0xff] %v12309_v39  ;;  %v5037_v43 = vmax.f32 %v5035_v12, %v12309_v39  ;;  %v12312_v2 = vpop.f32.mrb[38].mxu1 }
 0xff4   :  { %v5001_v19 = vmax.f32 %v4999_v33, %v12312_v2  ;;  %v12315_v35 = vpop.f32.mrb[39].mxu1 }
 0xff5   :  { %14780 = vst [vmem:[#allocation52_spill] sm:$0xff] %v12315_v35  ;;  %v5038_v4 = vmax.f32 %v5036_v45, %v12315_v35 }
 0xff9   :  { %v12318_v15 = vpop.f32.mrb[40].mxu1 }
 0xffa   :  { %v5002_v60 = vmax.f32 %v5000_v14, %v12318_v15  ;;  %v12321_v50 = vpop.f32.mrb[41].mxu1 }
 0xffb   :  { %14781 = vst [vmem:[#allocation79_spill] sm:$0xff] %v12321_v50  ;;  %v5039_v0 = vmax.f32 %v5037_v43, %v12321_v50  ;;  %v12324_v59 = vpop.f32.mrb[42].mxu1 }
 0xffc   :  { %v5003_v12 = vmax.f32 %v5001_v19, %v12324_v59  ;;  %v12327_v39 = vpop.f32.mrb[43].mxu1 }
 0xffd   :  { %14782 = vst [vmem:[#allocation80_spill] sm:$0xff] %v12327_v39  ;;  %v5040_v33 = vmax.f32 %v5038_v4, %v12327_v39 }
 0xffe   :  { %v5004_v27 = vmax.f32 %v5002_v60, %v5003_v12 }
 0xfff   :  { %v5041_v32 = vmax.f32 %v5039_v0, %v5040_v33 }
0x1000   :  { %v5005_v13 = vrot.slane %v5004_v27, 4 }
0x1001   :  { %v5042_v45 = vrot.slane %v5041_v32, 4 }
0x1002   :  { %v5006_v35 = vmax.f32 %v5004_v27, %v5005_v13 }
0x1003   :  { %v5043_v62 = vmax.f32 %v5041_v32, %v5042_v45 }
0x1004   :  { %v5007_v46 = vrot.slane %v5006_v35, 2 }
0x1005   :  { %v5044_v14 = vrot.slane %v5043_v62, 2 }
0x1006   :  { %v5008_v36 = vmax.f32 %v5006_v35, %v5007_v46 }
0x1007   :  { %v5045_v17 = vmax.f32 %v5043_v62, %v5044_v14 }
0x1008   :  { %v5009_v53 = vrot.slane %v5008_v36, 1 }
0x1009   :  { %v5046_v43 = vrot.slane %v5045_v17, 1 }
0x100a   :  { %v12330_v50 = vmax.f32 %v5008_v36, %v5009_v53 }
0x100b   :  { %v12332_v7 = vmax.f32 %v5045_v17, %v5046_v43 }
0x100c   :  { %v5048_v19 = vsub.f32 %v12138_v3, %v12330_v50  ;;  %v5050_v4 = vsub.f32 %v12142_v52, %v12330_v50  ;;  %v5052_v13 = vsub.f32 %v12146_v54, %v12330_v50  ;;  %v5054_v32 = vsub.f32 %v12154_v38, %v12330_v50 }
0x100d   :  { %v5056_v46 = vsub.f32 %v12162_v61, %v12330_v50  ;;  %v5058_v53 = vsub.f32 %v12168_v6, %v12330_v50  ;;  %v5060_v17 = vsub.f32 %v12174_v5, %v12330_v50  ;;  %v5062_v3 = vsub.f32 %v12180_v29, %v12330_v50 }
0x100e   :  { %v5064_v52 = vsub.f32 %v12186_v16, %v12330_v50  ;;  %v5066_v54 = vsub.f32 %v12192_v23, %v12330_v50  ;;  %v5068_v38 = vsub.f32 %v12198_v48, %v12330_v50  ;;  %v5070_v61 = vsub.f32 %v12204_v18, %v12330_v50 }
0x100f   :  { %v5072_v6 = vsub.f32 %v12210_v25, %v12330_v50  ;;  %v5074_v5 = vsub.f32 %v12216_v30, %v12330_v50  ;;  %v5076_v29 = vsub.f32 %v12222_v56, %v12330_v50  ;;  %v5078_v16 = vsub.f32 %v12228_v47, %v12330_v50 }
0x1010   :  { %v5080_v23 = vsub.f32 %v12234_v42, %v12330_v50  ;;  %v5082_v48 = vsub.f32 %v12240_v1, %v12330_v50  ;;  %v5084_v18 = vsub.f32 %v12246_v20, %v12330_v50  ;;  %v5086_v25 = vsub.f32 %v12252_v49, %v12330_v50  ;;  %v14802_v42 = vld [vmem:[#allocation79_spill] sm:$0xff] }
0x1011   :  { %v5088_v30 = vsub.f32 %v12258_v34, %v12330_v50  ;;  %v5090_v56 = vsub.f32 %v12264_v57, %v12330_v50  ;;  %v5092_v36 = vsub.f32 %v12270_v51, %v12330_v50  ;;  %v5094_v47 = vsub.f32 %v12276_v21, %v12330_v50 }
0x1012   :  { %v5112_v51 = vmul.f32 1.442695, %v5048_v19  ;;  %v5116_v21 = vmul.f32 1.442695, %v5050_v4  ;;  %v5120_v35 = vmul.f32 1.442695, %v5052_v13 }
0x1013   :  { %v5124_v0 = vmul.f32 1.442695, %v5054_v32  ;;  %v5128_v33 = vmul.f32 1.442695, %v5056_v46  ;;  %v5132_v45 = vmul.f32 1.442695, %v5058_v53 }
0x1014   :  { %7149 = vpow2.f32 %v5112_v51  ;;  %v5136_v14 = vmul.f32 1.442695, %v5060_v17  ;;  %v5140_v43 = vmul.f32 1.442695, %v5062_v3  ;;  %v5144_v34 = vmul.f32 1.442695, %v5064_v52 }
0x1015   :  { %7151 = vpow2.f32 %v5116_v21  ;;  %v5148_v57 = vmul.f32 1.442695, %v5066_v54  ;;  %v5152_v19 = vmul.f32 1.442695, %v5068_v38  ;;  %v5156_v4 = vmul.f32 1.442695, %v5070_v61 }
0x1016   :  { %7153 = vpow2.f32 %v5120_v35  ;;  %v5160_v13 = vmul.f32 1.442695, %v5072_v6  ;;  %v5164_v60 = vmul.f32 1.442695, %v5074_v5  ;;  %v5168_v32 = vmul.f32 1.442695, %v5076_v29 }
0x1017   :  { %7155 = vpow2.f32 %v5124_v0  ;;  %v5172_v27 = vmul.f32 1.442695, %v5078_v16  ;;  %v5176_v12 = vmul.f32 1.442695, %v5080_v23  ;;  %v5180_v51 = vmul.f32 1.442695, %v5082_v48 }
0x1018   :  { %7157 = vpow2.f32 %v5128_v33  ;;  %v5184_v46 = vmul.f32 1.442695, %v5084_v18  ;;  %v5188_v53 = vmul.f32 1.442695, %v5086_v25  ;;  %v5192_v21 = vmul.f32 1.442695, %v5088_v30 }
0x1019   :  { %7159 = vpow2.f32 %v5132_v45  ;;  %v12402_v17 = vmul.f32 1.442695, %v5090_v56  ;;  %v12404_v3 = vmul.f32 1.442695, %v5092_v36  ;;  %v12406_v52 = vmul.f32 1.442695, %v5094_v47 }
0x101a   :  { %7161 = vpow2.f32 %v5136_v14  ;;  %v14783_v30 = vld [vmem:[#allocation9_spill] sm:$0xff]  ;;  %v14785_v35 = vld [vmem:[#allocation22_spill] sm:$0xff]  ;;  %v14789_v25 = vld [vmem:[#allocation28_spill] sm:$0xff] }
0x101b   :  { %7163 = vpow2.f32 %v5140_v43  ;;  %v14786_v45 = vld [vmem:[#allocation14_spill] sm:$0xff]  ;;  %v14787_v43 = vld [vmem:[#allocation12_spill] sm:$0xff]  ;;  %v14790_v18 = vld [vmem:[#allocation25_spill] sm:$0xff] }
0x101c   :  { %7165 = vpow2.f32 %v5144_v34  ;;  %v14784_v34 = vld [vmem:[#allocation44_spill] sm:$0xff]  ;;  %v14791_v14 = vld [vmem:[#allocation37_spill] sm:$0xff]  ;;  %v14792_v16 = vld [vmem:[#allocation39_spill] sm:$0xff] }
0x101d   :  { %7167 = vpow2.f32 %v5148_v57  ;;  %v14793_v29 = vld [vmem:[#allocation50_spill] sm:$0xff]  ;;  %v14794_v0 = vld [vmem:[#allocation32_spill] sm:$0xff] }
0x101e   :  { %v12416_v5 = vpop.eup %7149  ;;  %7169 = vpow2.f32 %v5152_v19  ;;  %v14795_v61 = vld [vmem:[#allocation34_spill] sm:$0xff]  ;;  %v14797_v54 = vld [vmem:[#allocation40_spill] sm:$0xff] }
0x101f   :  { %v12424_v48 = vpop.eup %7151  ;;  %7171 = vpow2.f32 %v5156_v4  ;;  %v14788_v4 = vld [vmem:[#allocation27_spill] sm:$0xff]  ;;  %v14796_v19 = vld [vmem:[#allocation38_spill] sm:$0xff] }
0x1020   :  { %v12432_v36 = vpop.eup %7153  ;;  %7173 = vpow2.f32 %v5160_v13  ;;  %v5240_v47 = vadd.f32 %v12424_v48, %v12416_v5  ;;  %v14801_v13 = vld [vmem:[#allocation52_spill] sm:$0xff] }
0x1021   :  { %v12440_v33 = vpop.eup %7155  ;;  %7175 = vpow2.f32 %v5164_v60  ;;  %v14799_v60 = vld [vmem:[#allocation51_spill] sm:$0xff] }
0x1022   :  { %v12448_v56 = vpop.eup %7157  ;;  %7177 = vpow2.f32 %v5168_v32  ;;  %v5241_v57 = vadd.f32 %v12432_v36, %v5240_v47 }
0x1023   :  { %v12455_v23 = vpop.eup %7159  ;;  %7179 = vpow2.f32 %v5172_v27 }
0x1024   :  { %v12463_v6 = vpop.eup %7161  ;;  %7181 = vpow2.f32 %v5176_v12  ;;  %v5242_v47 = vadd.f32 %v12440_v33, %v5241_v57 }
0x1025   :  { %v12470_v38 = vpop.eup %7163  ;;  %7183 = vpow2.f32 %v5180_v51 }
0x1026   :  { %v12478_v20 = vpop.eup %7165  ;;  %7185 = vpow2.f32 %v5184_v46  ;;  %v5243_v57 = vadd.f32 %v12448_v56, %v5242_v47  ;;  %v14803_v47 = vsub.f32 %v12282_v8, %v12330_v50 }
0x1027   :  { %v12485_v62 = vpop.eup %7167  ;;  %7187 = vpow2.f32 %v5188_v53  ;;  %v14804_v53 = vsub.f32 %v12288_v40, %v12330_v50 }
0x1028   :  { %v12493_v49 = vpop.eup %7169  ;;  %7189 = vpow2.f32 %v5192_v21  ;;  %v5208_v27 = vmul.f32 1.442695, %v14803_v47  ;;  %v5244_v51 = vadd.f32 %v12455_v23, %v5243_v57  ;;  %v14805_v21 = vsub.f32 %v12294_v58, %v12330_v50 }
0x1029   :  { %v12499_v1 = vpop.eup %7171  ;;  %7191 = vpow2.f32 %v12402_v17  ;;  %v5212_v12 = vmul.f32 1.442695, %v14804_v53  ;;  %v14806_v17 = vsub.f32 %v12300_v11, %v12330_v50  ;;  %v14810_v11 = vsub.f32 %v12318_v15, %v12330_v50 }
0x102a   :  { %v12505_v32 = vpop.eup %7173  ;;  %7193 = vpow2.f32 %v12404_v3  ;;  %v5216_v46 = vmul.f32 1.442695, %v14805_v21  ;;  %v5245_v8 = vadd.f32 %v12463_v6, %v5244_v51  ;;  %v14807_v3 = vsub.f32 %v12306_v41, %v12330_v50 }
0x102b   :  { %v12512_v47 = vpop.eup %7175  ;;  %7195 = vpow2.f32 %v12406_v52  ;;  %v5220_v57 = vmul.f32 1.442695, %v14806_v17  ;;  %v14808_v51 = vsub.f32 %v12312_v2, %v12330_v50 }
0x102c   :  { %v12518_v40 = vpop.eup %7177  ;;  %7197 = vpow2.f32 %v5208_v27  ;;  %v5224_v53 = vmul.f32 1.442695, %v14807_v3  ;;  %v5246_v58 = vadd.f32 %v12470_v38, %v5245_v8  ;;  %v5232_v27 = vmul.f32 1.442695, %v14810_v11 }
0x102d   :  { %v12524_v21 = vpop.eup %7179  ;;  %7199 = vpow2.f32 %v5212_v12  ;;  %v5228_v52 = vmul.f32 1.442695, %v14808_v51  ;;  %v14811_v8 = vsub.f32 %v12324_v59, %v12330_v50  ;;  %v14814_v59 = vsub.f32 %v12150_v10, %v12332_v7 }
0x102e   :  { %v12529_v39 = vpop.eup %7181  ;;  %7201 = vpow2.f32 %v5216_v46  ;;  %v5247_v17 = vadd.f32 %v12478_v20, %v5246_v58  ;;  %v14812_v46 = vsub.f32 %v12140_v31, %v12332_v7  ;;  %v14813_v58 = vsub.f32 %v12144_v26, %v12332_v7 }
0x102f   :  { %14809 = vst [vmem:[#allocation81_spill] sm:$0xff] %v12529_v39  ;;  %v12535_v41 = vpop.eup %7183  ;;  %7203 = vpow2.f32 %v5220_v57  ;;  %v5236_v12 = vmul.f32 1.442695, %v14811_v8  ;;  %v5122_v50 = vmul.f32 1.442695, %v14814_v59  ;;  %v14815_v31 = vsub.f32 %v12158_v9, %v12332_v7 }
0x1030   :  { %v12540_v3 = vpop.eup %7185  ;;  %7205 = vpow2.f32 %v5224_v53  ;;  %v5248_v2 = vadd.f32 %v12485_v62, %v5247_v17  ;;  %v5114_v51 = vmul.f32 1.442695, %v14812_v46  ;;  %v5118_v57 = vmul.f32 1.442695, %v14813_v58 }
0x1031   :  { %v12546_v15 = vpop.eup %7187  ;;  %7207 = vpow2.f32 %v5228_v52  ;;  %v5126_v17 = vmul.f32 1.442695, %v14815_v31  ;;  %v14816_v52 = vsub.f32 %v12165_v37, %v12332_v7  ;;  %v14817_v26 = vsub.f32 %v12171_v63, %v12332_v7 }
0x1032   :  { %v12554_v11 = vpop.eup %7189  ;;  %7209 = vpow2.f32 %v5232_v27  ;;  %v5249_v53 = vadd.f32 %v12493_v49, %v5248_v2  ;;  %v14818_v27 = vsub.f32 %v12177_v44, %v12332_v7  ;;  %v14819_v2 = vsub.f32 %v12183_v28, %v12332_v7 }
0x1033   :  { %v5130_v8 = vmul.f32 1.442695, %v14816_v52  ;;  %v12563_v46 = vpop.eup %7191  ;;  %7211 = vpow2.f32 %v5236_v12  ;;  %v5134_v10 = vmul.f32 1.442695, %v14817_v26  ;;  %v14820_v12 = vsub.f32 %v12189_v24, %v12332_v7 }
0x1034   :  { %v5138_v58 = vmul.f32 1.442695, %v14818_v27  ;;  %v5142_v9 = vmul.f32 1.442695, %v14819_v2  ;;  %v12574_v59 = vpop.eup %7193  ;;  %v5250_v37 = vadd.f32 %v12499_v1, %v5249_v53  ;;  %7213 = vpow2.f32 %v5114_v51 }
0x1035   :  { %v5146_v31 = vmul.f32 1.442695, %v14820_v12  ;;  %v14821_v63 = vsub.f32 %v12195_v22, %v12332_v7  ;;  %v12583_v26 = vpop.eup %7195  ;;  %7215 = vpow2.f32 %v5118_v57 }
0x1036   :  { %v12591_v53 = vpop.eup %7197  ;;  %v5251_v24 = vadd.f32 %v12505_v32, %v5250_v37  ;;  %7217 = vpow2.f32 %v5122_v50 }
0x1037   :  { %v5150_v52 = vmul.f32 1.442695, %v14821_v63  ;;  %v12598_v27 = vpop.eup %7199  ;;  %7219 = vpow2.f32 %v5126_v17  ;;  %v14822_v17 = vsub.f32 %v12201_v55, %v12332_v7  ;;  %v14823_v63 = vsub.f32 %v14783_v30, %v12332_v7 }
0x1038   :  { %v12606_v37 = vpop.eup %7201  ;;  %v5252_v50 = vadd.f32 %v12512_v47, %v5251_v24  ;;  %7221 = vpow2.f32 %v5130_v8 }
0x1039   :  { %v12613_v22 = vpop.eup %7203  ;;  %7223 = vpow2.f32 %v5134_v10  ;;  %v5154_v57 = vmul.f32 1.442695, %v14822_v17  ;;  %v5158_v12 = vmul.f32 1.442695, %v14823_v63 }
0x103a   :  { %v12621_v24 = vpop.eup %7205  ;;  %v5253_v8 = vadd.f32 %v12518_v40, %v5252_v50  ;;  %7225 = vpow2.f32 %v5138_v58  ;;  %v14824_v58 = vsub.f32 %v14784_v34, %v12332_v7  ;;  %v14829_v34 = vsub.f32 %v14789_v25, %v12332_v7 }
0x103b   :  { %v12629_v51 = vpop.eup %7207  ;;  %7227 = vpow2.f32 %v5142_v9  ;;  %v14825_v9 = vsub.f32 %v14785_v35, %v12332_v7  ;;  %v14828_v35 = vsub.f32 %v14788_v4, %v12332_v7  ;;  %v14832_v25 = vsub.f32 %v14792_v16, %v12332_v7 }
0x103c   :  { %v12634_v2 = vpop.eup %7209  ;;  %v5254_v28 = vadd.f32 %v12524_v21, %v5253_v8  ;;  %7229 = vpow2.f32 %v5146_v31  ;;  %v5162_v55 = vmul.f32 1.442695, %v14824_v58  ;;  %v14826_v31 = vsub.f32 %v14786_v45, %v12332_v7 }
0x103d   :  { %v12642_v17 = vpop.eup %7211  ;;  %7231 = vpow2.f32 %v5150_v52  ;;  %v5166_v30 = vmul.f32 1.442695, %v14825_v9  ;;  %v14827_v52 = vsub.f32 %v14787_v43, %v12332_v7  ;;  %v5178_v9 = vmul.f32 1.442695, %v14828_v35 }
0x103e   :  { %v7214_v63 = vpop.eup %7213  ;;  %v5255_v10 = vadd.f32 %v12529_v39, %v5254_v28  ;;  %7233 = vpow2.f32 %v5154_v57  ;;  %v5170_v8 = vmul.f32 1.442695, %v14826_v31  ;;  %v14830_v43 = vsub.f32 %v14790_v18, %v12332_v7 }
0x103f   :  { %v7216_v58 = vpop.eup %7215  ;;  %7235 = vpow2.f32 %v5158_v12  ;;  %v5174_v50 = vmul.f32 1.442695, %v14827_v52  ;;  %v5182_v12 = vmul.f32 1.442695, %v14829_v34  ;;  %v5194_v34 = vmul.f32 1.442695, %v14832_v25 }
0x1040   :  { %v7218_v44 = vpop.eup %7217  ;;  %v5256_v28 = vadd.f32 %v12535_v41, %v5255_v10  ;;  %7237 = vpow2.f32 %v5162_v55  ;;  %v5277_v57 = vadd.f32 %v7216_v58, %v7214_v63  ;;  %v5317_v45 = vpack.c.bf16 %v7216_v58, %v7214_v63 }
0x1041   :  { %v7220_v31 = vpop.eup %7219  ;;  %7239 = vpow2.f32 %v5166_v30  ;;  %v5186_v52 = vmul.f32 1.442695, %v14830_v43  ;;  %v14831_v30 = vsub.f32 %v14791_v14, %v12332_v7  ;;  %v14833_v18 = vpack.c.bf16 %v12424_v48, %v12416_v5 }
0x1042   :  { %v7222_v39 = vpop.eup %7221  ;;  %v5257_v4 = vadd.f32 %v12540_v3, %v5256_v28  ;;  %7241 = vpow2.f32 %v5170_v8  ;;  %v5278_v35 = vadd.f32 %v7218_v44, %v5277_v57  ;;  %5348 = vmatprep.subr.bf16.mxu0 %v5317_v45  ;;  %v5319_v10 = vpack.c.bf16 %v7220_v31, %v7218_v44 }
0x1043   :  { %v7224_v55 = vpop.eup %7223  ;;  %7243 = vpow2.f32 %v5174_v50  ;;  %v5190_v63 = vmul.f32 1.442695, %v14831_v30  ;;  %5349 = vmatpush1.bf16.msra.mxu0 %v14833_v18  ;;  %v14834_v14 = vsub.f32 %v14793_v29, %v12332_v7  ;;  %v14835_v16 = vsub.f32 %v14794_v0, %v12332_v7  ;;  %v14840_v18 = vld [vmem:[#allocation48_spill] sm:$0xff] }
0x1044   :  { %v7226_v58 = vpop.eup %7225  ;;  %v5258_v8 = vadd.f32 %v12546_v15, %v5257_v4  ;;  %7245 = vpow2.f32 %v5178_v9  ;;  %v5279_v28 = vadd.f32 %v7220_v31, %v5278_v35  ;;  %5350 = vmatprep.subr.bf16.mxu0 %v5319_v10  ;;  %v5321_v44 = vpack.c.bf16 %v7224_v55, %v7222_v39 }
0x1045   :  { %v7228_v50 = vpop.eup %7227  ;;  %7247 = vpow2.f32 %v5182_v12  ;;  %v5198_v57 = vmul.f32 1.442695, %v14834_v14  ;;  %v5202_v45 = vmul.f32 1.442695, %v14835_v16  ;;  %v14836_v31 = vsub.f32 %v14795_v61, %v12332_v7 }
0x1046   :  { %v7230_v43 = vpop.eup %7229  ;;  %v5259_v5 = vadd.f32 %v12554_v11, %v5258_v8  ;;  %7249 = vpow2.f32 %v5186_v52  ;;  %v5280_v48 = vadd.f32 %v7222_v39, %v5279_v28  ;;  %v5323_v4 = vpack.c.bf16 %v7228_v50, %v7226_v58 }
0x1047   :  { %v7232_v9 = vpop.eup %7231  ;;  %7251 = vpow2.f32 %v5190_v63  ;;  %v5206_v12 = vmul.f32 1.442695, %v14836_v31  ;;  %v14837_v29 = vsub.f32 %v14796_v19, %v12332_v7  ;;  %v14838_v0 = vpack.c.bf16 %v12440_v33, %v12432_v36 }
0x1048   :  { %v7234_v10 = vpop.eup %7233  ;;  %v5260_v30 = vadd.f32 %v12563_v46, %v5259_v5  ;;  %7253 = vpow2.f32 %v5194_v34  ;;  %v5281_v39 = vadd.f32 %v7224_v55, %v5280_v48  ;;  %v5325_v52 = vpack.c.bf16 %v7232_v9, %v7230_v43 }
0x1049   :  { %v5210_v35 = vmul.f32 1.442695, %v14837_v29  ;;  %5351 = vmatpush1.bf16.msra.mxu0 %v14838_v0  ;;  %v7236_v63 = vpop.eup %7235  ;;  %7255 = vpow2.f32 %v5198_v57  ;;  %v14839_v61 = vsub.f32 %v14797_v54, %v12332_v7  ;;  %v14841_v19 = vsub.f32 %v14840_v18, %v12332_v7  ;;  %v14843_v57 = vld [vmem:[#allocation21_spill] sm:$0xff] }
0x104a   :  { %5352 = vmatprep.subr.bf16.mxu0 %v5321_v44  ;;  %v7238_v28 = vpop.eup %7237  ;;  %v5261_v36 = vadd.f32 %v12574_v59, %v5260_v30  ;;  %7257 = vpow2.f32 %v5202_v45  ;;  %v5282_v33 = vadd.f32 %v7226_v58, %v5281_v39  ;;  %v5327_v14 = vpack.c.bf16 %v7236_v63, %v7234_v10 }
0x104b   :  { %v5214_v25 = vmul.f32 1.442695, %v14839_v61  ;;  %v5218_v8 = vmul.f32 1.442695, %v14841_v19  ;;  %v7240_v34 = vpop.eup %7239  ;;  %7259 = vpow2.f32 %v5206_v12  ;;  %v14842_v55 = vsub.f32 %v14799_v60, %v12332_v7 }
0x104c   :  { %v14844_v54 = vsub.f32 %v14843_v57, %v12332_v7  ;;  %v14845_v5 = vpack.c.bf16 %v12455_v23, %v12448_v56  ;;  %v7242_v48 = vpop.eup %7241  ;;  %v5262_v31 = vadd.f32 %v12583_v26, %v5261_v36  ;;  %7261 = vpow2.f32 %v5210_v35 }
0x104d   :  { %v5222_v44 = vmul.f32 1.442695, %v14842_v55  ;;  %v5283_v58 = vadd.f32 %v7228_v50, %v5282_v33  ;;  %v5329_v45 = vpack.c.bf16 %v7240_v34, %v7238_v28  ;;  %v7244_v12 = vpop.eup %7243  ;;  %7263 = vpow2.f32 %v5214_v25  ;;  %v14848_v50 = vld [vmem:[#allocation80_spill] sm:$0xff] }
0x104e   :  { %v5226_v16 = vmul.f32 1.442695, %v14844_v54  ;;  %5353 = vmatpush1.bf16.msra.mxu0 %v14845_v5  ;;  %v14846_v60 = vsub.f32 %v14801_v13, %v12332_v7  ;;  %v14847_v0 = vsub.f32 %v14802_v42, %v12332_v7  ;;  %v7246_v39 = vpop.eup %7245  ;;  %v5263_v23 = vadd.f32 %v12591_v53, %v5262_v31 }
0x104f   :  { %5354 = vmatprep.subr.bf16.mxu0 %v5323_v4  ;;  %7265 = vpow2.f32 %v5218_v8  ;;  %v5284_v56 = vadd.f32 %v7230_v43, %v5283_v58  ;;  %v5331_v61 = vpack.c.bf16 %v7244_v12, %v7242_v48  ;;  %v7248_v35 = vpop.eup %7247  ;;  %v14849_v4 = vsub.f32 %v14848_v50, %v12332_v7 }
0x1050   :  { %v5230_v29 = vmul.f32 1.442695, %v14846_v60  ;;  %v5234_v30 = vmul.f32 1.442695, %v14847_v0  ;;  %7267 = vpow2.f32 %v5222_v44  ;;  %v14850_v13 = vpack.c.bf16 %v12470_v38, %v12463_v6  ;;  %v7250_v18 = vpop.eup %7249 }
0x1051   :  { %v5238_v25 = vmul.f32 1.442695, %v14849_v4  ;;  %v5264_v42 = vadd.f32 %v12598_v27, %v5263_v23  ;;  %7269 = vpow2.f32 %v5226_v16  ;;  %v5285_v19 = vadd.f32 %v7232_v9, %v5284_v56  ;;  %v7252_v8 = vpop.eup %7251 }
0x1052   :  { %5355 = vmatpush1.bf16.msra.mxu0 %v14850_v13  ;;  %v5333_v36 = vpack.c.bf16 %v7248_v35, %v7246_v39  ;;  %7271 = vpow2.f32 %v5230_v29  ;;  %v7254_v43 = vpop.eup %7253  ;;  %v5335_v7 = vpack.c.bf16 %v7252_v8, %v7250_v18  ;;  %v14851_v38 = vpack.c.bf16 %v12485_v62, %v12478_v20 }
0x1053   :  { %5356 = vmatprep.subr.bf16.mxu0 %v5325_v52  ;;  %v5265_v33 = vadd.f32 %v12606_v37, %v5264_v42  ;;  %7273 = vpow2.f32 %v5234_v30  ;;  %v5286_v55 = vadd.f32 %v7234_v10, %v5285_v19  ;;  %v7256_v44 = vpop.eup %7255  ;;  %v14852_v60 = vpack.c.bf16 %v12499_v1, %v12493_v49 }
0x1054   :  { %7275 = vpow2.f32 %v5238_v25  ;;  %v7258_v6 = vpop.eup %7257  ;;  %v5337_v52 = vpack.c.bf16 %v7256_v44, %v7254_v43  ;;  %v14854_v42 = vpack.c.bf16 %v12524_v21, %v12518_v40  ;;  %v14858_v40 = vpack.c.bf16 %v12563_v46, %v12554_v11 }
0x1055   :  { %v5266_v57 = vadd.f32 %v12613_v22, %v5265_v33  ;;  %v5287_v9 = vadd.f32 %v7236_v63, %v5286_v55  ;;  %v7260_v54 = vpop.eup %7259  ;;  %v14861_v11 = vpack.c.bf16 %v12613_v22, %v12606_v37 }
0x1056   :  { %5357 = vmatpush1.bf16.msra.mxu0 %v14851_v38  ;;  %v7262_v16 = vpop.eup %7261  ;;  %v5339_v58 = vpack.c.bf16 %v7260_v54, %v7258_v6 }
0x1057   :  { %5358 = vmatprep.subr.bf16.mxu0 %v5327_v14  ;;  %v5267_v5 = vadd.f32 %v12621_v24, %v5266_v57  ;;  %v5288_v31 = vadd.f32 %v7238_v28, %v5287_v9  ;;  %v7264_v10 = vpop.eup %7263  ;;  %v14853_v28 = vpack.c.bf16 %v12512_v47, %v12505_v32  ;;  %v14855_v32 = vld [vmem:[#allocation81_spill] sm:$0xff] }
0x1058   :  { %v5341_v0 = vpack.c.bf16 %v7264_v10, %v7262_v16  ;;  %v14856_v47 = vpack.c.bf16 %v12535_v41, %v14855_v32  ;;  %v14859_v41 = vpack.c.bf16 %v12583_v26, %v12574_v59  ;;  %v14864_v26 = vld [vmem:[#allocation23_spill] sm:$0xff] }
0x1059   :  { %v7266_v29 = vpop.eup %7265  ;;  %v5268_v62 = vadd.f32 %v12629_v51, %v5267_v5  ;;  %v5289_v20 = vadd.f32 %v7240_v34, %v5288_v31  ;;  %v14871_v5 = vld [vmem:[#allocation54_spill] sm:$0xff]  ;;  %v14874_v31 = vld [vmem:[#allocation63_spill] sm:$0xff] }
0x105a   :  { %5359 = vmatpush1.bf16.msra.mxu0 %v14852_v60  ;;  %v7268_v63 = vpop.eup %7267  ;;  %v14877_v60 = vld [vmem:[#allocation61_spill] sm:$0xff] }
0x105b   :  { %5360 = vmatprep.subr.bf16.mxu0 %v5329_v45  ;;  %v7270_v14 = vpop.eup %7269  ;;  %v5269_v30 = vadd.f32 %v12634_v2, %v5268_v62  ;;  %v5290_v23 = vadd.f32 %v7242_v48, %v5289_v20  ;;  %v5343_v56 = vpack.c.bf16 %v7268_v63, %v7266_v29  ;;  %v14879_v62 = vld [vmem:[#allocation30_spill] sm:$0xff] }
0x105c   :  { %v7272_v50 = vpop.eup %7271  ;;  %v14880_v20 = vld [vmem:[#allocation6_spill] sm:$0xff] }
0x105d   :  { %v7274_v4 = vpop.eup %7273  ;;  %v12740_v1 = vadd.f32 %v12642_v17, %v5269_v30  ;;  %v5291_v49 = vadd.f32 %v7244_v12, %v5290_v23  ;;  %v5345_v34 = vpack.c.bf16 %v7272_v50, %v7270_v14  ;;  %v14857_v12 = vpack.c.bf16 %v12546_v15, %v12540_v3  ;;  %v14884_v30 = vld [vmem:[#allocation73_spill] sm:$0xff]  ;;  %v14885_v23 = vld [vmem:[#allocation60_spill] sm:$0xff] }
0x105e   :  { %5361 = vmatpush1.bf16.msra.mxu0 %v14853_v28  ;;  %v7276_v45 = vpop.eup %7275  ;;  %v14860_v3 = vpack.c.bf16 %v12598_v27, %v12591_v53  ;;  %v14865_v53 = vpack.c.bf16 %v12629_v51, %v12621_v24  ;;  %v14866_v27 = vld [vmem:[#allocation57_spill] sm:$0xff]  ;;  %v14869_v51 = vmov 0  }
0x105f   :  { %5362 = vmatprep.subr.bf16.mxu0 %v5331_v61  ;;  %v5292_v25 = vadd.f32 %v7246_v39, %v5291_v49  ;;  %v5347_v13 = vpack.c.bf16 %v7276_v45, %v7274_v4  ;;  %v14870_v24 = vld [vmem:[#allocation49_spill] sm:$0xff]  ;;  %v5271_v49 = vrot.slane %v12740_v1, 4 }
0x1061   :  { %v5293_v48 = vadd.f32 %v7248_v35, %v5292_v25 }
0x1062   :  { %5363 = vmatpush1.bf16.msra.mxu0 %v14854_v42 }
0x1063   :  { %5364 = vmatprep.subr.bf16.mxu0 %v5333_v36  ;;  %v5294_v19 = vadd.f32 %v7250_v18, %v5293_v48 }
0x1065   :  { %v5295_v33 = vadd.f32 %v7252_v8, %v5294_v19 }
0x1066   :  { %5365 = vmatpush1.bf16.msra.mxu0 %v14856_v47 }
0x1067   :  { %5366 = vmatprep.subr.bf16.mxu0 %v5335_v7  ;;  %v5296_v55 = vadd.f32 %v7254_v43, %v5295_v33  ;;  %v14862_v43 = vld [vmem:[#allocation35_spill] sm:$0xff] }
0x1068   :  { %v14863_v7 = vld [vmem:[#allocation19_spill] sm:$0xff] }
0x1069   :  { %v5297_v39 = vadd.f32 %v7256_v44, %v5296_v55  ;;  %v3271_v59 = vadd.f32 %v14863_v7, %v14862_v43  ;;  %v3273_v44 = vadd.f32 %v14864_v26, %v14862_v43 }
0x106a   :  { %5367 = vmatpush1.bf16.msra.mxu0 %v14857_v12 }
0x106b   :  { %5368 = vmatprep.subr.bf16.mxu0 %v5337_v52  ;;  %v5298_v61 = vadd.f32 %v7258_v6, %v5297_v39  ;;  %v14867_v6 = vld [vmem:[#allocation20_spill] sm:$0xff]  ;;  %v5391_v22 = vpack.c.bf16 %v3271_v59, %v3271_v59  ;;  %v5392_v37 = vpack.c.bf16 %v3273_v44, %v3273_v44  ;;  %v14868_v52 = vpack.c.bf16 %v12642_v17, %v12634_v2  ;;  %v14872_v2 = vld [vmem:[#allocation71_spill] sm:$0xff]  ;;  %v14873_v17 = vld [vmem:[#allocation65_spill] sm:$0xff] }
0x106c   :  { %v3267_v57 = vadd.f32 %v14867_v6, %v14866_v27 }
0x106d   :  { %v5299_v21 = vadd.f32 %v7260_v54, %v5298_v61 }
0x106e   :  { %5369 = vmatpush1.bf16.msra.mxu0 %v14858_v40  ;;  %v4693_v54 = vpack.c.bf16 %v3267_v57, %v3267_v57 }
0x106f   :  { %5370 = vmatprep.subr.bf16.mxu0 %v5339_v58  ;;  %v5300_v35 = vadd.f32 %v7262_v16, %v5299_v21  ;;  %v5478_v16 = vsel %vm355_vm1, %v5391_v22, 0  ;;  %v14875_v58 = vld [vmem:[#allocation66_spill] sm:$0xff] }
0x1071   :  { %v5301_v18 = vadd.f32 %v7264_v10, %v5300_v35  ;;  %v14876_v10 = vld [vmem:[#allocation62_spill] sm:$0xff] }
0x1072   :  { %5371 = vmatpush1.bf16.msra.mxu0 %v14859_v41 }
0x1073   :  { %5372 = vmatprep.subr.bf16.mxu0 %v5341_v0  ;;  %v5302_v36 = vadd.f32 %v7266_v29, %v5301_v18  ;;  %v14878_v29 = vld [vmem:[#allocation58_spill] sm:$0xff]  ;;  %v14881_v0 = vld [vmem:[#allocation24_spill] sm:$0xff] }
0x1075   :  { %v5303_v15 = vadd.f32 %v7268_v63, %v5302_v36  ;;  %v14882_v63 = vld [vmem:[#allocation42_spill] sm:$0xff] }
0x1076   :  { %5373 = vmatpush1.bf16.msra.mxu0 %v14860_v3 }
0x1077   :  { %5374 = vmatprep.subr.bf16.mxu0 %v5343_v56  ;;  %v5304_v8 = vadd.f32 %v7270_v14, %v5303_v15  ;;  %v14883_v14 = vld [vmem:[#allocation72_spill] sm:$0xff]  ;;  %v14886_v56 = vld [vmem:[#allocation17_spill] sm:$0xff] }
0x1079   :  { %v5305_v46 = vadd.f32 %v7272_v50, %v5304_v8  ;;  %v3283_v50 = vadd.f32 %v14886_v56, %v14885_v23 }
0x107a   :  { %5375 = vmatpush1.bf16.msra.mxu0 %v14861_v11 }
0x107b   :  { %5376 = vmatprep.subr.bf16.mxu0 %v5345_v34  ;;  %v5306_v38 = vadd.f32 %v7274_v4, %v5305_v46  ;;  %v5396_v28 = vpack.c.bf16 %v3283_v50, %v3283_v50  ;;  %v14887_v4 = vld [vmem:[#allocation74_spill] sm:$0xff] }
0x107d   :  { %v5307_v9 = vadd.f32 %v7276_v45, %v5306_v38  ;;  %v5272_v45 = vadd.f32 %v5271_v49, %v12740_v1 }
0x107e   :  { %5377 = vmatpush1.bf16.msra.mxu0 %v14865_v53 }
0x107f   :  { %5378 = vmatprep.subr.bf16.mxu0 %v5347_v13  ;;  %v5308_v34 = vrot.slane %v5307_v9, 4  ;;  %v5273_v13 = vrot.slane %v5272_v45, 2 }
0x1081   :  { %v5309_v25 = vadd.f32 %v5308_v34, %v5307_v9  ;;  %v5274_v48 = vadd.f32 %v5273_v13, %v5272_v45 }
0x1082   :  { %5379 = vmatpush1.bf16.msra.mxu0 %v14868_v52 }
0x1083   :  { %6324 = vmatprep.subr.msk.bf16.mxu0 %vm355_vm1, %v5392_v37  ;;  %v5310_v42 = vrot.slane %v5309_v25, 2  ;;  %v5275_v32 = vrot.slane %v5274_v48, 1 }
0x1085   :  { %5381 = vmatmul.mubr.bf16.vlgmr.msra.gmra.mrb[228].mxu0 %v4693_v54  ;;  %v5311_v19 = vadd.f32 %v5310_v42, %v5309_v25  ;;  %v5276_v33 = vadd.f32 %v5275_v32, %v5274_v48 }
0x1086   :  { %5484 = vmatpush1.bf16.msra.mxu0 %v5478_v16  ;;  %5515 = vmatprep.mubr.bf16.mxu0 %v14869_v51 }
0x1087   :  { %v5312_v47 = vrot.slane %v5311_v19, 1  ;;  %7277 = vrcp.f32 %v5276_v33 }
0x1089   :  { %v5313_v55 = vadd.f32 %v5312_v47, %v5311_v19 }
0x108b   :  { %7279 = vrcp.f32 %v5313_v55 }
0x108d   :  { %6325 = vmatmul.mubr.msk.bf16.vlgmr.msra.gmra.mrb[232].mxu0 %vm306_vm2, %v14870_v24 }
0x108e   :  { %5525 = vmatprep.mubr.bf16.mxu0 %v14869_v51 }
0x1091   :  { %v7278_v12 = vpop.eup %7277 }
0x1095   :  { %6326 = vmatmul.mubr.msk.bf16.gmra.mrb[236].mxu0 %vm306_vm2, %v14871_v5  ;;  %v7280_v61 = vpop.eup %7279 }
0x1096   :  { %5535 = vmatprep.mubr.bf16.mxu0 %v14869_v51 }
0x109d   :  { %6327 = vmatmul.mubr.msk.bf16.gmra.mrb[240].mxu0 %vm306_vm2, %v14872_v2 }
0x109e   :  { %5545 = vmatprep.mubr.bf16.mxu0 %v14869_v51 }
0x10a5   :  { %6328 = vmatmul.mubr.msk.bf16.gmra.mrb[244].mxu0 %vm306_vm2, %v14873_v17 }
0x10a6   :  { %5555 = vmatprep.mubr.bf16.mxu0 %v14869_v51 }
0x10ad   :  { %6329 = vmatmul.mubr.msk.bf16.gmra.mrb[248].mxu0 %vm306_vm2, %v14874_v31 }
0x10ae   :  { %5565 = vmatprep.mubr.bf16.mxu0 %v14869_v51 }
0x10b5   :  { %6330 = vmatmul.mubr.msk.bf16.gmra.mrb[252].mxu0 %vm306_vm2, %v14875_v58 }
0x10b6   :  { %5575 = vmatprep.mubr.bf16.mxu0 %v14869_v51 }
0x10bd   :  { %6331 = vmatmul.mubr.msk.bf16.gmra.mrb[0].mxu0 %vm306_vm2, %v14876_v10 }
0x10be   :  { %5585 = vmatprep.mubr.bf16.mxu0 %v14869_v51 }
0x10c5   :  { %6332 = vmatmul.mubr.msk.bf16.gmra.mrb[4].mxu0 %vm306_vm2, %v14877_v60 }
0x10c6   :  { %5595 = vmatprep.mubr.bf16.mxu0 %v14869_v51 }
0x10cd   :  { %6333 = vmatmul.mubr.msk.bf16.gmra.mrb[8].mxu0 %vm306_vm2, %v14878_v29 }
0x10ce   :  { %5605 = vmatprep.mubr.bf16.mxu0 %v14869_v51 }
0x10d5   :  { %6334 = vmatmul.mubr.msk.bf16.gmra.mrb[12].mxu0 %vm306_vm2, %v14879_v62 }
0x10d6   :  { %5615 = vmatprep.mubr.bf16.mxu0 %v14869_v51 }
0x10dd   :  { %6335 = vmatmul.mubr.msk.bf16.gmra.mrb[16].mxu0 %vm306_vm2, %v14880_v20 }
0x10de   :  { %5625 = vmatprep.mubr.bf16.mxu0 %v14869_v51 }
0x10e5   :  { %6336 = vmatmul.mubr.msk.bf16.gmra.mrb[20].mxu0 %vm306_vm2, %v14881_v0 }
0x10e6   :  { %5635 = vmatprep.mubr.bf16.mxu0 %v14869_v51 }
0x10ed   :  { %6337 = vmatmul.mubr.msk.bf16.gmra.mrb[24].mxu0 %vm306_vm2, %v14882_v63 }
0x10ee   :  { %5645 = vmatprep.mubr.bf16.mxu0 %v14869_v51 }
0x10f5   :  { %6338 = vmatmul.mubr.msk.bf16.gmra.mrb[28].mxu0 %vm306_vm2, %v14883_v14 }
0x10f6   :  { %5655 = vmatprep.mubr.bf16.mxu0 %v14869_v51 }
0x10fd   :  { %6339 = vmatmul.mubr.msk.bf16.gmra.mrb[32].mxu0 %vm306_vm2, %v14884_v30 }
0x10fe   :  { %5665 = vmatprep.mubr.bf16.mxu0 %v14869_v51 }
0x1105   :  { %6340 = vmatmul.mubr.msk.bf16.gmra.mrb[36].mxu0 %vm306_vm2, %v14887_v4 }
0x1106   :  { %6082 = vmatprep.mubr.bf16.mxu0 %v5396_v28 }
0x1158   :  { %v5382_v39 = vpop.f32.mrb[228].mxu0 }
0x1159   :  { %v12829_v40 = vmul.f32 %v7278_v12, %v5382_v39  ;;  %v5384_v21 = vpop.f32.mrb[229].mxu0 }
0x115a   :  { %v12831_v35 = vmul.f32 %v7280_v61, %v5384_v21  ;;  %v5386_v1 = vpop.f32.mrb[230].mxu0 }
0x115b   :  { %14888 = vst [vmem:[#allocation82_spill] sm:$0xff] %v12829_v40  ;;  %v5387_v41 = vpop.f32.mrb[231].mxu0 }
0x115c   :  { %14889 = vst [vmem:[#allocation83_spill] sm:$0xff] %v12831_v35 }
0x1160   :  { %v12833_v18 = vpop.f32.mrb[232].mxu0 }
0x1161   :  { %v12835_v36 = vpop.f32.mrb[233].mxu0 }
0x1162   :  { %v12837_v3 = vpop.f32.mrb[234].mxu0 }
0x1163   :  { %v12839_v15 = vpop.f32.mrb[235].mxu0 }
0x1168   :  { %v12841_v8 = vpop.f32.mrb[236].mxu0 }
0x1169   :  { %v5676_v11 = vmax.f32 %v12833_v18, %v12841_v8  ;;  %v12845_v46 = vpop.f32.mrb[237].mxu0 }
0x116a   :  { %v5713_v43 = vmax.f32 %v12835_v36, %v12845_v46  ;;  %v12849_v7 = vpop.f32.mrb[238].mxu0 }
0x116b   :  { %v5677_v59 = vmax.f32 %v12837_v3, %v12849_v7  ;;  %v12853_v26 = vpop.f32.mrb[239].mxu0 }
0x116c   :  { %v5714_v44 = vmax.f32 %v12839_v15, %v12853_v26 }
0x1170   :  { %v12857_v38 = vpop.f32.mrb[240].mxu0 }
0x1171   :  { %v5678_v53 = vmax.f32 %v5676_v11, %v12857_v38  ;;  %v12860_v27 = vpop.f32.mrb[241].mxu0 }
0x1172   :  { %v5715_v6 = vmax.f32 %v5713_v43, %v12860_v27  ;;  %v12863_v57 = vpop.f32.mrb[242].mxu0 }
0x1173   :  { %v5679_v9 = vmax.f32 %v5677_v59, %v12863_v57  ;;  %v12866_v22 = vpop.f32.mrb[243].mxu0 }
0x1174   :  { %v5716_v37 = vmax.f32 %v5714_v44, %v12866_v22 }
0x1178   :  { %v12869_v52 = vpop.f32.mrb[244].mxu0 }
0x1179   :  { %v5680_v54 = vmax.f32 %v5678_v53, %v12869_v52  ;;  %v12872_v16 = vpop.f32.mrb[245].mxu0 }
0x117a   :  { %v5717_v24 = vmax.f32 %v5715_v6, %v12872_v16  ;;  %v12875_v5 = vpop.f32.mrb[246].mxu0 }
0x117b   :  { %v5681_v2 = vmax.f32 %v5679_v9, %v12875_v5  ;;  %v12878_v17 = vpop.f32.mrb[247].mxu0 }
0x117c   :  { %v5718_v31 = vmax.f32 %v5716_v37, %v12878_v17 }
0x1180   :  { %v12881_v58 = vpop.f32.mrb[248].mxu0 }
0x1181   :  { %v5682_v10 = vmax.f32 %v5680_v54, %v12881_v58  ;;  %v12884_v60 = vpop.f32.mrb[249].mxu0 }
0x1182   :  { %v5719_v29 = vmax.f32 %v5717_v24, %v12884_v60  ;;  %v12887_v62 = vpop.f32.mrb[250].mxu0 }
0x1183   :  { %v5683_v20 = vmax.f32 %v5681_v2, %v12887_v62  ;;  %v12890_v0 = vpop.f32.mrb[251].mxu0 }
0x1184   :  { %v5720_v63 = vmax.f32 %v5718_v31, %v12890_v0 }
0x1188   :  { %v12893_v14 = vpop.f32.mrb[252].mxu0 }
0x1189   :  { %v5684_v30 = vmax.f32 %v5682_v10, %v12893_v14  ;;  %v12896_v56 = vpop.f32.mrb[253].mxu0 }
0x118a   :  { %v5721_v50 = vmax.f32 %v5719_v29, %v12896_v56  ;;  %v12899_v28 = vpop.f32.mrb[254].mxu0 }
0x118b   :  { %v5685_v4 = vmax.f32 %v5683_v20, %v12899_v28  ;;  %v12902_v49 = vpop.f32.mrb[255].mxu0 }
0x118c   :  { %14890 = vst [vmem:[#allocation84_spill] sm:$0xff] %v12902_v49  ;;  %v5722_v34 = vmax.f32 %v5720_v63, %v12902_v49 }
0x1190   :  { %v12905_v45 = vpop.f32.mrb[0].mxu0 }
0x1191   :  { %v5686_v25 = vmax.f32 %v5684_v30, %v12905_v45  ;;  %v12908_v13 = vpop.f32.mrb[1].mxu0 }
0x1192   :  { %14891 = vst [vmem:[#allocation85_spill] sm:$0xff] %v12908_v13  ;;  %v5723_v42 = vmax.f32 %v5721_v50, %v12908_v13  ;;  %v12911_v48 = vpop.f32.mrb[2].mxu0 }
0x1193   :  { %v5687_v19 = vmax.f32 %v5685_v4, %v12911_v48  ;;  %v12914_v32 = vpop.f32.mrb[3].mxu0 }
0x1194   :  { %14892 = vst [vmem:[#allocation86_spill] sm:$0xff] %v12914_v32  ;;  %v5724_v47 = vmax.f32 %v5722_v34, %v12914_v32 }
0x1198   :  { %v12917_v33 = vpop.f32.mrb[4].mxu0 }
0x1199   :  { %v5688_v55 = vmax.f32 %v5686_v25, %v12917_v33  ;;  %v12920_v12 = vpop.f32.mrb[5].mxu0 }
0x119a   :  { %14893 = vst [vmem:[#allocation87_spill] sm:$0xff] %v12920_v12  ;;  %v5725_v39 = vmax.f32 %v5723_v42, %v12920_v12  ;;  %v12923_v61 = vpop.f32.mrb[6].mxu0 }
0x119b   :  { %v5689_v21 = vmax.f32 %v5687_v19, %v12923_v61  ;;  %v12926_v1 = vpop.f32.mrb[7].mxu0 }
0x119c   :  { %14894 = vst [vmem:[#allocation88_spill] sm:$0xff] %v12926_v1  ;;  %v5726_v41 = vmax.f32 %v5724_v47, %v12926_v1 }
0x11a0   :  { %v12929_v11 = vpop.f32.mrb[8].mxu0 }
0x11a1   :  { %v5690_v43 = vmax.f32 %v5688_v55, %v12929_v11  ;;  %v12932_v59 = vpop.f32.mrb[9].mxu0 }
0x11a2   :  { %14895 = vst [vmem:[#allocation89_spill] sm:$0xff] %v12932_v59  ;;  %v5727_v44 = vmax.f32 %v5725_v39, %v12932_v59  ;;  %v12935_v53 = vpop.f32.mrb[10].mxu0 }
0x11a3   :  { %v5691_v6 = vmax.f32 %v5689_v21, %v12935_v53  ;;  %v12938_v9 = vpop.f32.mrb[11].mxu0 }
0x11a4   :  { %14896 = vst [vmem:[#allocation90_spill] sm:$0xff] %v12938_v9  ;;  %v5728_v37 = vmax.f32 %v5726_v41, %v12938_v9 }
0x11a8   :  { %v12941_v54 = vpop.f32.mrb[12].mxu0 }
0x11a9   :  { %v5692_v24 = vmax.f32 %v5690_v43, %v12941_v54  ;;  %v12944_v2 = vpop.f32.mrb[13].mxu0 }
0x11aa   :  { %14897 = vst [vmem:[#allocation92_spill] sm:$0xff] %v12944_v2  ;;  %v5729_v31 = vmax.f32 %v5727_v44, %v12944_v2  ;;  %v12947_v10 = vpop.f32.mrb[14].mxu0 }
0x11ab   :  { %v5693_v29 = vmax.f32 %v5691_v6, %v12947_v10  ;;  %v12950_v20 = vpop.f32.mrb[15].mxu0 }
0x11ac   :  { %14898 = vst [vmem:[#allocation94_spill] sm:$0xff] %v12950_v20  ;;  %v5730_v63 = vmax.f32 %v5728_v37, %v12950_v20 }
0x11b0   :  { %v12953_v30 = vpop.f32.mrb[16].mxu0 }
0x11b1   :  { %v5694_v50 = vmax.f32 %v5692_v24, %v12953_v30  ;;  %v12956_v4 = vpop.f32.mrb[17].mxu0 }
0x11b2   :  { %14899 = vst [vmem:[#allocation95_spill] sm:$0xff] %v12956_v4  ;;  %v5731_v34 = vmax.f32 %v5729_v31, %v12956_v4  ;;  %v12959_v25 = vpop.f32.mrb[18].mxu0 }
0x11b3   :  { %v5695_v42 = vmax.f32 %v5693_v29, %v12959_v25  ;;  %v12962_v19 = vpop.f32.mrb[19].mxu0 }
0x11b4   :  { %14900 = vst [vmem:[#allocation93_spill] sm:$0xff] %v12962_v19  ;;  %v5732_v47 = vmax.f32 %v5730_v63, %v12962_v19 }
0x11b8   :  { %v12965_v55 = vpop.f32.mrb[20].mxu0 }
0x11b9   :  { %v5696_v39 = vmax.f32 %v5694_v50, %v12965_v55  ;;  %v12968_v21 = vpop.f32.mrb[21].mxu0 }
0x11ba   :  { %14901 = vst [vmem:[#allocation76_spill] sm:$0xff] %v12968_v21  ;;  %v5733_v41 = vmax.f32 %v5731_v34, %v12968_v21  ;;  %v12971_v43 = vpop.f32.mrb[22].mxu0 }
0x11bb   :  { %v5697_v44 = vmax.f32 %v5695_v42, %v12971_v43  ;;  %v12974_v6 = vpop.f32.mrb[23].mxu0 }
0x11bc   :  { %14902 = vst [vmem:[#allocation15_spill] sm:$0xff] %v12974_v6  ;;  %v5734_v37 = vmax.f32 %v5732_v47, %v12974_v6 }
0x11c0   :  { %v12977_v24 = vpop.f32.mrb[24].mxu0 }
0x11c1   :  { %v5698_v31 = vmax.f32 %v5696_v39, %v12977_v24  ;;  %v12980_v29 = vpop.f32.mrb[25].mxu0 }
0x11c2   :  { %14903 = vst [vmem:[#allocation91_spill] sm:$0xff] %v12980_v29  ;;  %v5735_v63 = vmax.f32 %v5733_v41, %v12980_v29  ;;  %v12983_v50 = vpop.f32.mrb[26].mxu0 }
0x11c3   :  { %v5699_v34 = vmax.f32 %v5697_v44, %v12983_v50  ;;  %v12986_v51 = vpop.f32.mrb[27].mxu0 }
0x11c4   :  { %14904 = vst [vmem:[#allocation96_spill] sm:$0xff] %v12986_v51  ;;  %v5736_v42 = vmax.f32 %v5734_v37, %v12986_v51 }
0x11c8   :  { %v12989_v35 = vpop.f32.mrb[28].mxu0 }
0x11c9   :  { %v5700_v47 = vmax.f32 %v5698_v31, %v12989_v35  ;;  %v12992_v40 = vpop.f32.mrb[29].mxu0 }
0x11ca   :  { %14905 = vst [vmem:[#allocation10_spill] sm:$0xff] %v12992_v40  ;;  %v5737_v39 = vmax.f32 %v5735_v63, %v12992_v40  ;;  %v12995_v23 = vpop.f32.mrb[30].mxu0 }
0x11cb   :  { %v5701_v41 = vmax.f32 %v5699_v34, %v12995_v23  ;;  %v12998_v29 = vpop.f32.mrb[31].mxu0 }
0x11cc   :  { %14906 = vst [vmem:[#allocation11_spill] sm:$0xff] %v12998_v29  ;;  %v5738_v44 = vmax.f32 %v5736_v42, %v12998_v29 }
0x11d0   :  { %v13001_v6 = vpop.f32.mrb[32].mxu0 }
0x11d1   :  { %v5702_v37 = vmax.f32 %v5700_v47, %v13001_v6  ;;  %v13004_v51 = vpop.f32.mrb[33].mxu0 }
0x11d2   :  { %14907 = vst [vmem:[#allocation29_spill] sm:$0xff] %v13004_v51  ;;  %v5739_v31 = vmax.f32 %v5737_v39, %v13004_v51  ;;  %v13007_v21 = vpop.f32.mrb[34].mxu0 }
0x11d3   :  { %v5703_v63 = vmax.f32 %v5701_v41, %v13007_v21  ;;  %v13010_v40 = vpop.f32.mrb[35].mxu0 }
0x11d4   :  { %14908 = vst [vmem:[#allocation16_spill] sm:$0xff] %v13010_v40  ;;  %v5740_v34 = vmax.f32 %v5738_v44, %v13010_v40 }
0x11d8   :  { %v13013_v19 = vpop.f32.mrb[36].mxu0 }
0x11d9   :  { %v5704_v42 = vmax.f32 %v5702_v37, %v13013_v19  ;;  %v13016_v29 = vpop.f32.mrb[37].mxu0 }
0x11da   :  { %14909 = vst [vmem:[#allocation18_spill] sm:$0xff] %v13016_v29  ;;  %v5741_v47 = vmax.f32 %v5739_v31, %v13016_v29  ;;  %v13019_v4 = vpop.f32.mrb[38].mxu0 }
0x11db   :  { %v5705_v39 = vmax.f32 %v5703_v63, %v13019_v4  ;;  %v13022_v51 = vpop.f32.mrb[39].mxu0 }
0x11dc   :  { %14910 = vst [vmem:[#allocation53_spill] sm:$0xff] %v13022_v51  ;;  %v5742_v41 = vmax.f32 %v5740_v34, %v13022_v51 }
0x11dd   :  { %v5706_v20 = vmax.f32 %v5704_v42, %v5705_v39 }
0x11de   :  { %v5743_v2 = vmax.f32 %v5741_v47, %v5742_v41 }
0x11df   :  { %v5707_v9 = vrot.slane %v5706_v20, 4 }
0x11e0   :  { %v5744_v44 = vrot.slane %v5743_v2, 4 }
0x11e1   :  { %v5708_v40 = vmax.f32 %v5706_v20, %v5707_v9 }
0x11e2   :  { %v5745_v59 = vmax.f32 %v5743_v2, %v5744_v44 }
0x11e3   :  { %v5709_v1 = vrot.slane %v5708_v40, 2 }
0x11e4   :  { %v5746_v37 = vrot.slane %v5745_v59, 2 }
0x11e5   :  { %v5710_v12 = vmax.f32 %v5708_v40, %v5709_v1  ;;  %v14930_v1 = vld [vmem:[#allocation18_spill] sm:$0xff] }
0x11e6   :  { %v5747_v32 = vmax.f32 %v5745_v59, %v5746_v37 }
0x11e7   :  { %v5711_v13 = vrot.slane %v5710_v12, 1 }
0x11e8   :  { %v5748_v31 = vrot.slane %v5747_v32, 1 }
0x11e9   :  { %v13025_v29 = vmax.f32 %v5710_v12, %v5711_v13 }
0x11ea   :  { %v13027_v49 = vmax.f32 %v5747_v32, %v5748_v31 }
0x11eb   :  { %v5750_v63 = vsub.f32 %v12833_v18, %v13025_v29  ;;  %v5752_v34 = vsub.f32 %v12837_v3, %v13025_v29  ;;  %v5754_v9 = vsub.f32 %v12841_v8, %v13025_v29  ;;  %v5756_v2 = vsub.f32 %v12849_v7, %v13025_v29 }
0x11ec   :  { %v5758_v40 = vsub.f32 %v12857_v38, %v13025_v29  ;;  %v5760_v13 = vsub.f32 %v12863_v57, %v13025_v29  ;;  %v5762_v32 = vsub.f32 %v12869_v52, %v13025_v29  ;;  %v5764_v18 = vsub.f32 %v12875_v5, %v13025_v29 }
0x11ed   :  { %v5766_v3 = vsub.f32 %v12881_v58, %v13025_v29  ;;  %v5768_v8 = vsub.f32 %v12887_v62, %v13025_v29  ;;  %v5770_v7 = vsub.f32 %v12893_v14, %v13025_v29  ;;  %v5772_v38 = vsub.f32 %v12899_v28, %v13025_v29 }
0x11ee   :  { %v5774_v57 = vsub.f32 %v12905_v45, %v13025_v29  ;;  %v5776_v52 = vsub.f32 %v12911_v48, %v13025_v29  ;;  %v5778_v5 = vsub.f32 %v12917_v33, %v13025_v29  ;;  %v5780_v58 = vsub.f32 %v12923_v61, %v13025_v29 }
0x11ef   :  { %v5782_v62 = vsub.f32 %v12929_v11, %v13025_v29  ;;  %v5784_v14 = vsub.f32 %v12935_v53, %v13025_v29  ;;  %v5786_v28 = vsub.f32 %v12941_v54, %v13025_v29  ;;  %v5788_v45 = vsub.f32 %v12947_v10, %v13025_v29 }
0x11f0   :  { %v5790_v48 = vsub.f32 %v12953_v30, %v13025_v29  ;;  %v5792_v33 = vsub.f32 %v12959_v25, %v13025_v29  ;;  %v5794_v12 = vsub.f32 %v12965_v55, %v13025_v29  ;;  %v5796_v61 = vsub.f32 %v12971_v43, %v13025_v29 }
0x11f1   :  { %v5814_v25 = vmul.f32 1.442695, %v5750_v63  ;;  %v5818_v55 = vmul.f32 1.442695, %v5752_v34  ;;  %v5822_v43 = vmul.f32 1.442695, %v5754_v9 }
0x11f2   :  { %v5826_v47 = vmul.f32 1.442695, %v5756_v2  ;;  %v5830_v41 = vmul.f32 1.442695, %v5758_v40  ;;  %v5834_v44 = vmul.f32 1.442695, %v5760_v13 }
0x11f3   :  { %7281 = vpow2.f32 %v5814_v25  ;;  %v5838_v37 = vmul.f32 1.442695, %v5762_v32  ;;  %v5842_v31 = vmul.f32 1.442695, %v5764_v18  ;;  %v5846_v20 = vmul.f32 1.442695, %v5766_v3 }
0x11f4   :  { %7283 = vpow2.f32 %v5818_v55  ;;  %v5850_v30 = vmul.f32 1.442695, %v5768_v8  ;;  %v5854_v63 = vmul.f32 1.442695, %v5770_v7  ;;  %v5858_v34 = vmul.f32 1.442695, %v5772_v38 }
0x11f5   :  { %7285 = vpow2.f32 %v5822_v43  ;;  %v5862_v9 = vmul.f32 1.442695, %v5774_v57  ;;  %v5866_v42 = vmul.f32 1.442695, %v5776_v52  ;;  %v5870_v2 = vmul.f32 1.442695, %v5778_v5 }
0x11f6   :  { %7287 = vpow2.f32 %v5826_v47  ;;  %v5874_v10 = vmul.f32 1.442695, %v5780_v58  ;;  %v5878_v39 = vmul.f32 1.442695, %v5782_v62  ;;  %v5882_v25 = vmul.f32 1.442695, %v5784_v14 }
0x11f7   :  { %7289 = vpow2.f32 %v5830_v41  ;;  %v5886_v40 = vmul.f32 1.442695, %v5786_v28  ;;  %v5890_v13 = vmul.f32 1.442695, %v5788_v45  ;;  %v5894_v55 = vmul.f32 1.442695, %v5790_v48 }
0x11f8   :  { %7291 = vpow2.f32 %v5834_v44  ;;  %v13097_v32 = vmul.f32 1.442695, %v5792_v33  ;;  %v13099_v18 = vmul.f32 1.442695, %v5794_v12  ;;  %v13101_v3 = vmul.f32 1.442695, %v5796_v61 }
0x11f9   :  { %7293 = vpow2.f32 %v5838_v37  ;;  %v14911_v48 = vld [vmem:[#allocation84_spill] sm:$0xff]  ;;  %v14913_v43 = vld [vmem:[#allocation86_spill] sm:$0xff]  ;;  %v14914_v44 = vld [vmem:[#allocation87_spill] sm:$0xff] }
0x11fa   :  { %7295 = vpow2.f32 %v5842_v31  ;;  %v14915_v31 = vld [vmem:[#allocation88_spill] sm:$0xff]  ;;  %v14917_v45 = vld [vmem:[#allocation90_spill] sm:$0xff]  ;;  %v14920_v58 = vld [vmem:[#allocation95_spill] sm:$0xff] }
0x11fb   :  { %7297 = vpow2.f32 %v5846_v20  ;;  %v14912_v20 = vld [vmem:[#allocation85_spill] sm:$0xff]  ;;  %v14918_v28 = vld [vmem:[#allocation92_spill] sm:$0xff]  ;;  %v14919_v37 = vld [vmem:[#allocation94_spill] sm:$0xff] }
0x11fc   :  { %7299 = vpow2.f32 %v5850_v30  ;;  %v14921_v5 = vld [vmem:[#allocation93_spill] sm:$0xff]  ;;  %v14922_v47 = vld [vmem:[#allocation76_spill] sm:$0xff]  ;;  %v14923_v38 = vld [vmem:[#allocation15_spill] sm:$0xff] }
0x11fd   :  { %v13111_v52 = vpop.eup %7281  ;;  %7301 = vpow2.f32 %v5854_v63  ;;  %v14924_v63 = vld [vmem:[#allocation91_spill] sm:$0xff]  ;;  %v14925_v8 = vld [vmem:[#allocation96_spill] sm:$0xff] }
0x11fe   :  { %v13119_v14 = vpop.eup %7283  ;;  %7303 = vpow2.f32 %v5858_v34  ;;  %v14916_v34 = vld [vmem:[#allocation89_spill] sm:$0xff] }
0x11ff   :  { %v13127_v12 = vpop.eup %7285  ;;  %7305 = vpow2.f32 %v5862_v9  ;;  %v5942_v61 = vadd.f32 %v13119_v14, %v13111_v52  ;;  %v14929_v9 = vld [vmem:[#allocation16_spill] sm:$0xff] }
0x1200   :  { %v13135_v41 = vpop.eup %7287  ;;  %7307 = vpow2.f32 %v5866_v42  ;;  %v14927_v42 = vld [vmem:[#allocation11_spill] sm:$0xff] }
0x1201   :  { %v13143_v33 = vpop.eup %7289  ;;  %7309 = vpow2.f32 %v5870_v2  ;;  %v5943_v30 = vadd.f32 %v13127_v12, %v5942_v61 }
0x1202   :  { %v13150_v62 = vpop.eup %7291  ;;  %7311 = vpow2.f32 %v5874_v10 }
0x1203   :  { %v13158_v57 = vpop.eup %7293  ;;  %7313 = vpow2.f32 %v5878_v39  ;;  %v5944_v61 = vadd.f32 %v13135_v41, %v5943_v30 }
0x1204   :  { %v13165_v7 = vpop.eup %7295  ;;  %7315 = vpow2.f32 %v5882_v25 }
0x1205   :  { %v13173_v53 = vpop.eup %7297  ;;  %7317 = vpow2.f32 %v5886_v40  ;;  %v5945_v30 = vadd.f32 %v13143_v33, %v5944_v61  ;;  %v14931_v61 = vsub.f32 %v12977_v24, %v13025_v29 }
0x1206   :  { %v13180_v11 = vpop.eup %7299  ;;  %7319 = vpow2.f32 %v5890_v13  ;;  %v14932_v13 = vsub.f32 %v12983_v50, %v13025_v29 }
0x1207   :  { %v13188_v54 = vpop.eup %7301  ;;  %7321 = vpow2.f32 %v5894_v55  ;;  %v5910_v10 = vmul.f32 1.442695, %v14931_v61  ;;  %v5946_v25 = vadd.f32 %v13150_v62, %v5945_v30  ;;  %v14933_v55 = vsub.f32 %v12989_v35, %v13025_v29 }
0x1208   :  { %v13194_v59 = vpop.eup %7303  ;;  %7323 = vpow2.f32 %v13097_v32  ;;  %v5914_v39 = vmul.f32 1.442695, %v14932_v13  ;;  %v14934_v32 = vsub.f32 %v12995_v23, %v13025_v29  ;;  %v14938_v23 = vsub.f32 %v13013_v19, %v13025_v29 }
0x1209   :  { %v13200_v2 = vpop.eup %7305  ;;  %7325 = vpow2.f32 %v13099_v18  ;;  %v5918_v40 = vmul.f32 1.442695, %v14933_v55  ;;  %v5947_v24 = vadd.f32 %v13158_v57, %v5946_v25  ;;  %v14935_v18 = vsub.f32 %v13001_v6, %v13025_v29 }
0x120a   :  { %v13207_v61 = vpop.eup %7307  ;;  %7327 = vpow2.f32 %v13101_v3  ;;  %v5922_v30 = vmul.f32 1.442695, %v14934_v32  ;;  %v14936_v25 = vsub.f32 %v13007_v21, %v13025_v29 }
0x120b   :  { %v13213_v50 = vpop.eup %7309  ;;  %7329 = vpow2.f32 %v5910_v10  ;;  %v5926_v13 = vmul.f32 1.442695, %v14935_v18  ;;  %v5948_v35 = vadd.f32 %v13165_v7, %v5947_v24  ;;  %v5934_v10 = vmul.f32 1.442695, %v14938_v23 }
0x120c   :  { %v13219_v55 = vpop.eup %7311  ;;  %7331 = vpow2.f32 %v5914_v39  ;;  %v5930_v3 = vmul.f32 1.442695, %v14936_v25  ;;  %v14939_v24 = vsub.f32 %v13019_v4, %v13025_v29  ;;  %v14942_v4 = vsub.f32 %v12845_v46, %v13027_v49 }
0x120d   :  { %v13224_v51 = vpop.eup %7313  ;;  %7333 = vpow2.f32 %v5918_v40  ;;  %v5949_v32 = vadd.f32 %v13173_v53, %v5948_v35  ;;  %v14940_v40 = vsub.f32 %v12835_v36, %v13027_v49  ;;  %v14941_v35 = vsub.f32 %v12839_v15, %v13027_v49 }
0x120e   :  { %14937 = vst [vmem:[#allocation8_spill] sm:$0xff] %v13224_v51  ;;  %v13230_v6 = vpop.eup %7315  ;;  %7335 = vpow2.f32 %v5922_v30  ;;  %v5938_v39 = vmul.f32 1.442695, %v14939_v24  ;;  %v5824_v29 = vmul.f32 1.442695, %v14942_v4  ;;  %v14943_v36 = vsub.f32 %v12853_v26, %v13027_v49 }
0x120f   :  { %v13235_v18 = vpop.eup %7317  ;;  %7337 = vpow2.f32 %v5926_v13  ;;  %v5950_v21 = vadd.f32 %v13180_v11, %v5949_v32  ;;  %v5816_v25 = vmul.f32 1.442695, %v14940_v40  ;;  %v5820_v30 = vmul.f32 1.442695, %v14941_v35 }
0x1210   :  { %v13241_v19 = vpop.eup %7319  ;;  %7339 = vpow2.f32 %v5930_v3  ;;  %v5828_v32 = vmul.f32 1.442695, %v14943_v36  ;;  %v14944_v3 = vsub.f32 %v12860_v27, %v13027_v49  ;;  %v14945_v15 = vsub.f32 %v12866_v22, %v13027_v49 }
0x1211   :  { %v13249_v23 = vpop.eup %7321  ;;  %7341 = vpow2.f32 %v5934_v10  ;;  %v5951_v13 = vadd.f32 %v13188_v54, %v5950_v21  ;;  %v14946_v10 = vsub.f32 %v12872_v16, %v13027_v49  ;;  %v14947_v21 = vsub.f32 %v12878_v17, %v13027_v49 }
0x1212   :  { %v5832_v24 = vmul.f32 1.442695, %v14944_v3  ;;  %v13258_v40 = vpop.eup %7323  ;;  %7343 = vpow2.f32 %v5938_v39  ;;  %v5836_v46 = vmul.f32 1.442695, %v14945_v15  ;;  %v14948_v39 = vsub.f32 %v12884_v60, %v13027_v49 }
0x1213   :  { %v5840_v35 = vmul.f32 1.442695, %v14946_v10  ;;  %v5844_v26 = vmul.f32 1.442695, %v14947_v21  ;;  %v13269_v4 = vpop.eup %7325  ;;  %v5952_v27 = vadd.f32 %v13194_v59, %v5951_v13  ;;  %7345 = vpow2.f32 %v5816_v25 }
0x1214   :  { %v5848_v36 = vmul.f32 1.442695, %v14948_v39  ;;  %v14949_v22 = vsub.f32 %v12890_v0, %v13027_v49  ;;  %v13278_v15 = vpop.eup %7327  ;;  %7347 = vpow2.f32 %v5820_v30 }
0x1215   :  { %v13286_v13 = vpop.eup %7329  ;;  %v5953_v60 = vadd.f32 %v13200_v2, %v5952_v27  ;;  %7349 = vpow2.f32 %v5824_v29 }
0x1216   :  { %v5852_v3 = vmul.f32 1.442695, %v14949_v22  ;;  %v13293_v10 = vpop.eup %7331  ;;  %7351 = vpow2.f32 %v5828_v32  ;;  %v14950_v32 = vsub.f32 %v12896_v56, %v13027_v49  ;;  %v14951_v22 = vsub.f32 %v14911_v48, %v13027_v49 }
0x1217   :  { %v13301_v27 = vpop.eup %7333  ;;  %v5954_v29 = vadd.f32 %v13207_v61, %v5953_v60  ;;  %7353 = vpow2.f32 %v5832_v24 }
0x1218   :  { %v13308_v0 = vpop.eup %7335  ;;  %7355 = vpow2.f32 %v5836_v46  ;;  %v5856_v30 = vmul.f32 1.442695, %v14950_v32  ;;  %v5860_v39 = vmul.f32 1.442695, %v14951_v22 }
0x1219   :  { %v13316_v60 = vpop.eup %7337  ;;  %v5955_v24 = vadd.f32 %v13213_v50, %v5954_v29  ;;  %7357 = vpow2.f32 %v5840_v35  ;;  %v14952_v35 = vsub.f32 %v14912_v20, %v13027_v49  ;;  %v14957_v20 = vsub.f32 %v14917_v45, %v13027_v49 }
0x121a   :  { %v13324_v25 = vpop.eup %7339  ;;  %7359 = vpow2.f32 %v5844_v26  ;;  %v14953_v26 = vsub.f32 %v14913_v43, %v13027_v49  ;;  %v14956_v43 = vsub.f32 %v14916_v34, %v13027_v49  ;;  %v14960_v45 = vsub.f32 %v14920_v58, %v13027_v49 }
0x121b   :  { %v13329_v21 = vpop.eup %7341  ;;  %v5956_v17 = vadd.f32 %v13219_v55, %v5955_v24  ;;  %7361 = vpow2.f32 %v5848_v36  ;;  %v5864_v56 = vmul.f32 1.442695, %v14952_v35  ;;  %v14954_v36 = vsub.f32 %v14914_v44, %v13027_v49 }
0x121c   :  { %v13337_v32 = vpop.eup %7343  ;;  %7363 = vpow2.f32 %v5852_v3  ;;  %v5868_v48 = vmul.f32 1.442695, %v14953_v26  ;;  %v14955_v3 = vsub.f32 %v14915_v31, %v13027_v49  ;;  %v5880_v26 = vmul.f32 1.442695, %v14956_v43 }
0x121d   :  { %v7346_v22 = vpop.eup %7345  ;;  %v5957_v46 = vadd.f32 %v13224_v51, %v5956_v17  ;;  %7365 = vpow2.f32 %v5856_v30  ;;  %v5872_v24 = vmul.f32 1.442695, %v14954_v36  ;;  %v14958_v31 = vsub.f32 %v14918_v28, %v13027_v49 }
0x121e   :  { %v7348_v35 = vpop.eup %7347  ;;  %7367 = vpow2.f32 %v5860_v39  ;;  %v5876_v29 = vmul.f32 1.442695, %v14955_v3  ;;  %v5884_v39 = vmul.f32 1.442695, %v14957_v20  ;;  %v5896_v20 = vmul.f32 1.442695, %v14960_v45 }
0x121f   :  { %v7350_v16 = vpop.eup %7349  ;;  %v5958_v17 = vadd.f32 %v13230_v6, %v5957_v46  ;;  %7369 = vpow2.f32 %v5864_v56  ;;  %v5979_v30 = vadd.f32 %v7348_v35, %v7346_v22  ;;  %v6019_v44 = vpack.c.bf16 %v7348_v35, %v7346_v22 }
0x1220   :  { %v7352_v36 = vpop.eup %7351  ;;  %7371 = vpow2.f32 %v5868_v48  ;;  %v5888_v3 = vmul.f32 1.442695, %v14958_v31  ;;  %v14959_v48 = vsub.f32 %v14919_v37, %v13027_v49  ;;  %v14961_v28 = vpack.c.bf16 %v13119_v14, %v13111_v52 }
0x1221   :  { %v7354_v51 = vpop.eup %7353  ;;  %v5959_v34 = vadd.f32 %v13235_v18, %v5958_v17  ;;  %7373 = vpow2.f32 %v5872_v24  ;;  %v5980_v43 = vadd.f32 %v7350_v16, %v5979_v30  ;;  %6050 = vmatprep.subr.bf16.mxu0 %v6019_v44  ;;  %v6021_v46 = vpack.c.bf16 %v7352_v36, %v7350_v16 }
0x1222   :  { %v7356_v56 = vpop.eup %7355  ;;  %7375 = vpow2.f32 %v5876_v29  ;;  %v5892_v22 = vmul.f32 1.442695, %v14959_v48  ;;  %6051 = vmatpush1.bf16.msra.mxu0 %v14961_v28  ;;  %v14962_v37 = vsub.f32 %v14921_v5, %v13027_v49  ;;  %v14963_v58 = vsub.f32 %v14922_v47, %v13027_v49  ;;  %v14968_v28 = vld [vmem:[#allocation10_spill] sm:$0xff] }
0x1223   :  { %v7358_v35 = vpop.eup %7357  ;;  %v5960_v24 = vadd.f32 %v13241_v19, %v5959_v34  ;;  %7377 = vpow2.f32 %v5880_v26  ;;  %v5981_v17 = vadd.f32 %v7352_v36, %v5980_v43  ;;  %6052 = vmatprep.subr.bf16.mxu0 %v6021_v46  ;;  %v6023_v16 = vpack.c.bf16 %v7356_v56, %v7354_v51 }
0x1224   :  { %v7360_v29 = vpop.eup %7359  ;;  %7379 = vpow2.f32 %v5884_v39  ;;  %v5900_v30 = vmul.f32 1.442695, %v14962_v37  ;;  %v5904_v44 = vmul.f32 1.442695, %v14963_v58  ;;  %v14964_v36 = vsub.f32 %v14923_v38, %v13027_v49 }
0x1225   :  { %v7362_v31 = vpop.eup %7361  ;;  %v5961_v52 = vadd.f32 %v13249_v23, %v5960_v24  ;;  %7381 = vpow2.f32 %v5888_v3  ;;  %v5982_v14 = vadd.f32 %v7354_v51, %v5981_v17  ;;  %v6025_v34 = vpack.c.bf16 %v7360_v29, %v7358_v35 }
0x1226   :  { %v7364_v26 = vpop.eup %7363  ;;  %7383 = vpow2.f32 %v5892_v22  ;;  %v5908_v39 = vmul.f32 1.442695, %v14964_v36  ;;  %v14965_v5 = vsub.f32 %v14924_v63, %v13027_v49  ;;  %v14966_v47 = vpack.c.bf16 %v13135_v41, %v13127_v12 }
0x1227   :  { %v7366_v46 = vpop.eup %7365  ;;  %v5962_v48 = vadd.f32 %v13258_v40, %v5961_v52  ;;  %7385 = vpow2.f32 %v5896_v20  ;;  %v5983_v51 = vadd.f32 %v7356_v56, %v5982_v14  ;;  %v6027_v3 = vpack.c.bf16 %v7364_v26, %v7362_v31 }
0x1228   :  { %v5912_v43 = vmul.f32 1.442695, %v14965_v5  ;;  %6053 = vmatpush1.bf16.msra.mxu0 %v14966_v47  ;;  %v7368_v22 = vpop.eup %7367  ;;  %7387 = vpow2.f32 %v5900_v30  ;;  %v14967_v38 = vsub.f32 %v14925_v8, %v13027_v49  ;;  %v14969_v63 = vsub.f32 %v14968_v28, %v13027_v49  ;;  %v14971_v30 = vld [vmem:[#allocation29_spill] sm:$0xff] }
0x1229   :  { %6054 = vmatprep.subr.bf16.mxu0 %v6023_v16  ;;  %v7370_v17 = vpop.eup %7369  ;;  %v5963_v12 = vadd.f32 %v13269_v4, %v5962_v48  ;;  %7389 = vpow2.f32 %v5904_v44  ;;  %v5984_v41 = vadd.f32 %v7358_v35, %v5983_v51  ;;  %v6029_v37 = vpack.c.bf16 %v7368_v22, %v7366_v46 }
0x122a   :  { %v5916_v45 = vmul.f32 1.442695, %v14967_v38  ;;  %v5920_v24 = vmul.f32 1.442695, %v14969_v63  ;;  %v7372_v20 = vpop.eup %7371  ;;  %7391 = vpow2.f32 %v5908_v39  ;;  %v14970_v56 = vsub.f32 %v14927_v42, %v13027_v49 }
0x122b   :  { %v14972_v8 = vsub.f32 %v14971_v30, %v13027_v49  ;;  %v14973_v52 = vpack.c.bf16 %v13150_v62, %v13143_v33  ;;  %v7374_v14 = vpop.eup %7373  ;;  %v5964_v36 = vadd.f32 %v13278_v15, %v5963_v12  ;;  %7393 = vpow2.f32 %v5912_v43 }
0x122c   :  { %v5924_v16 = vmul.f32 1.442695, %v14970_v56  ;;  %v5985_v35 = vadd.f32 %v7360_v29, %v5984_v41  ;;  %v6031_v44 = vpack.c.bf16 %v7372_v20, %v7370_v17  ;;  %v7376_v39 = vpop.eup %7375  ;;  %7395 = vpow2.f32 %v5916_v45  ;;  %v14976_v29 = vld [vmem:[#allocation53_spill] sm:$0xff] }
0x122d   :  { %v5928_v58 = vmul.f32 1.442695, %v14972_v8  ;;  %6055 = vmatpush1.bf16.msra.mxu0 %v14973_v52  ;;  %v14974_v42 = vsub.f32 %v14929_v9, %v13027_v49  ;;  %v14975_v47 = vsub.f32 %v14930_v1, %v13027_v49  ;;  %v7378_v51 = vpop.eup %7377  ;;  %v5965_v62 = vadd.f32 %v13286_v13, %v5964_v36 }
0x122e   :  { %6056 = vmatprep.subr.bf16.mxu0 %v6025_v34  ;;  %7397 = vpow2.f32 %v5920_v24  ;;  %v5986_v33 = vadd.f32 %v7362_v31, %v5985_v35  ;;  %v6033_v38 = vpack.c.bf16 %v7376_v39, %v7374_v14  ;;  %v7380_v43 = vpop.eup %7379  ;;  %v14977_v34 = vsub.f32 %v14976_v29, %v13027_v49 }
0x122f   :  { %v5932_v5 = vmul.f32 1.442695, %v14974_v42  ;;  %v5936_v48 = vmul.f32 1.442695, %v14975_v47  ;;  %7399 = vpow2.f32 %v5924_v16  ;;  %v14978_v9 = vpack.c.bf16 %v13165_v7, %v13158_v57  ;;  %v7382_v28 = vpop.eup %7381 }
0x1230   :  { %v5940_v45 = vmul.f32 1.442695, %v14977_v34  ;;  %v5966_v1 = vadd.f32 %v13293_v10, %v5965_v62  ;;  %7401 = vpow2.f32 %v5928_v58  ;;  %v5987_v63 = vadd.f32 %v7364_v26, %v5986_v33  ;;  %v7384_v24 = vpop.eup %7383 }
0x1231   :  { %6057 = vmatpush1.bf16.msra.mxu0 %v14978_v9  ;;  %v6035_v12 = vpack.c.bf16 %v7380_v43, %v7378_v51  ;;  %7403 = vpow2.f32 %v5932_v5  ;;  %v7386_v31 = vpop.eup %7385  ;;  %v6037_v49 = vpack.c.bf16 %v7384_v24, %v7382_v28  ;;  %v14979_v7 = vpack.c.bf16 %v13180_v11, %v13173_v53 }
0x1232   :  { %6058 = vmatprep.subr.bf16.mxu0 %v6027_v3  ;;  %v5967_v41 = vadd.f32 %v13301_v27, %v5966_v1  ;;  %7405 = vpow2.f32 %v5936_v48  ;;  %v5988_v56 = vadd.f32 %v7366_v46, %v5987_v63  ;;  %v7388_v16 = vpop.eup %7387  ;;  %v14980_v42 = vpack.c.bf16 %v13194_v59, %v13188_v54 }
0x1233   :  { %7407 = vpow2.f32 %v5940_v45  ;;  %v7390_v57 = vpop.eup %7389  ;;  %v6039_v3 = vpack.c.bf16 %v7388_v16, %v7386_v31  ;;  %v14982_v1 = vpack.c.bf16 %v13219_v55, %v13213_v50  ;;  %v14986_v50 = vpack.c.bf16 %v13258_v40, %v13249_v23 }
0x1234   :  { %v5968_v30 = vadd.f32 %v13308_v0, %v5967_v41  ;;  %v5989_v26 = vadd.f32 %v7368_v22, %v5988_v56  ;;  %v7392_v8 = vpop.eup %7391  ;;  %v14983_v41 = vld [vmem:[#allocation8_spill] sm:$0xff]  ;;  %v14989_v23 = vpack.c.bf16 %v13308_v0, %v13301_v27 }
0x1235   :  { %6059 = vmatpush1.bf16.msra.mxu0 %v14979_v7  ;;  %v7394_v58 = vpop.eup %7393  ;;  %v6041_v35 = vpack.c.bf16 %v7392_v8, %v7390_v57 }
0x1236   :  { %6060 = vmatprep.subr.bf16.mxu0 %v6029_v37  ;;  %v5969_v52 = vadd.f32 %v13316_v60, %v5968_v30  ;;  %v5990_v36 = vadd.f32 %v7370_v17, %v5989_v26  ;;  %v7396_v46 = vpop.eup %7395  ;;  %v14981_v17 = vpack.c.bf16 %v13207_v61, %v13200_v2  ;;  %v14984_v2 = vpack.c.bf16 %v13230_v6, %v14983_v41  ;;  %v14999_v41 = vld [vmem:[#allocation5_spill] sm:$0xff] }
0x1237   :  { %v6043_v47 = vpack.c.bf16 %v7396_v46, %v7394_v58  ;;  %v14987_v6 = vpack.c.bf16 %v13278_v15, %v13269_v4  ;;  %v14990_v4 = vpack.c.bf16 %v13324_v25, %v13316_v60  ;;  %v14991_v15 = vld [vmem:[#allocation60_spill] sm:$0xff] }
0x1238   :  { %v7398_v5 = vpop.eup %7397  ;;  %v5970_v11 = vadd.f32 %v13324_v25, %v5969_v52  ;;  %v5991_v53 = vadd.f32 %v7372_v20, %v5990_v36 }
0x1239   :  { %6061 = vmatpush1.bf16.msra.mxu0 %v14980_v42  ;;  %v7400_v22 = vpop.eup %7399 }
0x123a   :  { %6062 = vmatprep.subr.bf16.mxu0 %v6031_v44  ;;  %v7402_v37 = vpop.eup %7401  ;;  %v5971_v48 = vadd.f32 %v13329_v21, %v5970_v11  ;;  %v5992_v62 = vadd.f32 %v7374_v14, %v5991_v53  ;;  %v6045_v33 = vpack.c.bf16 %v7400_v22, %v7398_v5  ;;  %v14994_v53 = vld [vmem:[#allocation82_spill] sm:$0xff] }
0x123b   :  { %v7404_v29 = vpop.eup %7403 }
0x123c   :  { %v7406_v34 = vpop.eup %7405  ;;  %v5972_v59 = vadd.f32 %v13337_v32, %v5971_v48  ;;  %v5993_v54 = vadd.f32 %v7376_v39, %v5992_v62  ;;  %v6047_v45 = vpack.c.bf16 %v7404_v29, %v7402_v37  ;;  %v14985_v39 = vpack.c.bf16 %v13241_v19, %v13235_v18  ;;  %v7419_v62 = vld [vmem:[%s13498_s3] sm:$0xff]  }
0x123d   :  { %6063 = vmatpush1.bf16.msra.mxu0 %v14981_v17  ;;  %v7408_v20 = vpop.eup %7407  ;;  %v14988_v18 = vpack.c.bf16 %v13293_v10, %v13286_v13  ;;  %v14993_v13 = vpack.c.bf16 %v13337_v32, %v13329_v21 }
0x123e   :  { %6064 = vmatprep.subr.bf16.mxu0 %v6033_v38  ;;  %v5994_v44 = vadd.f32 %v7378_v51, %v5993_v54  ;;  %v6049_v9 = vpack.c.bf16 %v7408_v20, %v7406_v34  ;;  %v5973_v0 = vrot.slane %v5972_v59, 4 }
0x1240   :  { %v5995_v14 = vadd.f32 %v7380_v43, %v5994_v44  ;;  %v14998_v44 = vld [vmem:[#allocation75_spill] sm:$0xff] }
0x1241   :  { %6065 = vmatpush1.bf16.msra.mxu0 %v14982_v1 }
0x1242   :  { %6066 = vmatprep.subr.bf16.mxu0 %v6035_v12  ;;  %v5996_v63 = vadd.f32 %v7382_v28, %v5995_v14 }
0x1244   :  { %v5997_v61 = vadd.f32 %v7384_v24, %v5996_v63 }
0x1245   :  { %6067 = vmatpush1.bf16.msra.mxu0 %v14984_v2 }
0x1246   :  { %6068 = vmatprep.subr.bf16.mxu0 %v6037_v49  ;;  %v5998_v56 = vadd.f32 %v7386_v31, %v5997_v61  ;;  %v14992_v49 = vld [vmem:[#allocation13_spill] sm:$0xff] }
0x1248   :  { %v5999_v51 = vadd.f32 %v7388_v16, %v5998_v56  ;;  %v3281_v16 = vadd.f32 %v14992_v49, %v14991_v15 }
0x1249   :  { %6069 = vmatpush1.bf16.msra.mxu0 %v14985_v39 }
0x124a   :  { %6070 = vmatprep.subr.bf16.mxu0 %v6039_v3  ;;  %v6000_v38 = vadd.f32 %v7390_v57, %v5999_v51  ;;  %v5395_v10 = vpack.c.bf16 %v3281_v16, %v3281_v16  ;;  %v5974_v57 = vadd.f32 %v5973_v0, %v5972_v59  ;;  %v15000_v51 = vld [vmem:[#allocation7_spill] sm:$0xff] }
0x124c   :  { %v6001_v55 = vadd.f32 %v7392_v8, %v6000_v38  ;;  %v5975_v26 = vrot.slane %v5974_v57, 2 }
0x124d   :  { %6071 = vmatpush1.bf16.msra.mxu0 %v14986_v50 }
0x124e   :  { %6072 = vmatprep.subr.bf16.mxu0 %v6041_v35  ;;  %v6002_v43 = vadd.f32 %v7394_v58, %v6001_v55  ;;  %v5976_v8 = vadd.f32 %v5975_v26, %v5974_v57 }
0x1250   :  { %v6003_v28 = vadd.f32 %v7396_v46, %v6002_v43  ;;  %v5977_v60 = vrot.slane %v5976_v8, 1 }
0x1251   :  { %6073 = vmatpush1.bf16.msra.mxu0 %v14987_v6 }
0x1252   :  { %6074 = vmatprep.subr.bf16.mxu0 %v6043_v47  ;;  %v6004_v12 = vadd.f32 %v7398_v5, %v6003_v28  ;;  %v5978_v52 = vadd.f32 %v5977_v60, %v5976_v8 }
0x1254   :  { %v6005_v19 = vadd.f32 %v7400_v22, %v6004_v12  ;;  %7409 = vrcp.f32 %v5978_v52 }
0x1255   :  { %6075 = vmatpush1.bf16.msra.mxu0 %v14988_v18 }
0x1256   :  { %6076 = vmatprep.subr.bf16.mxu0 %v6045_v33  ;;  %v6006_v24 = vadd.f32 %v7402_v37, %v6005_v19  ;;  %v14995_v37 = vld [vmem:[#allocation83_spill] sm:$0xff]  ;;  %v14996_v33 = vmov 0  }
0x1258   :  { %v6007_v40 = vadd.f32 %v7404_v29, %v6006_v24  ;;  %v7420_v29 = vld [vmem:[%s13498_s3 + $0x8] sm:$0xff]   ;;  %s7446_s3 = smov [#allocation2]  }
0x1259   :  { %6077 = vmatpush1.bf16.msra.mxu0 %v14989_v23  ;;  %s6164_s9 = sshll.u32 %s7446_s3, 4  ;;  %s6165_s9 = int_to_ptr.vmem [resolvable:$true] %s6164_s9 }
0x125a   :  { %6078 = vmatprep.subr.bf16.mxu0 %v6047_v45  ;;  %v6008_v31 = vadd.f32 %v7406_v34, %v6007_v40  ;;  %v14997_v34 = vld [vmem:[#allocation31_spill] sm:$0xff]  ;;  %s7421_s10 = scalar_lea.vmem %s6165_s9, 2048  ;;  %p7426_p1 = scmp.lt.s32.totalorder %s6165_s9, %s6165_s9 }
0x125b   :  { %p7422_p0 = scmp.ne.s32.totalorder %s6165_s9, %s7421_s10  ;;  %p7427_p2 = scmp.lt.s32.totalorder %s7421_s10, %s7421_s10 }
0x125c   :  { %v6009_v7 = vadd.f32 %v7408_v20, %v6008_v31 }
0x125d   :  { %6079 = vmatpush1.bf16.msra.mxu0 %v14990_v4  ;;  %p7428_p3 = por %p7427_p2, %p7426_p1 }
0x125e   :  { %6080 = vmatprep.subr.bf16.mxu0 %v6049_v9  ;;  %v6010_v27 = vrot.slane %v6009_v7, 4  ;;  %v7410_v35 = vpop.eup %7409 }
0x125f   :  { %p7429_p4 = pnand %p7428_p3, %p7422_p0 }
0x1260   :  { %v6011_v30 = vadd.f32 %v6010_v27, %v6009_v7 }
0x1261   :  { %6081 = vmatpush1.bf16.msra.mxu0 %v14993_v13 }
0x1262   :  { %v6012_v3 = vrot.slane %v6011_v30, 2 }
0x1264   :  { %6083 = vmatmul.mubr.bf16.vlgmr.msra.gmra.mrb[40].mxu0 %v5395_v10  ;;  %v6013_v25 = vadd.f32 %v6012_v3, %v6011_v30 }
0x1266   :  { %v6014_v58 = vrot.slane %v6013_v25, 1 }
0x1268   :  { %v6015_v36 = vadd.f32 %v6014_v58, %v6013_v25 }
0x126a   :  { %7411 = vrcp.f32 %v6015_v36 }
0x1274   :  { %v7412_v21 = vpop.eup %7411 }
0x1337   :  { %v6084_v46 = vpop.f32.mrb[40].mxu0 }
0x1338   :  { %v6091_v32 = vmul.f32 %v7410_v35, %v6084_v46  ;;  %v6086_v42 = vpop.f32.mrb[41].mxu0 }
0x1339   :  { %v6092_v5 = vmul.f32 %v7412_v21, %v6086_v42  ;;  %v6088_v11 = vpop.f32.mrb[42].mxu0 }
0x133a   :  { %v6095_v47 = vpack.c.bf16 %v6091_v32, %v14994_v53  ;;  %v6089_v22 = vpop.f32.mrb[43].mxu0 }
0x133b   :  { %v6096_v48 = vpack.c.bf16 %v6092_v5, %v14995_v37 }
0x133d   :  { %6099 = vmatprep.subr.bf16.mxu1 %v6096_v48 }
0x133e   :  { %6100 = vmatpush1.bf16.msra.mxu1 %v6095_v47 }
0x1341   :  { %6341 = vmatmul.mubr.msk.bf16.vlgmr.msra.gmra.mrb[44].mxu1 %vm156_vm0, %v7419_v62 }
0x1342   :  { %6139 = vmatprep.mubr.bf16.mxu1 %v14996_v33 }
0x1349   :  { %6342 = vmatmul.mubr.msk.bf16.gmra.mrb[48].mxu1 %vm156_vm0, %v7420_v29 }
0x1414   :  { %v6131_v17 = vpop.f32.mrb[44].mxu1 }
0x1415   :  { %v6132_v59 = vadd.f32 %v6131_v17, %v14997_v34  ;;  %v6133_v54 = vpop.f32.mrb[45].mxu1 }
0x1416   :  { %v6134_v45 = vadd.f32 %v6133_v54, %v14997_v34  ;;  %v6135_v20 = vpop.f32.mrb[46].mxu1 }
0x1417   :  { %6151 = vst [vmem:[#allocation2 + $0x40] sm:$0xff] %v6132_v59  ;;  %v6136_v9 = vadd.f32 %v6135_v20, %v14998_v44  ;;  %v6137_v1 = vpop.f32.mrb[47].mxu1 }
0x1418   :  { %6152 = vst [vmem:[#allocation2 + $0x48] sm:$0xff] %v6134_v45  ;;  %v6138_v14 = vadd.f32 %v6137_v1, %v14998_v44 }
0x1419   :  { %6153 = vst [vmem:[#allocation2 + $0x50] sm:$0xff] %v6136_v9 }
0x141a   :  { %6154 = vst [vmem:[#allocation2 + $0x58] sm:$0xff] %v6138_v14 }
0x141c   :  { %v6141_v63 = vpop.f32.mrb[48].mxu1 }
0x141d   :  { %v6142_v2 = vadd.f32 %v6141_v63, %v14999_v41  ;;  %v6143_v61 = vpop.f32.mrb[49].mxu1 }
0x141e   :  { %v6144_v56 = vadd.f32 %v6143_v61, %v14999_v41  ;;  %v6145_v39 = vpop.f32.mrb[50].mxu1 }
0x141f   :  { %6155 = vst [vmem:[#allocation2 + $0x60] sm:$0xff] %v6142_v2  ;;  %v6146_v38 = vadd.f32 %v6145_v39, %v15000_v51  ;;  %v6147_v50 = vpop.f32.mrb[51].mxu1 }
0x1420   :  { %6156 = vst [vmem:[#allocation2 + $0x68] sm:$0xff] %v6144_v56  ;;  %v6148_v55 = vadd.f32 %v6147_v50, %v15000_v51 }
0x1421   :  { %6157 = vst [vmem:[#allocation2 + $0x70] sm:$0xff] %v6146_v38 }
0x1422   :  { %6158 = vst [vmem:[#allocation2 + $0x78] sm:$0xff] %v6148_v55 }
0x1423   :  { %7432 = shalt.err (!%p7429_p4)
}
0x1424   :  { %s7433_s13 = scalar_lea.hbm %s13500_s5, 2048 }
0x1425   :  { %p7434_p5 = scmp.ne.s32.totalorder %s13500_s5, %s7433_s13  ;;  %p7437_p6 = scmp.lt.u32.totalorder %s7433_s13, %s13500_s5 }
0x1427   :  { %p7439_p7 = pnand %p7437_p6, %p7434_p5 }
0x1429   :  { %7442 = shalt.err (!%p7439_p7)
}
0x142a   :  { %s7447_s17 = smov 256   ;;  %s7448_s18 = smov 16  }
0x142b   :  { %6170 = dma.vmem_to_hbm [thread:$0]  %s6165_s9, 2048, %s13500_s5, [#allocation3], %s7447_s17, %s7447_s17, %s7448_s18  }
0x142c   :  { %7443 = dma.done.wait [#allocation3], 2048  }
0x142d   :  { %7444 = vsyncadd [#allocation3], 4294965248 }
0x142e   :  { %6174 = vsyncpa [#allocation3], 1 }

</bundles_post_ra>
